<compile_context>
chip_gen: v7x
topology: tpu7x:2x2x1
jax: 0.10.0
libtpu: 0.0.40
codegen_flags: <defaults>
</compile_context>

<pallas_src>
import functools

import jax
import jax.numpy as jnp
from jax.experimental import pallas as pl
from jax.experimental.pallas import tpu as pltpu

CLASS_LIST = ["duck", "goose", "swan", "heron"]
NUM_CLASSES = len(CLASS_LIST) + 1          # + background, matching torchvision SSD
NUM_ANCHORS = 4
IMAGE_SIZE = 32
TOPK = 10


def _round_up(x, m):
    return (x + m - 1) // m * m


def _pick_tm(m):
    """Row-tile size: big tiles for big M, otherwise split into >=2 tiles."""
    m16 = _round_up(m, 16)
    if m16 >= 512:
        return 256
    if m16 >= 256:
        return 128
    return max(16, _round_up(m16 // 2, 16))


# ---------------------------- Pallas kernels ----------------------------

def _mm_bias_act_kernel(a_ref, w_ref, b_ref, o_ref, *, relu):
    # Full-K / full-N block per M tile: single MXU pass, f32 accumulate,
    # fused bias (+ ReLU) epilogue in f32.
    acc = jnp.dot(a_ref[...], w_ref[...], preferred_element_type=jnp.float32)
    acc = acc + b_ref[...].astype(jnp.float32)
    if relu:
        acc = jnp.maximum(acc, 0.0)
    o_ref[...] = acc.astype(o_ref.dtype)


def matmul_bias_act(a, w, b, relu, out_dtype):
    """(M, K) @ (K, N) + b, optional ReLU.  K and N are tiny for this net, so
    each grid step loads the full K / full N; no reduction axis, no scratch."""
    M, K = a.shape
    K2, N = w.shape
    assert K == K2
    tm = _pick_tm(M)
    Mp = _round_up(M, tm)
    if Mp != M:
        a = jnp.pad(a, ((0, Mp - M), (0, 0)))
    out = pl.pallas_call(
        functools.partial(_mm_bias_act_kernel, relu=relu),
        out_shape=jax.ShapeDtypeStruct((Mp, N), out_dtype),
        grid_spec=pltpu.PrefetchScalarGridSpec(
            num_scalar_prefetch=0,
            grid=(Mp // tm,),
            in_specs=[
                pl.BlockSpec((tm, K), lambda i: (i, 0)),
                pl.BlockSpec((K, N), lambda i: (0, 0)),
                pl.BlockSpec((1, N), lambda i: (0, 0)),
            ],
            out_specs=pl.BlockSpec((tm, N), lambda i: (i, 0)),
        ),
        compiler_params=pltpu.CompilerParams(
            dimension_semantics=("parallel",)),
    )(a.astype(jnp.bfloat16), w.astype(jnp.bfloat16),
      b.reshape(1, N).astype(jnp.float32))
    return out[:M] if Mp != M else out


def _pool_kernel(x_ref, o_ref, *, c):
    # x: (N*H/2, 2, W/2, 2*C) -- a pure (free) reshape of the NHWC feature map.
    x = x_ref[...]
    m = jnp.maximum(x[:, 0], x[:, 1])                   # max over the 2 pooled rows
    o_ref[...] = jnp.maximum(m[..., :c], m[..., c:])    # max over the 2 pooled cols


def maxpool2x2(x):
    """2x2 / stride-2 max pool on NHWC, single whole-array Pallas kernel."""
    N, H, W, C = x.shape
    H2, W2 = H // 2, W // 2
    xr = x.reshape(N * H2, 2, W2, 2 * C)          # pure reshape, no data movement
    out = pl.pallas_call(
        functools.partial(_pool_kernel, c=C),
        out_shape=jax.ShapeDtypeStruct((N * H2, W2, C), x.dtype),
    )(xr)
    return out.reshape(N, H2, W2, C)


def _postprocess_kernel(logit_ref, delta_ref, anchor_ref,
                        score_ref, label_ref, box_ref):
    # per-anchor softmax over classes, background (class 0) masked out
    l = logit_ref[...].astype(jnp.float32)               # (R, NUM_CLASSES)
    m = jnp.max(l, axis=-1, keepdims=True)
    e = jnp.exp(l - m)
    p = e / jnp.sum(e, axis=-1, keepdims=True)
    ids = jax.lax.broadcasted_iota(jnp.int32, p.shape, 1)
    p_fg = jnp.where(ids == 0, -1.0, p)                  # mask background
    s = jnp.max(p_fg, axis=-1, keepdims=True)
    score_ref[...] = s
    label_ref[...] = jnp.min(jnp.where(p_fg >= s, ids, jnp.int32(2 ** 30)),
                             axis=-1, keepdims=True)
    # box decoding, torchvision SSD BoxCoder weights (10, 10, 5, 5)
    d = delta_ref[...]
    a = anchor_ref[...]
    ctr = a[:, 0:2] + d[:, 0:2] * (a[:, 2:4] * 0.1)
    wh = a[:, 2:4] * jnp.exp(d[:, 2:4] * 0.2)
    boxes = jnp.concatenate([ctr - 0.5 * wh, ctr + 0.5 * wh], axis=-1)
    box_ref[...] = jnp.clip(boxes, 0.0, float(IMAGE_SIZE))


def postprocess(logits, deltas, anchors):
    """Fused softmax + argmax + box decode for all N*T anchors in one launch."""
    R = logits.shape[0]
    scores, labels, boxes = pl.pallas_call(
        _postprocess_kernel,
        out_shape=(jax.ShapeDtypeStruct((R, 1), jnp.float32),
                   jax.ShapeDtypeStruct((R, 1), jnp.int32),
                   jax.ShapeDtypeStruct((R, 4), jnp.float32)),
    )(logits, deltas, anchors)
    return scores[:, 0], labels[:, 0], boxes


# ------------------- conv = fused-XLA im2col + Pallas matmul -------------------

def _extract_patches(x, kh, kw, stride, padding):
    """im2col as ONE fused XLA op (identity-kernel conv).

    Output feature ordering is (kh, kw, c) row-major by construction, matching
    w.transpose(2, 3, 1, 0).reshape(kh*kw*C, OutC)."""
    N, H, W, C = x.shape
    K = kh * kw * C
    eye = jnp.eye(K, dtype=x.dtype).reshape(kh, kw, C, K)
    return jax.lax.conv_general_dilated(
        x, eye, window_strides=(stride, stride),
        padding=[(padding, padding), (padding, padding)],
        dimension_numbers=("NHWC", "HWIO", "NHWC"))


def _w2mat(w):
    """(OutC, InC, KH, KW) PyTorch layout -> (KH*KW*InC, OutC) matmul layout."""
    return jnp.transpose(w, (2, 3, 1, 0)).reshape(-1, w.shape[0])


def conv2d(x, w, b, stride=1, padding=1, relu=True, out_dtype=jnp.bfloat16):
    N = x.shape[0]
    OutC, InC, KH, KW = w.shape
    patches = _extract_patches(x, KH, KW, stride, padding)   # (N, OH, OW, KH*KW*InC)
    _, OH, OW, K = patches.shape
    out = matmul_bias_act(patches.reshape(N * OH * OW, K), _w2mat(w), b,
                          relu, out_dtype)
    return out.reshape(N, OH, OW, OutC)


def fused_heads(f1, f2, params):
    """All four head convs (cls1/reg1/cls2/reg2) as ONE Pallas matmul:
    f1/f2 patch rows merged along M (shared K=576), weights merged along N."""
    N = f1.shape[0]
    p1 = _extract_patches(f1, 3, 3, 1, 1)       # (N, 8, 8, 576)
    p2 = _extract_patches(f2, 3, 3, 1, 1)       # (N, 4, 4, 576)
    K = p1.shape[-1]
    m1 = N * p1.shape[1] * p1.shape[2]
    m2 = N * p2.shape[1] * p2.shape[2]
    a = jnp.concatenate([p1.reshape(m1, K), p2.reshape(m2, K)], axis=0)
    w_all = jnp.concatenate([_w2mat(params["cls1_w"]), _w2mat(params["reg1_w"]),
                             _w2mat(params["cls2_w"]), _w2mat(params["reg2_w"])],
                            axis=1)
    b_all = jnp.concatenate([params["cls1_b"], params["reg1_b"],
                             params["cls2_b"], params["reg2_b"]])
    out = matmul_bias_act(a, w_all, b_all, relu=False, out_dtype=jnp.float32)
    nc, na = NUM_CLASSES, NUM_ANCHORS
    c_cols, r_cols = na * nc, na * 4
    c1 = out[:m1, :c_cols]
    r1 = out[:m1, c_cols:c_cols + r_cols]
    c2 = out[m1:, c_cols + r_cols:2 * c_cols + r_cols]
    r2 = out[m1:, 2 * c_cols + r_cols:]
    # TODO(synk): torchvision SSD's head channel interleaving is (A, C) after an
    # NCHW permute; with random init we keep the simpler anchor-major NHWC order.
    logits = jnp.concatenate([c1.reshape(N, -1, nc), c2.reshape(N, -1, nc)], axis=1)
    deltas = jnp.concatenate([r1.reshape(N, -1, 4), r2.reshape(N, -1, 4)], axis=1)
    return logits, deltas, (p1.shape[1], p1.shape[2]), (p2.shape[1], p2.shape[2])


# ---------------------------- SSD-style glue ----------------------------

def make_anchors(fh, fw, image_size, scale):
    ys = (jnp.arange(fh, dtype=jnp.float32) + 0.5) * image_size / fh
    xs = (jnp.arange(fw, dtype=jnp.float32) + 0.5) * image_size / fw
    cy, cx = jnp.meshgrid(ys, xs, indexing="ij")
    shapes = [(scale, scale), (1.4 * scale, 1.4 * scale),
              (1.414 * scale, scale / 1.414), (scale / 1.414, 1.414 * scale)]
    per = []
    for (aw, ah) in shapes:
        per.append(jnp.stack([cx, cy,
                              jnp.full_like(cx, aw),
                              jnp.full_like(cx, ah)], axis=-1))
    return jnp.stack(per, axis=2).reshape(-1, 4)       # (fh*fw*A, 4) = (cx,cy,w,h)


def init_params(key):
    def conv_p(k, outc, inc, ks=3):
        kw, kb = jax.random.split(k)
        w = 0.05 * jax.random.normal(kw, (outc, inc, ks, ks), jnp.float32)
        b = 0.01 * jax.random.normal(kb, (outc,), jnp.float32)
        return w, b

    ks = jax.random.split(key, 8)
    p = {}
    p["c1_w"], p["c1_b"] = conv_p(ks[0], 16, 3)
    p["c2_w"], p["c2_b"] = conv_p(ks[1], 32, 16)
    p["c3_w"], p["c3_b"] = conv_p(ks[2], 64, 32)
    p["c4_w"], p["c4_b"] = conv_p(ks[3], 64, 64)
    p["cls1_w"], p["cls1_b"] = conv_p(ks[4], NUM_ANCHORS * NUM_CLASSES, 64)
    p["reg1_w"], p["reg1_b"] = conv_p(ks[5], NUM_ANCHORS * 4, 64)
    p["cls2_w"], p["cls2_b"] = conv_p(ks[6], NUM_ANCHORS * NUM_CLASSES, 64)
    p["reg2_w"], p["reg2_b"] = conv_p(ks[7], NUM_ANCHORS * 4, 64)
    return p


def duck_detector_forward(params, x_nchw):
    """DuckDetector.forward: list of per-image dicts {'boxes','labels','scores'}."""
    N = x_nchw.shape[0]
    # NCHW -> NHWC; activations kept in bf16 for MXU speed / half DMA bytes
    # (all accumulation and epilogue math stays f32 inside the kernels).
    x = jnp.transpose(x_nchw, (0, 2, 3, 1)).astype(jnp.bfloat16)

    # VGG-ish backbone
    h = conv2d(x, params["c1_w"], params["c1_b"])                 # (N, 32, 32, 16)
    h = maxpool2x2(h)                                             # (N, 16, 16, 16)
    h = conv2d(h, params["c2_w"], params["c2_b"])                 # (N, 16, 16, 32)
    h = maxpool2x2(h)                                             # (N,  8,  8, 32)
    f1 = conv2d(h, params["c3_w"], params["c3_b"])                # (N,  8,  8, 64)
    f2 = conv2d(f1, params["c4_w"], params["c4_b"], stride=2)     # (N,  4,  4, 64)

    logits, deltas, (fh1, fw1), (fh2, fw2) = fused_heads(f1, f2, params)
    anchors = jnp.concatenate([make_anchors(fh1, fw1, IMAGE_SIZE, 8.0),
                               make_anchors(fh2, fw2, IMAGE_SIZE, 16.0)], axis=0)
    T = anchors.shape[0]

    scores, labels, boxes = postprocess(
        logits.reshape(N * T, NUM_CLASSES).astype(jnp.float32),
        deltas.reshape(N * T, 4).astype(jnp.float32),
        jnp.tile(anchors, (N, 1)))
    scores = scores.reshape(N, T)
    labels = labels.reshape(N, T)
    boxes = boxes.reshape(N, T, 4)

    # TODO(synk): torchvision SSD applies score thresholding + per-class NMS here;
    # NMS is data-dependent (dynamic output size) with no clean Pallas equivalent,
    # so we return the top-K detections by score instead.
    k = min(TOPK, T)
    top_scores, idx = jax.lax.top_k(scores, k)                     # batched over N
    top_boxes = jnp.take_along_axis(boxes, idx[..., None], axis=1)
    top_labels = jnp.take_along_axis(labels, idx, axis=1)
    return [{"boxes": top_boxes[i], "labels": top_labels[i], "scores": top_scores[i]}
            for i in range(N)]


if __name__ == "__main__":
    key = jax.random.PRNGKey(0)
    kp, kx = jax.random.split(key)
    params = init_params(kp)
    x = jax.random.normal(kx, (2, 3, IMAGE_SIZE, IMAGE_SIZE), jnp.float32)
    fwd = jax.jit(duck_detector_forward)
    results = fwd(params, x)
    for r in results:
        jax.block_until_ready(r["boxes"])
        jax.block_until_ready(r["labels"])
        jax.block_until_ready(r["scores"])
    print("KERNEL_OK")
</pallas_src>

<mosaic_0001>
module attributes {stable_mosaic.version = 11 : i64} {
  func.func @_mm_bias_act_kernel(%arg0: i32, %arg1: memref<256x27xbf16, #tpu.memory_space<vmem>>, %arg2: memref<27x16xbf16, #tpu.memory_space<vmem>>, %arg3: memref<1x16xf32, #tpu.memory_space<vmem>>, %arg4: memref<256x16xbf16, #tpu.memory_space<vmem>>) attributes {dimension_semantics = [#tpu.dimension_semantics<parallel>], iteration_bounds = array<i64: 8>, scalar_prefetch = 0 : i64, scratch_operands = 0 : i64, tpu.core_type = #tpu.core_type<tc>, window_params = [{transform_indices = @transform_0, window_bounds = array<i64: 256, 27>}, {pipeline_mode = #tpu.pipeline_mode<synchronous>, transform_indices = @transform_1, window_bounds = array<i64: 27, 16>}, {pipeline_mode = #tpu.pipeline_mode<synchronous>, transform_indices = @transform_2, window_bounds = array<i64: 1, 16>}, {transform_indices = @transform_3, window_bounds = array<i64: 256, 16>}]} {
    %c0 = arith.constant 0 : index
    %c0_0 = arith.constant 0 : index
    %0 = vector.load %arg1[%c0, %c0_0] : memref<256x27xbf16, #tpu.memory_space<vmem>>, vector<256x27xbf16>
    %c0_1 = arith.constant 0 : index
    %c0_2 = arith.constant 0 : index
    %1 = vector.load %arg2[%c0_1, %c0_2] : memref<27x16xbf16, #tpu.memory_space<vmem>>, vector<27x16xbf16>
    %cst = arith.constant dense<0.000000e+00> : vector<256x16xf32>
    %2 = tpu.matmul %0, %1, %cst {dimension_numbers = #tpu.dot_dimension_numbers<[1], [0], [0], [1], [0, 0, 1, 1], [], []>} : vector<256x27xbf16>, vector<27x16xbf16>, vector<256x16xf32> -> vector<256x16xf32>
    %c0_3 = arith.constant 0 : index
    %c0_4 = arith.constant 0 : index
    %3 = vector.load %arg3[%c0_3, %c0_4] : memref<1x16xf32, #tpu.memory_space<vmem>>, vector<1x16xf32>
    %4 = vector.broadcast %3 : vector<1x16xf32> to vector<256x16xf32>
    %5 = arith.addf %2, %4 : vector<256x16xf32>
    %cst_5 = arith.constant 0.000000e+00 : f32
    %6 = vector.broadcast %cst_5 : f32 to vector<256x16xf32>
    %7 = arith.maximumf %5, %6 : vector<256x16xf32>
    %8 = arith.truncf %7 : vector<256x16xf32> to vector<256x16xbf16>
    %c0_6 = arith.constant 0 : index
    %c0_7 = arith.constant 0 : index
    %9 = vector.load %arg4[%c0_6, %c0_7] : memref<256x16xbf16, #tpu.memory_space<vmem>>, vector<256x16xbf16>
    tpu.vector_store %arg4[%c0_6, %c0_7], %8 {strides = array<i32>} : memref<256x16xbf16, #tpu.memory_space<vmem>>, vector<256x16xbf16>,
    return
  }
  func.func @transform_0(%arg0: i32) -> (i32, i32) {
    %c0_i32 = arith.constant 0 : i32
    %c0_i32_0 = arith.constant 0 : i32
    return %arg0, %c0_i32 : i32, i32
  }
  func.func @transform_1(%arg0: i32) -> (i32, i32) {
    %c0_i32 = arith.constant 0 : i32
    %c0_i32_0 = arith.constant 0 : i32
    %c0_i32_1 = arith.constant 0 : i32
    return %c0_i32, %c0_i32_0 : i32, i32
  }
  func.func @transform_2(%arg0: i32) -> (i32, i32) {
    %c0_i32 = arith.constant 0 : i32
    %c0_i32_0 = arith.constant 0 : i32
    %c0_i32_1 = arith.constant 0 : i32
    return %c0_i32, %c0_i32_0 : i32, i32
  }
  func.func @transform_3(%arg0: i32) -> (i32, i32) {
    %c0_i32 = arith.constant 0 : i32
    %c0_i32_0 = arith.constant 0 : i32
    return %arg0, %c0_i32 : i32, i32
  }
}

module attributes {stable_mosaic.version = 11 : i64} {
  func.func @_pool_kernel(%arg0: memref<32x2x16x32xbf16, #tpu.memory_space<vmem>>, %arg1: memref<32x16x16xbf16, #tpu.memory_space<vmem>>) attributes {dimension_semantics = [], scalar_prefetch = 0 : i64, scratch_operands = 0 : i64, tpu.core_type = #tpu.core_type<tc>} {
    %c0 = arith.constant 0 : index
    %c0_0 = arith.constant 0 : index
    %c0_1 = arith.constant 0 : index
    %c0_2 = arith.constant 0 : index
    %0 = vector.load %arg0[%c0, %c0_0, %c0_1, %c0_2] : memref<32x2x16x32xbf16, #tpu.memory_space<vmem>>, vector<32x2x16x32xbf16>
    %1 = vector.extract_strided_slice %0 {offsets = [0, 0, 0, 0], sizes = [32, 1, 16, 32], strides = [1, 1, 1, 1]} : vector<32x2x16x32xbf16> to vector<32x1x16x32xbf16>
    %2 = vector.shape_cast %1 : vector<32x1x16x32xbf16> to vector<32x16x32xbf16>
    %3 = vector.extract_strided_slice %0 {offsets = [0, 1, 0, 0], sizes = [32, 1, 16, 32], strides = [1, 1, 1, 1]} : vector<32x2x16x32xbf16> to vector<32x1x16x32xbf16>
    %4 = vector.shape_cast %3 : vector<32x1x16x32xbf16> to vector<32x16x32xbf16>
    %5 = arith.maximumf %2, %4 : vector<32x16x32xbf16>
    %6 = vector.extract_strided_slice %5 {offsets = [0, 0, 0], sizes = [32, 16, 16], strides = [1, 1, 1]} : vector<32x16x32xbf16> to vector<32x16x16xbf16>
    %7 = vector.extract_strided_slice %5 {offsets = [0, 0, 16], sizes = [32, 16, 16], strides = [1, 1, 1]} : vector<32x16x32xbf16> to vector<32x16x16xbf16>
    %8 = arith.maximumf %6, %7 : vector<32x16x16xbf16>
    %c0_3 = arith.constant 0 : index
    %c0_4 = arith.constant 0 : index
    %c0_5 = arith.constant 0 : index
    %9 = vector.load %arg1[%c0_3, %c0_4, %c0_5] : memref<32x16x16xbf16, #tpu.memory_space<vmem>>, vector<32x16x16xbf16>
    tpu.vector_store %arg1[%c0_3, %c0_4, %c0_5], %8 {strides = array<i32>} : memref<32x16x16xbf16, #tpu.memory_space<vmem>>, vector<32x16x16xbf16>,
    return
  }
}

module attributes {stable_mosaic.version = 11 : i64} {
  func.func @_mm_bias_act_kernel(%arg0: i32, %arg1: memref<256x144xbf16, #tpu.memory_space<vmem>>, %arg2: memref<144x32xbf16, #tpu.memory_space<vmem>>, %arg3: memref<1x32xf32, #tpu.memory_space<vmem>>, %arg4: memref<256x32xbf16, #tpu.memory_space<vmem>>) attributes {dimension_semantics = [#tpu.dimension_semantics<parallel>], iteration_bounds = array<i64: 2>, scalar_prefetch = 0 : i64, scratch_operands = 0 : i64, tpu.core_type = #tpu.core_type<tc>, window_params = [{transform_indices = @transform_0, window_bounds = array<i64: 256, 144>}, {pipeline_mode = #tpu.pipeline_mode<synchronous>, transform_indices = @transform_1, window_bounds = array<i64: 144, 32>}, {pipeline_mode = #tpu.pipeline_mode<synchronous>, transform_indices = @transform_2, window_bounds = array<i64: 1, 32>}, {transform_indices = @transform_3, window_bounds = array<i64: 256, 32>}]} {
    %c0 = arith.constant 0 : index
    %c0_0 = arith.constant 0 : index
    %0 = vector.load %arg1[%c0, %c0_0] : memref<256x144xbf16, #tpu.memory_space<vmem>>, vector<256x144xbf16>
    %c0_1 = arith.constant 0 : index
    %c0_2 = arith.constant 0 : index
    %1 = vector.load %arg2[%c0_1, %c0_2] : memref<144x32xbf16, #tpu.memory_space<vmem>>, vector<144x32xbf16>
    %cst = arith.constant dense<0.000000e+00> : vector<256x32xf32>
    %2 = tpu.matmul %0, %1, %cst {dimension_numbers = #tpu.dot_dimension_numbers<[1], [0], [0], [1], [0, 0, 1, 1], [], []>} : vector<256x144xbf16>, vector<144x32xbf16>, vector<256x32xf32> -> vector<256x32xf32>
    %c0_3 = arith.constant 0 : index
    %c0_4 = arith.constant 0 : index
    %3 = vector.load %arg3[%c0_3, %c0_4] : memref<1x32xf32, #tpu.memory_space<vmem>>, vector<1x32xf32>
    %4 = vector.broadcast %3 : vector<1x32xf32> to vector<256x32xf32>
    %5 = arith.addf %2, %4 : vector<256x32xf32>
    %cst_5 = arith.constant 0.000000e+00 : f32
    %6 = vector.broadcast %cst_5 : f32 to vector<256x32xf32>
    %7 = arith.maximumf %5, %6 : vector<256x32xf32>
    %8 = arith.truncf %7 : vector<256x32xf32> to vector<256x32xbf16>
    %c0_6 = arith.constant 0 : index
    %c0_7 = arith.constant 0 : index
    %9 = vector.load %arg4[%c0_6, %c0_7] : memref<256x32xbf16, #tpu.memory_space<vmem>>, vector<256x32xbf16>
    tpu.vector_store %arg4[%c0_6, %c0_7], %8 {strides = array<i32>} : memref<256x32xbf16, #tpu.memory_space<vmem>>, vector<256x32xbf16>,
    return
  }
  func.func @transform_0(%arg0: i32) -> (i32, i32) {
    %c0_i32 = arith.constant 0 : i32
    %c0_i32_0 = arith.constant 0 : i32
    return %arg0, %c0_i32 : i32, i32
  }
  func.func @transform_1(%arg0: i32) -> (i32, i32) {
    %c0_i32 = arith.constant 0 : i32
    %c0_i32_0 = arith.constant 0 : i32
    %c0_i32_1 = arith.constant 0 : i32
    return %c0_i32, %c0_i32_0 : i32, i32
  }
  func.func @transform_2(%arg0: i32) -> (i32, i32) {
    %c0_i32 = arith.constant 0 : i32
    %c0_i32_0 = arith.constant 0 : i32
    %c0_i32_1 = arith.constant 0 : i32
    return %c0_i32, %c0_i32_0 : i32, i32
  }
  func.func @transform_3(%arg0: i32) -> (i32, i32) {
    %c0_i32 = arith.constant 0 : i32
    %c0_i32_0 = arith.constant 0 : i32
    return %arg0, %c0_i32 : i32, i32
  }
}

module attributes {stable_mosaic.version = 11 : i64} {
  func.func @_pool_kernel(%arg0: memref<16x2x8x64xbf16, #tpu.memory_space<vmem>>, %arg1: memref<16x8x32xbf16, #tpu.memory_space<vmem>>) attributes {dimension_semantics = [], scalar_prefetch = 0 : i64, scratch_operands = 0 : i64, tpu.core_type = #tpu.core_type<tc>} {
    %c0 = arith.constant 0 : index
    %c0_0 = arith.constant 0 : index
    %c0_1 = arith.constant 0 : index
    %c0_2 = arith.constant 0 : index
    %0 = vector.load %arg0[%c0, %c0_0, %c0_1, %c0_2] : memref<16x2x8x64xbf16, #tpu.memory_space<vmem>>, vector<16x2x8x64xbf16>
    %1 = vector.extract_strided_slice %0 {offsets = [0, 0, 0, 0], sizes = [16, 1, 8, 64], strides = [1, 1, 1, 1]} : vector<16x2x8x64xbf16> to vector<16x1x8x64xbf16>
    %2 = vector.shape_cast %1 : vector<16x1x8x64xbf16> to vector<16x8x64xbf16>
    %3 = vector.extract_strided_slice %0 {offsets = [0, 1, 0, 0], sizes = [16, 1, 8, 64], strides = [1, 1, 1, 1]} : vector<16x2x8x64xbf16> to vector<16x1x8x64xbf16>
    %4 = vector.shape_cast %3 : vector<16x1x8x64xbf16> to vector<16x8x64xbf16>
    %5 = arith.maximumf %2, %4 : vector<16x8x64xbf16>
    %6 = vector.extract_strided_slice %5 {offsets = [0, 0, 0], sizes = [16, 8, 32], strides = [1, 1, 1]} : vector<16x8x64xbf16> to vector<16x8x32xbf16>
    %7 = vector.extract_strided_slice %5 {offsets = [0, 0, 32], sizes = [16, 8, 32], strides = [1, 1, 1]} : vector<16x8x64xbf16> to vector<16x8x32xbf16>
    %8 = arith.maximumf %6, %7 : vector<16x8x32xbf16>
    %c0_3 = arith.constant 0 : index
    %c0_4 = arith.constant 0 : index
    %c0_5 = arith.constant 0 : index
    %9 = vector.load %arg1[%c0_3, %c0_4, %c0_5] : memref<16x8x32xbf16, #tpu.memory_space<vmem>>, vector<16x8x32xbf16>
    tpu.vector_store %arg1[%c0_3, %c0_4, %c0_5], %8 {strides = array<i32>} : memref<16x8x32xbf16, #tpu.memory_space<vmem>>, vector<16x8x32xbf16>,
    return
  }
}

module attributes {stable_mosaic.version = 11 : i64} {
  func.func @_mm_bias_act_kernel(%arg0: i32, %arg1: memref<64x288xbf16, #tpu.memory_space<vmem>>, %arg2: memref<288x64xbf16, #tpu.memory_space<vmem>>, %arg3: memref<1x64xf32, #tpu.memory_space<vmem>>, %arg4: memref<64x64xbf16, #tpu.memory_space<vmem>>) attributes {dimension_semantics = [#tpu.dimension_semantics<parallel>], iteration_bounds = array<i64: 2>, scalar_prefetch = 0 : i64, scratch_operands = 0 : i64, tpu.core_type = #tpu.core_type<tc>, window_params = [{transform_indices = @transform_0, window_bounds = array<i64: 64, 288>}, {pipeline_mode = #tpu.pipeline_mode<synchronous>, transform_indices = @transform_1, window_bounds = array<i64: 288, 64>}, {pipeline_mode = #tpu.pipeline_mode<synchronous>, transform_indices = @transform_2, window_bounds = array<i64: 1, 64>}, {transform_indices = @transform_3, window_bounds = array<i64: 64, 64>}]} {
    %c0 = arith.constant 0 : index
    %c0_0 = arith.constant 0 : index
    %0 = vector.load %arg1[%c0, %c0_0] : memref<64x288xbf16, #tpu.memory_space<vmem>>, vector<64x288xbf16>
    %c0_1 = arith.constant 0 : index
    %c0_2 = arith.constant 0 : index
    %1 = vector.load %arg2[%c0_1, %c0_2] : memref<288x64xbf16, #tpu.memory_space<vmem>>, vector<288x64xbf16>
    %cst = arith.constant dense<0.000000e+00> : vector<64x64xf32>
    %2 = tpu.matmul %0, %1, %cst {dimension_numbers = #tpu.dot_dimension_numbers<[1], [0], [0], [1], [0, 0, 1, 1], [], []>} : vector<64x288xbf16>, vector<288x64xbf16>, vector<64x64xf32> -> vector<64x64xf32>
    %c0_3 = arith.constant 0 : index
    %c0_4 = arith.constant 0 : index
    %3 = vector.load %arg3[%c0_3, %c0_4] : memref<1x64xf32, #tpu.memory_space<vmem>>, vector<1x64xf32>
    %4 = vector.broadcast %3 : vector<1x64xf32> to vector<64x64xf32>
    %5 = arith.addf %2, %4 : vector<64x64xf32>
    %cst_5 = arith.constant 0.000000e+00 : f32
    %6 = vector.broadcast %cst_5 : f32 to vector<64x64xf32>
    %7 = arith.maximumf %5, %6 : vector<64x64xf32>
    %8 = arith.truncf %7 : vector<64x64xf32> to vector<64x64xbf16>
    %c0_6 = arith.constant 0 : index
    %c0_7 = arith.constant 0 : index
    %9 = vector.load %arg4[%c0_6, %c0_7] : memref<64x64xbf16, #tpu.memory_space<vmem>>, vector<64x64xbf16>
    tpu.vector_store %arg4[%c0_6, %c0_7], %8 {strides = array<i32>} : memref<64x64xbf16, #tpu.memory_space<vmem>>, vector<64x64xbf16>,
    return
  }
  func.func @transform_0(%arg0: i32) -> (i32, i32) {
    %c0_i32 = arith.constant 0 : i32
    %c0_i32_0 = arith.constant 0 : i32
    return %arg0, %c0_i32 : i32, i32
  }
  func.func @transform_1(%arg0: i32) -> (i32, i32) {
    %c0_i32 = arith.constant 0 : i32
    %c0_i32_0 = arith.constant 0 : i32
    %c0_i32_1 = arith.constant 0 : i32
    return %c0_i32, %c0_i32_0 : i32, i32
  }
  func.func @transform_2(%arg0: i32) -> (i32, i32) {
    %c0_i32 = arith.constant 0 : i32
    %c0_i32_0 = arith.constant 0 : i32
    %c0_i32_1 = arith.constant 0 : i32
    return %c0_i32, %c0_i32_0 : i32, i32
  }
  func.func @transform_3(%arg0: i32) -> (i32, i32) {
    %c0_i32 = arith.constant 0 : i32
    %c0_i32_0 = arith.constant 0 : i32
    return %arg0, %c0_i32 : i32, i32
  }
}

module attributes {stable_mosaic.version = 11 : i64} {
  func.func @_mm_bias_act_kernel(%arg0: i32, %arg1: memref<16x576xbf16, #tpu.memory_space<vmem>>, %arg2: memref<576x64xbf16, #tpu.memory_space<vmem>>, %arg3: memref<1x64xf32, #tpu.memory_space<vmem>>, %arg4: memref<16x64xbf16, #tpu.memory_space<vmem>>) attributes {dimension_semantics = [#tpu.dimension_semantics<parallel>], iteration_bounds = array<i64: 2>, scalar_prefetch = 0 : i64, scratch_operands = 0 : i64, tpu.core_type = #tpu.core_type<tc>, window_params = [{transform_indices = @transform_0, window_bounds = array<i64: 16, 576>}, {pipeline_mode = #tpu.pipeline_mode<synchronous>, transform_indices = @transform_1, window_bounds = array<i64: 576, 64>}, {pipeline_mode = #tpu.pipeline_mode<synchronous>, transform_indices = @transform_2, window_bounds = array<i64: 1, 64>}, {transform_indices = @transform_3, window_bounds = array<i64: 16, 64>}]} {
    %c0 = arith.constant 0 : index
    %c0_0 = arith.constant 0 : index
    %0 = vector.load %arg1[%c0, %c0_0] : memref<16x576xbf16, #tpu.memory_space<vmem>>, vector<16x576xbf16>
    %c0_1 = arith.constant 0 : index
    %c0_2 = arith.constant 0 : index
    %1 = vector.load %arg2[%c0_1, %c0_2] : memref<576x64xbf16, #tpu.memory_space<vmem>>, vector<576x64xbf16>
    %cst = arith.constant dense<0.000000e+00> : vector<16x64xf32>
    %2 = tpu.matmul %0, %1, %cst {dimension_numbers = #tpu.dot_dimension_numbers<[1], [0], [0], [1], [0, 0, 1, 1], [], []>} : vector<16x576xbf16>, vector<576x64xbf16>, vector<16x64xf32> -> vector<16x64xf32>
    %c0_3 = arith.constant 0 : index
    %c0_4 = arith.constant 0 : index
    %3 = vector.load %arg3[%c0_3, %c0_4] : memref<1x64xf32, #tpu.memory_space<vmem>>, vector<1x64xf32>
    %4 = vector.broadcast %3 : vector<1x64xf32> to vector<16x64xf32>
    %5 = arith.addf %2, %4 : vector<16x64xf32>
    %cst_5 = arith.constant 0.000000e+00 : f32
    %6 = vector.broadcast %cst_5 : f32 to vector<16x64xf32>
    %7 = arith.maximumf %5, %6 : vector<16x64xf32>
    %8 = arith.truncf %7 : vector<16x64xf32> to vector<16x64xbf16>
    %c0_6 = arith.constant 0 : index
    %c0_7 = arith.constant 0 : index
    %9 = vector.load %arg4[%c0_6, %c0_7] : memref<16x64xbf16, #tpu.memory_space<vmem>>, vector<16x64xbf16>
    tpu.vector_store %arg4[%c0_6, %c0_7], %8 {strides = array<i32>} : memref<16x64xbf16, #tpu.memory_space<vmem>>, vector<16x64xbf16>,
    return
  }
  func.func @transform_0(%arg0: i32) -> (i32, i32) {
    %c0_i32 = arith.constant 0 : i32
    %c0_i32_0 = arith.constant 0 : i32
    return %arg0, %c0_i32 : i32, i32
  }
  func.func @transform_1(%arg0: i32) -> (i32, i32) {
    %c0_i32 = arith.constant 0 : i32
    %c0_i32_0 = arith.constant 0 : i32
    %c0_i32_1 = arith.constant 0 : i32
    return %c0_i32, %c0_i32_0 : i32, i32
  }
  func.func @transform_2(%arg0: i32) -> (i32, i32) {
    %c0_i32 = arith.constant 0 : i32
    %c0_i32_0 = arith.constant 0 : i32
    %c0_i32_1 = arith.constant 0 : i32
    return %c0_i32, %c0_i32_0 : i32, i32
  }
  func.func @transform_3(%arg0: i32) -> (i32, i32) {
    %c0_i32 = arith.constant 0 : i32
    %c0_i32_0 = arith.constant 0 : i32
    return %arg0, %c0_i32 : i32, i32
  }
}

module attributes {stable_mosaic.version = 11 : i64} {
  func.func @_mm_bias_act_kernel(%arg0: i32, %arg1: memref<80x576xbf16, #tpu.memory_space<vmem>>, %arg2: memref<576x72xbf16, #tpu.memory_space<vmem>>, %arg3: memref<1x72xf32, #tpu.memory_space<vmem>>, %arg4: memref<80x72xf32, #tpu.memory_space<vmem>>) attributes {dimension_semantics = [#tpu.dimension_semantics<parallel>], iteration_bounds = array<i64: 2>, scalar_prefetch = 0 : i64, scratch_operands = 0 : i64, tpu.core_type = #tpu.core_type<tc>, window_params = [{transform_indices = @transform_0, window_bounds = array<i64: 80, 576>}, {pipeline_mode = #tpu.pipeline_mode<synchronous>, transform_indices = @transform_1, window_bounds = array<i64: 576, 72>}, {pipeline_mode = #tpu.pipeline_mode<synchronous>, transform_indices = @transform_2, window_bounds = array<i64: 1, 72>}, {transform_indices = @transform_3, window_bounds = array<i64: 80, 72>}]} {
    %c0 = arith.constant 0 : index
    %c0_0 = arith.constant 0 : index
    %0 = vector.load %arg1[%c0, %c0_0] : memref<80x576xbf16, #tpu.memory_space<vmem>>, vector<80x576xbf16>
    %c0_1 = arith.constant 0 : index
    %c0_2 = arith.constant 0 : index
    %1 = vector.load %arg2[%c0_1, %c0_2] : memref<576x72xbf16, #tpu.memory_space<vmem>>, vector<576x72xbf16>
    %cst = arith.constant dense<0.000000e+00> : vector<80x72xf32>
    %2 = tpu.matmul %0, %1, %cst {dimension_numbers = #tpu.dot_dimension_numbers<[1], [0], [0], [1], [0, 0, 1, 1], [], []>} : vector<80x576xbf16>, vector<576x72xbf16>, vector<80x72xf32> -> vector<80x72xf32>
    %c0_3 = arith.constant 0 : index
    %c0_4 = arith.constant 0 : index
    %3 = vector.load %arg3[%c0_3, %c0_4] : memref<1x72xf32, #tpu.memory_space<vmem>>, vector<1x72xf32>
    %4 = vector.broadcast %3 : vector<1x72xf32> to vector<80x72xf32>
    %5 = arith.addf %2, %4 : vector<80x72xf32>
    %c0_5 = arith.constant 0 : index
    %c0_6 = arith.constant 0 : index
    %6 = vector.load %arg4[%c0_5, %c0_6] : memref<80x72xf32, #tpu.memory_space<vmem>>, vector<80x72xf32>
    tpu.vector_store %arg4[%c0_5, %c0_6], %5 {strides = array<i32>} : memref<80x72xf32, #tpu.memory_space<vmem>>, vector<80x72xf32>,
    return
  }
  func.func @transform_0(%arg0: i32) -> (i32, i32) {
    %c0_i32 = arith.constant 0 : i32
    %c0_i32_0 = arith.constant 0 : i32
    return %arg0, %c0_i32 : i32, i32
  }
  func.func @transform_1(%arg0: i32) -> (i32, i32) {
    %c0_i32 = arith.constant 0 : i32
    %c0_i32_0 = arith.constant 0 : i32
    %c0_i32_1 = arith.constant 0 : i32
    return %c0_i32, %c0_i32_0 : i32, i32
  }
  func.func @transform_2(%arg0: i32) -> (i32, i32) {
    %c0_i32 = arith.constant 0 : i32
    %c0_i32_0 = arith.constant 0 : i32
    %c0_i32_1 = arith.constant 0 : i32
    return %c0_i32, %c0_i32_0 : i32, i32
  }
  func.func @transform_3(%arg0: i32) -> (i32, i32) {
    %c0_i32 = arith.constant 0 : i32
    %c0_i32_0 = arith.constant 0 : i32
    return %arg0, %c0_i32 : i32, i32
  }
}

module attributes {stable_mosaic.version = 11 : i64} {
  func.func @_postprocess_kernel(%arg0: memref<640x5xf32, #tpu.memory_space<vmem>>, %arg1: memref<640x4xf32, #tpu.memory_space<vmem>>, %arg2: memref<640x4xf32, #tpu.memory_space<vmem>>, %arg3: memref<640x1xf32, #tpu.memory_space<vmem>>, %arg4: memref<640x1xi32, #tpu.memory_space<vmem>>, %arg5: memref<640x4xf32, #tpu.memory_space<vmem>>) attributes {dimension_semantics = [], scalar_prefetch = 0 : i64, scratch_operands = 0 : i64, tpu.core_type = #tpu.core_type<tc>} {
    %c0 = arith.constant 0 : index
    %c0_0 = arith.constant 0 : index
    %0 = vector.load %arg0[%c0, %c0_0] : memref<640x5xf32, #tpu.memory_space<vmem>>, vector<640x5xf32>
    %cst = arith.constant dense<0xFF800000> : vector<640xf32>
    %1 = vector.multi_reduction <maximumf>, %0, %cst [1] : vector<640x5xf32> to vector<640xf32>
    %2 = vector.shape_cast %1 : vector<640xf32> to vector<640x1xf32>
    %3 = vector.broadcast %2 : vector<640x1xf32> to vector<640x5xf32>
    %4 = arith.subf %0, %3 : vector<640x5xf32>
    %5 = math.exp %4 : vector<640x5xf32>
    %cst_1 = arith.constant dense<0.000000e+00> : vector<640xf32>
    %6 = vector.multi_reduction <add>, %5, %cst_1 [1] : vector<640x5xf32> to vector<640xf32>
    %7 = vector.shape_cast %6 : vector<640xf32> to vector<640x1xf32>
    %8 = vector.broadcast %7 : vector<640x1xf32> to vector<640x5xf32>
    %9 = arith.divf %5, %8 : vector<640x5xf32>
    %10 = tpu.iota {dimensions = array<i32: 1>} : vector<640x5xi32>
    %c0_i32 = arith.constant 0 : i32
    %11 = vector.broadcast %c0_i32 : i32 to vector<640x5xi32>
    %12 = arith.cmpi eq, %10, %11 : vector<640x5xi32>
    %cst_2 = arith.constant -1.000000e+00 : f32
    %13 = vector.broadcast %cst_2 : f32 to vector<640x5xf32>
    %14 = arith.select %12, %13, %9 : vector<640x5xi1>, vector<640x5xf32>
    %cst_3 = arith.constant dense<0xFF800000> : vector<640xf32>
    %15 = vector.multi_reduction <maximumf>, %14, %cst_3 [1] : vector<640x5xf32> to vector<640xf32>
    %16 = vector.shape_cast %15 : vector<640xf32> to vector<640x1xf32>
    %c0_4 = arith.constant 0 : index
    %c0_5 = arith.constant 0 : index
    %17 = vector.load %arg3[%c0_4, %c0_5] : memref<640x1xf32, #tpu.memory_space<vmem>>, vector<640x1xf32>
    tpu.vector_store %arg3[%c0_4, %c0_5], %16 {strides = array<i32>} : memref<640x1xf32, #tpu.memory_space<vmem>>, vector<640x1xf32>,
    %18 = vector.broadcast %16 : vector<640x1xf32> to vector<640x5xf32>
    %19 = arith.cmpf oge, %14, %18 : vector<640x5xf32>
    %c1073741824_i32 = arith.constant 1073741824 : i32
    %20 = vector.broadcast %c1073741824_i32 : i32 to vector<640x5xi32>
    %21 = arith.select %19, %10, %20 : vector<640x5xi1>, vector<640x5xi32>
    %cst_6 = arith.constant dense<2147483647> : vector<640xi32>
    %22 = vector.multi_reduction <minsi>, %21, %cst_6 [1] : vector<640x5xi32> to vector<640xi32>
    %23 = vector.shape_cast %22 : vector<640xi32> to vector<640x1xi32>
    %c0_7 = arith.constant 0 : index
    %c0_8 = arith.constant 0 : index
    %24 = vector.load %arg4[%c0_7, %c0_8] : memref<640x1xi32, #tpu.memory_space<vmem>>, vector<640x1xi32>
    tpu.vector_store %arg4[%c0_7, %c0_8], %23 {strides = array<i32>} : memref<640x1xi32, #tpu.memory_space<vmem>>, vector<640x1xi32>,
    %c0_9 = arith.constant 0 : index
    %c0_10 = arith.constant 0 : index
    %25 = vector.load %arg1[%c0_9, %c0_10] : memref<640x4xf32, #tpu.memory_space<vmem>>, vector<640x4xf32>
    %c0_11 = arith.constant 0 : index
    %c0_12 = arith.constant 0 : index
    %26 = vector.load %arg2[%c0_11, %c0_12] : memref<640x4xf32, #tpu.memory_space<vmem>>, vector<640x4xf32>
    %27 = vector.extract_strided_slice %26 {offsets = [0, 0], sizes = [640, 2], strides = [1, 1]} : vector<640x4xf32> to vector<640x2xf32>
    %28 = vector.extract_strided_slice %25 {offsets = [0, 0], sizes = [640, 2], strides = [1, 1]} : vector<640x4xf32> to vector<640x2xf32>
    %29 = vector.extract_strided_slice %26 {offsets = [0, 2], sizes = [640, 2], strides = [1, 1]} : vector<640x4xf32> to vector<640x2xf32>
    %cst_13 = arith.constant 1.000000e-01 : f32
    %30 = vector.broadcast %cst_13 : f32 to vector<640x2xf32>
    %31 = arith.mulf %29, %30 : vector<640x2xf32>
    %32 = arith.mulf %28, %31 : vector<640x2xf32>
    %33 = arith.addf %27, %32 : vector<640x2xf32>
    %34 = vector.extract_strided_slice %26 {offsets = [0, 2], sizes = [640, 2], strides = [1, 1]} : vector<640x4xf32> to vector<640x2xf32>
    %35 = vector.extract_strided_slice %25 {offsets = [0, 2], sizes = [640, 2], strides = [1, 1]} : vector<640x4xf32> to vector<640x2xf32>
    %cst_14 = arith.constant 2.000000e-01 : f32
    %36 = vector.broadcast %cst_14 : f32 to vector<640x2xf32>
    %37 = arith.mulf %35, %36 : vector<640x2xf32>
    %38 = math.exp %37 : vector<640x2xf32>
    %39 = arith.mulf %34, %38 : vector<640x2xf32>
    %cst_15 = arith.constant 5.000000e-01 : f32
    %40 = vector.broadcast %cst_15 : f32 to vector<640x2xf32>
    %41 = arith.mulf %40, %39 : vector<640x2xf32>
    %42 = arith.subf %33, %41 : vector<640x2xf32>
    %cst_16 = arith.constant 5.000000e-01 : f32
    %43 = vector.broadcast %cst_16 : f32 to vector<640x2xf32>
    %44 = arith.mulf %43, %39 : vector<640x2xf32>
    %45 = arith.addf %33, %44 : vector<640x2xf32>
    %46 = tpu.concatenate %42, %45 in 1 : vector<640x2xf32>, vector<640x2xf32> -> vector<640x4xf32>
    %cst_17 = arith.constant 0.000000e+00 : f32
    %cst_18 = arith.constant 3.200000e+01 : f32
    %47 = vector.broadcast %cst_17 : f32 to vector<640x4xf32>
    %48 = arith.maximumf %47, %46 : vector<640x4xf32>
    %49 = vector.broadcast %cst_18 : f32 to vector<640x4xf32>
    %50 = arith.minimumf %49, %48 : vector<640x4xf32>
    %c0_19 = arith.constant 0 : index
    %c0_20 = arith.constant 0 : index
    %51 = vector.load %arg5[%c0_19, %c0_20] : memref<640x4xf32, #tpu.memory_space<vmem>>, vector<640x4xf32>
    tpu.vector_store %arg5[%c0_19, %c0_20], %50 {strides = array<i32>} : memref<640x4xf32, #tpu.memory_space<vmem>>, vector<640x4xf32>,
    return
  }
}

</mosaic_0001>

<bundles_post_ra>
// kernel: duck_detector_forward.8
= control target key start
LH: loop header
LB: loop body
LE: loop exit
PB: predicated region body
PF: predicated region fallthrough
CT: control target
= control target key end

     0   :  { %s999_s12 = smov 0   ;;  %s1166_s0 = inlined_call_operand.vmem [shape: bf16[2048,27], index: 0, kind: input, shape index: {}]   ;;  %s1167_s1 = inlined_call_operand.vmem [shape: bf16[27,16], index: 1, kind: input, shape index: {}]   ;;  %s1168_s2 = inlined_call_operand.vmem [shape: f32[1,16], index: 2, kind: input, shape index: {}]   ;;  %s1169_s3 = inlined_call_operand.vmem [shape: bf16[2048,16], index: 3, kind: output, shape index: {}]  }
   0x1 LB: > { %s775_s13 = sadd.s32 4294967295, %s976_s12   ;;  %p779_p0 = scmp.ge.s32.totalorder %s976_s12, 1  ;;  %s976_s12 = sphi %s999_s12, %s13_s12  }
   0x2   : > { %p138_p1 = scmp.lt.s32.totalorder %s976_s12, 9 }
   0x4   : > { %p139_p2 = pnand %p779_p0, %p138_p1 }
   0x5   : > { %v952_v0 = vld [vmem:[%s1167_s1] sm:$0xff] (!%p139_p2)   ;;  %vm358_vm0 = vcmask (!%p139_p2), 1044480   ;;  %v953_v1 = vld [vmem:[%s1167_s1 + $0x8] sm:$0x3f] (!%p139_p2)   ;;  %vm359_vm1 = vcmask (!%p139_p2), 1045504   ;;  %s780_s18 = sshll.u32 (!%p139_p2), %s775_s13, 5 }
   0x6   : > { %142 = sbr.rel (%p139_p2) target bundleno = 265 (0x109), region = 32  ;;  %903 = vmatprep.subr.bf16.mxu0 (!%p139_p2), %v952_v0  ;;  %939 = vmatprep.subr.bf16.mxu1 (!%p139_p2), %v952_v0  ;;  %v978_v2 = vmov (!%p139_p2), 65535   ;;  %p163_p3 = scmp.lt.s32.totalorder (!%p139_p2), %s780_s18, 255  ;;  %vm309_vm2 = vcmask (!%p139_p2), 220160   ;;  %v1058_v22 = vld [vmem:[%s1168_s2] ss:$0 sm:$0xff] (!%p139_p2) }
   0x7   : > { %904 = vmatpush3.bf16.msra.mxu0 (!%p139_p2), %v952_v0  ;;  %941 = vmatpush3.bf16.msra.mxu1 (!%p139_p2), %v952_v0  ;;  %v360_v3 = vsel (!%p139_p2), %vm358_vm0, 4294967295, %v978_v2  ;;  %vm686_vm3 = vcmask (!%p139_p2), 125952  }
   0x8   : > { %v361_v4 = vsel (!%p139_p2), %vm359_vm1, %v360_v3, 0 }
   0x9   : > { %v363_v5 = vand.u32 (!%p139_p2), %v953_v1, %v361_v4 }
   0xb   : > { %905 = vmatprep.subr.bf16.mxu0 (!%p139_p2), %v363_v5  ;;  %940 = vmatprep.subr.bf16.mxu1 (!%p139_p2), %v363_v5 }
   0xc   : > { %906 = vmatpush3.bf16.msra.mxu0 (!%p139_p2), %v363_v5  ;;  %942 = vmatpush3.bf16.msra.mxu1 (!%p139_p2), %v363_v5 }
   0xd   : > { %s1171_s18 = smov (!%p163_p3, %s780_s18), 255 }
   0xe   : > { %s781_s19 = sshll.u32 %s1171_s18, 2 }
   0xf   : > { %s1021_s22 = scalar_lea.vmem %s1166_s0, %s781_s19  ;;  %s1070_s27 = scalar_lea.vmem %s1169_s3, %s781_s19 }
  0x10   : > { %v954_v6 = vld [vmem:[%s1021_s22] sm:$0xff]   ;;  %v956_v8 = vld [vmem:[%s1021_s22 + $0x8] sm:$0xff]   ;;  %v958_v10 = vld [vmem:[%s1021_s22 + $0x10] sm:$0xff]  }
  0x11   : > { %v955_v7 = vld [vmem:[%s1021_s22 + $0x40] sm:$0xff]   ;;  %907 = vmatprep.mubr.msk.bf16.mxu0 %vm309_vm2, %v954_v6  ;;  %v957_v9 = vld [vmem:[%s1021_s22 + $0x48] sm:$0xff]   ;;  %v959_v11 = vld [vmem:[%s1021_s22 + $0x50] sm:$0xff]  }
  0x12   : > { %923 = vmatprep.mubr.msk.bf16.mxu1 %vm309_vm2, %v955_v7  ;;  %908 = vmatmul.mubr.msk.bf16.vlgmr.msra.gmra.mrb[0].mxu0 %vm309_vm2, %v956_v8  ;;  %v960_v12 = vld [vmem:[%s1021_s22 + $0x18] sm:$0xff]   ;;  %v962_v14 = vld [vmem:[%s1021_s22 + $0x20] sm:$0xff]   ;;  %v964_v16 = vld [vmem:[%s1021_s22 + $0x28] sm:$0xff]  }
  0x13   : > { %924 = vmatmul.mubr.msk.bf16.vlgmr.msra.gmra.mrb[0].mxu1 %vm309_vm2, %v957_v9  ;;  %911 = vmatprep.mubr.msk.bf16.mxu0 %vm309_vm2, %v958_v10  ;;  %v961_v13 = vld [vmem:[%s1021_s22 + $0x58] sm:$0xff]   ;;  %v963_v15 = vld [vmem:[%s1021_s22 + $0x60] sm:$0xff]   ;;  %v965_v17 = vld [vmem:[%s1021_s22 + $0x68] sm:$0xff]  }
  0x14   : > { %927 = vmatprep.mubr.msk.bf16.mxu1 %vm309_vm2, %v959_v11  ;;  %v966_v18 = vld [vmem:[%s1021_s22 + $0x30] sm:$0xff]   ;;  %v968_v20 = vld [vmem:[%s1021_s22 + $0x38] sm:$0xff]  }
  0x15   : > { %v967_v19 = vld [vmem:[%s1021_s22 + $0x70] sm:$0xff]   ;;  %v969_v21 = vld [vmem:[%s1021_s22 + $0x78] sm:$0xff]  }
  0x1a   : > { %912 = vmatmul.mubr.msk.bf16.gmra.mrb[4].mxu0 %vm309_vm2, %v960_v12 }
  0x1b   : > { %928 = vmatmul.mubr.msk.bf16.gmra.mrb[4].mxu1 %vm309_vm2, %v961_v13  ;;  %915 = vmatprep.mubr.msk.bf16.mxu0 %vm309_vm2, %v962_v14 }
  0x1c   : > { %931 = vmatprep.mubr.msk.bf16.mxu1 %vm309_vm2, %v963_v15 }
  0x22   : > { %916 = vmatmul.mubr.msk.bf16.gmra.mrb[8].mxu0 %vm309_vm2, %v964_v16 }
  0x23   : > { %932 = vmatmul.mubr.msk.bf16.gmra.mrb[8].mxu1 %vm309_vm2, %v965_v17  ;;  %919 = vmatprep.mubr.msk.bf16.mxu0 %vm309_vm2, %v966_v18 }
  0x24   : > { %935 = vmatprep.mubr.msk.bf16.mxu1 %vm309_vm2, %v967_v19 }
  0x2a   : > { %920 = vmatmul.mubr.msk.bf16.gmra.mrb[12].mxu0 %vm309_vm2, %v968_v20 }
  0x2b   : > { %936 = vmatmul.mubr.msk.bf16.gmra.mrb[12].mxu1 %vm309_vm2, %v969_v21 }
  0xe5   : > { %v909_v23 = vpop.f32.mrb[0].mxu0 }
  0xe6   : > { %v408_v24 = vadd.f32 %v909_v23, %v1058_v22  ;;  %v925_v25 = vpop.f32.mrb[0].mxu1  ;;  %v399_v26 = vpop.f32.mrb[1].mxu0 }
  0xe7   : > { %v472_v27 = vadd.f32 %v925_v25, %v1058_v22  ;;  %v400_v28 = vadd.f32 %v1058_v22, %v399_v26  ;;  %v463_v29 = vpop.f32.mrb[1].mxu1  ;;  %v910_v30 = vpop.f32.mrb[2].mxu0 }
  0xe8   : > { %v528_v31 = vmax.f32 %v408_v24, 0.0  ;;  %v464_v32 = vadd.f32 %v1058_v22, %v463_v29  ;;  %v411_v33 = vadd.f32 %v910_v30, %v1058_v22  ;;  %v926_v34 = vpop.f32.mrb[2].mxu1  ;;  %v402_v35 = vpop.f32.mrb[3].mxu0 }
  0xe9   : > { %v544_v36 = vmax.f32 %v472_v27, 0.0  ;;  %v526_v37 = vmax.f32 %v400_v28, 0.0  ;;  %v475_v38 = vadd.f32 %v926_v34, %v1058_v22  ;;  %v403_v39 = vadd.f32 %v1058_v22, %v402_v35  ;;  %v466_v40 = vpop.f32.mrb[3].mxu1 }
  0xea   : > { %v855_v41 = vpack.c.bf16 %v528_v31, %v528_v31  ;;  %v542_v42 = vmax.f32 %v464_v32, 0.0  ;;  %v529_v43 = vmax.f32 %v411_v33, 0.0  ;;  %v467_v44 = vadd.f32 %v1058_v22, %v466_v40 }
  0xeb   : > { %v871_v45 = vpack.c.bf16 %v544_v36, %v544_v36  ;;  %v853_v46 = vpack.c.bf16 %v526_v37, %v526_v37  ;;  %v545_v47 = vmax.f32 %v475_v38, 0.0  ;;  %v527_v48 = vmax.f32 %v403_v39, 0.0 }
  0xec   : > { %689 = vst.msk [vmem:[%s1070_s27 + $0x8] sm:$0xf] %vm686_vm3, %v855_v41  ;;  %v869_v49 = vpack.c.bf16 %v542_v42, %v542_v42  ;;  %v856_v50 = vpack.c.bf16 %v529_v43, %v529_v43  ;;  %v543_v51 = vmax.f32 %v467_v44, 0.0 }
  0xed   : > { %705 = vst.msk [vmem:[%s1070_s27 + $0x48] sm:$0xf] %vm686_vm3, %v871_v45  ;;  %687 = vst.msk [vmem:[%s1070_s27] sm:$0xf] %vm686_vm3, %v853_v46  ;;  %v872_v52 = vpack.c.bf16 %v545_v47, %v545_v47  ;;  %v854_v53 = vpack.c.bf16 %v527_v48, %v527_v48  ;;  %v913_v54 = vpop.f32.mrb[4].mxu0 }
  0xee   : > { %703 = vst.msk [vmem:[%s1070_s27 + $0x40] sm:$0xf] %vm686_vm3, %v869_v49  ;;  %690 = vst.msk [vmem:[%s1070_s27 + $0xc] sm:$0xf] %vm686_vm3, %v856_v50  ;;  %v870_v55 = vpack.c.bf16 %v543_v51, %v543_v51  ;;  %v424_v56 = vadd.f32 %v913_v54, %v1058_v22  ;;  %v929_v57 = vpop.f32.mrb[4].mxu1  ;;  %v415_v58 = vpop.f32.mrb[5].mxu0 }
  0xef   : > { %706 = vst.msk [vmem:[%s1070_s27 + $0x4c] sm:$0xf] %vm686_vm3, %v872_v52  ;;  %688 = vst.msk [vmem:[%s1070_s27 + $0x4] sm:$0xf] %vm686_vm3, %v854_v53  ;;  %v488_v59 = vadd.f32 %v929_v57, %v1058_v22  ;;  %v416_v60 = vadd.f32 %v1058_v22, %v415_v58  ;;  %v479_v61 = vpop.f32.mrb[5].mxu1  ;;  %v914_v62 = vpop.f32.mrb[6].mxu0 }
  0xf0   : > { %704 = vst.msk [vmem:[%s1070_s27 + $0x44] sm:$0xf] %vm686_vm3, %v870_v55  ;;  %v532_v63 = vmax.f32 %v424_v56, 0.0  ;;  %v480_v0 = vadd.f32 %v1058_v22, %v479_v61  ;;  %v427_v1 = vadd.f32 %v914_v62, %v1058_v22  ;;  %v930_v2 = vpop.f32.mrb[6].mxu1  ;;  %v418_v3 = vpop.f32.mrb[7].mxu0 }
  0xf1   : > { %v548_v4 = vmax.f32 %v488_v59, 0.0  ;;  %v530_v5 = vmax.f32 %v416_v60, 0.0  ;;  %v491_v6 = vadd.f32 %v930_v2, %v1058_v22  ;;  %v419_v7 = vadd.f32 %v1058_v22, %v418_v3  ;;  %v482_v8 = vpop.f32.mrb[7].mxu1 }
  0xf2   : > { %v859_v9 = vpack.c.bf16 %v532_v63, %v532_v63  ;;  %v546_v10 = vmax.f32 %v480_v0, 0.0  ;;  %v533_v11 = vmax.f32 %v427_v1, 0.0  ;;  %v483_v12 = vadd.f32 %v1058_v22, %v482_v8 }
  0xf3   : > { %v875_v13 = vpack.c.bf16 %v548_v4, %v548_v4  ;;  %v857_v14 = vpack.c.bf16 %v530_v5, %v530_v5  ;;  %v549_v15 = vmax.f32 %v491_v6, 0.0  ;;  %v531_v16 = vmax.f32 %v419_v7, 0.0 }
  0xf4   : > { %693 = vst.msk [vmem:[%s1070_s27 + $0x18] sm:$0xf] %vm686_vm3, %v859_v9  ;;  %v873_v17 = vpack.c.bf16 %v546_v10, %v546_v10  ;;  %v860_v18 = vpack.c.bf16 %v533_v11, %v533_v11  ;;  %v547_v19 = vmax.f32 %v483_v12, 0.0 }
  0xf5   : > { %709 = vst.msk [vmem:[%s1070_s27 + $0x58] sm:$0xf] %vm686_vm3, %v875_v13  ;;  %691 = vst.msk [vmem:[%s1070_s27 + $0x10] sm:$0xf] %vm686_vm3, %v857_v14  ;;  %v876_v20 = vpack.c.bf16 %v549_v15, %v549_v15  ;;  %v858_v21 = vpack.c.bf16 %v531_v16, %v531_v16  ;;  %v917_v23 = vpop.f32.mrb[8].mxu0 }
  0xf6   : > { %707 = vst.msk [vmem:[%s1070_s27 + $0x50] sm:$0xf] %vm686_vm3, %v873_v17  ;;  %694 = vst.msk [vmem:[%s1070_s27 + $0x1c] sm:$0xf] %vm686_vm3, %v860_v18  ;;  %v874_v24 = vpack.c.bf16 %v547_v19, %v547_v19  ;;  %v440_v25 = vadd.f32 %v917_v23, %v1058_v22  ;;  %v933_v26 = vpop.f32.mrb[8].mxu1  ;;  %v431_v27 = vpop.f32.mrb[9].mxu0 }
  0xf7   : > { %710 = vst.msk [vmem:[%s1070_s27 + $0x5c] sm:$0xf] %vm686_vm3, %v876_v20  ;;  %692 = vst.msk [vmem:[%s1070_s27 + $0x14] sm:$0xf] %vm686_vm3, %v858_v21  ;;  %v504_v28 = vadd.f32 %v933_v26, %v1058_v22  ;;  %v432_v29 = vadd.f32 %v1058_v22, %v431_v27  ;;  %v495_v30 = vpop.f32.mrb[9].mxu1  ;;  %v918_v31 = vpop.f32.mrb[10].mxu0 }
  0xf8   : > { %708 = vst.msk [vmem:[%s1070_s27 + $0x54] sm:$0xf] %vm686_vm3, %v874_v24  ;;  %v536_v32 = vmax.f32 %v440_v25, 0.0  ;;  %v496_v33 = vadd.f32 %v1058_v22, %v495_v30  ;;  %v443_v34 = vadd.f32 %v918_v31, %v1058_v22  ;;  %v934_v35 = vpop.f32.mrb[10].mxu1  ;;  %v434_v36 = vpop.f32.mrb[11].mxu0 }
  0xf9   : > { %v552_v37 = vmax.f32 %v504_v28, 0.0  ;;  %v534_v38 = vmax.f32 %v432_v29, 0.0  ;;  %v507_v39 = vadd.f32 %v934_v35, %v1058_v22  ;;  %v435_v40 = vadd.f32 %v1058_v22, %v434_v36  ;;  %v498_v41 = vpop.f32.mrb[11].mxu1 }
  0xfa   : > { %v863_v42 = vpack.c.bf16 %v536_v32, %v536_v32  ;;  %v550_v43 = vmax.f32 %v496_v33, 0.0  ;;  %v537_v44 = vmax.f32 %v443_v34, 0.0  ;;  %v499_v45 = vadd.f32 %v1058_v22, %v498_v41 }
  0xfb   : > { %v879_v46 = vpack.c.bf16 %v552_v37, %v552_v37  ;;  %v861_v47 = vpack.c.bf16 %v534_v38, %v534_v38  ;;  %v553_v48 = vmax.f32 %v507_v39, 0.0  ;;  %v535_v49 = vmax.f32 %v435_v40, 0.0 }
  0xfc   : > { %697 = vst.msk [vmem:[%s1070_s27 + $0x28] sm:$0xf] %vm686_vm3, %v863_v42  ;;  %v877_v50 = vpack.c.bf16 %v550_v43, %v550_v43  ;;  %v864_v51 = vpack.c.bf16 %v537_v44, %v537_v44  ;;  %v551_v52 = vmax.f32 %v499_v45, 0.0 }
  0xfd   : > { %713 = vst.msk [vmem:[%s1070_s27 + $0x68] sm:$0xf] %vm686_vm3, %v879_v46  ;;  %695 = vst.msk [vmem:[%s1070_s27 + $0x20] sm:$0xf] %vm686_vm3, %v861_v47  ;;  %v880_v53 = vpack.c.bf16 %v553_v48, %v553_v48  ;;  %v862_v54 = vpack.c.bf16 %v535_v49, %v535_v49  ;;  %v921_v55 = vpop.f32.mrb[12].mxu0 }
  0xfe   : > { %711 = vst.msk [vmem:[%s1070_s27 + $0x60] sm:$0xf] %vm686_vm3, %v877_v50  ;;  %698 = vst.msk [vmem:[%s1070_s27 + $0x2c] sm:$0xf] %vm686_vm3, %v864_v51  ;;  %v878_v56 = vpack.c.bf16 %v551_v52, %v551_v52  ;;  %v456_v57 = vadd.f32 %v921_v55, %v1058_v22  ;;  %v937_v58 = vpop.f32.mrb[12].mxu1  ;;  %v447_v59 = vpop.f32.mrb[13].mxu0 }
  0xff   : > { %714 = vst.msk [vmem:[%s1070_s27 + $0x6c] sm:$0xf] %vm686_vm3, %v880_v53  ;;  %696 = vst.msk [vmem:[%s1070_s27 + $0x24] sm:$0xf] %vm686_vm3, %v862_v54  ;;  %v520_v60 = vadd.f32 %v937_v58, %v1058_v22  ;;  %v448_v61 = vadd.f32 %v1058_v22, %v447_v59  ;;  %v511_v62 = vpop.f32.mrb[13].mxu1  ;;  %v922_v63 = vpop.f32.mrb[14].mxu0 }
 0x100   : > { %712 = vst.msk [vmem:[%s1070_s27 + $0x64] sm:$0xf] %vm686_vm3, %v878_v56  ;;  %v540_v0 = vmax.f32 %v456_v57, 0.0  ;;  %v512_v1 = vadd.f32 %v1058_v22, %v511_v62  ;;  %v459_v2 = vadd.f32 %v922_v63, %v1058_v22  ;;  %v938_v3 = vpop.f32.mrb[14].mxu1  ;;  %v450_v4 = vpop.f32.mrb[15].mxu0 }
 0x101   : > { %v556_v5 = vmax.f32 %v520_v60, 0.0  ;;  %v538_v6 = vmax.f32 %v448_v61, 0.0  ;;  %v523_v7 = vadd.f32 %v938_v3, %v1058_v22  ;;  %v451_v8 = vadd.f32 %v1058_v22, %v450_v4  ;;  %v514_v9 = vpop.f32.mrb[15].mxu1 }
 0x102   : > { %v867_v10 = vpack.c.bf16 %v540_v0, %v540_v0  ;;  %v554_v11 = vmax.f32 %v512_v1, 0.0  ;;  %v541_v12 = vmax.f32 %v459_v2, 0.0  ;;  %v515_v13 = vadd.f32 %v1058_v22, %v514_v9 }
 0x103   : > { %v883_v14 = vpack.c.bf16 %v556_v5, %v556_v5  ;;  %v865_v15 = vpack.c.bf16 %v538_v6, %v538_v6  ;;  %v557_v16 = vmax.f32 %v523_v7, 0.0  ;;  %v539_v17 = vmax.f32 %v451_v8, 0.0 }
 0x104   : > { %701 = vst.msk [vmem:[%s1070_s27 + $0x38] sm:$0xf] %vm686_vm3, %v867_v10  ;;  %v881_v18 = vpack.c.bf16 %v554_v11, %v554_v11  ;;  %v868_v19 = vpack.c.bf16 %v541_v12, %v541_v12  ;;  %v555_v20 = vmax.f32 %v515_v13, 0.0 }
 0x105   : > { %717 = vst.msk [vmem:[%s1070_s27 + $0x78] sm:$0xf] %vm686_vm3, %v883_v14  ;;  %699 = vst.msk [vmem:[%s1070_s27 + $0x30] sm:$0xf] %vm686_vm3, %v865_v15  ;;  %v884_v21 = vpack.c.bf16 %v557_v16, %v557_v16  ;;  %v866_v23 = vpack.c.bf16 %v539_v17, %v539_v17 }
 0x106   : > { %715 = vst.msk [vmem:[%s1070_s27 + $0x70] sm:$0xf] %vm686_vm3, %v881_v18  ;;  %702 = vst.msk [vmem:[%s1070_s27 + $0x3c] sm:$0xf] %vm686_vm3, %v868_v19  ;;  %v882_v22 = vpack.c.bf16 %v555_v20, %v555_v20 }
 0x107   : > { %718 = vst.msk [vmem:[%s1070_s27 + $0x7c] sm:$0xf] %vm686_vm3, %v884_v21  ;;  %700 = vst.msk [vmem:[%s1070_s27 + $0x34] sm:$0xf] %vm686_vm3, %v866_v23 }
 0x108   : > { %716 = vst.msk [vmem:[%s1070_s27 + $0x74] sm:$0xf] %vm686_vm3, %v882_v22 }
 0x109 PF: > { %s13_s12 = sadd.s32 1, %s976_s12  }
 0x10a   : > { %p10_p4 = scmp.ge.s32.totalorder %s13_s12, 10  }
 0x10c   :  { %12 = sbr.rel (!%p10_p4) target bundleno = 1 (0x1), region = 62 }

// kernel: duck_detector_forward.9
= control target key start
LH: loop header
LB: loop body
LE: loop exit
PB: predicated region body
PF: predicated region fallthrough
CT: control target
= control target key end

     0   :  { %s590_s22 = smov 112   ;;  %vm520_vm0 = vcmask 125952   ;;  %s1561_s0 = inlined_call_operand.vmem [shape: bf16[32,2,16,32], index: 0, kind: input, shape index: {}]   ;;  %s1562_s1 = inlined_call_operand.vmem [shape: bf16[32,16,16], index: 1, kind: output, shape index: {}]  }
   0x1   :  { %v12_v0 = vld [vmem:[%s1561_s0 + $0x10] sm:$0xf]  ;;  %v14_v1 = vld [vmem:[%s1561_s0 + $0x18] sm:$0xf]  ;;  %v8_v2 = vld [vmem:[%s1561_s0] sm:$0xf] }
   0x2   :  { %v610_v3 = vmax.bf16 %v14_v1, %v12_v0  ;;  %v10_v4 = vld [vmem:[%s1561_s0 + $0x8] sm:$0xf]  ;;  %v13_v5 = vld [vmem:[%s1561_s0 + $0x14] sm:$0xf]  ;;  %v15_v6 = vld [vmem:[%s1561_s0 + $0x1c] sm:$0xf] }
   0x3   :  { %v621_v7 = vmax.bf16 %v10_v4, %v8_v2  ;;  %v9_v8 = vld [vmem:[%s1561_s0 + $0x4] sm:$0xf]  ;;  %v11_v9 = vld [vmem:[%s1561_s0 + $0xc] sm:$0xf]  ;;  %v631_v10 = vmax.bf16 %v15_v6, %v13_v5  ;;  %v16_v14 = vld [vmem:[%s1561_s0 + $0x20] sm:$0xf] }
   0x4   :  { %268 = vrot.lane.b32.xlu1 %v610_v3, %s590_s22  ;;  %v635_v11 = vmax.bf16 %v11_v9, %v9_v8  ;;  %v17_v12 = vld [vmem:[%s1561_s0 + $0x24] sm:$0xf]  ;;  %v19_v13 = vld [vmem:[%s1561_s0 + $0x2c] sm:$0xf]  ;;  %v18_v15 = vld [vmem:[%s1561_s0 + $0x28] sm:$0xf] }
   0x5   :  { %264 = vrot.lane.b32.xlu0 %v621_v7, %s590_s22  ;;  %v651_v16 = vmax.bf16 %v19_v13, %v17_v12  ;;  %v655_v17 = vmax.bf16 %v18_v15, %v16_v14  ;;  %v21_v18 = vld [vmem:[%s1561_s0 + $0x34] sm:$0xf]  ;;  %v23_v19 = vld [vmem:[%s1561_s0 + $0x3c] sm:$0xf]  ;;  %v20_v20 = vld [vmem:[%s1561_s0 + $0x30] sm:$0xf] }
   0x6   :  { %v22_v21 = vld [vmem:[%s1561_s0 + $0x38] sm:$0xf]  ;;  %v671_v22 = vmax.bf16 %v23_v19, %v21_v18  ;;  %v25_v24 = vld [vmem:[%s1561_s0 + $0x44] sm:$0xf]  ;;  %v27_v25 = vld [vmem:[%s1561_s0 + $0x4c] sm:$0xf] }
   0x7   :  { %v675_v23 = vmax.bf16 %v22_v21, %v20_v20  ;;  %v24_v26 = vld [vmem:[%s1561_s0 + $0x40] sm:$0xf]  ;;  %v26_v27 = vld [vmem:[%s1561_s0 + $0x48] sm:$0xf]  ;;  %v691_v28 = vmax.bf16 %v27_v25, %v25_v24  ;;  %v29_v30 = vld [vmem:[%s1561_s0 + $0x54] sm:$0xf] }
   0x8   :  { %270 = vrot.lane.b32.xlu1 %v631_v10, %s590_s22  ;;  %v695_v29 = vmax.bf16 %v26_v27, %v24_v26  ;;  %v31_v31 = vld [vmem:[%s1561_s0 + $0x5c] sm:$0xf]  ;;  %v28_v32 = vld [vmem:[%s1561_s0 + $0x50] sm:$0xf]  ;;  %v30_v33 = vld [vmem:[%s1561_s0 + $0x58] sm:$0xf] }
   0x9   :  { %266 = vrot.lane.b32.xlu0 %v635_v11, %s590_s22  ;;  %v711_v34 = vmax.bf16 %v31_v31, %v29_v30  ;;  %v715_v35 = vmax.bf16 %v30_v33, %v28_v32  ;;  %v33_v36 = vld [vmem:[%s1561_s0 + $0x64] sm:$0xf]  ;;  %v35_v37 = vld [vmem:[%s1561_s0 + $0x6c] sm:$0xf]  ;;  %v32_v38 = vld [vmem:[%s1561_s0 + $0x60] sm:$0xf] }
   0xa   :  { %v34_v39 = vld [vmem:[%s1561_s0 + $0x68] sm:$0xf]  ;;  %v731_v40 = vmax.bf16 %v35_v37, %v33_v36  ;;  %v37_v42 = vld [vmem:[%s1561_s0 + $0x74] sm:$0xf]  ;;  %v39_v43 = vld [vmem:[%s1561_s0 + $0x7c] sm:$0xf] }
   0xb   :  { %v735_v41 = vmax.bf16 %v34_v39, %v32_v38  ;;  %v36_v44 = vld [vmem:[%s1561_s0 + $0x70] sm:$0xf]  ;;  %v38_v45 = vld [vmem:[%s1561_s0 + $0x78] sm:$0xf]  ;;  %v751_v46 = vmax.bf16 %v39_v43, %v37_v42  ;;  %v41_v48 = vld [vmem:[%s1561_s0 + $0x84] sm:$0xf] }
   0xc   :  { %274 = vrot.lane.b32.xlu1 %v651_v16, %s590_s22  ;;  %v755_v47 = vmax.bf16 %v38_v45, %v36_v44  ;;  %v43_v49 = vld [vmem:[%s1561_s0 + $0x8c] sm:$0xf]  ;;  %v40_v50 = vld [vmem:[%s1561_s0 + $0x80] sm:$0xf]  ;;  %v42_v51 = vld [vmem:[%s1561_s0 + $0x88] sm:$0xf] }
   0xd   :  { %272 = vrot.lane.b32.xlu0 %v655_v17, %s590_s22  ;;  %v771_v52 = vmax.bf16 %v43_v49, %v41_v48  ;;  %v775_v53 = vmax.bf16 %v42_v51, %v40_v50  ;;  %v45_v54 = vld [vmem:[%s1561_s0 + $0x94] sm:$0xf]  ;;  %v47_v55 = vld [vmem:[%s1561_s0 + $0x9c] sm:$0xf]  ;;  %v44_v56 = vld [vmem:[%s1561_s0 + $0x90] sm:$0xf] }
   0xe   :  { %v46_v57 = vld [vmem:[%s1561_s0 + $0x98] sm:$0xf]  ;;  %v791_v58 = vmax.bf16 %v47_v55, %v45_v54  ;;  %v49_v60 = vld [vmem:[%s1561_s0 + $0xa4] sm:$0xf]  ;;  %v51_v61 = vld [vmem:[%s1561_s0 + $0xac] sm:$0xf] }
   0xf   :  { %v795_v59 = vmax.bf16 %v46_v57, %v44_v56  ;;  %v48_v62 = vld [vmem:[%s1561_s0 + $0xa0] sm:$0xf]  ;;  %v50_v63 = vld [vmem:[%s1561_s0 + $0xa8] sm:$0xf]  ;;  %v811_v0 = vmax.bf16 %v51_v61, %v49_v60  ;;  %v53_v2 = vld [vmem:[%s1561_s0 + $0xb4] sm:$0xf] }
  0x10   :  { %278 = vrot.lane.b32.xlu1 %v671_v22, %s590_s22  ;;  %v815_v1 = vmax.bf16 %v50_v63, %v48_v62  ;;  %v55_v4 = vld [vmem:[%s1561_s0 + $0xbc] sm:$0xf]  ;;  %v52_v5 = vld [vmem:[%s1561_s0 + $0xb0] sm:$0xf]  ;;  %v54_v6 = vld [vmem:[%s1561_s0 + $0xb8] sm:$0xf] }
  0x11   :  { %276 = vrot.lane.b32.xlu0 %v675_v23, %s590_s22  ;;  %v831_v8 = vmax.bf16 %v55_v4, %v53_v2  ;;  %v835_v9 = vmax.bf16 %v54_v6, %v52_v5  ;;  %v57_v12 = vld [vmem:[%s1561_s0 + $0xc4] sm:$0xf]  ;;  %v59_v13 = vld [vmem:[%s1561_s0 + $0xcc] sm:$0xf]  ;;  %v56_v14 = vld [vmem:[%s1561_s0 + $0xc0] sm:$0xf] }
  0x12   :  { %v58_v15 = vld [vmem:[%s1561_s0 + $0xc8] sm:$0xf]  ;;  %v851_v18 = vmax.bf16 %v59_v13, %v57_v12  ;;  %v61_v20 = vld [vmem:[%s1561_s0 + $0xd4] sm:$0xf]  ;;  %v63_v21 = vld [vmem:[%s1561_s0 + $0xdc] sm:$0xf] }
  0x13   :  { %v855_v19 = vmax.bf16 %v58_v15, %v56_v14  ;;  %v60_v24 = vld [vmem:[%s1561_s0 + $0xd0] sm:$0xf]  ;;  %v62_v25 = vld [vmem:[%s1561_s0 + $0xd8] sm:$0xf]  ;;  %v871_v26 = vmax.bf16 %v63_v21, %v61_v20  ;;  %v65_v30 = vld [vmem:[%s1561_s0 + $0xe4] sm:$0xf] }
  0x14   :  { %282 = vrot.lane.b32.xlu1 %v691_v28, %s590_s22  ;;  %v875_v27 = vmax.bf16 %v62_v25, %v60_v24  ;;  %v67_v31 = vld [vmem:[%s1561_s0 + $0xec] sm:$0xf]  ;;  %v64_v32 = vld [vmem:[%s1561_s0 + $0xe0] sm:$0xf]  ;;  %v66_v33 = vld [vmem:[%s1561_s0 + $0xe8] sm:$0xf] }
  0x15   :  { %280 = vrot.lane.b32.xlu0 %v695_v29, %s590_s22  ;;  %v891_v36 = vmax.bf16 %v67_v31, %v65_v30  ;;  %v895_v37 = vmax.bf16 %v66_v33, %v64_v32  ;;  %v69_v38 = vld [vmem:[%s1561_s0 + $0xf4] sm:$0xf]  ;;  %v71_v39 = vld [vmem:[%s1561_s0 + $0xfc] sm:$0xf]  ;;  %v68_v42 = vld [vmem:[%s1561_s0 + $0xf0] sm:$0xf] }
  0x16   :  { %v70_v43 = vld [vmem:[%s1561_s0 + $0xf8] sm:$0xf]  ;;  %v911_v44 = vmax.bf16 %v71_v39, %v69_v38  ;;  %v73_v48 = vld [vmem:[%s1561_s0 + $0x104] sm:$0xf]  ;;  %v75_v49 = vld [vmem:[%s1561_s0 + $0x10c] sm:$0xf] }
  0x17   :  { %v915_v45 = vmax.bf16 %v70_v43, %v68_v42  ;;  %v72_v50 = vld [vmem:[%s1561_s0 + $0x100] sm:$0xf]  ;;  %v74_v51 = vld [vmem:[%s1561_s0 + $0x108] sm:$0xf]  ;;  %v931_v54 = vmax.bf16 %v75_v49, %v73_v48  ;;  %v77_v56 = vld [vmem:[%s1561_s0 + $0x114] sm:$0xf] }
  0x18   :  { %286 = vrot.lane.b32.xlu1 %v711_v34, %s590_s22  ;;  %v935_v55 = vmax.bf16 %v74_v51, %v72_v50  ;;  %v79_v57 = vld [vmem:[%s1561_s0 + $0x11c] sm:$0xf]  ;;  %v76_v60 = vld [vmem:[%s1561_s0 + $0x110] sm:$0xf]  ;;  %v78_v61 = vld [vmem:[%s1561_s0 + $0x118] sm:$0xf] }
  0x19   :  { %284 = vrot.lane.b32.xlu0 %v715_v35, %s590_s22  ;;  %v951_v62 = vmax.bf16 %v79_v57, %v77_v56  ;;  %v955_v63 = vmax.bf16 %v78_v61, %v76_v60  ;;  %v81_v2 = vld [vmem:[%s1561_s0 + $0x124] sm:$0xf]  ;;  %v83_v4 = vld [vmem:[%s1561_s0 + $0x12c] sm:$0xf]  ;;  %v80_v5 = vld [vmem:[%s1561_s0 + $0x120] sm:$0xf] }
  0x1a   :  { %v82_v6 = vld [vmem:[%s1561_s0 + $0x128] sm:$0xf]  ;;  %v971_v12 = vmax.bf16 %v83_v4, %v81_v2  ;;  %v85_v14 = vld [vmem:[%s1561_s0 + $0x134] sm:$0xf]  ;;  %v87_v15 = vld [vmem:[%s1561_s0 + $0x13c] sm:$0xf] }
  0x1b   :  { %v975_v13 = vmax.bf16 %v82_v6, %v80_v5  ;;  %v84_v20 = vld [vmem:[%s1561_s0 + $0x130] sm:$0xf]  ;;  %v86_v21 = vld [vmem:[%s1561_s0 + $0x138] sm:$0xf]  ;;  %v991_v24 = vmax.bf16 %v87_v15, %v85_v14  ;;  %v89_v30 = vld [vmem:[%s1561_s0 + $0x144] sm:$0xf] }
  0x1c   :  { %290 = vrot.lane.b32.xlu1 %v731_v40, %s590_s22  ;;  %v995_v25 = vmax.bf16 %v86_v21, %v84_v20  ;;  %v91_v31 = vld [vmem:[%s1561_s0 + $0x14c] sm:$0xf]  ;;  %v88_v32 = vld [vmem:[%s1561_s0 + $0x140] sm:$0xf]  ;;  %v90_v33 = vld [vmem:[%s1561_s0 + $0x148] sm:$0xf] }
  0x1d   :  { %288 = vrot.lane.b32.xlu0 %v735_v41, %s590_s22  ;;  %v1011_v38 = vmax.bf16 %v91_v31, %v89_v30  ;;  %v1015_v39 = vmax.bf16 %v90_v33, %v88_v32  ;;  %v93_v42 = vld [vmem:[%s1561_s0 + $0x154] sm:$0xf]  ;;  %v95_v43 = vld [vmem:[%s1561_s0 + $0x15c] sm:$0xf]  ;;  %v92_v48 = vld [vmem:[%s1561_s0 + $0x150] sm:$0xf] }
  0x1e   :  { %v94_v49 = vld [vmem:[%s1561_s0 + $0x158] sm:$0xf]  ;;  %v1031_v50 = vmax.bf16 %v95_v43, %v93_v42  ;;  %v97_v56 = vld [vmem:[%s1561_s0 + $0x164] sm:$0xf]  ;;  %v99_v57 = vld [vmem:[%s1561_s0 + $0x16c] sm:$0xf] }
  0x1f   :  { %v1035_v51 = vmax.bf16 %v94_v49, %v92_v48  ;;  %v96_v60 = vld [vmem:[%s1561_s0 + $0x160] sm:$0xf]  ;;  %v98_v61 = vld [vmem:[%s1561_s0 + $0x168] sm:$0xf]  ;;  %v1051_v2 = vmax.bf16 %v99_v57, %v97_v56  ;;  %v101_v5 = vld [vmem:[%s1561_s0 + $0x174] sm:$0xf] }
  0x20   :  { %294 = vrot.lane.b32.xlu1 %v751_v46, %s590_s22  ;;  %v1055_v4 = vmax.bf16 %v98_v61, %v96_v60  ;;  %v103_v6 = vld [vmem:[%s1561_s0 + $0x17c] sm:$0xf]  ;;  %v100_v14 = vld [vmem:[%s1561_s0 + $0x170] sm:$0xf]  ;;  %v102_v15 = vld [vmem:[%s1561_s0 + $0x178] sm:$0xf] }
  0x21   :  { %292 = vrot.lane.b32.xlu0 %v755_v47, %s590_s22  ;;  %v1071_v20 = vmax.bf16 %v103_v6, %v101_v5  ;;  %v1075_v21 = vmax.bf16 %v102_v15, %v100_v14  ;;  %v105_v30 = vld [vmem:[%s1561_s0 + $0x184] sm:$0xf]  ;;  %v107_v31 = vld [vmem:[%s1561_s0 + $0x18c] sm:$0xf]  ;;  %v104_v32 = vld [vmem:[%s1561_s0 + $0x180] sm:$0xf] }
  0x22   :  { %v106_v33 = vld [vmem:[%s1561_s0 + $0x188] sm:$0xf]  ;;  %v1091_v42 = vmax.bf16 %v107_v31, %v105_v30  ;;  %v109_v48 = vld [vmem:[%s1561_s0 + $0x194] sm:$0xf]  ;;  %v111_v49 = vld [vmem:[%s1561_s0 + $0x19c] sm:$0xf] }
  0x23   :  { %v1095_v43 = vmax.bf16 %v106_v33, %v104_v32  ;;  %v108_v56 = vld [vmem:[%s1561_s0 + $0x190] sm:$0xf]  ;;  %v110_v57 = vld [vmem:[%s1561_s0 + $0x198] sm:$0xf]  ;;  %v1111_v60 = vmax.bf16 %v111_v49, %v109_v48  ;;  %v113_v5 = vld [vmem:[%s1561_s0 + $0x1a4] sm:$0xf] }
  0x24   :  { %298 = vrot.lane.b32.xlu1 %v771_v52, %s590_s22  ;;  %v1115_v61 = vmax.bf16 %v110_v57, %v108_v56  ;;  %v115_v6 = vld [vmem:[%s1561_s0 + $0x1ac] sm:$0xf]  ;;  %v112_v14 = vld [vmem:[%s1561_s0 + $0x1a0] sm:$0xf]  ;;  %v114_v15 = vld [vmem:[%s1561_s0 + $0x1a8] sm:$0xf] }
  0x25   :  { %296 = vrot.lane.b32.xlu0 %v775_v53, %s590_s22  ;;  %v1131_v30 = vmax.bf16 %v115_v6, %v113_v5  ;;  %v1135_v31 = vmax.bf16 %v114_v15, %v112_v14  ;;  %v117_v32 = vld [vmem:[%s1561_s0 + $0x1b4] sm:$0xf]  ;;  %v119_v33 = vld [vmem:[%s1561_s0 + $0x1bc] sm:$0xf]  ;;  %v116_v48 = vld [vmem:[%s1561_s0 + $0x1b0] sm:$0xf] }
  0x26   :  { %v118_v49 = vld [vmem:[%s1561_s0 + $0x1b8] sm:$0xf]  ;;  %v1151_v56 = vmax.bf16 %v119_v33, %v117_v32  ;;  %v121_v5 = vld [vmem:[%s1561_s0 + $0x1c4] sm:$0xf]  ;;  %v123_v6 = vld [vmem:[%s1561_s0 + $0x1cc] sm:$0xf] }
  0x27   :  { %1569 = vst [vmem:[#allocation2_spill] sm:$0xff] %v1131_v30  ;;  %1570 = vst [vmem:[#allocation3_spill] sm:$0xff] %v1135_v31  ;;  %v1155_v57 = vmax.bf16 %v118_v49, %v116_v48  ;;  %v120_v14 = vld [vmem:[%s1561_s0 + $0x1c0] sm:$0xf]  ;;  %v122_v15 = vld [vmem:[%s1561_s0 + $0x1c8] sm:$0xf]  ;;  %v1171_v32 = vmax.bf16 %v123_v6, %v121_v5 }
  0x28   :  { %302 = vrot.lane.b32.xlu1 %v791_v58, %s590_s22  ;;  %1571 = vst [vmem:[#allocation4_spill] sm:$0xff] %v1151_v56  ;;  %v1175_v33 = vmax.bf16 %v122_v15, %v120_v14  ;;  %v125_v48 = vld [vmem:[%s1561_s0 + $0x1d4] sm:$0xf]  ;;  %v127_v49 = vld [vmem:[%s1561_s0 + $0x1dc] sm:$0xf] }
  0x29   :  { %300 = vrot.lane.b32.xlu0 %v795_v59, %s590_s22  ;;  %1572 = vst [vmem:[#allocation5_spill] sm:$0xff] %v1155_v57  ;;  %1573 = vst [vmem:[#allocation6_spill] sm:$0xff] %v1171_v32  ;;  %v126_v5 = vld [vmem:[%s1561_s0 + $0x1d8] sm:$0xf]  ;;  %v1191_v6 = vmax.bf16 %v127_v49, %v125_v48  ;;  %v129_v15 = vld [vmem:[%s1561_s0 + $0x1e4] sm:$0xf] }
  0x2a   :  { %1574 = vst [vmem:[#allocation7_spill] sm:$0xff] %v1175_v33  ;;  %v128_v48 = vld [vmem:[%s1561_s0 + $0x1e0] sm:$0xf]  ;;  %v130_v49 = vld [vmem:[%s1561_s0 + $0x1e8] sm:$0xf] }
  0x2c   :  { %306 = vrot.lane.b32.xlu1 %v811_v0, %s590_s22 }
  0x2d   :  { %304 = vrot.lane.b32.xlu0 %v815_v1, %s590_s22 }
  0x30   :  { %310 = vrot.lane.b32.xlu1 %v831_v8, %s590_s22 }
  0x31   :  { %308 = vrot.lane.b32.xlu0 %v835_v9, %s590_s22 }
  0x34   :  { %314 = vrot.lane.b32.xlu1 %v851_v18, %s590_s22 }
  0x35   :  { %312 = vrot.lane.b32.xlu0 %v855_v19, %s590_s22 }
  0x38   :  { %318 = vrot.lane.b32.xlu1 %v871_v26, %s590_s22 }
  0x39   :  { %316 = vrot.lane.b32.xlu0 %v875_v27, %s590_s22 }
  0x3c   :  { %322 = vrot.lane.b32.xlu1 %v891_v36, %s590_s22 }
  0x3d   :  { %320 = vrot.lane.b32.xlu0 %v895_v37, %s590_s22 }
  0x40   :  { %326 = vrot.lane.b32.xlu1 %v911_v44, %s590_s22 }
  0x41   :  { %324 = vrot.lane.b32.xlu0 %v915_v45, %s590_s22 }
  0x44   :  { %330 = vrot.lane.b32.xlu1 %v931_v54, %s590_s22 }
  0x45   :  { %328 = vrot.lane.b32.xlu0 %v935_v55, %s590_s22 }
  0x48   :  { %334 = vrot.lane.b32.xlu1 %v951_v62, %s590_s22 }
  0x49   :  { %332 = vrot.lane.b32.xlu0 %v955_v63, %s590_s22 }
  0x4c   :  { %338 = vrot.lane.b32.xlu1 %v971_v12, %s590_s22 }
  0x4d   :  { %336 = vrot.lane.b32.xlu0 %v975_v13, %s590_s22 }
  0x50   :  { %342 = vrot.lane.b32.xlu1 %v991_v24, %s590_s22 }
  0x51   :  { %340 = vrot.lane.b32.xlu0 %v995_v25, %s590_s22 }
  0x54   :  { %346 = vrot.lane.b32.xlu1 %v1011_v38, %s590_s22 }
  0x55   :  { %344 = vrot.lane.b32.xlu0 %v1015_v39, %s590_s22 }
  0x58   :  { %350 = vrot.lane.b32.xlu1 %v1031_v50, %s590_s22 }
  0x59   :  { %348 = vrot.lane.b32.xlu0 %v1035_v51, %s590_s22 }
  0x5c   :  { %354 = vrot.lane.b32.xlu1 %v1051_v2, %s590_s22 }
  0x5d   :  { %352 = vrot.lane.b32.xlu0 %v1055_v4, %s590_s22 }
  0x60   :  { %358 = vrot.lane.b32.xlu1 %v1071_v20, %s590_s22 }
  0x61   :  { %356 = vrot.lane.b32.xlu0 %v1075_v21, %s590_s22 }
  0x64   :  { %362 = vrot.lane.b32.xlu1 %v1091_v42, %s590_s22 }
  0x65   :  { %360 = vrot.lane.b32.xlu0 %v1095_v43, %s590_s22 }
  0x68   :  { %366 = vrot.lane.b32.xlu1 %v1111_v60, %s590_s22 }
  0x69   :  { %364 = vrot.lane.b32.xlu0 %v1115_v61, %s590_s22 }
  0x6c   :  { %370 = vrot.lane.b32.xlu1 %v1131_v30, %s590_s22  ;;  %v1221_v30 = vmax.bf16 %v130_v49, %v128_v48 }
  0x6d   :  { %368 = vrot.lane.b32.xlu0 %v1135_v31, %s590_s22  ;;  %v124_v31 = vld [vmem:[%s1561_s0 + $0x1d0] sm:$0xf] }
  0x6e   :  { %v1195_v14 = vmax.bf16 %v126_v5, %v124_v31 }
  0x70   :  { %374 = vrot.lane.b32.xlu1 %v1151_v56, %s590_s22 }
  0x71   :  { %372 = vrot.lane.b32.xlu0 %v1155_v57, %s590_s22  ;;  %v131_v57 = vld [vmem:[%s1561_s0 + $0x1ec] sm:$0xf] }
  0x74   :  { %378 = vrot.lane.b32.xlu1 %v1171_v32, %s590_s22  ;;  %v1213_v32 = vmax.bf16 %v131_v57, %v129_v15  ;;  %v132_v57 = vld [vmem:[%s1561_s0 + $0x1f0] sm:$0xf]  ;;  %v134_v15 = vld [vmem:[%s1561_s0 + $0x1f8] sm:$0xf] }
  0x75   :  { %376 = vrot.lane.b32.xlu0 %v1175_v33, %s590_s22 }
  0x76   :  { %v269_v56 = vpop.permute.xlu1 %268 }
  0x77   :  { %v458_v31 = vmax.bf16 %v269_v56, %v610_v3  ;;  %v265_v5 = vpop.permute.xlu0 %264  ;;  %v133_v3 = vld [vmem:[%s1561_s0 + $0x1f4] sm:$0xf] }
  0x78   :  { %v456_v33 = vmax.bf16 %v265_v5, %v621_v7  ;;  %382 = vrot.lane.b32.xlu1 %v1191_v6, %s590_s22  ;;  %v135_v7 = vld [vmem:[%s1561_s0 + $0x1fc] sm:$0xf] }
  0x79   :  { %523 = vst.msk [vmem:[%s1562_s1 + $0x8] sm:$0xf] %vm520_vm0, %v458_v31  ;;  %380 = vrot.lane.b32.xlu0 %v1195_v14, %s590_s22  ;;  %v1243_v5 = vmax.bf16 %v135_v7, %v133_v3 }
  0x7a   :  { %521 = vst.msk [vmem:[%s1562_s1] sm:$0xf] %vm520_vm0, %v456_v33  ;;  %v271_v56 = vpop.permute.xlu1 %270  ;;  %v1251_v33 = vmax.bf16 %v134_v15, %v132_v57 }
  0x7b   :  { %v459_v48 = vmax.bf16 %v271_v56, %v631_v10  ;;  %v267_v49 = vpop.permute.xlu0 %266 }
  0x7c   :  { %v457_v31 = vmax.bf16 %v267_v49, %v635_v11  ;;  %386 = vrot.lane.b32.xlu1 %v1213_v32, %s590_s22 }
  0x7d   :  { %524 = vst.msk [vmem:[%s1562_s1 + $0xc] sm:$0xf] %vm520_vm0, %v459_v48  ;;  %384 = vrot.lane.b32.xlu0 %v1221_v30, %s590_s22 }
  0x7e   :  { %522 = vst.msk [vmem:[%s1562_s1 + $0x4] sm:$0xf] %vm520_vm0, %v457_v31  ;;  %v275_v10 = vpop.permute.xlu1 %274 }
  0x7f   :  { %v461_v11 = vmax.bf16 %v275_v10, %v651_v16  ;;  %v273_v3 = vpop.permute.xlu0 %272 }
  0x80   :  { %v460_v7 = vmax.bf16 %v273_v3, %v655_v17  ;;  %390 = vrot.lane.b32.xlu1 %v1243_v5, %s590_s22 }
  0x81   :  { %526 = vst.msk [vmem:[%s1562_s1 + $0x14] sm:$0xf] %vm520_vm0, %v461_v11  ;;  %388 = vrot.lane.b32.xlu0 %v1251_v33, %s590_s22 }
  0x82   :  { %525 = vst.msk [vmem:[%s1562_s1 + $0x10] sm:$0xf] %vm520_vm0, %v460_v7  ;;  %v279_v16 = vpop.permute.xlu1 %278 }
  0x83   :  { %v463_v56 = vmax.bf16 %v279_v16, %v671_v22  ;;  %v277_v17 = vpop.permute.xlu0 %276 }
  0x84   :  { %v462_v57 = vmax.bf16 %v277_v17, %v675_v23 }
  0x85   :  { %528 = vst.msk [vmem:[%s1562_s1 + $0x1c] sm:$0xf] %vm520_vm0, %v463_v56 }
  0x86   :  { %527 = vst.msk [vmem:[%s1562_s1 + $0x18] sm:$0xf] %vm520_vm0, %v462_v57  ;;  %v283_v15 = vpop.permute.xlu1 %282 }
  0x87   :  { %v465_v48 = vmax.bf16 %v283_v15, %v691_v28  ;;  %v281_v49 = vpop.permute.xlu0 %280 }
  0x88   :  { %v464_v31 = vmax.bf16 %v281_v49, %v695_v29 }
  0x89   :  { %530 = vst.msk [vmem:[%s1562_s1 + $0x24] sm:$0xf] %vm520_vm0, %v465_v48 }
  0x8a   :  { %529 = vst.msk [vmem:[%s1562_s1 + $0x20] sm:$0xf] %vm520_vm0, %v464_v31  ;;  %v287_v22 = vpop.permute.xlu1 %286 }
  0x8b   :  { %v467_v23 = vmax.bf16 %v287_v22, %v711_v34  ;;  %v285_v10 = vpop.permute.xlu0 %284 }
  0x8c   :  { %v466_v11 = vmax.bf16 %v285_v10, %v715_v35 }
  0x8d   :  { %532 = vst.msk [vmem:[%s1562_s1 + $0x2c] sm:$0xf] %vm520_vm0, %v467_v23 }
  0x8e   :  { %531 = vst.msk [vmem:[%s1562_s1 + $0x28] sm:$0xf] %vm520_vm0, %v466_v11  ;;  %v291_v28 = vpop.permute.xlu1 %290 }
  0x8f   :  { %v469_v29 = vmax.bf16 %v291_v28, %v731_v40  ;;  %v289_v3 = vpop.permute.xlu0 %288 }
  0x90   :  { %v468_v7 = vmax.bf16 %v289_v3, %v735_v41 }
  0x91   :  { %534 = vst.msk [vmem:[%s1562_s1 + $0x34] sm:$0xf] %vm520_vm0, %v469_v29 }
  0x92   :  { %533 = vst.msk [vmem:[%s1562_s1 + $0x30] sm:$0xf] %vm520_vm0, %v468_v7  ;;  %v295_v34 = vpop.permute.xlu1 %294 }
  0x93   :  { %v471_v35 = vmax.bf16 %v295_v34, %v751_v46  ;;  %v293_v16 = vpop.permute.xlu0 %292 }
  0x94   :  { %v470_v56 = vmax.bf16 %v293_v16, %v755_v47 }
  0x95   :  { %536 = vst.msk [vmem:[%s1562_s1 + $0x3c] sm:$0xf] %vm520_vm0, %v471_v35 }
  0x96   :  { %535 = vst.msk [vmem:[%s1562_s1 + $0x38] sm:$0xf] %vm520_vm0, %v470_v56  ;;  %v299_v40 = vpop.permute.xlu1 %298 }
  0x97   :  { %v473_v41 = vmax.bf16 %v299_v40, %v771_v52  ;;  %v297_v17 = vpop.permute.xlu0 %296 }
  0x98   :  { %v472_v57 = vmax.bf16 %v297_v17, %v775_v53 }
  0x99   :  { %538 = vst.msk [vmem:[%s1562_s1 + $0x44] sm:$0xf] %vm520_vm0, %v473_v41 }
  0x9a   :  { %537 = vst.msk [vmem:[%s1562_s1 + $0x40] sm:$0xf] %vm520_vm0, %v472_v57  ;;  %v303_v46 = vpop.permute.xlu1 %302 }
  0x9b   :  { %v475_v47 = vmax.bf16 %v303_v46, %v791_v58  ;;  %v301_v15 = vpop.permute.xlu0 %300 }
  0x9c   :  { %v474_v48 = vmax.bf16 %v301_v15, %v795_v59 }
  0x9d   :  { %540 = vst.msk [vmem:[%s1562_s1 + $0x4c] sm:$0xf] %vm520_vm0, %v475_v47 }
  0x9e   :  { %539 = vst.msk [vmem:[%s1562_s1 + $0x48] sm:$0xf] %vm520_vm0, %v474_v48  ;;  %v307_v52 = vpop.permute.xlu1 %306 }
  0x9f   :  { %v477_v53 = vmax.bf16 %v307_v52, %v811_v0  ;;  %v305_v49 = vpop.permute.xlu0 %304 }
  0xa0   :  { %v476_v31 = vmax.bf16 %v305_v49, %v815_v1 }
  0xa1   :  { %542 = vst.msk [vmem:[%s1562_s1 + $0x54] sm:$0xf] %vm520_vm0, %v477_v53 }
  0xa2   :  { %541 = vst.msk [vmem:[%s1562_s1 + $0x50] sm:$0xf] %vm520_vm0, %v476_v31  ;;  %v311_v58 = vpop.permute.xlu1 %310 }
  0xa3   :  { %v479_v59 = vmax.bf16 %v311_v58, %v831_v8  ;;  %v309_v22 = vpop.permute.xlu0 %308 }
  0xa4   :  { %v478_v23 = vmax.bf16 %v309_v22, %v835_v9 }
  0xa5   :  { %544 = vst.msk [vmem:[%s1562_s1 + $0x5c] sm:$0xf] %vm520_vm0, %v479_v59 }
  0xa6   :  { %543 = vst.msk [vmem:[%s1562_s1 + $0x58] sm:$0xf] %vm520_vm0, %v478_v23  ;;  %v315_v0 = vpop.permute.xlu1 %314 }
  0xa7   :  { %v481_v1 = vmax.bf16 %v315_v0, %v851_v18  ;;  %v313_v10 = vpop.permute.xlu0 %312 }
  0xa8   :  { %v480_v11 = vmax.bf16 %v313_v10, %v855_v19 }
  0xa9   :  { %546 = vst.msk [vmem:[%s1562_s1 + $0x64] sm:$0xf] %vm520_vm0, %v481_v1 }
  0xaa   :  { %545 = vst.msk [vmem:[%s1562_s1 + $0x60] sm:$0xf] %vm520_vm0, %v480_v11  ;;  %v319_v8 = vpop.permute.xlu1 %318 }
  0xab   :  { %v483_v9 = vmax.bf16 %v319_v8, %v871_v26  ;;  %v317_v28 = vpop.permute.xlu0 %316  ;;  %v1576_v8 = vld [vmem:[#allocation3_spill] sm:$0xff] }
  0xac   :  { %v482_v29 = vmax.bf16 %v317_v28, %v875_v27 }
  0xad   :  { %548 = vst.msk [vmem:[%s1562_s1 + $0x6c] sm:$0xf] %vm520_vm0, %v483_v9 }
  0xae   :  { %547 = vst.msk [vmem:[%s1562_s1 + $0x68] sm:$0xf] %vm520_vm0, %v482_v29  ;;  %v323_v18 = vpop.permute.xlu1 %322 }
  0xaf   :  { %v485_v19 = vmax.bf16 %v323_v18, %v891_v36  ;;  %v321_v3 = vpop.permute.xlu0 %320  ;;  %v1578_v18 = vld [vmem:[#allocation5_spill] sm:$0xff] }
  0xb0   :  { %v484_v7 = vmax.bf16 %v321_v3, %v895_v37 }
  0xb1   :  { %550 = vst.msk [vmem:[%s1562_s1 + $0x74] sm:$0xf] %vm520_vm0, %v485_v19 }
  0xb2   :  { %549 = vst.msk [vmem:[%s1562_s1 + $0x70] sm:$0xf] %vm520_vm0, %v484_v7  ;;  %v327_v26 = vpop.permute.xlu1 %326  ;;  %v1579_v7 = vld [vmem:[#allocation6_spill] sm:$0xff] }
  0xb3   :  { %v487_v27 = vmax.bf16 %v327_v26, %v911_v44  ;;  %v325_v34 = vpop.permute.xlu0 %324 }
  0xb4   :  { %v486_v35 = vmax.bf16 %v325_v34, %v915_v45  ;;  %v1580_v34 = vld [vmem:[#allocation7_spill] sm:$0xff] }
  0xb5   :  { %552 = vst.msk [vmem:[%s1562_s1 + $0x7c] sm:$0xf] %vm520_vm0, %v487_v27 }
  0xb6   :  { %551 = vst.msk [vmem:[%s1562_s1 + $0x78] sm:$0xf] %vm520_vm0, %v486_v35  ;;  %v331_v36 = vpop.permute.xlu1 %330 }
  0xb7   :  { %v489_v37 = vmax.bf16 %v331_v36, %v931_v54  ;;  %v329_v16 = vpop.permute.xlu0 %328 }
  0xb8   :  { %v488_v56 = vmax.bf16 %v329_v16, %v935_v55 }
  0xb9   :  { %554 = vst.msk [vmem:[%s1562_s1 + $0x84] sm:$0xf] %vm520_vm0, %v489_v37 }
  0xba   :  { %553 = vst.msk [vmem:[%s1562_s1 + $0x80] sm:$0xf] %vm520_vm0, %v488_v56  ;;  %v335_v44 = vpop.permute.xlu1 %334 }
  0xbb   :  { %v491_v45 = vmax.bf16 %v335_v44, %v951_v62  ;;  %v333_v40 = vpop.permute.xlu0 %332 }
  0xbc   :  { %v490_v41 = vmax.bf16 %v333_v40, %v955_v63 }
  0xbd   :  { %556 = vst.msk [vmem:[%s1562_s1 + $0x8c] sm:$0xf] %vm520_vm0, %v491_v45 }
  0xbe   :  { %555 = vst.msk [vmem:[%s1562_s1 + $0x88] sm:$0xf] %vm520_vm0, %v490_v41  ;;  %v339_v54 = vpop.permute.xlu1 %338 }
  0xbf   :  { %v493_v55 = vmax.bf16 %v339_v54, %v971_v12  ;;  %v337_v17 = vpop.permute.xlu0 %336 }
  0xc0   :  { %v492_v57 = vmax.bf16 %v337_v17, %v975_v13 }
  0xc1   :  { %558 = vst.msk [vmem:[%s1562_s1 + $0x94] sm:$0xf] %vm520_vm0, %v493_v55 }
  0xc2   :  { %557 = vst.msk [vmem:[%s1562_s1 + $0x90] sm:$0xf] %vm520_vm0, %v492_v57  ;;  %v343_v62 = vpop.permute.xlu1 %342 }
  0xc3   :  { %v495_v63 = vmax.bf16 %v343_v62, %v991_v24  ;;  %v341_v46 = vpop.permute.xlu0 %340 }
  0xc4   :  { %v494_v47 = vmax.bf16 %v341_v46, %v995_v25 }
  0xc5   :  { %560 = vst.msk [vmem:[%s1562_s1 + $0x9c] sm:$0xf] %vm520_vm0, %v495_v63 }
  0xc6   :  { %559 = vst.msk [vmem:[%s1562_s1 + $0x98] sm:$0xf] %vm520_vm0, %v494_v47  ;;  %v347_v12 = vpop.permute.xlu1 %346 }
  0xc7   :  { %v497_v13 = vmax.bf16 %v347_v12, %v1011_v38  ;;  %v345_v15 = vpop.permute.xlu0 %344 }
  0xc8   :  { %v496_v48 = vmax.bf16 %v345_v15, %v1015_v39 }
  0xc9   :  { %562 = vst.msk [vmem:[%s1562_s1 + $0xa4] sm:$0xf] %vm520_vm0, %v497_v13 }
  0xca   :  { %561 = vst.msk [vmem:[%s1562_s1 + $0xa0] sm:$0xf] %vm520_vm0, %v496_v48  ;;  %v351_v24 = vpop.permute.xlu1 %350 }
  0xcb   :  { %v499_v25 = vmax.bf16 %v351_v24, %v1031_v50  ;;  %v349_v52 = vpop.permute.xlu0 %348 }
  0xcc   :  { %v498_v53 = vmax.bf16 %v349_v52, %v1035_v51 }
  0xcd   :  { %564 = vst.msk [vmem:[%s1562_s1 + $0xac] sm:$0xf] %vm520_vm0, %v499_v25 }
  0xce   :  { %563 = vst.msk [vmem:[%s1562_s1 + $0xa8] sm:$0xf] %vm520_vm0, %v498_v53  ;;  %v355_v38 = vpop.permute.xlu1 %354 }
  0xcf   :  { %v501_v39 = vmax.bf16 %v355_v38, %v1051_v2  ;;  %v353_v49 = vpop.permute.xlu0 %352 }
  0xd0   :  { %v500_v31 = vmax.bf16 %v353_v49, %v1055_v4 }
  0xd1   :  { %566 = vst.msk [vmem:[%s1562_s1 + $0xb4] sm:$0xf] %vm520_vm0, %v501_v39 }
  0xd2   :  { %565 = vst.msk [vmem:[%s1562_s1 + $0xb0] sm:$0xf] %vm520_vm0, %v500_v31  ;;  %v359_v50 = vpop.permute.xlu1 %358 }
  0xd3   :  { %v503_v51 = vmax.bf16 %v359_v50, %v1071_v20  ;;  %v357_v58 = vpop.permute.xlu0 %356 }
  0xd4   :  { %v502_v59 = vmax.bf16 %v357_v58, %v1075_v21 }
  0xd5   :  { %568 = vst.msk [vmem:[%s1562_s1 + $0xbc] sm:$0xf] %vm520_vm0, %v503_v51 }
  0xd6   :  { %567 = vst.msk [vmem:[%s1562_s1 + $0xb8] sm:$0xf] %vm520_vm0, %v502_v59  ;;  %v363_v2 = vpop.permute.xlu1 %362 }
  0xd7   :  { %v505_v4 = vmax.bf16 %v363_v2, %v1091_v42  ;;  %v361_v22 = vpop.permute.xlu0 %360 }
  0xd8   :  { %v504_v23 = vmax.bf16 %v361_v22, %v1095_v43  ;;  %v1575_v43 = vld [vmem:[#allocation2_spill] sm:$0xff] }
  0xd9   :  { %570 = vst.msk [vmem:[%s1562_s1 + $0xc4] sm:$0xf] %vm520_vm0, %v505_v4 }
  0xda   :  { %569 = vst.msk [vmem:[%s1562_s1 + $0xc0] sm:$0xf] %vm520_vm0, %v504_v23  ;;  %v367_v20 = vpop.permute.xlu1 %366 }
  0xdb   :  { %v507_v21 = vmax.bf16 %v367_v20, %v1111_v60  ;;  %v365_v0 = vpop.permute.xlu0 %364 }
  0xdc   :  { %v506_v1 = vmax.bf16 %v365_v0, %v1115_v61  ;;  %v1577_v61 = vld [vmem:[#allocation4_spill] sm:$0xff] }
  0xdd   :  { %572 = vst.msk [vmem:[%s1562_s1 + $0xcc] sm:$0xf] %vm520_vm0, %v507_v21 }
  0xde   :  { %571 = vst.msk [vmem:[%s1562_s1 + $0xc8] sm:$0xf] %vm520_vm0, %v506_v1  ;;  %v371_v42 = vpop.permute.xlu1 %370 }
  0xdf   :  { %v509_v10 = vmax.bf16 %v371_v42, %v1575_v43  ;;  %v369_v11 = vpop.permute.xlu0 %368 }
  0xe0   :  { %v508_v9 = vmax.bf16 %v369_v11, %v1576_v8 }
  0xe1   :  { %574 = vst.msk [vmem:[%s1562_s1 + $0xd4] sm:$0xf] %vm520_vm0, %v509_v10 }
  0xe2   :  { %573 = vst.msk [vmem:[%s1562_s1 + $0xd0] sm:$0xf] %vm520_vm0, %v508_v9  ;;  %v375_v60 = vpop.permute.xlu1 %374 }
  0xe3   :  { %v511_v28 = vmax.bf16 %v375_v60, %v1577_v61  ;;  %v373_v29 = vpop.permute.xlu0 %372 }
  0xe4   :  { %v510_v19 = vmax.bf16 %v373_v29, %v1578_v18 }
  0xe5   :  { %576 = vst.msk [vmem:[%s1562_s1 + $0xdc] sm:$0xf] %vm520_vm0, %v511_v28 }
  0xe6   :  { %575 = vst.msk [vmem:[%s1562_s1 + $0xd8] sm:$0xf] %vm520_vm0, %v510_v19  ;;  %v379_v3 = vpop.permute.xlu1 %378 }
  0xe7   :  { %v513_v26 = vmax.bf16 %v379_v3, %v1579_v7  ;;  %v377_v27 = vpop.permute.xlu0 %376 }
  0xe8   :  { %v512_v35 = vmax.bf16 %v377_v27, %v1580_v34 }
  0xe9   :  { %578 = vst.msk [vmem:[%s1562_s1 + $0xe4] sm:$0xf] %vm520_vm0, %v513_v26 }
  0xea   :  { %577 = vst.msk [vmem:[%s1562_s1 + $0xe0] sm:$0xf] %vm520_vm0, %v512_v35  ;;  %v383_v36 = vpop.permute.xlu1 %382 }
  0xeb   :  { %v515_v37 = vmax.bf16 %v383_v36, %v1191_v6  ;;  %v381_v16 = vpop.permute.xlu0 %380 }
  0xec   :  { %v514_v56 = vmax.bf16 %v381_v16, %v1195_v14 }
  0xed   :  { %580 = vst.msk [vmem:[%s1562_s1 + $0xec] sm:$0xf] %vm520_vm0, %v515_v37 }
  0xee   :  { %579 = vst.msk [vmem:[%s1562_s1 + $0xe8] sm:$0xf] %vm520_vm0, %v514_v56  ;;  %v387_v44 = vpop.permute.xlu1 %386 }
  0xef   :  { %v517_v45 = vmax.bf16 %v387_v44, %v1213_v32  ;;  %v385_v40 = vpop.permute.xlu0 %384 }
  0xf0   :  { %v516_v41 = vmax.bf16 %v385_v40, %v1221_v30 }
  0xf1   :  { %582 = vst.msk [vmem:[%s1562_s1 + $0xf4] sm:$0xf] %vm520_vm0, %v517_v45 }
  0xf2   :  { %581 = vst.msk [vmem:[%s1562_s1 + $0xf0] sm:$0xf] %vm520_vm0, %v516_v41  ;;  %v391_v6 = vpop.permute.xlu1 %390 }
  0xf3   :  { %v519_v14 = vmax.bf16 %v391_v6, %v1243_v5  ;;  %v389_v54 = vpop.permute.xlu0 %388 }
  0xf4   :  { %v518_v55 = vmax.bf16 %v389_v54, %v1251_v33 }
  0xf5   :  { %584 = vst.msk [vmem:[%s1562_s1 + $0xfc] sm:$0xf] %vm520_vm0, %v519_v14 }
  0xf6   :  { %583 = vst.msk [vmem:[%s1562_s1 + $0xf8] sm:$0xf] %vm520_vm0, %v518_v55 }

// kernel: duck_detector_forward.10
= control target key start
LH: loop header
LB: loop body
LE: loop exit
PB: predicated region body
PF: predicated region fallthrough
CT: control target
= control target key end

     0   :  { %s1140_s12 = smov 0   ;;  %s1341_s0 = inlined_call_operand.vmem [shape: bf16[512,144], index: 0, kind: input, shape index: {}]   ;;  %s1342_s1 = inlined_call_operand.vmem [shape: bf16[144,32], index: 1, kind: input, shape index: {}]   ;;  %s1343_s2 = inlined_call_operand.vmem [shape: f32[1,32], index: 2, kind: input, shape index: {}]   ;;  %s1344_s3 = inlined_call_operand.vmem [shape: bf16[512,32], index: 3, kind: output, shape index: {}]  }
   0x1 LB: > { %s892_s13 = sadd.s32 4294967295, %s1117_s12   ;;  %p896_p0 = scmp.ge.s32.totalorder %s1117_s12, 1  ;;  %s1117_s12 = sphi %s1140_s12, %s13_s12  }
   0x2   : > { %p139_p1 = scmp.lt.s32.totalorder %s1117_s12, 3 }
   0x4   : > { %p140_p2 = pnand %p896_p0, %p139_p1 }
   0x5   : > { %v1054_v0 = vld [vmem:[%s1342_s1] sm:$0xff] (!%p140_p2)   ;;  %v1119_v1 = vmov (!%p140_p2), 0   ;;  %s897_s16 = sshll.u32 (!%p140_p2), %s892_s13, 5  ;;  %v1055_v2 = vld [vmem:[%s1342_s1 + $0x8] sm:$0xff] (!%p140_p2)   ;;  %v1056_v3 = vld [vmem:[%s1342_s1 + $0x10] sm:$0xff] (!%p140_p2)   ;;  %vm433_vm0 = vcmask (!%p140_p2), 130048  }
   0x6   : > { %143 = sbr.rel (%p140_p2) target bundleno = 319 (0x13f), region = 32  ;;  %482 = vmatprep.subr.bf16.mxu0 (!%p140_p2), %v1119_v1  ;;  %1027 = vmatprep.subr.bf16.mxu1 (!%p140_p2), %v1119_v1  ;;  %p165_p3 = scmp.lt.s32.totalorder (!%p140_p2), %s897_s16, 63  ;;  %v1057_v4 = vld [vmem:[%s1342_s1 + $0x18] sm:$0xff] (!%p140_p2)   ;;  %v1058_v7 = vld [vmem:[%s1342_s1 + $0x20] sm:$0xff] (!%p140_p2)   ;;  %v1059_v8 = vld [vmem:[%s1342_s1 + $0x28] sm:$0xff] (!%p140_p2)   ;;  %vm803_vm1 = vcmask (!%p140_p2), 257024  }
   0x7   : > { %483 = vmatpush1.bf16.msra.mxu0 (!%p140_p2), %v1054_v0  ;;  %1036 = vmatpush1.bf16.msra.mxu1 (!%p140_p2), %v1054_v0  ;;  %v1060_v9 = vld [vmem:[%s1342_s1 + $0x30] sm:$0xff] (!%p140_p2)   ;;  %v1061_v10 = vld [vmem:[%s1342_s1 + $0x38] sm:$0xff] (!%p140_p2)   ;;  %v1062_v11 = vld [vmem:[%s1342_s1 + $0x40] sm:$0xff] (!%p140_p2)  }
   0x8   : > { %484 = vmatprep.subr.bf16.mxu0 (!%p140_p2), %v1119_v1  ;;  %1028 = vmatprep.subr.bf16.mxu1 (!%p140_p2), %v1119_v1  ;;  %v1234_v42 = vld [vmem:[%s1343_s2] ss:$0 sm:$0xff] (!%p140_p2) }
   0xb   : > { %485 = vmatpush1.bf16.msra.mxu0 (!%p140_p2), %v1055_v2  ;;  %1037 = vmatpush1.bf16.msra.mxu1 (!%p140_p2), %v1055_v2 }
   0xc   : > { %486 = vmatprep.subr.bf16.mxu0 (!%p140_p2), %v1119_v1  ;;  %1029 = vmatprep.subr.bf16.mxu1 (!%p140_p2), %v1119_v1 }
   0xd   : > { %s1346_s16 = smov (!%p165_p3, %s897_s16), 63 }
   0xe   : > { %s994_s21 = sshll.u32 %s1346_s16, 3  ;;  %s901_s13 = sshll.u32 %s1346_s16, 2 }
   0xf   : > { %s1163_s24 = scalar_lea.vmem %s1341_s0, %s994_s21  ;;  %487 = vmatpush1.bf16.msra.mxu0 %v1056_v3  ;;  %1038 = vmatpush1.bf16.msra.mxu1 %v1056_v3  ;;  %s1244_s16 = scalar_lea.vmem %s1344_s3, %s901_s13 }
  0x10   : > { %v1065_v5 = vld [vmem:[%s1163_s24 + $0x4] ss:$8 sps:$4 sm:$0xff]   ;;  %488 = vmatprep.subr.bf16.mxu0 %v1119_v1  ;;  %1030 = vmatprep.subr.bf16.mxu1 %v1119_v1  ;;  %v1063_v12 = vld [vmem:[%s1163_s24] ss:$8 sps:$4 sm:$0xff]   ;;  %v1069_v14 = vld [vmem:[%s1163_s24 + $0x14] ss:$8 sps:$4 sm:$0xff]  }
  0x11   : > { %v1068_v6 = vld [vmem:[%s1163_s24 + $0x84] ss:$8 sps:$4 sm:$0xff]   ;;  %944 = vmatprep.mubr.msk.bf16.mxu0 %vm433_vm0, %v1065_v5  ;;  %v1066_v13 = vld [vmem:[%s1163_s24 + $0x80] ss:$8 sps:$4 sm:$0xff]   ;;  %v1071_v15 = vld [vmem:[%s1163_s24 + $0x94] ss:$8 sps:$4 sm:$0xff]  }
  0x12   : > { %952 = vmatprep.mubr.msk.bf16.mxu1 %vm433_vm0, %v1068_v6  ;;  %v1073_v16 = vld [vmem:[%s1163_s24 + $0x10] ss:$8 sps:$4 sm:$0xff]   ;;  %v1075_v18 = vld [vmem:[%s1163_s24 + $0x24] ss:$8 sps:$4 sm:$0xff]   ;;  %v1079_v20 = vld [vmem:[%s1163_s24 + $0x20] ss:$8 sps:$4 sm:$0xff]  }
  0x13   : > { %489 = vmatpush1.bf16.msra.mxu0 %v1057_v4  ;;  %1039 = vmatpush1.bf16.msra.mxu1 %v1057_v4  ;;  %v1074_v17 = vld [vmem:[%s1163_s24 + $0x90] ss:$8 sps:$4 sm:$0xff]   ;;  %v1077_v19 = vld [vmem:[%s1163_s24 + $0xa4] ss:$8 sps:$4 sm:$0xff]   ;;  %v1080_v21 = vld [vmem:[%s1163_s24 + $0xa0] ss:$8 sps:$4 sm:$0xff]  }
  0x14   : > { %490 = vmatprep.subr.bf16.mxu0 %v1119_v1  ;;  %1031 = vmatprep.subr.bf16.mxu1 %v1119_v1  ;;  %v1081_v22 = vld [vmem:[%s1163_s24 + $0x34] ss:$8 sps:$4 sm:$0xff]   ;;  %v1085_v24 = vld [vmem:[%s1163_s24 + $0x30] ss:$8 sps:$4 sm:$0xff]   ;;  %v1087_v26 = vld [vmem:[%s1163_s24 + $0x44] ss:$8 sps:$4 sm:$0xff]  }
  0x15   : > { %v1083_v23 = vld [vmem:[%s1163_s24 + $0xb4] ss:$8 sps:$4 sm:$0xff]   ;;  %v1086_v25 = vld [vmem:[%s1163_s24 + $0xb0] ss:$8 sps:$4 sm:$0xff]   ;;  %v1089_v27 = vld [vmem:[%s1163_s24 + $0xc4] ss:$8 sps:$4 sm:$0xff]  }
  0x16   : > { %v1091_v28 = vld [vmem:[%s1163_s24 + $0x40] ss:$8 sps:$4 sm:$0xff]   ;;  %v1093_v30 = vld [vmem:[%s1163_s24 + $0x54] ss:$8 sps:$4 sm:$0xff]   ;;  %v1097_v32 = vld [vmem:[%s1163_s24 + $0x50] ss:$8 sps:$4 sm:$0xff]  }
  0x17   : > { %491 = vmatpush1.bf16.msra.mxu0 %v1058_v7  ;;  %1040 = vmatpush1.bf16.msra.mxu1 %v1058_v7  ;;  %v1092_v29 = vld [vmem:[%s1163_s24 + $0xc0] ss:$8 sps:$4 sm:$0xff]   ;;  %v1095_v31 = vld [vmem:[%s1163_s24 + $0xd4] ss:$8 sps:$4 sm:$0xff]   ;;  %v1098_v33 = vld [vmem:[%s1163_s24 + $0xd0] ss:$8 sps:$4 sm:$0xff]  }
  0x18   : > { %492 = vmatprep.subr.bf16.mxu0 %v1119_v1  ;;  %1032 = vmatprep.subr.bf16.mxu1 %v1119_v1  ;;  %v1099_v34 = vld [vmem:[%s1163_s24 + $0x64] ss:$8 sps:$4 sm:$0xff]   ;;  %v1103_v36 = vld [vmem:[%s1163_s24 + $0x60] ss:$8 sps:$4 sm:$0xff]   ;;  %v1105_v38 = vld [vmem:[%s1163_s24 + $0x74] ss:$8 sps:$4 sm:$0xff]  }
  0x19   : > { %v1101_v35 = vld [vmem:[%s1163_s24 + $0xe4] ss:$8 sps:$4 sm:$0xff]   ;;  %v1104_v37 = vld [vmem:[%s1163_s24 + $0xe0] ss:$8 sps:$4 sm:$0xff]   ;;  %v1107_v39 = vld [vmem:[%s1163_s24 + $0xf4] ss:$8 sps:$4 sm:$0xff]  }
  0x1a   : > { %v1109_v40 = vld [vmem:[%s1163_s24 + $0x70] ss:$8 sps:$4 sm:$0xff]  }
  0x1b   : > { %493 = vmatpush1.bf16.msra.mxu0 %v1059_v8  ;;  %1041 = vmatpush1.bf16.msra.mxu1 %v1059_v8  ;;  %v1110_v41 = vld [vmem:[%s1163_s24 + $0xf0] ss:$8 sps:$4 sm:$0xff]  }
  0x1c   : > { %494 = vmatprep.subr.bf16.mxu0 %v1119_v1  ;;  %1033 = vmatprep.subr.bf16.mxu1 %v1119_v1 }
  0x1f   : > { %495 = vmatpush1.bf16.msra.mxu0 %v1060_v9  ;;  %1042 = vmatpush1.bf16.msra.mxu1 %v1060_v9 }
  0x20   : > { %496 = vmatprep.subr.bf16.mxu0 %v1119_v1  ;;  %1034 = vmatprep.subr.bf16.mxu1 %v1119_v1 }
  0x23   : > { %497 = vmatpush1.bf16.msra.mxu0 %v1061_v10  ;;  %1043 = vmatpush1.bf16.msra.mxu1 %v1061_v10 }
  0x24   : > { %498 = vmatprep.subr.bf16.mxu0 %v1119_v1  ;;  %1035 = vmatprep.subr.bf16.mxu1 %v1119_v1 }
  0x27   : > { %499 = vmatpush1.bf16.msra.mxu0 %v1062_v11  ;;  %1044 = vmatpush1.bf16.msra.mxu1 %v1062_v11 }
  0x2a   : > { %515 = vmatmul.mubr.bf16.vlgmr.msra.gmra.mrb[0].mxu0 %v1063_v12  ;;  %579 = vmatmul.mubr.bf16.vlgmr.msra.gmra.mrb[0].mxu1 %v1066_v13 }
  0x2b   : > { %945 = vmatprep.mubr.msk.bf16.mxu0 %vm433_vm0, %v1069_v14  ;;  %953 = vmatprep.mubr.msk.bf16.mxu1 %vm433_vm0, %v1071_v15 }
  0x32   : > { %523 = vmatmul.mubr.bf16.gmra.mrb[4].mxu0 %v1073_v16  ;;  %587 = vmatmul.mubr.bf16.gmra.mrb[4].mxu1 %v1074_v17 }
  0x33   : > { %946 = vmatprep.mubr.msk.bf16.mxu0 %vm433_vm0, %v1075_v18  ;;  %954 = vmatprep.mubr.msk.bf16.mxu1 %vm433_vm0, %v1077_v19 }
  0x3a   : > { %531 = vmatmul.mubr.bf16.gmra.mrb[8].mxu0 %v1079_v20  ;;  %595 = vmatmul.mubr.bf16.gmra.mrb[8].mxu1 %v1080_v21 }
  0x3b   : > { %947 = vmatprep.mubr.msk.bf16.mxu0 %vm433_vm0, %v1081_v22  ;;  %955 = vmatprep.mubr.msk.bf16.mxu1 %vm433_vm0, %v1083_v23 }
  0x42   : > { %539 = vmatmul.mubr.bf16.gmra.mrb[12].mxu0 %v1085_v24  ;;  %603 = vmatmul.mubr.bf16.gmra.mrb[12].mxu1 %v1086_v25 }
  0x43   : > { %948 = vmatprep.mubr.msk.bf16.mxu0 %vm433_vm0, %v1087_v26  ;;  %956 = vmatprep.mubr.msk.bf16.mxu1 %vm433_vm0, %v1089_v27 }
  0x4a   : > { %547 = vmatmul.mubr.bf16.gmra.mrb[16].mxu0 %v1091_v28  ;;  %611 = vmatmul.mubr.bf16.gmra.mrb[16].mxu1 %v1092_v29 }
  0x4b   : > { %949 = vmatprep.mubr.msk.bf16.mxu0 %vm433_vm0, %v1093_v30  ;;  %957 = vmatprep.mubr.msk.bf16.mxu1 %vm433_vm0, %v1095_v31 }
  0x52   : > { %555 = vmatmul.mubr.bf16.gmra.mrb[20].mxu0 %v1097_v32  ;;  %619 = vmatmul.mubr.bf16.gmra.mrb[20].mxu1 %v1098_v33 }
  0x53   : > { %950 = vmatprep.mubr.msk.bf16.mxu0 %vm433_vm0, %v1099_v34  ;;  %958 = vmatprep.mubr.msk.bf16.mxu1 %vm433_vm0, %v1101_v35 }
  0x5a   : > { %563 = vmatmul.mubr.bf16.gmra.mrb[24].mxu0 %v1103_v36  ;;  %627 = vmatmul.mubr.bf16.gmra.mrb[24].mxu1 %v1104_v37 }
  0x5b   : > { %951 = vmatprep.mubr.msk.bf16.mxu0 %vm433_vm0, %v1105_v38  ;;  %959 = vmatprep.mubr.msk.bf16.mxu1 %vm433_vm0, %v1107_v39 }
  0x62   : > { %571 = vmatmul.mubr.bf16.gmra.mrb[28].mxu0 %v1109_v40  ;;  %635 = vmatmul.mubr.bf16.gmra.mrb[28].mxu1 %v1110_v41 }
  0xfd   : > { %v516_v43 = vpop.f32.mrb[0].mxu0  ;;  %v580_v44 = vpop.f32.mrb[0].mxu1 }
  0xfe   : > { %v517_v45 = vadd.f32 %v1234_v42, %v516_v43  ;;  %v581_v46 = vadd.f32 %v1234_v42, %v580_v44  ;;  %v518_v47 = vpop.f32.mrb[1].mxu0  ;;  %v582_v48 = vpop.f32.mrb[1].mxu1 }
  0xff   : > { %v519_v49 = vpop.f32.mrb[2].mxu0  ;;  %v583_v50 = vpop.f32.mrb[2].mxu1 }
 0x100   : > { %v643_v51 = vmax.f32 %v517_v45, 0.0  ;;  %v659_v52 = vmax.f32 %v581_v46, 0.0  ;;  %v520_v53 = vadd.f32 %v1234_v42, %v519_v49  ;;  %v584_v54 = vadd.f32 %v1234_v42, %v583_v50  ;;  %v521_v55 = vpop.f32.mrb[3].mxu0  ;;  %v585_v56 = vpop.f32.mrb[3].mxu1 }
 0x102   : > { %v995_v57 = vpack.c.bf16 %v643_v51, %v643_v51  ;;  %v1011_v58 = vpack.c.bf16 %v659_v52, %v659_v52  ;;  %v644_v59 = vmax.f32 %v520_v53, 0.0  ;;  %v660_v60 = vmax.f32 %v584_v54, 0.0 }
 0x104   : > { %804 = vst.msk [vmem:[%s1244_s16] sm:$0xf] %vm803_vm1, %v995_v57  ;;  %820 = vst.msk [vmem:[%s1244_s16 + $0x40] sm:$0xf] %vm803_vm1, %v1011_v58  ;;  %v996_v61 = vpack.c.bf16 %v644_v59, %v644_v59  ;;  %v1012_v62 = vpack.c.bf16 %v660_v60, %v660_v60 }
 0x105   : > { %v524_v63 = vpop.f32.mrb[4].mxu0  ;;  %v588_v0 = vpop.f32.mrb[4].mxu1 }
 0x106   : > { %805 = vst.msk [vmem:[%s1244_s16 + $0x4] sm:$0xf] %vm803_vm1, %v996_v61  ;;  %821 = vst.msk [vmem:[%s1244_s16 + $0x44] sm:$0xf] %vm803_vm1, %v1012_v62  ;;  %v525_v1 = vadd.f32 %v1234_v42, %v524_v63  ;;  %v589_v2 = vadd.f32 %v1234_v42, %v588_v0  ;;  %v526_v3 = vpop.f32.mrb[5].mxu0  ;;  %v590_v4 = vpop.f32.mrb[5].mxu1 }
 0x107   : > { %v527_v5 = vpop.f32.mrb[6].mxu0  ;;  %v591_v6 = vpop.f32.mrb[6].mxu1 }
 0x108   : > { %v645_v7 = vmax.f32 %v525_v1, 0.0  ;;  %v661_v8 = vmax.f32 %v589_v2, 0.0  ;;  %v528_v9 = vadd.f32 %v1234_v42, %v527_v5  ;;  %v592_v10 = vadd.f32 %v1234_v42, %v591_v6  ;;  %v529_v11 = vpop.f32.mrb[7].mxu0  ;;  %v593_v12 = vpop.f32.mrb[7].mxu1 }
 0x10a   : > { %v997_v13 = vpack.c.bf16 %v645_v7, %v645_v7  ;;  %v1013_v14 = vpack.c.bf16 %v661_v8, %v661_v8  ;;  %v646_v15 = vmax.f32 %v528_v9, 0.0  ;;  %v662_v16 = vmax.f32 %v592_v10, 0.0 }
 0x10c   : > { %806 = vst.msk [vmem:[%s1244_s16 + $0x8] sm:$0xf] %vm803_vm1, %v997_v13  ;;  %822 = vst.msk [vmem:[%s1244_s16 + $0x48] sm:$0xf] %vm803_vm1, %v1013_v14  ;;  %v998_v17 = vpack.c.bf16 %v646_v15, %v646_v15  ;;  %v1014_v18 = vpack.c.bf16 %v662_v16, %v662_v16 }
 0x10d   : > { %v532_v19 = vpop.f32.mrb[8].mxu0  ;;  %v596_v20 = vpop.f32.mrb[8].mxu1 }
 0x10e   : > { %807 = vst.msk [vmem:[%s1244_s16 + $0xc] sm:$0xf] %vm803_vm1, %v998_v17  ;;  %823 = vst.msk [vmem:[%s1244_s16 + $0x4c] sm:$0xf] %vm803_vm1, %v1014_v18  ;;  %v533_v21 = vadd.f32 %v1234_v42, %v532_v19  ;;  %v597_v22 = vadd.f32 %v1234_v42, %v596_v20  ;;  %v534_v23 = vpop.f32.mrb[9].mxu0  ;;  %v598_v24 = vpop.f32.mrb[9].mxu1 }
 0x10f   : > { %v535_v25 = vpop.f32.mrb[10].mxu0  ;;  %v599_v26 = vpop.f32.mrb[10].mxu1 }
 0x110   : > { %v647_v27 = vmax.f32 %v533_v21, 0.0  ;;  %v663_v28 = vmax.f32 %v597_v22, 0.0  ;;  %v536_v29 = vadd.f32 %v1234_v42, %v535_v25  ;;  %v600_v30 = vadd.f32 %v1234_v42, %v599_v26  ;;  %v537_v31 = vpop.f32.mrb[11].mxu0  ;;  %v601_v32 = vpop.f32.mrb[11].mxu1 }
 0x112   : > { %v999_v33 = vpack.c.bf16 %v647_v27, %v647_v27  ;;  %v1015_v34 = vpack.c.bf16 %v663_v28, %v663_v28  ;;  %v648_v35 = vmax.f32 %v536_v29, 0.0  ;;  %v664_v36 = vmax.f32 %v600_v30, 0.0 }
 0x114   : > { %808 = vst.msk [vmem:[%s1244_s16 + $0x10] sm:$0xf] %vm803_vm1, %v999_v33  ;;  %824 = vst.msk [vmem:[%s1244_s16 + $0x50] sm:$0xf] %vm803_vm1, %v1015_v34  ;;  %v1000_v37 = vpack.c.bf16 %v648_v35, %v648_v35  ;;  %v1016_v38 = vpack.c.bf16 %v664_v36, %v664_v36 }
 0x115   : > { %v540_v39 = vpop.f32.mrb[12].mxu0  ;;  %v604_v40 = vpop.f32.mrb[12].mxu1 }
 0x116   : > { %809 = vst.msk [vmem:[%s1244_s16 + $0x14] sm:$0xf] %vm803_vm1, %v1000_v37  ;;  %825 = vst.msk [vmem:[%s1244_s16 + $0x54] sm:$0xf] %vm803_vm1, %v1016_v38  ;;  %v541_v41 = vadd.f32 %v1234_v42, %v540_v39  ;;  %v605_v43 = vadd.f32 %v1234_v42, %v604_v40  ;;  %v542_v44 = vpop.f32.mrb[13].mxu0  ;;  %v606_v45 = vpop.f32.mrb[13].mxu1 }
 0x117   : > { %v543_v46 = vpop.f32.mrb[14].mxu0  ;;  %v607_v47 = vpop.f32.mrb[14].mxu1 }
 0x118   : > { %v649_v48 = vmax.f32 %v541_v41, 0.0  ;;  %v665_v49 = vmax.f32 %v605_v43, 0.0  ;;  %v544_v50 = vadd.f32 %v1234_v42, %v543_v46  ;;  %v608_v51 = vadd.f32 %v1234_v42, %v607_v47  ;;  %v545_v52 = vpop.f32.mrb[15].mxu0  ;;  %v609_v53 = vpop.f32.mrb[15].mxu1 }
 0x11a   : > { %v1001_v54 = vpack.c.bf16 %v649_v48, %v649_v48  ;;  %v1017_v55 = vpack.c.bf16 %v665_v49, %v665_v49  ;;  %v650_v56 = vmax.f32 %v544_v50, 0.0  ;;  %v666_v57 = vmax.f32 %v608_v51, 0.0 }
 0x11c   : > { %810 = vst.msk [vmem:[%s1244_s16 + $0x18] sm:$0xf] %vm803_vm1, %v1001_v54  ;;  %826 = vst.msk [vmem:[%s1244_s16 + $0x58] sm:$0xf] %vm803_vm1, %v1017_v55  ;;  %v1002_v58 = vpack.c.bf16 %v650_v56, %v650_v56  ;;  %v1018_v59 = vpack.c.bf16 %v666_v57, %v666_v57 }
 0x11d   : > { %v548_v60 = vpop.f32.mrb[16].mxu0  ;;  %v612_v61 = vpop.f32.mrb[16].mxu1 }
 0x11e   : > { %811 = vst.msk [vmem:[%s1244_s16 + $0x1c] sm:$0xf] %vm803_vm1, %v1002_v58  ;;  %827 = vst.msk [vmem:[%s1244_s16 + $0x5c] sm:$0xf] %vm803_vm1, %v1018_v59  ;;  %v549_v62 = vadd.f32 %v1234_v42, %v548_v60  ;;  %v613_v63 = vadd.f32 %v1234_v42, %v612_v61  ;;  %v550_v0 = vpop.f32.mrb[17].mxu0  ;;  %v614_v1 = vpop.f32.mrb[17].mxu1 }
 0x11f   : > { %v551_v2 = vpop.f32.mrb[18].mxu0  ;;  %v615_v3 = vpop.f32.mrb[18].mxu1 }
 0x120   : > { %v651_v4 = vmax.f32 %v549_v62, 0.0  ;;  %v667_v5 = vmax.f32 %v613_v63, 0.0  ;;  %v552_v6 = vadd.f32 %v1234_v42, %v551_v2  ;;  %v616_v7 = vadd.f32 %v1234_v42, %v615_v3  ;;  %v553_v8 = vpop.f32.mrb[19].mxu0  ;;  %v617_v9 = vpop.f32.mrb[19].mxu1 }
 0x122   : > { %v1003_v10 = vpack.c.bf16 %v651_v4, %v651_v4  ;;  %v1019_v11 = vpack.c.bf16 %v667_v5, %v667_v5  ;;  %v652_v12 = vmax.f32 %v552_v6, 0.0  ;;  %v668_v13 = vmax.f32 %v616_v7, 0.0 }
 0x124   : > { %812 = vst.msk [vmem:[%s1244_s16 + $0x20] sm:$0xf] %vm803_vm1, %v1003_v10  ;;  %828 = vst.msk [vmem:[%s1244_s16 + $0x60] sm:$0xf] %vm803_vm1, %v1019_v11  ;;  %v1004_v14 = vpack.c.bf16 %v652_v12, %v652_v12  ;;  %v1020_v15 = vpack.c.bf16 %v668_v13, %v668_v13 }
 0x125   : > { %v556_v16 = vpop.f32.mrb[20].mxu0  ;;  %v620_v17 = vpop.f32.mrb[20].mxu1 }
 0x126   : > { %813 = vst.msk [vmem:[%s1244_s16 + $0x24] sm:$0xf] %vm803_vm1, %v1004_v14  ;;  %829 = vst.msk [vmem:[%s1244_s16 + $0x64] sm:$0xf] %vm803_vm1, %v1020_v15  ;;  %v557_v18 = vadd.f32 %v1234_v42, %v556_v16  ;;  %v621_v19 = vadd.f32 %v1234_v42, %v620_v17  ;;  %v558_v20 = vpop.f32.mrb[21].mxu0  ;;  %v622_v21 = vpop.f32.mrb[21].mxu1 }
 0x127   : > { %v559_v22 = vpop.f32.mrb[22].mxu0  ;;  %v623_v23 = vpop.f32.mrb[22].mxu1 }
 0x128   : > { %v653_v24 = vmax.f32 %v557_v18, 0.0  ;;  %v669_v25 = vmax.f32 %v621_v19, 0.0  ;;  %v560_v26 = vadd.f32 %v1234_v42, %v559_v22  ;;  %v624_v27 = vadd.f32 %v1234_v42, %v623_v23  ;;  %v561_v28 = vpop.f32.mrb[23].mxu0  ;;  %v625_v29 = vpop.f32.mrb[23].mxu1 }
 0x12a   : > { %v1005_v30 = vpack.c.bf16 %v653_v24, %v653_v24  ;;  %v1021_v31 = vpack.c.bf16 %v669_v25, %v669_v25  ;;  %v654_v32 = vmax.f32 %v560_v26, 0.0  ;;  %v670_v33 = vmax.f32 %v624_v27, 0.0 }
 0x12c   : > { %814 = vst.msk [vmem:[%s1244_s16 + $0x28] sm:$0xf] %vm803_vm1, %v1005_v30  ;;  %830 = vst.msk [vmem:[%s1244_s16 + $0x68] sm:$0xf] %vm803_vm1, %v1021_v31  ;;  %v1006_v34 = vpack.c.bf16 %v654_v32, %v654_v32  ;;  %v1022_v35 = vpack.c.bf16 %v670_v33, %v670_v33 }
 0x12d   : > { %v564_v36 = vpop.f32.mrb[24].mxu0  ;;  %v628_v37 = vpop.f32.mrb[24].mxu1 }
 0x12e   : > { %815 = vst.msk [vmem:[%s1244_s16 + $0x2c] sm:$0xf] %vm803_vm1, %v1006_v34  ;;  %831 = vst.msk [vmem:[%s1244_s16 + $0x6c] sm:$0xf] %vm803_vm1, %v1022_v35  ;;  %v565_v38 = vadd.f32 %v1234_v42, %v564_v36  ;;  %v629_v39 = vadd.f32 %v1234_v42, %v628_v37  ;;  %v566_v40 = vpop.f32.mrb[25].mxu0  ;;  %v630_v41 = vpop.f32.mrb[25].mxu1 }
 0x12f   : > { %v567_v43 = vpop.f32.mrb[26].mxu0  ;;  %v631_v44 = vpop.f32.mrb[26].mxu1 }
 0x130   : > { %v655_v45 = vmax.f32 %v565_v38, 0.0  ;;  %v671_v46 = vmax.f32 %v629_v39, 0.0  ;;  %v568_v47 = vadd.f32 %v1234_v42, %v567_v43  ;;  %v632_v48 = vadd.f32 %v1234_v42, %v631_v44  ;;  %v569_v49 = vpop.f32.mrb[27].mxu0  ;;  %v633_v50 = vpop.f32.mrb[27].mxu1 }
 0x132   : > { %v1007_v51 = vpack.c.bf16 %v655_v45, %v655_v45  ;;  %v1023_v52 = vpack.c.bf16 %v671_v46, %v671_v46  ;;  %v656_v53 = vmax.f32 %v568_v47, 0.0  ;;  %v672_v54 = vmax.f32 %v632_v48, 0.0 }
 0x134   : > { %816 = vst.msk [vmem:[%s1244_s16 + $0x30] sm:$0xf] %vm803_vm1, %v1007_v51  ;;  %832 = vst.msk [vmem:[%s1244_s16 + $0x70] sm:$0xf] %vm803_vm1, %v1023_v52  ;;  %v1008_v55 = vpack.c.bf16 %v656_v53, %v656_v53  ;;  %v1024_v56 = vpack.c.bf16 %v672_v54, %v672_v54 }
 0x135   : > { %v572_v57 = vpop.f32.mrb[28].mxu0  ;;  %v636_v58 = vpop.f32.mrb[28].mxu1 }
 0x136   : > { %817 = vst.msk [vmem:[%s1244_s16 + $0x34] sm:$0xf] %vm803_vm1, %v1008_v55  ;;  %833 = vst.msk [vmem:[%s1244_s16 + $0x74] sm:$0xf] %vm803_vm1, %v1024_v56  ;;  %v573_v59 = vadd.f32 %v1234_v42, %v572_v57  ;;  %v637_v60 = vadd.f32 %v1234_v42, %v636_v58  ;;  %v574_v61 = vpop.f32.mrb[29].mxu0  ;;  %v638_v62 = vpop.f32.mrb[29].mxu1 }
 0x137   : > { %v575_v63 = vpop.f32.mrb[30].mxu0  ;;  %v639_v0 = vpop.f32.mrb[30].mxu1 }
 0x138   : > { %v657_v1 = vmax.f32 %v573_v59, 0.0  ;;  %v673_v2 = vmax.f32 %v637_v60, 0.0  ;;  %v576_v3 = vadd.f32 %v1234_v42, %v575_v63  ;;  %v640_v4 = vadd.f32 %v1234_v42, %v639_v0  ;;  %v577_v5 = vpop.f32.mrb[31].mxu0  ;;  %v641_v6 = vpop.f32.mrb[31].mxu1 }
 0x13a   : > { %v1009_v7 = vpack.c.bf16 %v657_v1, %v657_v1  ;;  %v1025_v8 = vpack.c.bf16 %v673_v2, %v673_v2  ;;  %v658_v9 = vmax.f32 %v576_v3, 0.0  ;;  %v674_v10 = vmax.f32 %v640_v4, 0.0 }
 0x13c   : > { %818 = vst.msk [vmem:[%s1244_s16 + $0x38] sm:$0xf] %vm803_vm1, %v1009_v7  ;;  %834 = vst.msk [vmem:[%s1244_s16 + $0x78] sm:$0xf] %vm803_vm1, %v1025_v8  ;;  %v1010_v11 = vpack.c.bf16 %v658_v9, %v658_v9  ;;  %v1026_v12 = vpack.c.bf16 %v674_v10, %v674_v10 }
 0x13e   : > { %819 = vst.msk [vmem:[%s1244_s16 + $0x3c] sm:$0xf] %vm803_vm1, %v1010_v11  ;;  %835 = vst.msk [vmem:[%s1244_s16 + $0x7c] sm:$0xf] %vm803_vm1, %v1026_v12 }
 0x13f PF: > { %s13_s12 = sadd.s32 1, %s1117_s12  }
 0x140   : > { %p10_p4 = scmp.ge.s32.totalorder %s13_s12, 4  }
 0x142   :  { %12 = sbr.rel (!%p10_p4) target bundleno = 1 (0x1), region = 62 }

// kernel: duck_detector_forward.11
= control target key start
LH: loop header
LB: loop body
LE: loop exit
PB: predicated region body
PF: predicated region fallthrough
CT: control target
= control target key end

     0   :  { %s158_s22 = smov 96   ;;  %vm136_vm0 = vcmask 257024   ;;  %s369_s0 = inlined_call_operand.vmem [shape: bf16[16,2,8,64], index: 0, kind: input, shape index: {}]   ;;  %s370_s1 = inlined_call_operand.vmem [shape: bf16[16,8,32], index: 1, kind: output, shape index: {}]  }
   0x1   :  { %v12_v0 = vld [vmem:[%s369_s0 + $0x10] sm:$0xf]  ;;  %v13_v1 = vld [vmem:[%s369_s0 + $0x14] sm:$0xf]  ;;  %v8_v2 = vld [vmem:[%s369_s0] sm:$0xf] }
   0x2   :  { %v178_v3 = vmax.bf16 %v13_v1, %v12_v0  ;;  %v9_v4 = vld [vmem:[%s369_s0 + $0x4] sm:$0xf]  ;;  %v14_v5 = vld [vmem:[%s369_s0 + $0x18] sm:$0xf]  ;;  %v15_v6 = vld [vmem:[%s369_s0 + $0x1c] sm:$0xf] }
   0x3   :  { %v189_v7 = vmax.bf16 %v9_v4, %v8_v2  ;;  %v10_v8 = vld [vmem:[%s369_s0 + $0x8] sm:$0xf]  ;;  %v11_v9 = vld [vmem:[%s369_s0 + $0xc] sm:$0xf]  ;;  %v199_v10 = vmax.bf16 %v15_v6, %v14_v5  ;;  %v16_v14 = vld [vmem:[%s369_s0 + $0x20] sm:$0xf] }
   0x4   :  { %76 = vrot.lane.b32.xlu1 %v178_v3, %s158_s22  ;;  %v203_v11 = vmax.bf16 %v11_v9, %v10_v8  ;;  %v18_v12 = vld [vmem:[%s369_s0 + $0x28] sm:$0xf]  ;;  %v19_v13 = vld [vmem:[%s369_s0 + $0x2c] sm:$0xf]  ;;  %v17_v15 = vld [vmem:[%s369_s0 + $0x24] sm:$0xf] }
   0x5   :  { %72 = vrot.lane.b32.xlu0 %v189_v7, %s158_s22  ;;  %v219_v16 = vmax.bf16 %v19_v13, %v18_v12  ;;  %v223_v17 = vmax.bf16 %v17_v15, %v16_v14  ;;  %v22_v18 = vld [vmem:[%s369_s0 + $0x38] sm:$0xf]  ;;  %v23_v19 = vld [vmem:[%s369_s0 + $0x3c] sm:$0xf]  ;;  %v20_v20 = vld [vmem:[%s369_s0 + $0x30] sm:$0xf] }
   0x6   :  { %v21_v21 = vld [vmem:[%s369_s0 + $0x34] sm:$0xf]  ;;  %v47_v22 = vmax.bf16 %v23_v19, %v22_v18  ;;  %v26_v24 = vld [vmem:[%s369_s0 + $0x48] sm:$0xf]  ;;  %v27_v25 = vld [vmem:[%s369_s0 + $0x4c] sm:$0xf] }
   0x7   :  { %v46_v23 = vmax.bf16 %v21_v21, %v20_v20  ;;  %v24_v26 = vld [vmem:[%s369_s0 + $0x40] sm:$0xf]  ;;  %v25_v27 = vld [vmem:[%s369_s0 + $0x44] sm:$0xf]  ;;  %v49_v28 = vmax.bf16 %v27_v25, %v26_v24  ;;  %v30_v30 = vld [vmem:[%s369_s0 + $0x58] sm:$0xf] }
   0x8   :  { %78 = vrot.lane.b32.xlu1 %v199_v10, %s158_s22  ;;  %v48_v29 = vmax.bf16 %v25_v27, %v24_v26  ;;  %v31_v31 = vld [vmem:[%s369_s0 + $0x5c] sm:$0xf]  ;;  %v28_v32 = vld [vmem:[%s369_s0 + $0x50] sm:$0xf]  ;;  %v29_v33 = vld [vmem:[%s369_s0 + $0x54] sm:$0xf] }
   0x9   :  { %74 = vrot.lane.b32.xlu0 %v203_v11, %s158_s22  ;;  %v51_v34 = vmax.bf16 %v31_v31, %v30_v30  ;;  %v50_v35 = vmax.bf16 %v29_v33, %v28_v32  ;;  %v34_v36 = vld [vmem:[%s369_s0 + $0x68] sm:$0xf]  ;;  %v35_v37 = vld [vmem:[%s369_s0 + $0x6c] sm:$0xf]  ;;  %v32_v38 = vld [vmem:[%s369_s0 + $0x60] sm:$0xf] }
   0xa   :  { %v33_v39 = vld [vmem:[%s369_s0 + $0x64] sm:$0xf]  ;;  %v53_v40 = vmax.bf16 %v35_v37, %v34_v36  ;;  %v38_v42 = vld [vmem:[%s369_s0 + $0x78] sm:$0xf]  ;;  %v39_v43 = vld [vmem:[%s369_s0 + $0x7c] sm:$0xf] }
   0xb   :  { %v52_v41 = vmax.bf16 %v33_v39, %v32_v38  ;;  %v36_v44 = vld [vmem:[%s369_s0 + $0x70] sm:$0xf]  ;;  %v37_v45 = vld [vmem:[%s369_s0 + $0x74] sm:$0xf]  ;;  %v55_v46 = vmax.bf16 %v39_v43, %v38_v42 }
   0xc   :  { %82 = vrot.lane.b32.xlu1 %v219_v16, %s158_s22  ;;  %v54_v47 = vmax.bf16 %v37_v45, %v36_v44 }
   0xd   :  { %80 = vrot.lane.b32.xlu0 %v223_v17, %s158_s22 }
  0x10   :  { %86 = vrot.lane.b32.xlu1 %v47_v22, %s158_s22 }
  0x11   :  { %84 = vrot.lane.b32.xlu0 %v46_v23, %s158_s22 }
  0x14   :  { %90 = vrot.lane.b32.xlu1 %v49_v28, %s158_s22 }
  0x15   :  { %88 = vrot.lane.b32.xlu0 %v48_v29, %s158_s22 }
  0x18   :  { %94 = vrot.lane.b32.xlu1 %v51_v34, %s158_s22 }
  0x19   :  { %92 = vrot.lane.b32.xlu0 %v50_v35, %s158_s22 }
  0x1c   :  { %98 = vrot.lane.b32.xlu1 %v53_v40, %s158_s22 }
  0x1d   :  { %96 = vrot.lane.b32.xlu0 %v52_v41, %s158_s22 }
  0x20   :  { %102 = vrot.lane.b32.xlu1 %v55_v46, %s158_s22 }
  0x21   :  { %100 = vrot.lane.b32.xlu0 %v54_v47, %s158_s22 }
  0x76   :  { %v77_v48 = vpop.permute.xlu1 %76 }
  0x77   :  { %v122_v49 = vmax.bf16 %v77_v48, %v178_v3  ;;  %v73_v50 = vpop.permute.xlu0 %72 }
  0x78   :  { %v120_v51 = vmax.bf16 %v73_v50, %v189_v7 }
  0x79   :  { %139 = vst.msk [vmem:[%s370_s1 + $0x8] sm:$0xf] %vm136_vm0, %v122_v49 }
  0x7a   :  { %137 = vst.msk [vmem:[%s370_s1] sm:$0xf] %vm136_vm0, %v120_v51  ;;  %v79_v52 = vpop.permute.xlu1 %78 }
  0x7b   :  { %v123_v53 = vmax.bf16 %v79_v52, %v199_v10  ;;  %v75_v54 = vpop.permute.xlu0 %74 }
  0x7c   :  { %v121_v55 = vmax.bf16 %v75_v54, %v203_v11 }
  0x7d   :  { %140 = vst.msk [vmem:[%s370_s1 + $0xc] sm:$0xf] %vm136_vm0, %v123_v53 }
  0x7e   :  { %138 = vst.msk [vmem:[%s370_s1 + $0x4] sm:$0xf] %vm136_vm0, %v121_v55  ;;  %v83_v56 = vpop.permute.xlu1 %82 }
  0x7f   :  { %v125_v57 = vmax.bf16 %v83_v56, %v219_v16  ;;  %v81_v58 = vpop.permute.xlu0 %80 }
  0x80   :  { %v124_v59 = vmax.bf16 %v81_v58, %v223_v17 }
  0x81   :  { %142 = vst.msk [vmem:[%s370_s1 + $0x14] sm:$0xf] %vm136_vm0, %v125_v57 }
  0x82   :  { %141 = vst.msk [vmem:[%s370_s1 + $0x10] sm:$0xf] %vm136_vm0, %v124_v59  ;;  %v87_v60 = vpop.permute.xlu1 %86 }
  0x83   :  { %v127_v61 = vmax.bf16 %v87_v60, %v47_v22  ;;  %v85_v62 = vpop.permute.xlu0 %84 }
  0x84   :  { %v126_v63 = vmax.bf16 %v85_v62, %v46_v23 }
  0x85   :  { %144 = vst.msk [vmem:[%s370_s1 + $0x1c] sm:$0xf] %vm136_vm0, %v127_v61 }
  0x86   :  { %143 = vst.msk [vmem:[%s370_s1 + $0x18] sm:$0xf] %vm136_vm0, %v126_v63  ;;  %v91_v0 = vpop.permute.xlu1 %90 }
  0x87   :  { %v129_v1 = vmax.bf16 %v91_v0, %v49_v28  ;;  %v89_v2 = vpop.permute.xlu0 %88 }
  0x88   :  { %v128_v3 = vmax.bf16 %v89_v2, %v48_v29 }
  0x89   :  { %146 = vst.msk [vmem:[%s370_s1 + $0x24] sm:$0xf] %vm136_vm0, %v129_v1 }
  0x8a   :  { %145 = vst.msk [vmem:[%s370_s1 + $0x20] sm:$0xf] %vm136_vm0, %v128_v3  ;;  %v95_v4 = vpop.permute.xlu1 %94 }
  0x8b   :  { %v131_v5 = vmax.bf16 %v95_v4, %v51_v34  ;;  %v93_v6 = vpop.permute.xlu0 %92 }
  0x8c   :  { %v130_v7 = vmax.bf16 %v93_v6, %v50_v35 }
  0x8d   :  { %148 = vst.msk [vmem:[%s370_s1 + $0x2c] sm:$0xf] %vm136_vm0, %v131_v5 }
  0x8e   :  { %147 = vst.msk [vmem:[%s370_s1 + $0x28] sm:$0xf] %vm136_vm0, %v130_v7  ;;  %v99_v8 = vpop.permute.xlu1 %98 }
  0x8f   :  { %v133_v9 = vmax.bf16 %v99_v8, %v53_v40  ;;  %v97_v10 = vpop.permute.xlu0 %96 }
  0x90   :  { %v132_v11 = vmax.bf16 %v97_v10, %v52_v41 }
  0x91   :  { %150 = vst.msk [vmem:[%s370_s1 + $0x34] sm:$0xf] %vm136_vm0, %v133_v9 }
  0x92   :  { %149 = vst.msk [vmem:[%s370_s1 + $0x30] sm:$0xf] %vm136_vm0, %v132_v11  ;;  %v103_v12 = vpop.permute.xlu1 %102 }
  0x93   :  { %v135_v13 = vmax.bf16 %v103_v12, %v55_v46  ;;  %v101_v14 = vpop.permute.xlu0 %100 }
  0x94   :  { %v134_v15 = vmax.bf16 %v101_v14, %v54_v47 }
  0x95   :  { %152 = vst.msk [vmem:[%s370_s1 + $0x3c] sm:$0xf] %vm136_vm0, %v135_v13 }
  0x96   :  { %151 = vst.msk [vmem:[%s370_s1 + $0x38] sm:$0xf] %vm136_vm0, %v134_v15 }

// kernel: duck_detector_forward.12
= control target key start
LH: loop header
LB: loop body
LE: loop exit
PB: predicated region body
PF: predicated region fallthrough
CT: control target
= control target key end

     0   :  { %s860_s12 = smov 0   ;;  %s974_s0 = inlined_call_operand.vmem [shape: bf16[128,288], index: 0, kind: input, shape index: {}]   ;;  %s975_s1 = inlined_call_operand.vmem [shape: bf16[288,64], index: 1, kind: input, shape index: {}]   ;;  %s976_s2 = inlined_call_operand.vmem [shape: f32[1,64], index: 2, kind: input, shape index: {}]   ;;  %s977_s3 = inlined_call_operand.vmem [shape: bf16[128,64], index: 3, kind: output, shape index: {}]  }
   0x1 LB: > { %s653_s13 = sadd.s32 4294967295, %s838_s12   ;;  %p657_p0 = scmp.ge.s32.totalorder %s838_s12, 1  ;;  %s838_s12 = sphi %s860_s12, %s13_s12  }
   0x2   : > { %p139_p1 = scmp.lt.s32.totalorder %s838_s12, 3 }
   0x4   : > { %p140_p2 = pnand %p657_p0, %p139_p1 }
   0x5   : > { %v798_v0 = vld [vmem:[%s975_s1 + $0x40] sm:$0xff] (!%p140_p2)   ;;  %s658_s16 = sshll.u32 (!%p140_p2), %s653_s13, 3  ;;  %v800_v2 = vld [vmem:[%s975_s1 + $0x48] sm:$0xff] (!%p140_p2)   ;;  %v802_v4 = vld [vmem:[%s975_s1 + $0x50] sm:$0xff] (!%p140_p2)   ;;  %vm405_vm0 = vcmask (!%p140_p2), 261120   ;;  %vm588_vm1 = vcmask (!%p140_p2), 519168  }
   0x6   : > { %143 = sbr.rel (%p140_p2) target bundleno = 280 (0x118), region = 32  ;;  %v799_v1 = vld [vmem:[%s975_s1] sm:$0xff] (!%p140_p2)   ;;  %715 = vmatprep.subr.bf16.mxu0 (!%p140_p2), %v798_v0  ;;  %773 = vmatprep.subr.bf16.mxu1 (!%p140_p2), %v798_v0  ;;  %p165_p3 = scmp.lt.s32.totalorder (!%p140_p2), %s658_s16, 15  ;;  %v801_v3 = vld [vmem:[%s975_s1 + $0x8] sm:$0xff] (!%p140_p2)   ;;  %v803_v5 = vld [vmem:[%s975_s1 + $0x10] sm:$0xff] (!%p140_p2)  }
   0x7   : > { %716 = vmatpush3.bf16.msra.mxu0 (!%p140_p2), %v799_v1  ;;  %781 = vmatpush3.bf16.msra.mxu1 (!%p140_p2), %v799_v1  ;;  %v804_v6 = vld [vmem:[%s975_s1 + $0x58] sm:$0xff] (!%p140_p2)   ;;  %v806_v8 = vld [vmem:[%s975_s1 + $0x60] sm:$0xff] (!%p140_p2)   ;;  %v808_v10 = vld [vmem:[%s975_s1 + $0x68] sm:$0xff] (!%p140_p2)  }
   0x8   : > { %717 = vmatprep.subr.bf16.mxu0 (!%p140_p2), %v800_v2  ;;  %774 = vmatprep.subr.bf16.mxu1 (!%p140_p2), %v800_v2  ;;  %v805_v7 = vld [vmem:[%s975_s1 + $0x18] sm:$0xff] (!%p140_p2)   ;;  %v807_v9 = vld [vmem:[%s975_s1 + $0x20] sm:$0xff] (!%p140_p2)   ;;  %v809_v13 = vld [vmem:[%s975_s1 + $0x28] sm:$0xff] (!%p140_p2)  }
   0x9   : > { %v810_v14 = vld [vmem:[%s975_s1 + $0x70] sm:$0xff] (!%p140_p2)   ;;  %v812_v16 = vld [vmem:[%s975_s1 + $0x78] sm:$0xff] (!%p140_p2)   ;;  %v820_v18 = vld [vmem:[%s975_s1 + $0x80] sm:$0xff] (!%p140_p2)  }
   0xa   : > { %v811_v15 = vld [vmem:[%s975_s1 + $0x30] sm:$0xff] (!%p140_p2)   ;;  %v813_v17 = vld [vmem:[%s975_s1 + $0x38] sm:$0xff] (!%p140_p2)   ;;  %v821_v22 = vld [vmem:[%s975_s1 + $0x88] sm:$0xff] (!%p140_p2)  }
   0xb   : > { %718 = vmatpush3.bf16.msra.mxu0 (!%p140_p2), %v801_v3  ;;  %782 = vmatpush3.bf16.msra.mxu1 (!%p140_p2), %v801_v3  ;;  %v662_v42 = vld [vmem:[%s976_s2] ss:$0 sm:$0xff] (!%p140_p2) }
   0xc   : > { %719 = vmatprep.subr.bf16.mxu0 (!%p140_p2), %v802_v4  ;;  %775 = vmatprep.subr.bf16.mxu1 (!%p140_p2), %v802_v4 }
   0xd   : > { %s979_s16 = smov (!%p165_p3, %s658_s16), 15 }
   0xe   : > { %s789_s29 = smul.u32 12, %s979_s16  ;;  %s661_s5 = sshll.u32 %s979_s16, 2 }
   0xf   : > { %720 = vmatpush3.bf16.msra.mxu0 %v803_v5  ;;  %783 = vmatpush3.bf16.msra.mxu1 %v803_v5  ;;  %s953_s8 = scalar_lea.vmem %s977_s3, %s661_s5 }
  0x10   : > { %721 = vmatprep.subr.bf16.mxu0 %v804_v6  ;;  %776 = vmatprep.subr.bf16.mxu1 %v804_v6  ;;  %s901_s9 = scalar_lea.vmem %s974_s0, %s789_s29 }
  0x11   : > { %v816_v11 = vld [vmem:[%s901_s9 + $0x4] ss:$12 sps:$4 sm:$0xff]   ;;  %v819_v12 = vld [vmem:[%s901_s9 + $0x4c] ss:$12 sps:$4 sm:$0xff]   ;;  %v817_v20 = vld [vmem:[%s901_s9 + $0x48] ss:$12 sps:$4 sm:$0xff]  }
  0x12   : > { %450 = vmatprep.mubr.bf16.mxu0 %v816_v11  ;;  %474 = vmatprep.mubr.bf16.mxu1 %v819_v12  ;;  %v814_v19 = vld [vmem:[%s901_s9] ss:$12 sps:$4 sm:$0xff]   ;;  %v822_v21 = vld [vmem:[%s901_s9 + $0x1c] ss:$12 sps:$4 sm:$0xff]   ;;  %v825_v24 = vld [vmem:[%s901_s9 + $0x18] ss:$12 sps:$4 sm:$0xff]  }
  0x13   : > { %722 = vmatpush3.bf16.msra.mxu0 %v805_v7  ;;  %784 = vmatpush3.bf16.msra.mxu1 %v805_v7  ;;  %v824_v23 = vld [vmem:[%s901_s9 + $0x8] ss:$12 sps:$4 sm:$0xff]   ;;  %v826_v25 = vld [vmem:[%s901_s9 + $0x20] ss:$12 sps:$4 sm:$0xff]   ;;  %v829_v27 = vld [vmem:[%s901_s9 + $0x38] ss:$12 sps:$4 sm:$0xff]  }
  0x14   : > { %723 = vmatprep.subr.bf16.mxu0 %v806_v8  ;;  %777 = vmatprep.subr.bf16.mxu1 %v806_v8  ;;  %v827_v26 = vld [vmem:[%s901_s9 + $0x34] ss:$12 sps:$4 sm:$0xff]   ;;  %v830_v28 = vld [vmem:[%s901_s9 + $0x30] ss:$12 sps:$4 sm:$0xff]  }
  0x15   : > { %v831_v29 = vld [vmem:[%s901_s9 + $0x50] ss:$12 sps:$4 sm:$0xff]  }
  0x17   : > { %724 = vmatpush3.bf16.msra.mxu0 %v807_v9  ;;  %785 = vmatpush3.bf16.msra.mxu1 %v807_v9 }
  0x18   : > { %725 = vmatprep.subr.bf16.mxu0 %v808_v10  ;;  %778 = vmatprep.subr.bf16.mxu1 %v808_v10 }
  0x1b   : > { %726 = vmatpush3.bf16.msra.mxu0 %v809_v13  ;;  %786 = vmatpush3.bf16.msra.mxu1 %v809_v13 }
  0x1c   : > { %727 = vmatprep.subr.bf16.mxu0 %v810_v14  ;;  %779 = vmatprep.subr.bf16.mxu1 %v810_v14 }
  0x1f   : > { %728 = vmatpush3.bf16.msra.mxu0 %v811_v15  ;;  %787 = vmatpush3.bf16.msra.mxu1 %v811_v15 }
  0x20   : > { %729 = vmatprep.subr.bf16.mxu0 %v812_v16  ;;  %780 = vmatprep.subr.bf16.mxu1 %v812_v16 }
  0x23   : > { %730 = vmatpush3.bf16.msra.mxu0 %v813_v17  ;;  %788 = vmatpush3.bf16.msra.mxu1 %v813_v17 }
  0x24   : > { %761 = vmatprep.subr.bf16.mxu1 %v820_v18 }
  0x26   : > { %451 = vmatmul.mubr.bf16.vlgmr.msra.gmra.mrb[0].mxu0 %v814_v19  ;;  %475 = vmatmul.mubr.bf16.vlgmr.msra.gmra.mrb[0].mxu1 %v817_v20 }
  0x27   : > { %762 = vmatpush3.bf16.msra.mxu1 %v820_v18  ;;  %458 = vmatprep.mubr.bf16.mxu0 %v822_v21 }
  0x28   : > { %763 = vmatprep.subr.bf16.mxu1 %v821_v22  ;;  %765 = vmatprep.mubr.msk.bf16.mxu1 %vm405_vm0, %v824_v23 }
  0x2b   : > { %764 = vmatpush3.bf16.msra.mxu1 %v821_v22 }
  0x2e   : > { %459 = vmatmul.mubr.bf16.gmra.mrb[4].mxu0 %v825_v24  ;;  %766 = vmatmul.mubr.msk.bf16.vlgmr.msra.gmra.mrb[4].mxu1 %vm405_vm0, %v826_v25 }
  0x2f   : > { %466 = vmatprep.mubr.bf16.mxu0 %v827_v26  ;;  %769 = vmatprep.mubr.msk.bf16.mxu1 %vm405_vm0, %v829_v27 }
  0x36   : > { %467 = vmatmul.mubr.bf16.gmra.mrb[8].mxu0 %v830_v28  ;;  %770 = vmatmul.mubr.msk.bf16.gmra.mrb[8].mxu1 %vm405_vm0, %v831_v29 }
  0xf9   : > { %v731_v30 = vpop.f32.mrb[0].mxu0  ;;  %v749_v31 = vpop.f32.mrb[0].mxu1 }
  0xfa   : > { %v732_v32 = vpop.f32.mrb[1].mxu0  ;;  %v750_v33 = vpop.f32.mrb[1].mxu1 }
  0xfb   : > { %v733_v34 = vadd.f32 %v732_v32, %v731_v30  ;;  %v734_v35 = vpop.f32.mrb[2].mxu0  ;;  %v751_v36 = vadd.f32 %v750_v33, %v749_v31  ;;  %v752_v37 = vpop.f32.mrb[2].mxu1 }
  0xfc   : > { %v735_v38 = vpop.f32.mrb[3].mxu0  ;;  %v753_v39 = vpop.f32.mrb[3].mxu1 }
  0xfd   : > { %v736_v40 = vadd.f32 %v735_v38, %v734_v35  ;;  %v754_v41 = vadd.f32 %v753_v39, %v752_v37  ;;  %v453_v45 = vadd.f32 %v733_v34, %v662_v42  ;;  %v477_v63 = vadd.f32 %v751_v36, %v662_v42 }
  0xff   : > { %v456_v52 = vadd.f32 %v736_v40, %v662_v42  ;;  %v480_v8 = vadd.f32 %v754_v41, %v662_v42 }
 0x101   : > { %v737_v43 = vpop.f32.mrb[4].mxu0  ;;  %v767_v44 = vpop.f32.mrb[4].mxu1 }
 0x102   : > { %v738_v46 = vpop.f32.mrb[5].mxu0  ;;  %v517_v47 = vpop.f32.mrb[5].mxu1 }
 0x103   : > { %v739_v48 = vadd.f32 %v738_v46, %v737_v43  ;;  %v518_v49 = vadd.f32 %v517_v47, %v453_v45  ;;  %v740_v50 = vpop.f32.mrb[6].mxu0  ;;  %v768_v51 = vpop.f32.mrb[6].mxu1 }
 0x104   : > { %v741_v53 = vpop.f32.mrb[7].mxu0  ;;  %v520_v54 = vpop.f32.mrb[7].mxu1 }
 0x105   : > { %v461_v55 = vadd.f32 %v739_v48, %v662_v42  ;;  %v548_v56 = vmax.f32 %v518_v49, 0.0  ;;  %v742_v57 = vadd.f32 %v741_v53, %v740_v50  ;;  %v521_v58 = vadd.f32 %v520_v54, %v456_v52 }
 0x107   : > { %v526_v59 = vadd.f32 %v767_v44, %v461_v55  ;;  %v707_v60 = vpack.c.bf16 %v548_v56, %v548_v56  ;;  %v464_v61 = vadd.f32 %v742_v57, %v662_v42  ;;  %v549_v62 = vmax.f32 %v521_v58, 0.0 }
 0x109   : > { %v550_v0 = vmax.f32 %v526_v59, 0.0  ;;  %589 = vst.msk [vmem:[%s953_s8] sm:$0xf] %vm588_vm1, %v707_v60  ;;  %v529_v1 = vadd.f32 %v768_v51, %v464_v61  ;;  %v708_v2 = vpack.c.bf16 %v549_v62, %v549_v62  ;;  %v743_v3 = vpop.f32.mrb[8].mxu0  ;;  %v771_v4 = vpop.f32.mrb[8].mxu1 }
 0x10a   : > { %v542_v5 = vadd.f32 %v771_v4, %v477_v63  ;;  %v744_v6 = vpop.f32.mrb[9].mxu0  ;;  %v533_v7 = vpop.f32.mrb[9].mxu1 }
 0x10b   : > { %v709_v9 = vpack.c.bf16 %v550_v0, %v550_v0  ;;  %v551_v10 = vmax.f32 %v529_v1, 0.0  ;;  %590 = vst.msk [vmem:[%s953_s8 + $0x4] sm:$0xf] %vm588_vm1, %v708_v2  ;;  %v745_v11 = vadd.f32 %v744_v6, %v743_v3  ;;  %v746_v12 = vpop.f32.mrb[10].mxu0  ;;  %v772_v13 = vpop.f32.mrb[10].mxu1 }
 0x10c   : > { %v554_v14 = vmax.f32 %v542_v5, 0.0  ;;  %v545_v15 = vadd.f32 %v772_v13, %v480_v8  ;;  %v747_v16 = vpop.f32.mrb[11].mxu0  ;;  %v536_v17 = vpop.f32.mrb[11].mxu1 }
 0x10d   : > { %591 = vst.msk [vmem:[%s953_s8 + $0x8] sm:$0xf] %vm588_vm1, %v709_v9  ;;  %v710_v18 = vpack.c.bf16 %v551_v10, %v551_v10  ;;  %v469_v19 = vadd.f32 %v745_v11, %v662_v42  ;;  %v748_v20 = vadd.f32 %v747_v16, %v746_v12 }
 0x10e   : > { %v713_v21 = vpack.c.bf16 %v554_v14, %v554_v14  ;;  %v555_v22 = vmax.f32 %v545_v15, 0.0 }
 0x10f   : > { %592 = vst.msk [vmem:[%s953_s8 + $0xc] sm:$0xf] %vm588_vm1, %v710_v18  ;;  %v534_v23 = vadd.f32 %v533_v7, %v469_v19  ;;  %v472_v24 = vadd.f32 %v748_v20, %v662_v42 }
 0x110   : > { %595 = vst.msk [vmem:[%s953_s8 + $0x18] sm:$0xf] %vm588_vm1, %v713_v21  ;;  %v714_v25 = vpack.c.bf16 %v555_v22, %v555_v22 }
 0x111   : > { %v552_v26 = vmax.f32 %v534_v23, 0.0  ;;  %v537_v27 = vadd.f32 %v536_v17, %v472_v24 }
 0x112   : > { %596 = vst.msk [vmem:[%s953_s8 + $0x1c] sm:$0xf] %vm588_vm1, %v714_v25 }
 0x113   : > { %v711_v28 = vpack.c.bf16 %v552_v26, %v552_v26  ;;  %v553_v29 = vmax.f32 %v537_v27, 0.0 }
 0x115   : > { %593 = vst.msk [vmem:[%s953_s8 + $0x10] sm:$0xf] %vm588_vm1, %v711_v28  ;;  %v712_v30 = vpack.c.bf16 %v553_v29, %v553_v29 }
 0x117   : > { %594 = vst.msk [vmem:[%s953_s8 + $0x14] sm:$0xf] %vm588_vm1, %v712_v30 }
 0x118 PF: > { %s13_s12 = sadd.s32 1, %s838_s12  }
 0x119   : > { %p10_p4 = scmp.ge.s32.totalorder %s13_s12, 4  }
 0x11b   :  { %12 = sbr.rel (!%p10_p4) target bundleno = 1 (0x1), region = 62 }

// kernel: duck_detector_forward.13
= control target key start
LH: loop header
LB: loop body
LE: loop exit
PB: predicated region body
PF: predicated region fallthrough
CT: control target
= control target key end

     0   :  { %s903_s12 = smov 0   ;;  %s1044_s0 = inlined_call_operand.vmem [shape: bf16[32,576], index: 0, kind: input, shape index: {}]   ;;  %s1045_s1 = inlined_call_operand.vmem [shape: bf16[576,64], index: 1, kind: input, shape index: {}]   ;;  %s1046_s2 = inlined_call_operand.vmem [shape: f32[1,64], index: 2, kind: input, shape index: {}]   ;;  %s1047_s3 = inlined_call_operand.vmem [shape: bf16[32,64], index: 3, kind: output, shape index: {}]  }
   0x1 LB: > { %s700_s13 = sadd.s32 4294967295, %s879_s12   ;;  %p704_p0 = scmp.ge.s32.totalorder %s879_s12, 1  ;;  %s879_s12 = sphi %s903_s12, %s13_s12  }
   0x2   : > { %p139_p1 = scmp.lt.s32.totalorder %s879_s12, 3 }
   0x4   : > { %p140_p2 = pnand %p704_p0, %p139_p1 }
   0x5   : > { %v830_v0 = vld [vmem:[%s1045_s1 + $0x40] sm:$0xff] (!%p140_p2)   ;;  %v834_v4 = vld [vmem:[%s1045_s1 + $0x48] sm:$0xff] (!%p140_p2)   ;;  %v838_v8 = vld [vmem:[%s1045_s1 + $0x50] sm:$0xff] (!%p140_p2)   ;;  %s705_s17 = sshll.u32 (!%p140_p2), %s700_s13, 1  ;;  %v881_v33 = vmov (!%p140_p2), 0.0   ;;  %vm882_vm0 = vmmov (!%p140_p2), 0  }
   0x6   : > { %143 = sbr.rel (%p140_p2) target bundleno = 275 (0x113), region = 32  ;;  %v831_v1 = vld [vmem:[%s1045_s1] sm:$0xff] (!%p140_p2)   ;;  %758 = vmatprep.subr.bf16.mxu0 (!%p140_p2), %v830_v0  ;;  %v835_v5 = vld [vmem:[%s1045_s1 + $0x8] sm:$0xff] (!%p140_p2)   ;;  %v839_v9 = vld [vmem:[%s1045_s1 + $0x10] sm:$0xff] (!%p140_p2)   ;;  %p165_p3 = scmp.lt.s32.totalorder (!%p140_p2), %s705_s17, 3  ;;  %vm504_vm1 = vcmask (!%p140_p2), 523264  }
   0x7   : > { %v832_v2 = vld [vmem:[%s1045_s1 + $0xc0] sm:$0xff] (!%p140_p2)   ;;  %759 = vmatpush3.bf16.msra.mxu0 (!%p140_p2), %v831_v1  ;;  %v836_v6 = vld [vmem:[%s1045_s1 + $0xc8] sm:$0xff] (!%p140_p2)   ;;  %v840_v10 = vld [vmem:[%s1045_s1 + $0xd0] sm:$0xff] (!%p140_p2)   ;;  %vm641_vm2 = vcmask (!%p140_p2), 519168  }
   0x8   : > { %v833_v3 = vld [vmem:[%s1045_s1 + $0x80] sm:$0xff] (!%p140_p2)   ;;  %780 = vmatprep.subr.bf16.mxu1 (!%p140_p2), %v832_v2  ;;  %760 = vmatprep.subr.bf16.mxu0 (!%p140_p2), %v834_v4  ;;  %v837_v7 = vld [vmem:[%s1045_s1 + $0x88] sm:$0xff] (!%p140_p2)   ;;  %v841_v11 = vld [vmem:[%s1045_s1 + $0x90] sm:$0xff] (!%p140_p2)  }
   0x9   : > { %781 = vmatpush3.bf16.msra.mxu1 (!%p140_p2), %v833_v3  ;;  %v842_v12 = vld [vmem:[%s1045_s1 + $0x58] sm:$0xff] (!%p140_p2)   ;;  %v846_v16 = vld [vmem:[%s1045_s1 + $0x60] sm:$0xff] (!%p140_p2)   ;;  %v850_v20 = vld [vmem:[%s1045_s1 + $0x68] sm:$0xff] (!%p140_p2)  }
   0xa   : > { %782 = vmatprep.subr.bf16.mxu1 (!%p140_p2), %v836_v6  ;;  %v843_v13 = vld [vmem:[%s1045_s1 + $0x18] sm:$0xff] (!%p140_p2)   ;;  %v847_v17 = vld [vmem:[%s1045_s1 + $0x20] sm:$0xff] (!%p140_p2)   ;;  %v851_v21 = vld [vmem:[%s1045_s1 + $0x28] sm:$0xff] (!%p140_p2)  }
   0xb   : > { %761 = vmatpush3.bf16.msra.mxu0 (!%p140_p2), %v835_v5  ;;  %v844_v14 = vld [vmem:[%s1045_s1 + $0xd8] sm:$0xff] (!%p140_p2)   ;;  %v848_v18 = vld [vmem:[%s1045_s1 + $0xe0] sm:$0xff] (!%p140_p2)   ;;  %v852_v22 = vld [vmem:[%s1045_s1 + $0xe8] sm:$0xff] (!%p140_p2)  }
   0xc   : > { %762 = vmatprep.subr.bf16.mxu0 (!%p140_p2), %v838_v8  ;;  %v845_v15 = vld [vmem:[%s1045_s1 + $0x98] sm:$0xff] (!%p140_p2)   ;;  %v849_v19 = vld [vmem:[%s1045_s1 + $0xa0] sm:$0xff] (!%p140_p2)   ;;  %v853_v23 = vld [vmem:[%s1045_s1 + $0xa8] sm:$0xff] (!%p140_p2)  }
   0xd   : > { %783 = vmatpush3.bf16.msra.mxu1 %v837_v7  ;;  %s1049_s17 = smov (!%p165_p3, %s705_s17), 3  ;;  %v854_v24 = vld [vmem:[%s1045_s1 + $0x70] sm:$0xff]   ;;  %v858_v28 = vld [vmem:[%s1045_s1 + $0x78] sm:$0xff]   ;;  %v868_v37 = vld [vmem:[%s1045_s1 + $0x100] sm:$0xff]  }
   0xe   : > { %784 = vmatprep.subr.bf16.mxu1 %v840_v10  ;;  %s819_s14 = smul.u32 20, %s1049_s17  ;;  %v855_v25 = vld [vmem:[%s1045_s1 + $0x30] sm:$0xff]   ;;  %v859_v29 = vld [vmem:[%s1045_s1 + $0x38] sm:$0xff]   ;;  %v869_v38 = vld [vmem:[%s1045_s1 + $0x108] sm:$0xff]   ;;  %s708_s18 = sshll.u32 %s1049_s17, 2 }
   0xf   : > { %763 = vmatpush3.bf16.msra.mxu0 %v839_v9  ;;  %v856_v26 = vld [vmem:[%s1045_s1 + $0xf0] sm:$0xff]   ;;  %v860_v30 = vld [vmem:[%s1045_s1 + $0xf8] sm:$0xff]   ;;  %v709_v43 = vld [vmem:[%s1046_s2] ss:$0 sm:$0xff]  ;;  %s175_s21 = scalar_lea.vmem %s1047_s3, %s708_s18 }
  0x10   : > { %764 = vmatprep.subr.bf16.mxu0 %v842_v12  ;;  %v857_v27 = vld [vmem:[%s1045_s1 + $0xb0] sm:$0xff]   ;;  %s1006_s13 = scalar_lea.vmem %s1044_s0, %s819_s14  ;;  %v864_v34 = vld [vmem:[%s1045_s1 + $0xb8] sm:$0xff]  }
  0x11   : > { %785 = vmatpush3.bf16.msra.mxu1 %v841_v11  ;;  %v861_v31 = vld [vmem:[%s1006_s13] ss:$20 sps:$4 sm:$0xff]   ;;  %v863_v32 = vld [vmem:[%s1006_s13 + $0x4] ss:$20 sps:$4 sm:$0xff]   ;;  %v865_v35 = vld [vmem:[%s1006_s13 + $0x8] ss:$20 sps:$4 sm:$0xff]  }
  0x12   : > { %786 = vmatprep.subr.bf16.mxu1 %v844_v14  ;;  %540 = vmatprep.mubr.bf16.mxu0 %v863_v32  ;;  %v867_v36 = vld [vmem:[%s1006_s13 + $0xc] ss:$20 sps:$4 sm:$0xff]   ;;  %v870_v39 = vld [vmem:[%s1045_s1 + $0x110] sm:$0xff]   ;;  %v871_v40 = vld [vmem:[%s1045_s1 + $0x118] sm:$0xff]  }
  0x13   : > { %765 = vmatpush3.bf16.msra.mxu0 %v843_v13  ;;  %581 = vmatprep.mubr.bf16.mxu1 %v867_v36  ;;  %v872_v41 = vld [vmem:[%s1006_s13 + $0x10] ss:$20 sps:$4 sm:$0xff]  }
  0x14   : > { %766 = vmatprep.subr.bf16.mxu0 %v846_v16 }
  0x15   : > { %787 = vmatpush3.bf16.msra.mxu1 %v845_v15 }
  0x16   : > { %788 = vmatprep.subr.bf16.mxu1 %v848_v18 }
  0x17   : > { %767 = vmatpush3.bf16.msra.mxu0 %v847_v17 }
  0x18   : > { %768 = vmatprep.subr.bf16.mxu0 %v850_v20 }
  0x19   : > { %789 = vmatpush3.bf16.msra.mxu1 %v849_v19 }
  0x1a   : > { %790 = vmatprep.subr.bf16.mxu1 %v852_v22 }
  0x1b   : > { %769 = vmatpush3.bf16.msra.mxu0 %v851_v21 }
  0x1c   : > { %770 = vmatprep.subr.bf16.mxu0 %v854_v24 }
  0x1d   : > { %791 = vmatpush3.bf16.msra.mxu1 %v853_v23 }
  0x1e   : > { %792 = vmatprep.subr.bf16.mxu1 %v856_v26 }
  0x1f   : > { %771 = vmatpush3.bf16.msra.mxu0 %v855_v25 }
  0x20   : > { %772 = vmatprep.subr.bf16.mxu0 %v858_v28 }
  0x21   : > { %793 = vmatpush3.bf16.msra.mxu1 %v857_v27 }
  0x22   : > { %794 = vmatprep.subr.bf16.mxu1 %v860_v30 }
  0x23   : > { %773 = vmatpush3.bf16.msra.mxu0 %v859_v29 }
  0x24   : > { %807 = vmatprep.subr.bf16.mxu0 %v881_v33 }
  0x25   : > { %795 = vmatpush3.bf16.msra.mxu1 %v864_v34 }
  0x26   : > { %541 = vmatmul.mubr.bf16.vlgmr.msra.gmra.mrb[0].mxu0 %v861_v31 }
  0x27   : > { %815 = vmatprep.mubr.msk.bf16.mxu0 %vm882_vm0, %v881_v33  ;;  %808 = vmatpush3.bf16.msra.mxu0 %v868_v37 }
  0x28   : > { %582 = vmatmul.mubr.bf16.vlgmr.msra.gmra.mrb[0].mxu1 %v865_v35  ;;  %809 = vmatprep.subr.bf16.mxu0 %v881_v33 }
  0x2b   : > { %810 = vmatpush3.bf16.msra.mxu0 %v869_v38 }
  0x2c   : > { %811 = vmatprep.subr.bf16.mxu0 %v881_v33 }
  0x2f   : > { %812 = vmatpush3.bf16.msra.mxu0 %v870_v39 }
  0x30   : > { %813 = vmatprep.subr.bf16.mxu0 %v881_v33 }
  0x33   : > { %814 = vmatpush3.bf16.msra.mxu0 %v871_v40 }
  0x36   : > { %816 = vmatmul.mubr.msk.bf16.vlgmr.msra.gmra.mrb[4].mxu0 %vm504_vm1, %v872_v41 }
  0xf9   : > { %v774_v42 = vpop.f32.mrb[0].mxu0 }
  0xfa   : > { %v775_v44 = vpop.f32.mrb[1].mxu0 }
  0xfb   : > { %v776_v45 = vadd.f32 %v775_v44, %v774_v42  ;;  %v777_v46 = vpop.f32.mrb[2].mxu0  ;;  %v796_v47 = vpop.f32.mrb[0].mxu1 }
  0xfc   : > { %v778_v48 = vpop.f32.mrb[3].mxu0  ;;  %v797_v51 = vpop.f32.mrb[1].mxu1 }
  0xfd   : > { %v543_v49 = vadd.f32 %v776_v45, %v709_v43  ;;  %v779_v50 = vadd.f32 %v778_v48, %v777_v46  ;;  %v798_v52 = vadd.f32 %v797_v51, %v796_v47  ;;  %v799_v53 = vpop.f32.mrb[2].mxu1 }
  0xfe   : > { %v800_v55 = vpop.f32.mrb[3].mxu1 }
  0xff   : > { %v546_v54 = vadd.f32 %v779_v50, %v709_v43  ;;  %v801_v56 = vadd.f32 %v800_v55, %v799_v53  ;;  %v584_v57 = vadd.f32 %v798_v52, %v543_v49 }
 0x101   : > { %v587_v58 = vadd.f32 %v801_v56, %v546_v54 }
 0x109   : > { %v624_v59 = vpop.f32.mrb[4].mxu0 }
 0x10a   : > { %v625_v60 = vadd.f32 %v624_v59, %v584_v57  ;;  %v817_v61 = vpop.f32.mrb[5].mxu0 }
 0x10b   : > { %v627_v62 = vpop.f32.mrb[6].mxu0 }
 0x10c   : > { %v631_v63 = vmax.f32 %v625_v60, 0.0  ;;  %v628_v0 = vadd.f32 %v627_v62, %v587_v58  ;;  %v818_v1 = vpop.f32.mrb[7].mxu0 }
 0x10e   : > { %v756_v2 = vpack.c.bf16 %v631_v63, %v631_v63  ;;  %v632_v3 = vmax.f32 %v628_v0, 0.0 }
 0x110   : > { %642 = vst.msk [vmem:[%s175_s21] sm:$0xf] %vm641_vm2, %v756_v2  ;;  %v757_v4 = vpack.c.bf16 %v632_v3, %v632_v3 }
 0x112   : > { %643 = vst.msk [vmem:[%s175_s21 + $0x4] sm:$0xf] %vm641_vm2, %v757_v4 }
 0x113 PF: > { %s13_s12 = sadd.s32 1, %s879_s12  }
 0x114   : > { %p10_p4 = scmp.ge.s32.totalorder %s13_s12, 4  }
 0x116   :  { %12 = sbr.rel (!%p10_p4) target bundleno = 1 (0x1), region = 62 }

// kernel: duck_detector_forward.14
= control target key start
LH: loop header
LB: loop body
LE: loop exit
PB: predicated region body
PF: predicated region fallthrough
CT: control target
= control target key end

     0   :  { %s1255_s12 = smov 0   ;;  %s1481_s0 = inlined_call_operand.vmem [shape: bf16[160,576], index: 0, kind: input, shape index: {}]   ;;  %s1482_s1 = inlined_call_operand.vmem [shape: bf16[576,72], index: 1, kind: input, shape index: {}]   ;;  %s1483_s2 = inlined_call_operand.vmem [shape: f32[1,72], index: 2, kind: input, shape index: {}]   ;;  %s1484_s3 = inlined_call_operand.vmem [shape: f32[160,72], index: 3, kind: output, shape index: {}]  }
   0x1 LB: > { %s930_s13 = sadd.s32 4294967295, %s1231_s12   ;;  %p934_p0 = scmp.ge.s32.totalorder %s1231_s12, 1  ;;  %s1231_s12 = sphi %s1255_s12, %s13_s12  }
   0x2   : > { %p139_p1 = scmp.lt.s32.totalorder %s1231_s12, 3 }
   0x4   : > { %p140_p2 = pnand %p934_p0, %p139_p1 }
   0x5   : > { %v1154_v0 = vld [vmem:[%s1482_s1 + $0x40] sm:$0xff] (!%p140_p2)   ;;  %v1158_v4 = vld [vmem:[%s1482_s1 + $0x48] sm:$0xff] (!%p140_p2)   ;;  %v1162_v8 = vld [vmem:[%s1482_s1 + $0x50] sm:$0xff] (!%p140_p2)   ;;  %s164_s17 = smul.u32 (!%p140_p2), 10, %s930_s13  ;;  %v1233_v34 = vmov (!%p140_p2), 0.0   ;;  %vm1234_vm0 = vmmov (!%p140_p2), 0  }
   0x6   : > { %143 = sbr.rel (%p140_p2) target bundleno = 312 (0x138), region = 32  ;;  %v1155_v1 = vld [vmem:[%s1482_s1 + $0xc0] sm:$0xff] (!%p140_p2)   ;;  %1006 = vmatprep.subr.bf16.mxu0 (!%p140_p2), %v1154_v0  ;;  %v1159_v5 = vld [vmem:[%s1482_s1 + $0xc8] sm:$0xff] (!%p140_p2)   ;;  %v1163_v9 = vld [vmem:[%s1482_s1 + $0xd0] sm:$0xff] (!%p140_p2)   ;;  %vm628_vm1 = vcmask (!%p140_p2), 523264   ;;  %vm863_vm2 = vcmask (!%p140_p2), 588800  }
   0x7   : > { %v1156_v2 = vld [vmem:[%s1482_s1] sm:$0xff] (!%p140_p2)   ;;  %1052 = vmatprep.subr.bf16.mxu1 (!%p140_p2), %v1155_v1  ;;  %v1160_v6 = vld [vmem:[%s1482_s1 + $0x8] sm:$0xff] (!%p140_p2)   ;;  %v1164_v10 = vld [vmem:[%s1482_s1 + $0x10] sm:$0xff] (!%p140_p2)   ;;  %p165_p3 = scmp.lt.s32.totalorder (!%p140_p2), %s164_s17, 19 }
   0x8   : > { %v1157_v3 = vld [vmem:[%s1482_s1 + $0x80] sm:$0xff] (!%p140_p2)   ;;  %1007 = vmatpush3.bf16.msra.mxu0 (!%p140_p2), %v1156_v2  ;;  %v1161_v7 = vld [vmem:[%s1482_s1 + $0x88] sm:$0xff] (!%p140_p2)   ;;  %v1165_v11 = vld [vmem:[%s1482_s1 + $0x90] sm:$0xff] (!%p140_p2)  }
   0x9   : > { %1053 = vmatpush3.bf16.msra.mxu1 (!%p140_p2), %v1157_v3  ;;  %1008 = vmatprep.subr.bf16.mxu0 (!%p140_p2), %v1158_v4  ;;  %v1166_v12 = vld [vmem:[%s1482_s1 + $0x58] sm:$0xff] (!%p140_p2)   ;;  %v1170_v16 = vld [vmem:[%s1482_s1 + $0x60] sm:$0xff] (!%p140_p2)   ;;  %v1174_v20 = vld [vmem:[%s1482_s1 + $0x68] sm:$0xff] (!%p140_p2)  }
   0xa   : > { %1054 = vmatprep.subr.bf16.mxu1 (!%p140_p2), %v1159_v5  ;;  %v1167_v13 = vld [vmem:[%s1482_s1 + $0xd8] sm:$0xff] (!%p140_p2)   ;;  %v1171_v17 = vld [vmem:[%s1482_s1 + $0xe0] sm:$0xff] (!%p140_p2)   ;;  %v1175_v21 = vld [vmem:[%s1482_s1 + $0xe8] sm:$0xff] (!%p140_p2)  }
   0xb   : > { %v1168_v14 = vld [vmem:[%s1482_s1 + $0x18] sm:$0xff] (!%p140_p2)   ;;  %v1172_v18 = vld [vmem:[%s1482_s1 + $0x20] sm:$0xff] (!%p140_p2)   ;;  %v1176_v22 = vld [vmem:[%s1482_s1 + $0x28] sm:$0xff] (!%p140_p2)  }
   0xc   : > { %1009 = vmatpush3.bf16.msra.mxu0 (!%p140_p2), %v1160_v6  ;;  %v1169_v15 = vld [vmem:[%s1482_s1 + $0x98] sm:$0xff] (!%p140_p2)   ;;  %v1173_v19 = vld [vmem:[%s1482_s1 + $0xa0] sm:$0xff] (!%p140_p2)   ;;  %v1177_v23 = vld [vmem:[%s1482_s1 + $0xa8] sm:$0xff] (!%p140_p2)  }
   0xd   : > { %1055 = vmatpush3.bf16.msra.mxu1 %v1161_v7  ;;  %1010 = vmatprep.subr.bf16.mxu0 %v1162_v8  ;;  %s1486_s17 = smov (!%p165_p3, %s164_s17), 19  ;;  %v1178_v24 = vld [vmem:[%s1482_s1 + $0x70] sm:$0xff]   ;;  %v1182_v28 = vld [vmem:[%s1482_s1 + $0x78] sm:$0xff]   ;;  %v1192_v37 = vld [vmem:[%s1482_s1 + $0x100] sm:$0xff]  }
   0xe   : > { %1056 = vmatprep.subr.bf16.mxu1 %v1163_v9  ;;  %v1179_v25 = vld [vmem:[%s1482_s1 + $0xf0] sm:$0xff]   ;;  %s1143_s16 = smul.u32 20, %s1486_s17  ;;  %v1183_v29 = vld [vmem:[%s1482_s1 + $0xf8] sm:$0xff]   ;;  %v1199_v40 = vld [vmem:[%s1482_s1 + $0x108] sm:$0xff]   ;;  %s936_s18 = sshll.u32 %s1486_s17, 3 }
   0xf   : > { %v1180_v26 = vld [vmem:[%s1482_s1 + $0x30] sm:$0xff]   ;;  %v1184_v30 = vld [vmem:[%s1482_s1 + $0x38] sm:$0xff]   ;;  %v1422_v63 = vld [vmem:[%s1483_s2] ss:$0 sm:$0xff]  ;;  %s1450_s21 = scalar_lea.vmem %s1484_s3, %s936_s18 }
  0x10   : > { %1011 = vmatpush3.bf16.msra.mxu0 %v1164_v10  ;;  %v1181_v27 = vld [vmem:[%s1482_s1 + $0xb0] sm:$0xff]   ;;  %s1361_s27 = scalar_lea.vmem %s1481_s0, %s1143_s16  ;;  %v1185_v31 = vld [vmem:[%s1482_s1 + $0xb8] sm:$0xff]  }
  0x11   : > { %1057 = vmatpush3.bf16.msra.mxu1 %v1165_v11  ;;  %1012 = vmatprep.subr.bf16.mxu0 %v1166_v12  ;;  %v1186_v32 = vld [vmem:[%s1361_s27] ss:$20 sps:$4 sm:$0xff]   ;;  %v1188_v33 = vld [vmem:[%s1361_s27 + $0x4] ss:$20 sps:$4 sm:$0xff]   ;;  %v1189_v35 = vld [vmem:[%s1361_s27 + $0x8] ss:$20 sps:$4 sm:$0xff]  }
  0x12   : > { %1058 = vmatprep.subr.bf16.mxu1 %v1167_v13  ;;  %v1191_v36 = vld [vmem:[%s1361_s27 + $0xc] ss:$20 sps:$4 sm:$0xff]   ;;  %676 = vmatprep.mubr.bf16.mxu0 %v1188_v33  ;;  %v1195_v39 = vld [vmem:[%s1361_s27 + $0x34] ss:$20 sps:$4 sm:$0xff]   ;;  %v1198_v42 = vld [vmem:[%s1361_s27 + $0x30] ss:$20 sps:$4 sm:$0xff]  }
  0x13   : > { %749 = vmatprep.mubr.bf16.mxu1 %v1191_v36  ;;  %v1193_v38 = vld [vmem:[%s1361_s27 + $0x2c] ss:$20 sps:$4 sm:$0xff]   ;;  %v1197_v41 = vld [vmem:[%s1361_s27 + $0x28] ss:$20 sps:$4 sm:$0xff]   ;;  %v1206_v45 = vld [vmem:[%s1482_s1 + $0x110] sm:$0xff]  }
  0x14   : > { %1013 = vmatpush3.bf16.msra.mxu0 %v1168_v14  ;;  %v1200_v43 = vld [vmem:[%s1361_s27 + $0x54] ss:$20 sps:$4 sm:$0xff]   ;;  %v1202_v44 = vld [vmem:[%s1361_s27 + $0x5c] ss:$20 sps:$4 sm:$0xff]   ;;  %v1205_v47 = vld [vmem:[%s1361_s27 + $0x58] ss:$20 sps:$4 sm:$0xff]  }
  0x15   : > { %1059 = vmatpush3.bf16.msra.mxu1 %v1169_v15  ;;  %1014 = vmatprep.subr.bf16.mxu0 %v1170_v16  ;;  %v1204_v46 = vld [vmem:[%s1361_s27 + $0x50] ss:$20 sps:$4 sm:$0xff]   ;;  %v1217_v48 = vld [vmem:[%s1482_s1 + $0x118] sm:$0xff]   ;;  %v1212_v52 = vld [vmem:[%s1361_s27 + $0x80] ss:$20 sps:$4 sm:$0xff]  }
  0x16   : > { %1060 = vmatprep.subr.bf16.mxu1 %v1171_v17  ;;  %v1207_v49 = vld [vmem:[%s1361_s27 + $0x7c] ss:$20 sps:$4 sm:$0xff]   ;;  %v1209_v50 = vld [vmem:[%s1361_s27 + $0x84] ss:$20 sps:$4 sm:$0xff]   ;;  %v1215_v54 = vld [vmem:[%s1361_s27 + $0xac] ss:$20 sps:$4 sm:$0xff]  }
  0x17   : > { %v1211_v51 = vld [vmem:[%s1361_s27 + $0x78] ss:$20 sps:$4 sm:$0xff]   ;;  %v1218_v55 = vld [vmem:[%s1361_s27 + $0xa0] ss:$20 sps:$4 sm:$0xff]   ;;  %v1219_v56 = vld [vmem:[%s1361_s27 + $0xa8] ss:$20 sps:$4 sm:$0xff]  }
  0x18   : > { %1015 = vmatpush3.bf16.msra.mxu0 %v1172_v18  ;;  %v1213_v53 = vld [vmem:[%s1361_s27 + $0xa4] ss:$20 sps:$4 sm:$0xff]   ;;  %v1221_v58 = vld [vmem:[%s1361_s27 + $0x88] ss:$20 sps:$4 sm:$0xff]   ;;  %v1224_v61 = vld [vmem:[%s1361_s27 + $0x60] ss:$20 sps:$4 sm:$0xff]  }
  0x19   : > { %1061 = vmatpush3.bf16.msra.mxu1 %v1173_v19  ;;  %1016 = vmatprep.subr.bf16.mxu0 %v1174_v20  ;;  %v1220_v57 = vld [vmem:[%s1361_s27 + $0x10] ss:$20 sps:$4 sm:$0xff]   ;;  %v1222_v59 = vld [vmem:[%s1361_s27 + $0x38] ss:$20 sps:$4 sm:$0xff]  }
  0x1a   : > { %1062 = vmatprep.subr.bf16.mxu1 %v1175_v21  ;;  %v1223_v60 = vld [vmem:[%s1361_s27 + $0xb0] ss:$20 sps:$4 sm:$0xff]  }
  0x1c   : > { %1017 = vmatpush3.bf16.msra.mxu0 %v1176_v22 }
  0x1d   : > { %1063 = vmatpush3.bf16.msra.mxu1 %v1177_v23  ;;  %1018 = vmatprep.subr.bf16.mxu0 %v1178_v24 }
  0x1e   : > { %1064 = vmatprep.subr.bf16.mxu1 %v1179_v25 }
  0x20   : > { %1019 = vmatpush3.bf16.msra.mxu0 %v1180_v26 }
  0x21   : > { %1065 = vmatpush3.bf16.msra.mxu1 %v1181_v27  ;;  %1020 = vmatprep.subr.bf16.mxu0 %v1182_v28 }
  0x22   : > { %1066 = vmatprep.subr.bf16.mxu1 %v1183_v29 }
  0x24   : > { %1021 = vmatpush3.bf16.msra.mxu0 %v1184_v30 }
  0x25   : > { %1067 = vmatpush3.bf16.msra.mxu1 %v1185_v31  ;;  %1107 = vmatprep.subr.bf16.mxu0 %v1233_v34 }
  0x26   : > { %1135 = vmatprep.subr.bf16.mxu1 %v1233_v34 }
  0x27   : > { %677 = vmatmul.mubr.bf16.vlgmr.msra.gmra.mrb[0].mxu0 %v1186_v32 }
  0x28   : > { %750 = vmatmul.mubr.bf16.vlgmr.msra.gmra.mrb[0].mxu1 %v1189_v35  ;;  %1108 = vmatpush3.bf16.msra.mxu0 %v1192_v37 }
  0x29   : > { %684 = vmatprep.mubr.bf16.mxu0 %v1193_v38  ;;  %1139 = vmatpush3.bf16.msra.mxu1 %v1192_v37 }
  0x2a   : > { %757 = vmatprep.mubr.bf16.mxu1 %v1195_v39  ;;  %1109 = vmatprep.subr.bf16.mxu0 %v1233_v34 }
  0x2b   : > { %1136 = vmatprep.subr.bf16.mxu1 %v1233_v34 }
  0x2c   : > { %1110 = vmatpush3.bf16.msra.mxu0 %v1199_v40 }
  0x2d   : > { %1140 = vmatpush3.bf16.msra.mxu1 %v1199_v40  ;;  %1111 = vmatprep.subr.bf16.mxu0 %v1233_v34 }
  0x2e   : > { %1137 = vmatprep.subr.bf16.mxu1 %v1233_v34 }
  0x2f   : > { %685 = vmatmul.mubr.bf16.gmra.mrb[4].mxu0 %v1197_v41 }
  0x30   : > { %758 = vmatmul.mubr.bf16.gmra.mrb[4].mxu1 %v1198_v42  ;;  %692 = vmatprep.mubr.bf16.mxu0 %v1200_v43 }
  0x31   : > { %765 = vmatprep.mubr.bf16.mxu1 %v1202_v44  ;;  %1112 = vmatpush3.bf16.msra.mxu0 %v1206_v45 }
  0x32   : > { %1141 = vmatpush3.bf16.msra.mxu1 %v1206_v45  ;;  %1113 = vmatprep.subr.bf16.mxu0 %v1233_v34 }
  0x33   : > { %1138 = vmatprep.subr.bf16.mxu1 %v1233_v34 }
  0x35   : > { %1114 = vmatpush3.bf16.msra.mxu0 %v1217_v48 }
  0x36   : > { %1142 = vmatpush3.bf16.msra.mxu1 %v1217_v48 }
  0x37   : > { %693 = vmatmul.mubr.bf16.gmra.mrb[8].mxu0 %v1204_v46 }
  0x38   : > { %766 = vmatmul.mubr.bf16.gmra.mrb[8].mxu1 %v1205_v47  ;;  %700 = vmatprep.mubr.bf16.mxu0 %v1207_v49 }
  0x39   : > { %773 = vmatprep.mubr.bf16.mxu1 %v1209_v50 }
  0x3f   : > { %701 = vmatmul.mubr.bf16.gmra.mrb[12].mxu0 %v1211_v51 }
  0x40   : > { %774 = vmatmul.mubr.bf16.gmra.mrb[12].mxu1 %v1212_v52  ;;  %708 = vmatprep.mubr.bf16.mxu0 %v1213_v53 }
  0x41   : > { %781 = vmatprep.mubr.bf16.mxu1 %v1215_v54 }
  0x47   : > { %709 = vmatmul.mubr.bf16.gmra.mrb[16].mxu0 %v1218_v55 }
  0x48   : > { %782 = vmatmul.mubr.bf16.gmra.mrb[16].mxu1 %v1219_v56  ;;  %1115 = vmatprep.mubr.msk.bf16.mxu0 %vm1234_vm0, %v1233_v34 }
  0x49   : > { %1127 = vmatprep.mubr.msk.bf16.mxu1 %vm1234_vm0, %v1233_v34 }
  0x4f   : > { %1116 = vmatmul.mubr.msk.bf16.vlgmr.msra.gmra.mrb[20].mxu0 %vm628_vm1, %v1220_v57 }
  0x50   : > { %1128 = vmatmul.mubr.msk.bf16.vlgmr.msra.gmra.mrb[20].mxu1 %vm628_vm1, %v1221_v58  ;;  %1119 = vmatprep.mubr.msk.bf16.mxu0 %vm1234_vm0, %v1233_v34 }
  0x51   : > { %1131 = vmatprep.mubr.msk.bf16.mxu1 %vm1234_vm0, %v1233_v34 }
  0x57   : > { %1120 = vmatmul.mubr.msk.bf16.gmra.mrb[24].mxu0 %vm628_vm1, %v1222_v59 }
  0x58   : > { %1132 = vmatmul.mubr.msk.bf16.gmra.mrb[24].mxu1 %vm628_vm1, %v1223_v60  ;;  %1123 = vmatprep.mubr.msk.bf16.mxu0 %vm1234_vm0, %v1233_v34 }
  0x5f   : > { %1124 = vmatmul.mubr.msk.bf16.gmra.mrb[28].mxu0 %vm628_vm1, %v1224_v61 }
  0xfa   : > { %v1022_v62 = vpop.f32.mrb[0].mxu0 }
  0xfb   : > { %v1023_v0 = vpop.f32.mrb[1].mxu0  ;;  %v1068_v1 = vpop.f32.mrb[0].mxu1 }
  0xfc   : > { %v1024_v2 = vadd.f32 %v1023_v0, %v1022_v62  ;;  %v1025_v3 = vpop.f32.mrb[2].mxu0  ;;  %v1069_v4 = vpop.f32.mrb[1].mxu1 }
  0xfd   : > { %v1026_v5 = vpop.f32.mrb[3].mxu0  ;;  %v1070_v6 = vadd.f32 %v1069_v4, %v1068_v1  ;;  %v1071_v7 = vpop.f32.mrb[2].mxu1 }
  0xfe   : > { %v679_v8 = vadd.f32 %v1024_v2, %v1422_v63  ;;  %v1027_v9 = vadd.f32 %v1026_v5, %v1025_v3  ;;  %v1072_v10 = vpop.f32.mrb[3].mxu1 }
  0xff   : > { %v1073_v11 = vadd.f32 %v1072_v10, %v1071_v7 }
 0x100   : > { %v682_v12 = vadd.f32 %v1027_v9, %v1422_v63  ;;  %v1426_v13 = vadd.f32 %v1070_v6, %v679_v8 }
 0x102   : > { %v1028_v14 = vpop.f32.mrb[4].mxu0  ;;  %v1428_v15 = vadd.f32 %v1073_v11, %v682_v12 }
 0x103   : > { %v1029_v16 = vpop.f32.mrb[5].mxu0  ;;  %v1074_v17 = vpop.f32.mrb[4].mxu1 }
 0x104   : > { %v1030_v18 = vadd.f32 %v1029_v16, %v1028_v14  ;;  %v1031_v19 = vpop.f32.mrb[6].mxu0  ;;  %v1075_v20 = vpop.f32.mrb[5].mxu1 }
 0x105   : > { %v1032_v21 = vpop.f32.mrb[7].mxu0  ;;  %v1076_v22 = vadd.f32 %v1075_v20, %v1074_v17  ;;  %v1077_v23 = vpop.f32.mrb[6].mxu1 }
 0x106   : > { %v687_v24 = vadd.f32 %v1030_v18, %v1422_v63  ;;  %v1033_v25 = vadd.f32 %v1032_v21, %v1031_v19  ;;  %v1078_v26 = vpop.f32.mrb[7].mxu1 }
 0x107   : > { %v1079_v27 = vadd.f32 %v1078_v26, %v1077_v23 }
 0x108   : > { %v690_v28 = vadd.f32 %v1033_v25, %v1422_v63  ;;  %v1432_v29 = vadd.f32 %v1076_v22, %v687_v24 }
 0x10a   : > { %v1034_v30 = vpop.f32.mrb[8].mxu0  ;;  %v1434_v31 = vadd.f32 %v1079_v27, %v690_v28 }
 0x10b   : > { %v1035_v32 = vpop.f32.mrb[9].mxu0  ;;  %v1080_v33 = vpop.f32.mrb[8].mxu1 }
 0x10c   : > { %v1036_v34 = vadd.f32 %v1035_v32, %v1034_v30  ;;  %v1037_v35 = vpop.f32.mrb[10].mxu0  ;;  %v1081_v36 = vpop.f32.mrb[9].mxu1 }
 0x10d   : > { %v1038_v37 = vpop.f32.mrb[11].mxu0  ;;  %v1082_v38 = vadd.f32 %v1081_v36, %v1080_v33  ;;  %v1083_v39 = vpop.f32.mrb[10].mxu1 }
 0x10e   : > { %v695_v40 = vadd.f32 %v1036_v34, %v1422_v63  ;;  %v1039_v41 = vadd.f32 %v1038_v37, %v1037_v35  ;;  %v1084_v42 = vpop.f32.mrb[11].mxu1 }
 0x10f   : > { %v1085_v43 = vadd.f32 %v1084_v42, %v1083_v39 }
 0x110   : > { %v698_v44 = vadd.f32 %v1039_v41, %v1422_v63  ;;  %v1438_v45 = vadd.f32 %v1082_v38, %v695_v40 }
 0x112   : > { %v1040_v46 = vpop.f32.mrb[12].mxu0  ;;  %v1440_v47 = vadd.f32 %v1085_v43, %v698_v44 }
 0x113   : > { %v1041_v48 = vpop.f32.mrb[13].mxu0  ;;  %v1086_v49 = vpop.f32.mrb[12].mxu1 }
 0x114   : > { %v1042_v50 = vadd.f32 %v1041_v48, %v1040_v46  ;;  %v1043_v51 = vpop.f32.mrb[14].mxu0  ;;  %v1087_v52 = vpop.f32.mrb[13].mxu1 }
 0x115   : > { %v1044_v53 = vpop.f32.mrb[15].mxu0  ;;  %v1088_v54 = vadd.f32 %v1087_v52, %v1086_v49  ;;  %v1089_v55 = vpop.f32.mrb[14].mxu1 }
 0x116   : > { %v703_v56 = vadd.f32 %v1042_v50, %v1422_v63  ;;  %v1045_v57 = vadd.f32 %v1044_v53, %v1043_v51  ;;  %v1090_v58 = vpop.f32.mrb[15].mxu1 }
 0x117   : > { %v1091_v59 = vadd.f32 %v1090_v58, %v1089_v55 }
 0x118   : > { %v706_v60 = vadd.f32 %v1045_v57, %v1422_v63  ;;  %v776_v61 = vadd.f32 %v1088_v54, %v703_v56 }
 0x11a   : > { %v1046_v62 = vpop.f32.mrb[16].mxu0  ;;  %v779_v0 = vadd.f32 %v1091_v59, %v706_v60 }
 0x11b   : > { %v1047_v1 = vpop.f32.mrb[17].mxu0  ;;  %v1092_v2 = vpop.f32.mrb[16].mxu1 }
 0x11c   : > { %v1048_v3 = vadd.f32 %v1047_v1, %v1046_v62  ;;  %v1049_v4 = vpop.f32.mrb[18].mxu0  ;;  %v1093_v5 = vpop.f32.mrb[17].mxu1 }
 0x11d   : > { %v1050_v6 = vpop.f32.mrb[19].mxu0  ;;  %v1094_v7 = vadd.f32 %v1093_v5, %v1092_v2  ;;  %v1095_v8 = vpop.f32.mrb[18].mxu1 }
 0x11e   : > { %v711_v9 = vadd.f32 %v1048_v3, %v1422_v63  ;;  %v1051_v10 = vadd.f32 %v1050_v6, %v1049_v4  ;;  %v1096_v11 = vpop.f32.mrb[19].mxu1 }
 0x11f   : > { %v1097_v12 = vadd.f32 %v1096_v11, %v1095_v8 }
 0x120   : > { %v714_v14 = vadd.f32 %v1051_v10, %v1422_v63  ;;  %v784_v16 = vadd.f32 %v1094_v7, %v711_v9 }
 0x122   : > { %v824_v17 = vpop.f32.mrb[20].mxu0  ;;  %v787_v18 = vadd.f32 %v1097_v12, %v714_v14 }
 0x123   : > { %v825_v19 = vadd.f32 %v824_v17, %v1426_v13  ;;  %v848_v20 = vpop.f32.mrb[20].mxu1  ;;  %v1117_v21 = vpop.f32.mrb[21].mxu0 }
 0x124   : > { %v849_v22 = vadd.f32 %v848_v20, %v776_v61  ;;  %v1129_v23 = vpop.f32.mrb[21].mxu1  ;;  %v827_v63 = vpop.f32.mrb[22].mxu0 }
 0x125   : > { %864 = vst.msk [vmem:[%s1450_s21] sm:$0xff] %vm863_vm2, %v825_v19  ;;  %v828_v24 = vadd.f32 %v827_v63, %v1428_v15  ;;  %v851_v25 = vpop.f32.mrb[22].mxu1  ;;  %v1118_v26 = vpop.f32.mrb[23].mxu0 }
 0x126   : > { %870 = vst.msk [vmem:[%s1450_s21 + $0x30] sm:$0xff] %vm863_vm2, %v849_v22  ;;  %v852_v27 = vadd.f32 %v851_v25, %v779_v0  ;;  %v1130_v28 = vpop.f32.mrb[23].mxu1 }
 0x127   : > { %865 = vst.msk [vmem:[%s1450_s21 + $0x8] sm:$0xff] %vm863_vm2, %v828_v24 }
 0x128   : > { %871 = vst.msk [vmem:[%s1450_s21 + $0x38] sm:$0xff] %vm863_vm2, %v852_v27 }
 0x12a   : > { %v832_v13 = vpop.f32.mrb[24].mxu0 }
 0x12b   : > { %v833_v30 = vadd.f32 %v832_v13, %v1432_v29  ;;  %v856_v32 = vpop.f32.mrb[24].mxu1  ;;  %v1121_v33 = vpop.f32.mrb[25].mxu0 }
 0x12c   : > { %v857_v34 = vadd.f32 %v856_v32, %v784_v16  ;;  %v1133_v15 = vpop.f32.mrb[25].mxu1  ;;  %v835_v35 = vpop.f32.mrb[26].mxu0 }
 0x12d   : > { %866 = vst.msk [vmem:[%s1450_s21 + $0x10] sm:$0xff] %vm863_vm2, %v833_v30  ;;  %v836_v36 = vadd.f32 %v835_v35, %v1434_v31  ;;  %v859_v37 = vpop.f32.mrb[26].mxu1  ;;  %v1122_v38 = vpop.f32.mrb[27].mxu0 }
 0x12e   : > { %872 = vst.msk [vmem:[%s1450_s21 + $0x40] sm:$0xff] %vm863_vm2, %v857_v34  ;;  %v860_v39 = vadd.f32 %v859_v37, %v787_v18  ;;  %v1134_v40 = vpop.f32.mrb[27].mxu1 }
 0x12f   : > { %867 = vst.msk [vmem:[%s1450_s21 + $0x18] sm:$0xff] %vm863_vm2, %v836_v36 }
 0x130   : > { %873 = vst.msk [vmem:[%s1450_s21 + $0x48] sm:$0xff] %vm863_vm2, %v860_v39 }
 0x132   : > { %v840_v29 = vpop.f32.mrb[28].mxu0 }
 0x133   : > { %v841_v41 = vadd.f32 %v840_v29, %v1438_v45  ;;  %v1125_v42 = vpop.f32.mrb[29].mxu0 }
 0x134   : > { %v843_v43 = vpop.f32.mrb[30].mxu0 }
 0x135   : > { %868 = vst.msk [vmem:[%s1450_s21 + $0x20] sm:$0xff] %vm863_vm2, %v841_v41  ;;  %v844_v44 = vadd.f32 %v843_v43, %v1440_v47  ;;  %v1126_v31 = vpop.f32.mrb[31].mxu0 }
 0x137   : > { %869 = vst.msk [vmem:[%s1450_s21 + $0x28] sm:$0xff] %vm863_vm2, %v844_v44 }
 0x138 PF: > { %s13_s12 = sadd.s32 1, %s1231_s12  }
 0x139   : > { %p10_p4 = scmp.ge.s32.totalorder %s13_s12, 4  }
 0x13b   :  { %12 = sbr.rel (!%p10_p4) target bundleno = 1 (0x1), region = 62 }

// kernel: squeeze.8
= control target key start
LH: loop header
LB: loop body
LE: loop exit
PB: predicated region body
PF: predicated region fallthrough
CT: control target
= control target key end

     0   :  { %vm4_vm0 = vcmask 523264   ;;  %vm20_vm1 = vcmask 1048064   ;;  %s79_s0 = inlined_call_operand.vmem [shape: f32[640], index: 0, kind: input, shape index: {}]   ;;  %s80_s1 = inlined_call_operand.vmem [shape: f32[2,320], index: 1, kind: output, shape index: {}]  }
   0x1   :  { %v42_v0 = vld [vmem:[%s79_s0 + $0x2] sm:$0x7]   ;;  %v7_v4 = vld [vmem:[%s79_s0] sm:$0x3]  }
   0x2   :  { %v43_v1 = vld [vmem:[%s79_s0 + $0x3] sm:$0x3]   ;;  %v41_v3 = vld [vmem:[%s79_s0 + $0x2] sm:$0x1]   ;;  %s47_s0 = smov 64  }
   0x3   :  { %v14_v2 = vsel %vm4_vm0, %v43_v1, %v42_v0  ;;  %6 = vst.msk [vmem:[#allocation0 + $0x10] sm:$0x1] %vm4_vm0, %v41_v3   ;;  %8 = vst [vmem:[#allocation0] ss:$8 sm:$0x3] %v7_v4  }
   0x4   :  { %15 = vrot.lane.b32.xlu0 %v14_v2, %s47_s0 }
  0x76   :  { %v16_v5 = vpop.permute.xlu0 %15  }
  0x77   :  { %19 = vst.msk [vmem:[#allocation0 + $0x1] ss:$8 sm:$0x7] %vm4_vm0, %v16_v5  }
  0x78   :  { %22 = vst.msk [vmem:[#allocation0 + $0x1] ss:$8 sm:$0x3] %vm20_vm1, %v16_v5  }
  0x7e   :  { %v35_v6 = vld [vmem:[#allocation0 + $0x10] sm:$0x3] }
  0x7f   :  { %v26_v7 = vld [vmem:[#allocation0] sm:$0x3]  ;;  %v30_v8 = vld [vmem:[#allocation0 + $0x8] sm:$0x3]  ;;  %45 = vst [vmem:[%s80_s1 + $0x4] sm:$0x3] %v35_v6 }
  0x80   :  { %28 = vst [vmem:[%s80_s1] sm:$0x3] %v26_v7  ;;  %44 = vst [vmem:[%s80_s1 + $0x2] sm:$0x3] %v30_v8 }

// kernel: duck_detector_forward.15
= control target key start
LH: loop header
LB: loop body
LE: loop exit
PB: predicated region body
PF: predicated region fallthrough
CT: control target
= control target key end

     0   :  { %vm97_vm0 = vcmask 39936   ;;  %vm1301_vm2 = vcmask 7168   ;;  %s5774_s20 = smov 126   ;;  %s5775_s16 = smov 2   ;;  %s12263_s0 = inlined_call_operand.vmem [shape: f32[640,5], index: 0, kind: input, shape index: {}]   ;;  %s12264_s3 = inlined_call_operand.vmem [shape: f32[640,1], index: 3, kind: output, shape index: {0}]   ;;  %s12265_s4 = inlined_call_operand.vmem [shape: s32[640,1], index: 4, kind: output, shape index: {1}]   ;;  %s12266_s2 = inlined_call_operand.vmem [shape: f32[640,4], index: 2, kind: input, shape index: {}]   ;;  %s12267_s1 = inlined_call_operand.vmem [shape: f32[640,4], index: 1, kind: input, shape index: {}]   ;;  %s12268_s5 = inlined_call_operand.vmem [shape: f32[640,4], index: 5, kind: output, shape index: {2}]  }
   0x1   :  { %v5809_v0 = vld [vmem:[%s12263_s0] sm:$0xff]  ;;  %v5814_v1 = vld [vmem:[%s12263_s0 + $0x10] sm:$0xff]  ;;  %v5819_v2 = vld [vmem:[%s12263_s0 + $0x8] sm:$0xff] }
   0x2   :  { %v98_v3 = vsel %vm97_vm0, %v5809_v0, -inf  ;;  %v104_v4 = vsel %vm97_vm0, %v5814_v1, -inf  ;;  %v5828_v5 = vld [vmem:[%s12263_s0 + $0x18] sm:$0xff]  ;;  %v101_v6 = vsel %vm97_vm0, %v5819_v2, -inf  ;;  %v5837_v8 = vld [vmem:[%s12263_s0 + $0x20] sm:$0xff]  ;;  %v5842_v9 = vld [vmem:[%s12263_s0 + $0x28] sm:$0xff] }
   0x3   :  { %99 = vmax.xlane.f32.xlu0 %v98_v3  ;;  %105 = vmax.xlane.f32.xlu1 %v104_v4  ;;  %v107_v7 = vsel %vm97_vm0, %v5828_v5, -inf  ;;  %v110_v10 = vsel %vm97_vm0, %v5837_v8, -inf  ;;  %v113_v11 = vsel %vm97_vm0, %v5842_v9, -inf  ;;  %v5851_v12 = vld [vmem:[%s12263_s0 + $0x30] sm:$0xff]  ;;  %v5856_v13 = vld [vmem:[%s12263_s0 + $0x38] sm:$0xff]  ;;  %v5865_v16 = vld [vmem:[%s12263_s0 + $0x40] sm:$0xff] }
   0x4   :  { %v116_v14 = vsel %vm97_vm0, %v5851_v12, -inf  ;;  %v119_v15 = vsel %vm97_vm0, %v5856_v13, -inf  ;;  %v5870_v17 = vld [vmem:[%s12263_s0 + $0x48] sm:$0xff]  ;;  %v122_v18 = vsel %vm97_vm0, %v5865_v16, -inf  ;;  %v5879_v20 = vld [vmem:[%s12263_s0 + $0x50] sm:$0xff]  ;;  %v5884_v21 = vld [vmem:[%s12263_s0 + $0x58] sm:$0xff] }
   0x5   :  { %v125_v19 = vsel %vm97_vm0, %v5870_v17, -inf  ;;  %v128_v22 = vsel %vm97_vm0, %v5879_v20, -inf  ;;  %v131_v23 = vsel %vm97_vm0, %v5884_v21, -inf  ;;  %v5893_v24 = vld [vmem:[%s12263_s0 + $0x60] sm:$0xff]  ;;  %v5898_v25 = vld [vmem:[%s12263_s0 + $0x68] sm:$0xff]  ;;  %v5907_v28 = vld [vmem:[%s12263_s0 + $0x70] sm:$0xff] }
   0x6   :  { %v134_v26 = vsel %vm97_vm0, %v5893_v24, -inf  ;;  %v137_v27 = vsel %vm97_vm0, %v5898_v25, -inf  ;;  %v5912_v29 = vld [vmem:[%s12263_s0 + $0x78] sm:$0xff]  ;;  %v140_v30 = vsel %vm97_vm0, %v5907_v28, -inf  ;;  %v5921_v32 = vld [vmem:[%s12263_s0 + $0x80] sm:$0xff]  ;;  %v5926_v33 = vld [vmem:[%s12263_s0 + $0x88] sm:$0xff] }
   0x7   :  { %102 = vmax.xlane.f32.xlu0 %v101_v6  ;;  %108 = vmax.xlane.f32.xlu1 %v107_v7  ;;  %v143_v31 = vsel %vm97_vm0, %v5912_v29, -inf  ;;  %v146_v34 = vsel %vm97_vm0, %v5921_v32, -inf  ;;  %v149_v35 = vsel %vm97_vm0, %v5926_v33, -inf  ;;  %v5935_v36 = vld [vmem:[%s12263_s0 + $0x90] sm:$0xff]  ;;  %v5940_v37 = vld [vmem:[%s12263_s0 + $0x98] sm:$0xff]  ;;  %v5949_v40 = vld [vmem:[%s12263_s0 + $0xa0] sm:$0xff] }
   0x8   :  { %v152_v38 = vsel %vm97_vm0, %v5935_v36, -inf  ;;  %v155_v39 = vsel %vm97_vm0, %v5940_v37, -inf  ;;  %v5954_v41 = vld [vmem:[%s12263_s0 + $0xa8] sm:$0xff]  ;;  %v158_v42 = vsel %vm97_vm0, %v5949_v40, -inf  ;;  %v5963_v44 = vld [vmem:[%s12263_s0 + $0xb0] sm:$0xff]  ;;  %v5968_v45 = vld [vmem:[%s12263_s0 + $0xb8] sm:$0xff] }
   0x9   :  { %v161_v43 = vsel %vm97_vm0, %v5954_v41, -inf  ;;  %v164_v46 = vsel %vm97_vm0, %v5963_v44, -inf  ;;  %v167_v47 = vsel %vm97_vm0, %v5968_v45, -inf  ;;  %v5977_v48 = vld [vmem:[%s12263_s0 + $0xc0] sm:$0xff]  ;;  %v5982_v49 = vld [vmem:[%s12263_s0 + $0xc8] sm:$0xff]  ;;  %v5991_v52 = vld [vmem:[%s12263_s0 + $0xd0] sm:$0xff] }
   0xa   :  { %v170_v50 = vsel %vm97_vm0, %v5977_v48, -inf  ;;  %v173_v51 = vsel %vm97_vm0, %v5982_v49, -inf  ;;  %v5996_v53 = vld [vmem:[%s12263_s0 + $0xd8] sm:$0xff]  ;;  %v176_v54 = vsel %vm97_vm0, %v5991_v52, -inf  ;;  %v6005_v56 = vld [vmem:[%s12263_s0 + $0xe0] sm:$0xff]  ;;  %v6010_v57 = vld [vmem:[%s12263_s0 + $0xe8] sm:$0xff] }
   0xb   :  { %111 = vmax.xlane.f32.xlu0 %v110_v10  ;;  %114 = vmax.xlane.f32.xlu1 %v113_v11  ;;  %v179_v55 = vsel %vm97_vm0, %v5996_v53, -inf  ;;  %v182_v58 = vsel %vm97_vm0, %v6005_v56, -inf  ;;  %v185_v59 = vsel %vm97_vm0, %v6010_v57, -inf  ;;  %v6019_v60 = vld [vmem:[%s12263_s0 + $0xf0] sm:$0xff]  ;;  %v6024_v61 = vld [vmem:[%s12263_s0 + $0xf8] sm:$0xff]  ;;  %v6033_v3 = vld [vmem:[%s12263_s0 + $0x100] sm:$0xff] }
   0xc   :  { %v188_v62 = vsel %vm97_vm0, %v6019_v60, -inf  ;;  %v191_v63 = vsel %vm97_vm0, %v6024_v61, -inf  ;;  %v6038_v4 = vld [vmem:[%s12263_s0 + $0x108] sm:$0xff]  ;;  %v194_v6 = vsel %vm97_vm0, %v6033_v3, -inf  ;;  %v6047_v10 = vld [vmem:[%s12263_s0 + $0x110] sm:$0xff]  ;;  %v6052_v11 = vld [vmem:[%s12263_s0 + $0x118] sm:$0xff] }
   0xd   :  { %v197_v7 = vsel %vm97_vm0, %v6038_v4, -inf }
   0xf   :  { %117 = vmax.xlane.f32.xlu0 %v116_v14  ;;  %120 = vmax.xlane.f32.xlu1 %v119_v15  ;;  %v200_v14 = vsel %vm97_vm0, %v6047_v10, -inf  ;;  %v203_v15 = vsel %vm97_vm0, %v6052_v11, -inf }
  0x13   :  { %123 = vmax.xlane.f32.xlu0 %v122_v18  ;;  %126 = vmax.xlane.f32.xlu1 %v125_v19  ;;  %v6061_v18 = vld [vmem:[%s12263_s0 + $0x120] sm:$0xff]  ;;  %v6066_v19 = vld [vmem:[%s12263_s0 + $0x128] sm:$0xff] }
  0x17   :  { %129 = vmax.xlane.f32.xlu0 %v128_v22  ;;  %132 = vmax.xlane.f32.xlu1 %v131_v23  ;;  %v206_v22 = vsel %vm97_vm0, %v6061_v18, -inf  ;;  %v209_v23 = vsel %vm97_vm0, %v6066_v19, -inf }
  0x1b   :  { %135 = vmax.xlane.f32.xlu0 %v134_v26  ;;  %138 = vmax.xlane.f32.xlu1 %v137_v27  ;;  %v6075_v26 = vld [vmem:[%s12263_s0 + $0x130] sm:$0xff]  ;;  %v6080_v27 = vld [vmem:[%s12263_s0 + $0x138] sm:$0xff] }
  0x1f   :  { %141 = vmax.xlane.f32.xlu0 %v140_v30  ;;  %144 = vmax.xlane.f32.xlu1 %v143_v31  ;;  %v212_v30 = vsel %vm97_vm0, %v6075_v26, -inf  ;;  %v215_v31 = vsel %vm97_vm0, %v6080_v27, -inf }
  0x23   :  { %147 = vmax.xlane.f32.xlu0 %v146_v34  ;;  %150 = vmax.xlane.f32.xlu1 %v149_v35  ;;  %v6089_v34 = vld [vmem:[%s12263_s0 + $0x140] sm:$0xff]  ;;  %v6094_v35 = vld [vmem:[%s12263_s0 + $0x148] sm:$0xff] }
  0x27   :  { %153 = vmax.xlane.f32.xlu0 %v152_v38  ;;  %156 = vmax.xlane.f32.xlu1 %v155_v39  ;;  %v218_v38 = vsel %vm97_vm0, %v6089_v34, -inf  ;;  %v221_v39 = vsel %vm97_vm0, %v6094_v35, -inf }
  0x2b   :  { %159 = vmax.xlane.f32.xlu0 %v158_v42  ;;  %162 = vmax.xlane.f32.xlu1 %v161_v43  ;;  %v6103_v42 = vld [vmem:[%s12263_s0 + $0x150] sm:$0xff]  ;;  %v6108_v43 = vld [vmem:[%s12263_s0 + $0x158] sm:$0xff] }
  0x2f   :  { %165 = vmax.xlane.f32.xlu0 %v164_v46  ;;  %168 = vmax.xlane.f32.xlu1 %v167_v47  ;;  %v224_v46 = vsel %vm97_vm0, %v6103_v42, -inf  ;;  %v227_v47 = vsel %vm97_vm0, %v6108_v43, -inf }
  0x33   :  { %171 = vmax.xlane.f32.xlu0 %v170_v50  ;;  %174 = vmax.xlane.f32.xlu1 %v173_v51  ;;  %v6117_v50 = vld [vmem:[%s12263_s0 + $0x160] sm:$0xff]  ;;  %v6122_v51 = vld [vmem:[%s12263_s0 + $0x168] sm:$0xff] }
  0x37   :  { %177 = vmax.xlane.f32.xlu0 %v176_v54  ;;  %180 = vmax.xlane.f32.xlu1 %v179_v55  ;;  %v230_v54 = vsel %vm97_vm0, %v6117_v50, -inf  ;;  %v233_v55 = vsel %vm97_vm0, %v6122_v51, -inf }
  0x3b   :  { %183 = vmax.xlane.f32.xlu0 %v182_v58  ;;  %186 = vmax.xlane.f32.xlu1 %v185_v59  ;;  %v6131_v58 = vld [vmem:[%s12263_s0 + $0x170] sm:$0xff]  ;;  %v6136_v59 = vld [vmem:[%s12263_s0 + $0x178] sm:$0xff] }
  0x3f   :  { %189 = vmax.xlane.f32.xlu0 %v188_v62  ;;  %192 = vmax.xlane.f32.xlu1 %v191_v63  ;;  %v236_v62 = vsel %vm97_vm0, %v6131_v58, -inf  ;;  %v239_v63 = vsel %vm97_vm0, %v6136_v59, -inf }
  0x43   :  { %195 = vmax.xlane.f32.xlu0 %v194_v6  ;;  %198 = vmax.xlane.f32.xlu1 %v197_v7  ;;  %v6145_v6 = vld [vmem:[%s12263_s0 + $0x180] sm:$0xff]  ;;  %v6150_v7 = vld [vmem:[%s12263_s0 + $0x188] sm:$0xff] }
  0x47   :  { %201 = vmax.xlane.f32.xlu0 %v200_v14  ;;  %204 = vmax.xlane.f32.xlu1 %v203_v15  ;;  %v242_v14 = vsel %vm97_vm0, %v6145_v6, -inf  ;;  %v245_v15 = vsel %vm97_vm0, %v6150_v7, -inf }
  0x4b   :  { %207 = vmax.xlane.f32.xlu0 %v206_v22  ;;  %210 = vmax.xlane.f32.xlu1 %v209_v23  ;;  %v6159_v22 = vld [vmem:[%s12263_s0 + $0x190] sm:$0xff]  ;;  %v6164_v23 = vld [vmem:[%s12263_s0 + $0x198] sm:$0xff] }
  0x4c   :  { %12594 = vst [vmem:[#allocation2_spill] sm:$0xff] %v6164_v23 }
  0x4f   :  { %213 = vmax.xlane.f32.xlu0 %v212_v30  ;;  %216 = vmax.xlane.f32.xlu1 %v215_v31  ;;  %v248_v30 = vsel %vm97_vm0, %v6159_v22, -inf  ;;  %v251_v31 = vsel %vm97_vm0, %v6164_v23, -inf }
  0x53   :  { %219 = vmax.xlane.f32.xlu0 %v218_v38  ;;  %222 = vmax.xlane.f32.xlu1 %v221_v39  ;;  %v6173_v38 = vld [vmem:[%s12263_s0 + $0x1a0] sm:$0xff]  ;;  %v6178_v39 = vld [vmem:[%s12263_s0 + $0x1a8] sm:$0xff] }
  0x54   :  { %12595 = vst [vmem:[#allocation3_spill] sm:$0xff] %v6173_v38  ;;  %12596 = vst [vmem:[#allocation4_spill] sm:$0xff] %v6178_v39 }
  0x57   :  { %225 = vmax.xlane.f32.xlu0 %v224_v46  ;;  %228 = vmax.xlane.f32.xlu1 %v227_v47  ;;  %v254_v46 = vsel %vm97_vm0, %v6173_v38, -inf  ;;  %v257_v47 = vsel %vm97_vm0, %v6178_v39, -inf  ;;  %v91_v39 = vld [vmem:[%s12263_s0 + $0x250] sm:$0xff] }
  0x5b   :  { %231 = vmax.xlane.f32.xlu0 %v230_v54  ;;  %234 = vmax.xlane.f32.xlu1 %v233_v55  ;;  %v6187_v54 = vld [vmem:[%s12263_s0 + $0x1b0] sm:$0xff]  ;;  %v6192_v55 = vld [vmem:[%s12263_s0 + $0x1b8] sm:$0xff] }
  0x5c   :  { %12597 = vst [vmem:[#allocation5_spill] sm:$0xff] %v6187_v54  ;;  %12598 = vst [vmem:[#allocation6_spill] sm:$0xff] %v6192_v55 }
  0x5f   :  { %237 = vmax.xlane.f32.xlu0 %v236_v62  ;;  %240 = vmax.xlane.f32.xlu1 %v239_v63  ;;  %v260_v62 = vsel %vm97_vm0, %v6187_v54, -inf  ;;  %v263_v63 = vsel %vm97_vm0, %v6192_v55, -inf }
  0x63   :  { %243 = vmax.xlane.f32.xlu0 %v242_v14  ;;  %246 = vmax.xlane.f32.xlu1 %v245_v15  ;;  %v6201_v14 = vld [vmem:[%s12263_s0 + $0x1c0] sm:$0xff]  ;;  %v6206_v15 = vld [vmem:[%s12263_s0 + $0x1c8] sm:$0xff] }
  0x64   :  { %12599 = vst [vmem:[#allocation7_spill] sm:$0xff] %v6201_v14  ;;  %12600 = vst [vmem:[#allocation8_spill] sm:$0xff] %v6206_v15 }
  0x67   :  { %249 = vmax.xlane.f32.xlu0 %v248_v30  ;;  %252 = vmax.xlane.f32.xlu1 %v251_v31  ;;  %v266_v30 = vsel %vm97_vm0, %v6201_v14, -inf  ;;  %v269_v31 = vsel %vm97_vm0, %v6206_v15, -inf  ;;  %v6229_v15 = vld [vmem:[%s12263_s0 + $0x1e0] sm:$0xff]  ;;  %v6234_v14 = vld [vmem:[%s12263_s0 + $0x1e8] sm:$0xff] }
  0x68   :  { %12603 = vst [vmem:[#allocation11_spill] sm:$0xff] %v6229_v15  ;;  %12604 = vst [vmem:[#allocation12_spill] sm:$0xff] %v6234_v14 }
  0x6b   :  { %255 = vmax.xlane.f32.xlu0 %v254_v46  ;;  %258 = vmax.xlane.f32.xlu1 %v257_v47  ;;  %v6215_v46 = vld [vmem:[%s12263_s0 + $0x1d0] sm:$0xff]  ;;  %v6220_v47 = vld [vmem:[%s12263_s0 + $0x1d8] sm:$0xff] }
  0x6c   :  { %12601 = vst [vmem:[#allocation9_spill] sm:$0xff] %v6215_v46  ;;  %12602 = vst [vmem:[#allocation10_spill] sm:$0xff] %v6220_v47 }
  0x6f   :  { %261 = vmax.xlane.f32.xlu0 %v260_v62  ;;  %264 = vmax.xlane.f32.xlu1 %v263_v63  ;;  %v272_v62 = vsel %vm97_vm0, %v6215_v46, -inf  ;;  %v275_v63 = vsel %vm97_vm0, %v6220_v47, -inf  ;;  %v6243_v47 = vld [vmem:[%s12263_s0 + $0x1f0] sm:$0xff]  ;;  %v6248_v46 = vld [vmem:[%s12263_s0 + $0x1f8] sm:$0xff] }
  0x70   :  { %12605 = vst [vmem:[#allocation13_spill] sm:$0xff] %v6243_v47  ;;  %12606 = vst [vmem:[#allocation14_spill] sm:$0xff] %v6248_v46 }
  0x73   :  { %267 = vmax.xlane.f32.xlu0 %v266_v30  ;;  %270 = vmax.xlane.f32.xlu1 %v269_v31  ;;  %v278_v30 = vsel %vm97_vm0, %v6229_v15, -inf  ;;  %v281_v31 = vsel %vm97_vm0, %v6234_v14, -inf  ;;  %v6257_v14 = vld [vmem:[%s12263_s0 + $0x200] sm:$0xff]  ;;  %v6262_v15 = vld [vmem:[%s12263_s0 + $0x208] sm:$0xff] }
  0x74   :  { %12607 = vst [vmem:[#allocation15_spill] sm:$0xff] %v6257_v14  ;;  %12608 = vst [vmem:[#allocation16_spill] sm:$0xff] %v6262_v15 }
  0x77   :  { %273 = vmax.xlane.f32.xlu0 %v272_v62  ;;  %276 = vmax.xlane.f32.xlu1 %v275_v63  ;;  %v284_v62 = vsel %vm97_vm0, %v6243_v47, -inf  ;;  %v287_v63 = vsel %vm97_vm0, %v6248_v46, -inf  ;;  %v6271_v46 = vld [vmem:[%s12263_s0 + $0x210] sm:$0xff]  ;;  %v6276_v47 = vld [vmem:[%s12263_s0 + $0x218] sm:$0xff] }
  0x78   :  { %12609 = vst [vmem:[#allocation17_spill] sm:$0xff] %v6271_v46  ;;  %12610 = vst [vmem:[#allocation18_spill] sm:$0xff] %v6276_v47 }
  0x7b   :  { %279 = vmax.xlane.f32.xlu0 %v278_v30  ;;  %282 = vmax.xlane.f32.xlu1 %v281_v31  ;;  %v290_v30 = vsel %vm97_vm0, %v6257_v14, -inf  ;;  %v293_v31 = vsel %vm97_vm0, %v6262_v15, -inf  ;;  %v6285_v15 = vld [vmem:[%s12263_s0 + $0x220] sm:$0xff]  ;;  %v6290_v14 = vld [vmem:[%s12263_s0 + $0x228] sm:$0xff] }
  0x7c   :  { %12611 = vst [vmem:[#allocation19_spill] sm:$0xff] %v6285_v15  ;;  %12612 = vst [vmem:[#allocation20_spill] sm:$0xff] %v6290_v14 }
  0x7f   :  { %285 = vmax.xlane.f32.xlu0 %v284_v62  ;;  %288 = vmax.xlane.f32.xlu1 %v287_v63  ;;  %v296_v62 = vsel %vm97_vm0, %v6271_v46, -inf  ;;  %v299_v63 = vsel %vm97_vm0, %v6276_v47, -inf  ;;  %v6299_v47 = vld [vmem:[%s12263_s0 + $0x230] sm:$0xff]  ;;  %v6304_v46 = vld [vmem:[%s12263_s0 + $0x238] sm:$0xff] }
  0x80   :  { %12613 = vst [vmem:[#allocation21_spill] sm:$0xff] %v6299_v47  ;;  %12614 = vst [vmem:[#allocation22_spill] sm:$0xff] %v6304_v46 }
  0x83   :  { %291 = vmax.xlane.f32.xlu0 %v290_v30  ;;  %294 = vmax.xlane.f32.xlu1 %v293_v31  ;;  %v302_v30 = vsel %vm97_vm0, %v6285_v15, -inf  ;;  %v305_v31 = vsel %vm97_vm0, %v6290_v14, -inf  ;;  %v6313_v14 = vld [vmem:[%s12263_s0 + $0x240] sm:$0xff]  ;;  %v6318_v15 = vld [vmem:[%s12263_s0 + $0x248] sm:$0xff] }
  0x84   :  { %12615 = vst [vmem:[#allocation23_spill] sm:$0xff] %v6313_v14  ;;  %12616 = vst [vmem:[#allocation24_spill] sm:$0xff] %v6318_v15 }
  0x87   :  { %297 = vmax.xlane.f32.xlu0 %v296_v62  ;;  %300 = vmax.xlane.f32.xlu1 %v299_v63  ;;  %v308_v62 = vsel %vm97_vm0, %v6299_v47, -inf  ;;  %v311_v63 = vsel %vm97_vm0, %v6304_v46, -inf  ;;  %v314_v47 = vsel %vm97_vm0, %v6313_v14, -inf  ;;  %v317_v46 = vsel %vm97_vm0, %v6318_v15, -inf }
  0x88   :  { %v320_v15 = vsel %vm97_vm0, %v91_v39, -inf }
  0x8b   :  { %303 = vmax.xlane.f32.xlu0 %v302_v30  ;;  %306 = vmax.xlane.f32.xlu1 %v305_v31 }
  0x8f   :  { %309 = vmax.xlane.f32.xlu0 %v308_v62  ;;  %312 = vmax.xlane.f32.xlu1 %v311_v63  ;;  %v92_v62 = vld [vmem:[%s12263_s0 + $0x258] sm:$0xff] }
  0x90   :  { %v100_v30 = vpop.xlane.xlu0 %99  ;;  %v106_v31 = vpop.xlane.xlu1 %105 }
  0x91   :  { %v338_v55 = vsub.f32 %v5809_v0, %v100_v30  ;;  %v340_v54 = vsub.f32 %v5814_v1, %v106_v31  ;;  %v323_v0 = vsel %vm97_vm0, %v92_v62, -inf  ;;  %v93_v31 = vld [vmem:[%s12263_s0 + $0x260] sm:$0xff] }
  0x92   :  { %v326_v62 = vsel %vm97_vm0, %v93_v31, -inf }
  0x93   :  { %v418_v63 = vmul.f32 1.442695, %v338_v55  ;;  %v422_v38 = vmul.f32 1.442695, %v340_v54  ;;  %315 = vmax.xlane.f32.xlu0 %v314_v47  ;;  %318 = vmax.xlane.f32.xlu1 %v317_v46  ;;  %v94_v54 = vld [vmem:[%s12263_s0 + $0x268] sm:$0xff] }
  0x94   :  { %v103_v14 = vpop.xlane.xlu0 %102  ;;  %v109_v23 = vpop.xlane.xlu1 %108 }
  0x95   :  { %5078 = vpow2.f32 %v418_v63  ;;  %v339_v1 = vsub.f32 %v5819_v2, %v103_v14  ;;  %v341_v30 = vsub.f32 %v5828_v5, %v109_v23  ;;  %v329_v2 = vsel %vm97_vm0, %v94_v54, -inf  ;;  %v95_v14 = vld [vmem:[%s12263_s0 + $0x270] sm:$0xff] }
  0x96   :  { %5080 = vpow2.f32 %v422_v38  ;;  %v96_v38 = vld [vmem:[%s12263_s0 + $0x278] sm:$0xff] }
  0x97   :  { %v420_v55 = vmul.f32 1.442695, %v339_v1  ;;  %v424_v46 = vmul.f32 1.442695, %v341_v30  ;;  %321 = vmax.xlane.f32.xlu0 %v320_v15  ;;  %324 = vmax.xlane.f32.xlu1 %v323_v0  ;;  %v332_v30 = vsel %vm97_vm0, %v95_v14, -inf }
  0x98   :  { %v112_v39 = vpop.xlane.xlu0 %111  ;;  %v115_v47 = vpop.xlane.xlu1 %114 }
  0x99   :  { %5082 = vpow2.f32 %v420_v55  ;;  %v342_v5 = vsub.f32 %v5837_v8, %v112_v39  ;;  %v343_v23 = vsub.f32 %v5842_v9, %v115_v47  ;;  %v335_v8 = vsel %vm97_vm0, %v96_v38, -inf }
  0x9a   :  { %5084 = vpow2.f32 %v424_v46 }
  0x9b   :  { %v426_v15 = vmul.f32 1.442695, %v342_v5  ;;  %v428_v63 = vmul.f32 1.442695, %v343_v23  ;;  %327 = vmax.xlane.f32.xlu0 %v326_v62  ;;  %330 = vmax.xlane.f32.xlu1 %v329_v2 }
  0x9c   :  { %v118_v0 = vpop.xlane.xlu0 %117  ;;  %v121_v1 = vpop.xlane.xlu1 %120 }
  0x9d   :  { %5086 = vpow2.f32 %v426_v15  ;;  %v344_v9 = vsub.f32 %v5851_v12, %v118_v0  ;;  %v345_v31 = vsub.f32 %v5856_v13, %v121_v1 }
  0x9e   :  { %5088 = vpow2.f32 %v428_v63 }
  0x9f   :  { %v6356_v54 = vpop.eup %5078  ;;  %v430_v55 = vmul.f32 1.442695, %v344_v9  ;;  %v432_v46 = vmul.f32 1.442695, %v345_v31  ;;  %333 = vmax.xlane.f32.xlu0 %v332_v30  ;;  %336 = vmax.xlane.f32.xlu1 %v335_v8 }
  0xa0   :  { %v124_v39 = vpop.xlane.xlu0 %123  ;;  %v127_v47 = vpop.xlane.xlu1 %126  ;;  %v578_v12 = vsel %vm97_vm0, %v6356_v54, 0.0 }
  0xa1   :  { %v6358_v62 = vpop.eup %5080  ;;  %5090 = vpow2.f32 %v430_v55  ;;  %v346_v2 = vsub.f32 %v5865_v16, %v124_v39  ;;  %v347_v5 = vsub.f32 %v5870_v17, %v127_v47 }
  0xa2   :  { %5092 = vpow2.f32 %v432_v46  ;;  %v584_v16 = vsel %vm97_vm0, %v6358_v62, 0.0 }
  0xa3   :  { %v6364_v13 = vpop.eup %5082  ;;  %v434_v23 = vmul.f32 1.442695, %v346_v2  ;;  %v436_v14 = vmul.f32 1.442695, %v347_v5  ;;  %579 = vadd.xlane.f32.xlu0 %v578_v12 }
  0xa4   :  { %v6366_v38 = vpop.eup %5084  ;;  %v130_v15 = vpop.xlane.xlu0 %129  ;;  %v581_v63 = vsel %vm97_vm0, %v6364_v13, 0.0 }
  0xa5   :  { %v133_v0 = vpop.xlane.xlu1 %132  ;;  %5094 = vpow2.f32 %v434_v23  ;;  %v348_v17 = vsub.f32 %v5879_v20, %v130_v15  ;;  %582 = vadd.xlane.f32.xlu1 %v581_v63  ;;  %v587_v30 = vsel %vm97_vm0, %v6366_v38, 0.0 }
  0xa6   :  { %v349_v1 = vsub.f32 %v5884_v21, %v133_v0  ;;  %5096 = vpow2.f32 %v436_v14 }
  0xa7   :  { %v6376_v8 = vpop.eup %5086  ;;  %v438_v9 = vmul.f32 1.442695, %v348_v17  ;;  %585 = vadd.xlane.f32.xlu0 %v584_v16 }
  0xa8   :  { %v440_v31 = vmul.f32 1.442695, %v349_v1  ;;  %v6378_v55 = vpop.eup %5088  ;;  %v136_v46 = vpop.xlane.xlu0 %135  ;;  %v590_v21 = vsel %vm97_vm0, %v6376_v8, 0.0 }
  0xa9   :  { %v139_v39 = vpop.xlane.xlu1 %138  ;;  %5098 = vpow2.f32 %v438_v9  ;;  %v350_v47 = vsub.f32 %v5893_v24, %v136_v46  ;;  %588 = vadd.xlane.f32.xlu1 %v587_v30  ;;  %v593_v2 = vsel %vm97_vm0, %v6378_v55, 0.0 }
  0xaa   :  { %v351_v20 = vsub.f32 %v5898_v25, %v139_v39  ;;  %5100 = vpow2.f32 %v440_v31 }
  0xab   :  { %v6386_v5 = vpop.eup %5090  ;;  %v442_v12 = vmul.f32 1.442695, %v350_v47  ;;  %591 = vadd.xlane.f32.xlu0 %v590_v21 }
  0xac   :  { %v444_v23 = vmul.f32 1.442695, %v351_v20  ;;  %v6388_v14 = vpop.eup %5092  ;;  %v142_v15 = vpop.xlane.xlu0 %141  ;;  %v596_v0 = vsel %vm97_vm0, %v6386_v5, 0.0 }
  0xad   :  { %v145_v63 = vpop.xlane.xlu1 %144  ;;  %5102 = vpow2.f32 %v442_v12  ;;  %v352_v24 = vsub.f32 %v5907_v28, %v142_v15  ;;  %594 = vadd.xlane.f32.xlu1 %v593_v2  ;;  %v599_v16 = vsel %vm97_vm0, %v6388_v14, 0.0 }
  0xae   :  { %v353_v25 = vsub.f32 %v5912_v29, %v145_v63  ;;  %5104 = vpow2.f32 %v444_v23 }
  0xaf   :  { %v6396_v17 = vpop.eup %5094  ;;  %v446_v1 = vmul.f32 1.442695, %v352_v24  ;;  %597 = vadd.xlane.f32.xlu0 %v596_v0 }
  0xb0   :  { %v448_v30 = vmul.f32 1.442695, %v353_v25  ;;  %v6398_v9 = vpop.eup %5096  ;;  %v148_v31 = vpop.xlane.xlu0 %147  ;;  %v602_v39 = vsel %vm97_vm0, %v6396_v17, 0.0 }
  0xb1   :  { %v151_v46 = vpop.xlane.xlu1 %150  ;;  %5106 = vpow2.f32 %v446_v1  ;;  %v354_v28 = vsub.f32 %v5921_v32, %v148_v31  ;;  %600 = vadd.xlane.f32.xlu1 %v599_v16  ;;  %v605_v47 = vsel %vm97_vm0, %v6398_v9, 0.0 }
  0xb2   :  { %v355_v29 = vsub.f32 %v5926_v33, %v151_v46  ;;  %5108 = vpow2.f32 %v448_v30 }
  0xb3   :  { %v6406_v20 = vpop.eup %5098  ;;  %v450_v21 = vmul.f32 1.442695, %v354_v28  ;;  %603 = vadd.xlane.f32.xlu0 %v602_v39 }
  0xb4   :  { %v452_v2 = vmul.f32 1.442695, %v355_v29  ;;  %v6408_v12 = vpop.eup %5100  ;;  %v154_v23 = vpop.xlane.xlu0 %153  ;;  %v608_v63 = vsel %vm97_vm0, %v6406_v20, 0.0 }
  0xb5   :  { %v157_v15 = vpop.xlane.xlu1 %156  ;;  %5110 = vpow2.f32 %v450_v21  ;;  %v356_v32 = vsub.f32 %v5935_v36, %v154_v23  ;;  %606 = vadd.xlane.f32.xlu1 %v605_v47  ;;  %v611_v24 = vsel %vm97_vm0, %v6408_v12, 0.0 }
  0xb6   :  { %v357_v33 = vsub.f32 %v5940_v37, %v157_v15  ;;  %5112 = vpow2.f32 %v452_v2 }
  0xb7   :  { %v6416_v25 = vpop.eup %5102  ;;  %v454_v0 = vmul.f32 1.442695, %v356_v32  ;;  %609 = vadd.xlane.f32.xlu0 %v608_v63 }
  0xb8   :  { %v456_v16 = vmul.f32 1.442695, %v357_v33  ;;  %v6418_v1 = vpop.eup %5104  ;;  %v160_v30 = vpop.xlane.xlu0 %159  ;;  %v614_v46 = vsel %vm97_vm0, %v6416_v25, 0.0 }
  0xb9   :  { %v163_v31 = vpop.xlane.xlu1 %162  ;;  %5114 = vpow2.f32 %v454_v0  ;;  %v358_v36 = vsub.f32 %v5949_v40, %v160_v30  ;;  %612 = vadd.xlane.f32.xlu1 %v611_v24  ;;  %v617_v28 = vsel %vm97_vm0, %v6418_v1, 0.0 }
  0xba   :  { %v359_v37 = vsub.f32 %v5954_v41, %v163_v31  ;;  %5116 = vpow2.f32 %v456_v16 }
  0xbb   :  { %v6426_v29 = vpop.eup %5106  ;;  %v458_v39 = vmul.f32 1.442695, %v358_v36  ;;  %615 = vadd.xlane.f32.xlu0 %v614_v46 }
  0xbc   :  { %v460_v47 = vmul.f32 1.442695, %v359_v37  ;;  %v6428_v21 = vpop.eup %5108  ;;  %v166_v2 = vpop.xlane.xlu0 %165  ;;  %v620_v15 = vsel %vm97_vm0, %v6426_v29, 0.0 }
  0xbd   :  { %v169_v23 = vpop.xlane.xlu1 %168  ;;  %5118 = vpow2.f32 %v458_v39  ;;  %v360_v40 = vsub.f32 %v5963_v44, %v166_v2  ;;  %618 = vadd.xlane.f32.xlu1 %v617_v28  ;;  %v623_v32 = vsel %vm97_vm0, %v6428_v21, 0.0 }
  0xbe   :  { %v361_v41 = vsub.f32 %v5968_v45, %v169_v23  ;;  %5120 = vpow2.f32 %v460_v47 }
  0xbf   :  { %v6436_v33 = vpop.eup %5110  ;;  %v462_v63 = vmul.f32 1.442695, %v360_v40  ;;  %621 = vadd.xlane.f32.xlu0 %v620_v15 }
  0xc0   :  { %v464_v24 = vmul.f32 1.442695, %v361_v41  ;;  %v6438_v0 = vpop.eup %5112  ;;  %v172_v16 = vpop.xlane.xlu0 %171  ;;  %v626_v31 = vsel %vm97_vm0, %v6436_v33, 0.0 }
  0xc1   :  { %v175_v30 = vpop.xlane.xlu1 %174  ;;  %5122 = vpow2.f32 %v462_v63  ;;  %v362_v44 = vsub.f32 %v5977_v48, %v172_v16  ;;  %624 = vadd.xlane.f32.xlu1 %v623_v32  ;;  %v629_v36 = vsel %vm97_vm0, %v6438_v0, 0.0 }
  0xc2   :  { %v363_v45 = vsub.f32 %v5982_v49, %v175_v30  ;;  %5124 = vpow2.f32 %v464_v24 }
  0xc3   :  { %v6446_v37 = vpop.eup %5114  ;;  %v466_v46 = vmul.f32 1.442695, %v362_v44  ;;  %627 = vadd.xlane.f32.xlu0 %v626_v31 }
  0xc4   :  { %v468_v28 = vmul.f32 1.442695, %v363_v45  ;;  %v6448_v39 = vpop.eup %5116  ;;  %v178_v47 = vpop.xlane.xlu0 %177  ;;  %v632_v23 = vsel %vm97_vm0, %v6446_v37, 0.0 }
  0xc5   :  { %v181_v2 = vpop.xlane.xlu1 %180  ;;  %5126 = vpow2.f32 %v466_v46  ;;  %v364_v48 = vsub.f32 %v5991_v52, %v178_v47  ;;  %630 = vadd.xlane.f32.xlu1 %v629_v36  ;;  %v635_v40 = vsel %vm97_vm0, %v6448_v39, 0.0 }
  0xc6   :  { %v365_v49 = vsub.f32 %v5996_v53, %v181_v2  ;;  %5128 = vpow2.f32 %v468_v28 }
  0xc7   :  { %v6456_v41 = vpop.eup %5118  ;;  %v470_v15 = vmul.f32 1.442695, %v364_v48  ;;  %633 = vadd.xlane.f32.xlu0 %v632_v23 }
  0xc8   :  { %v472_v32 = vmul.f32 1.442695, %v365_v49  ;;  %v6458_v63 = vpop.eup %5120  ;;  %v184_v24 = vpop.xlane.xlu0 %183  ;;  %v638_v30 = vsel %vm97_vm0, %v6456_v41, 0.0 }
  0xc9   :  { %v187_v16 = vpop.xlane.xlu1 %186  ;;  %5130 = vpow2.f32 %v470_v15  ;;  %v366_v52 = vsub.f32 %v6005_v56, %v184_v24  ;;  %636 = vadd.xlane.f32.xlu1 %v635_v40  ;;  %v641_v44 = vsel %vm97_vm0, %v6458_v63, 0.0 }
  0xca   :  { %v367_v53 = vsub.f32 %v6010_v57, %v187_v16  ;;  %5132 = vpow2.f32 %v472_v32 }
  0xcb   :  { %v6466_v45 = vpop.eup %5122  ;;  %v474_v31 = vmul.f32 1.442695, %v366_v52  ;;  %639 = vadd.xlane.f32.xlu0 %v638_v30 }
  0xcc   :  { %v476_v36 = vmul.f32 1.442695, %v367_v53  ;;  %v6468_v46 = vpop.eup %5124  ;;  %v190_v28 = vpop.xlane.xlu0 %189  ;;  %v644_v2 = vsel %vm97_vm0, %v6466_v45, 0.0 }
  0xcd   :  { %v193_v47 = vpop.xlane.xlu1 %192  ;;  %5134 = vpow2.f32 %v474_v31  ;;  %v368_v56 = vsub.f32 %v6019_v60, %v190_v28  ;;  %642 = vadd.xlane.f32.xlu1 %v641_v44  ;;  %v647_v48 = vsel %vm97_vm0, %v6468_v46, 0.0 }
  0xce   :  { %v369_v57 = vsub.f32 %v6024_v61, %v193_v47  ;;  %5136 = vpow2.f32 %v476_v36 }
  0xcf   :  { %v6476_v49 = vpop.eup %5126  ;;  %v478_v23 = vmul.f32 1.442695, %v368_v56  ;;  %645 = vadd.xlane.f32.xlu0 %v644_v2 }
  0xd0   :  { %v480_v40 = vmul.f32 1.442695, %v369_v57  ;;  %v6478_v15 = vpop.eup %5128  ;;  %v196_v32 = vpop.xlane.xlu0 %195  ;;  %v650_v16 = vsel %vm97_vm0, %v6476_v49, 0.0 }
  0xd1   :  { %v199_v24 = vpop.xlane.xlu1 %198  ;;  %5138 = vpow2.f32 %v478_v23  ;;  %v370_v60 = vsub.f32 %v6033_v3, %v196_v32  ;;  %648 = vadd.xlane.f32.xlu1 %v647_v48  ;;  %v653_v52 = vsel %vm97_vm0, %v6478_v15, 0.0 }
  0xd2   :  { %v371_v61 = vsub.f32 %v6038_v4, %v199_v24  ;;  %5140 = vpow2.f32 %v480_v40 }
  0xd3   :  { %v6486_v53 = vpop.eup %5130  ;;  %v482_v30 = vmul.f32 1.442695, %v370_v60  ;;  %651 = vadd.xlane.f32.xlu0 %v650_v16 }
  0xd4   :  { %v484_v44 = vmul.f32 1.442695, %v371_v61  ;;  %v6488_v31 = vpop.eup %5132  ;;  %v202_v36 = vpop.xlane.xlu0 %201  ;;  %v656_v47 = vsel %vm97_vm0, %v6486_v53, 0.0 }
  0xd5   :  { %v205_v28 = vpop.xlane.xlu1 %204  ;;  %5142 = vpow2.f32 %v482_v30  ;;  %v372_v3 = vsub.f32 %v6047_v10, %v202_v36  ;;  %654 = vadd.xlane.f32.xlu1 %v653_v52  ;;  %v659_v56 = vsel %vm97_vm0, %v6488_v31, 0.0 }
  0xd6   :  { %v373_v4 = vsub.f32 %v6052_v11, %v205_v28  ;;  %5144 = vpow2.f32 %v484_v44 }
  0xd7   :  { %v6496_v57 = vpop.eup %5134  ;;  %v486_v2 = vmul.f32 1.442695, %v372_v3  ;;  %657 = vadd.xlane.f32.xlu0 %v656_v47 }
  0xd8   :  { %v488_v48 = vmul.f32 1.442695, %v373_v4  ;;  %v6498_v23 = vpop.eup %5136  ;;  %v208_v40 = vpop.xlane.xlu0 %207  ;;  %v662_v24 = vsel %vm97_vm0, %v6496_v57, 0.0 }
  0xd9   :  { %v211_v32 = vpop.xlane.xlu1 %210  ;;  %5146 = vpow2.f32 %v486_v2  ;;  %v374_v10 = vsub.f32 %v6061_v18, %v208_v40  ;;  %660 = vadd.xlane.f32.xlu1 %v659_v56  ;;  %v665_v60 = vsel %vm97_vm0, %v6498_v23, 0.0 }
  0xda   :  { %v375_v11 = vsub.f32 %v6066_v19, %v211_v32  ;;  %5148 = vpow2.f32 %v488_v48 }
  0xdb   :  { %v6506_v61 = vpop.eup %5138  ;;  %v490_v16 = vmul.f32 1.442695, %v374_v10  ;;  %663 = vadd.xlane.f32.xlu0 %v662_v24 }
  0xdc   :  { %v492_v52 = vmul.f32 1.442695, %v375_v11  ;;  %v6508_v30 = vpop.eup %5140  ;;  %v214_v44 = vpop.xlane.xlu0 %213  ;;  %v668_v28 = vsel %vm97_vm0, %v6506_v61, 0.0 }
  0xdd   :  { %v217_v36 = vpop.xlane.xlu1 %216  ;;  %5150 = vpow2.f32 %v490_v16  ;;  %v376_v18 = vsub.f32 %v6075_v26, %v214_v44  ;;  %666 = vadd.xlane.f32.xlu1 %v665_v60  ;;  %v671_v3 = vsel %vm97_vm0, %v6508_v30, 0.0 }
  0xde   :  { %v377_v19 = vsub.f32 %v6080_v27, %v217_v36  ;;  %5152 = vpow2.f32 %v492_v52 }
  0xdf   :  { %v6516_v4 = vpop.eup %5142  ;;  %v494_v47 = vmul.f32 1.442695, %v376_v18  ;;  %669 = vadd.xlane.f32.xlu0 %v668_v28 }
  0xe0   :  { %v496_v56 = vmul.f32 1.442695, %v377_v19  ;;  %v6518_v2 = vpop.eup %5144  ;;  %v220_v48 = vpop.xlane.xlu0 %219  ;;  %v674_v32 = vsel %vm97_vm0, %v6516_v4, 0.0 }
  0xe1   :  { %v223_v40 = vpop.xlane.xlu1 %222  ;;  %5154 = vpow2.f32 %v494_v47  ;;  %v378_v26 = vsub.f32 %v6089_v34, %v220_v48  ;;  %672 = vadd.xlane.f32.xlu1 %v671_v3  ;;  %v677_v10 = vsel %vm97_vm0, %v6518_v2, 0.0 }
  0xe2   :  { %v379_v27 = vsub.f32 %v6094_v35, %v223_v40  ;;  %5156 = vpow2.f32 %v496_v56 }
  0xe3   :  { %v6526_v11 = vpop.eup %5146  ;;  %v498_v24 = vmul.f32 1.442695, %v378_v26  ;;  %675 = vadd.xlane.f32.xlu0 %v674_v32 }
  0xe4   :  { %v500_v60 = vmul.f32 1.442695, %v379_v27  ;;  %v6528_v16 = vpop.eup %5148  ;;  %v226_v52 = vpop.xlane.xlu0 %225  ;;  %v680_v36 = vsel %vm97_vm0, %v6526_v11, 0.0 }
  0xe5   :  { %v229_v44 = vpop.xlane.xlu1 %228  ;;  %5158 = vpow2.f32 %v498_v24  ;;  %v380_v34 = vsub.f32 %v6103_v42, %v226_v52  ;;  %678 = vadd.xlane.f32.xlu1 %v677_v10  ;;  %v683_v18 = vsel %vm97_vm0, %v6528_v16, 0.0 }
  0xe6   :  { %v381_v35 = vsub.f32 %v6108_v43, %v229_v44  ;;  %5160 = vpow2.f32 %v500_v60 }
  0xe7   :  { %v6536_v19 = vpop.eup %5150  ;;  %v502_v28 = vmul.f32 1.442695, %v380_v34  ;;  %681 = vadd.xlane.f32.xlu0 %v680_v36 }
  0xe8   :  { %v504_v3 = vmul.f32 1.442695, %v381_v35  ;;  %v6538_v47 = vpop.eup %5152  ;;  %v232_v56 = vpop.xlane.xlu0 %231  ;;  %v686_v40 = vsel %vm97_vm0, %v6536_v19, 0.0 }
  0xe9   :  { %v235_v48 = vpop.xlane.xlu1 %234  ;;  %5162 = vpow2.f32 %v502_v28  ;;  %v382_v42 = vsub.f32 %v6117_v50, %v232_v56  ;;  %684 = vadd.xlane.f32.xlu1 %v683_v18  ;;  %v689_v26 = vsel %vm97_vm0, %v6538_v47, 0.0 }
  0xea   :  { %v383_v43 = vsub.f32 %v6122_v51, %v235_v48  ;;  %5164 = vpow2.f32 %v504_v3 }
  0xeb   :  { %v6546_v27 = vpop.eup %5154  ;;  %v506_v32 = vmul.f32 1.442695, %v382_v42  ;;  %687 = vadd.xlane.f32.xlu0 %v686_v40 }
  0xec   :  { %v508_v10 = vmul.f32 1.442695, %v383_v43  ;;  %v6548_v24 = vpop.eup %5156  ;;  %v238_v60 = vpop.xlane.xlu0 %237  ;;  %v692_v44 = vsel %vm97_vm0, %v6546_v27, 0.0 }
  0xed   :  { %v241_v52 = vpop.xlane.xlu1 %240  ;;  %5166 = vpow2.f32 %v506_v32  ;;  %v384_v50 = vsub.f32 %v6131_v58, %v238_v60  ;;  %690 = vadd.xlane.f32.xlu1 %v689_v26  ;;  %v695_v34 = vsel %vm97_vm0, %v6548_v24, 0.0 }
  0xee   :  { %v385_v51 = vsub.f32 %v6136_v59, %v241_v52  ;;  %5168 = vpow2.f32 %v508_v10 }
  0xef   :  { %v6556_v35 = vpop.eup %5158  ;;  %v510_v36 = vmul.f32 1.442695, %v384_v50  ;;  %693 = vadd.xlane.f32.xlu0 %v692_v44 }
  0xf0   :  { %v512_v18 = vmul.f32 1.442695, %v385_v51  ;;  %v6558_v28 = vpop.eup %5160  ;;  %v244_v3 = vpop.xlane.xlu0 %243  ;;  %v698_v48 = vsel %vm97_vm0, %v6556_v35, 0.0 }
  0xf1   :  { %v247_v56 = vpop.xlane.xlu1 %246  ;;  %5170 = vpow2.f32 %v510_v36  ;;  %v386_v58 = vsub.f32 %v6145_v6, %v244_v3  ;;  %696 = vadd.xlane.f32.xlu1 %v695_v34  ;;  %v701_v42 = vsel %vm97_vm0, %v6558_v28, 0.0 }
  0xf2   :  { %v387_v59 = vsub.f32 %v6150_v7, %v247_v56  ;;  %5172 = vpow2.f32 %v512_v18  ;;  %v12617_v7 = vld [vmem:[#allocation2_spill] sm:$0xff] }
  0xf3   :  { %v6566_v43 = vpop.eup %5162  ;;  %v514_v40 = vmul.f32 1.442695, %v386_v58  ;;  %699 = vadd.xlane.f32.xlu0 %v698_v48 }
  0xf4   :  { %v516_v26 = vmul.f32 1.442695, %v387_v59  ;;  %v6568_v32 = vpop.eup %5164  ;;  %v250_v10 = vpop.xlane.xlu0 %249  ;;  %v704_v50 = vsel %vm97_vm0, %v6566_v43, 0.0  ;;  %v12619_v59 = vld [vmem:[#allocation4_spill] sm:$0xff] }
  0xf5   :  { %v253_v60 = vpop.xlane.xlu1 %252  ;;  %5174 = vpow2.f32 %v514_v40  ;;  %v388_v6 = vsub.f32 %v6159_v22, %v250_v10  ;;  %702 = vadd.xlane.f32.xlu1 %v701_v42  ;;  %v707_v51 = vsel %vm97_vm0, %v6568_v32, 0.0  ;;  %v12618_v22 = vld [vmem:[#allocation3_spill] sm:$0xff] }
  0xf6   :  { %v389_v52 = vsub.f32 %v12617_v7, %v253_v60  ;;  %5176 = vpow2.f32 %v516_v26 }
  0xf7   :  { %v6576_v44 = vpop.eup %5166  ;;  %v518_v34 = vmul.f32 1.442695, %v388_v6  ;;  %705 = vadd.xlane.f32.xlu0 %v704_v50  ;;  %v12622_v50 = vld [vmem:[#allocation5_spill] sm:$0xff] }
  0xf8   :  { %v520_v36 = vmul.f32 1.442695, %v389_v52  ;;  %v6578_v18 = vpop.eup %5168  ;;  %v256_v3 = vpop.xlane.xlu0 %255  ;;  %v710_v42 = vsel %vm97_vm0, %v6576_v44, 0.0 }
  0xf9   :  { %v259_v56 = vpop.xlane.xlu1 %258  ;;  %5178 = vpow2.f32 %v518_v34  ;;  %v390_v58 = vsub.f32 %v12618_v22, %v256_v3  ;;  %708 = vadd.xlane.f32.xlu1 %v707_v51  ;;  %v713_v40 = vsel %vm97_vm0, %v6578_v18, 0.0  ;;  %v12623_v34 = vld [vmem:[#allocation6_spill] sm:$0xff] }
  0xfa   :  { %v391_v48 = vsub.f32 %v12619_v59, %v259_v56  ;;  %5180 = vpow2.f32 %v520_v36 }
  0xfb   :  { %v6586_v26 = vpop.eup %5170  ;;  %v522_v10 = vmul.f32 1.442695, %v390_v58  ;;  %711 = vadd.xlane.f32.xlu0 %v710_v42 }
  0xfc   :  { %12620 = vst [vmem:[#allocation2_spill] sm:$0xff] %v6586_v26  ;;  %v524_v60 = vmul.f32 1.442695, %v391_v48  ;;  %v6588_v6 = vpop.eup %5172  ;;  %v262_v7 = vpop.xlane.xlu0 %261  ;;  %v716_v3 = vsel %vm97_vm0, %v6586_v26, 0.0 }
  0xfd   :  { %12621 = vst [vmem:[#allocation3_spill] sm:$0xff] %v6588_v6  ;;  %v265_v52 = vpop.xlane.xlu1 %264  ;;  %5182 = vpow2.f32 %v522_v10  ;;  %v392_v51 = vsub.f32 %v12622_v50, %v262_v7  ;;  %714 = vadd.xlane.f32.xlu1 %v713_v40  ;;  %v719_v56 = vsel %vm97_vm0, %v6588_v6, 0.0  ;;  %v12626_v40 = vld [vmem:[#allocation7_spill] sm:$0xff] }
  0xfe   :  { %v393_v36 = vsub.f32 %v12623_v34, %v265_v52  ;;  %5184 = vpow2.f32 %v524_v60  ;;  %v12627_v60 = vld [vmem:[#allocation8_spill] sm:$0xff] }
  0xff   :  { %v6596_v22 = vpop.eup %5174  ;;  %v526_v58 = vmul.f32 1.442695, %v392_v51  ;;  %717 = vadd.xlane.f32.xlu0 %v716_v3 }
 0x100   :  { %12624 = vst [vmem:[#allocation4_spill] sm:$0xff] %v6596_v22  ;;  %v528_v59 = vmul.f32 1.442695, %v393_v36  ;;  %v6598_v48 = vpop.eup %5176  ;;  %v268_v42 = vpop.xlane.xlu0 %267  ;;  %v722_v50 = vsel %vm97_vm0, %v6596_v22, 0.0 }
 0x101   :  { %12625 = vst [vmem:[#allocation5_spill] sm:$0xff] %v6598_v48  ;;  %v271_v10 = vpop.xlane.xlu1 %270  ;;  %5186 = vpow2.f32 %v526_v58  ;;  %v394_v7 = vsub.f32 %v12626_v40, %v268_v42  ;;  %720 = vadd.xlane.f32.xlu1 %v719_v56  ;;  %v725_v34 = vsel %vm97_vm0, %v6598_v48, 0.0  ;;  %v12630_v56 = vld [vmem:[#allocation9_spill] sm:$0xff] }
 0x102   :  { %v395_v52 = vsub.f32 %v12627_v60, %v271_v10  ;;  %5188 = vpow2.f32 %v528_v59  ;;  %v12631_v59 = vld [vmem:[#allocation10_spill] sm:$0xff] }
 0x103   :  { %v6606_v51 = vpop.eup %5178  ;;  %v530_v36 = vmul.f32 1.442695, %v394_v7  ;;  %723 = vadd.xlane.f32.xlu0 %v722_v50 }
 0x104   :  { %12628 = vst [vmem:[#allocation6_spill] sm:$0xff] %v6606_v51  ;;  %v532_v3 = vmul.f32 1.442695, %v395_v52  ;;  %v6608_v6 = vpop.eup %5180  ;;  %v274_v58 = vpop.xlane.xlu0 %273  ;;  %v728_v40 = vsel %vm97_vm0, %v6606_v51, 0.0 }
 0x105   :  { %12629 = vst [vmem:[#allocation7_spill] sm:$0xff] %v6608_v6  ;;  %v277_v26 = vpop.xlane.xlu1 %276  ;;  %5190 = vpow2.f32 %v530_v36  ;;  %v396_v42 = vsub.f32 %v12630_v56, %v274_v58  ;;  %726 = vadd.xlane.f32.xlu1 %v725_v34  ;;  %v731_v60 = vsel %vm97_vm0, %v6608_v6, 0.0  ;;  %v12634_v34 = vld [vmem:[#allocation11_spill] sm:$0xff] }
 0x106   :  { %v397_v10 = vsub.f32 %v12631_v59, %v277_v26  ;;  %5192 = vpow2.f32 %v532_v3  ;;  %v12635_v26 = vld [vmem:[#allocation12_spill] sm:$0xff] }
 0x107   :  { %v6616_v7 = vpop.eup %5182  ;;  %v534_v52 = vmul.f32 1.442695, %v396_v42  ;;  %729 = vadd.xlane.f32.xlu0 %v728_v40 }
 0x108   :  { %12632 = vst [vmem:[#allocation8_spill] sm:$0xff] %v6616_v7  ;;  %v536_v50 = vmul.f32 1.442695, %v397_v10  ;;  %v6618_v48 = vpop.eup %5184  ;;  %v280_v36 = vpop.xlane.xlu0 %279  ;;  %v734_v56 = vsel %vm97_vm0, %v6616_v7, 0.0 }
 0x109   :  { %12633 = vst [vmem:[#allocation9_spill] sm:$0xff] %v6618_v48  ;;  %v283_v22 = vpop.xlane.xlu1 %282  ;;  %5194 = vpow2.f32 %v534_v52  ;;  %v398_v58 = vsub.f32 %v12634_v34, %v280_v36  ;;  %732 = vadd.xlane.f32.xlu1 %v731_v60  ;;  %v737_v59 = vsel %vm97_vm0, %v6618_v48, 0.0  ;;  %v12638_v60 = vld [vmem:[#allocation13_spill] sm:$0xff] }
 0x10a   :  { %v399_v3 = vsub.f32 %v12635_v26, %v283_v22  ;;  %5196 = vpow2.f32 %v536_v50  ;;  %v12639_v22 = vld [vmem:[#allocation14_spill] sm:$0xff] }
 0x10b   :  { %v6626_v42 = vpop.eup %5186  ;;  %v538_v10 = vmul.f32 1.442695, %v398_v58  ;;  %735 = vadd.xlane.f32.xlu0 %v734_v56 }
 0x10c   :  { %12636 = vst [vmem:[#allocation10_spill] sm:$0xff] %v6626_v42  ;;  %v540_v40 = vmul.f32 1.442695, %v399_v3  ;;  %v6628_v6 = vpop.eup %5188  ;;  %v286_v52 = vpop.xlane.xlu0 %285  ;;  %v740_v34 = vsel %vm97_vm0, %v6626_v42, 0.0 }
 0x10d   :  { %12637 = vst [vmem:[#allocation11_spill] sm:$0xff] %v6628_v6  ;;  %v289_v51 = vpop.xlane.xlu1 %288  ;;  %5198 = vpow2.f32 %v538_v10  ;;  %v400_v36 = vsub.f32 %v12638_v60, %v286_v52  ;;  %738 = vadd.xlane.f32.xlu1 %v737_v59  ;;  %v743_v26 = vsel %vm97_vm0, %v6628_v6, 0.0  ;;  %v12642_v59 = vld [vmem:[#allocation15_spill] sm:$0xff] }
 0x10e   :  { %v401_v50 = vsub.f32 %v12639_v22, %v289_v51  ;;  %5200 = vpow2.f32 %v540_v40  ;;  %v12643_v51 = vld [vmem:[#allocation16_spill] sm:$0xff] }
 0x10f   :  { %v6636_v58 = vpop.eup %5190  ;;  %v542_v3 = vmul.f32 1.442695, %v400_v36  ;;  %741 = vadd.xlane.f32.xlu0 %v740_v34 }
 0x110   :  { %12640 = vst [vmem:[#allocation12_spill] sm:$0xff] %v6636_v58  ;;  %v544_v56 = vmul.f32 1.442695, %v401_v50  ;;  %v6638_v48 = vpop.eup %5192  ;;  %v292_v10 = vpop.xlane.xlu0 %291  ;;  %v746_v60 = vsel %vm97_vm0, %v6636_v58, 0.0 }
 0x111   :  { %12641 = vst [vmem:[#allocation13_spill] sm:$0xff] %v6638_v48  ;;  %v295_v7 = vpop.xlane.xlu1 %294  ;;  %5202 = vpow2.f32 %v542_v3  ;;  %v402_v52 = vsub.f32 %v12642_v59, %v292_v10  ;;  %744 = vadd.xlane.f32.xlu1 %v743_v26  ;;  %v749_v22 = vsel %vm97_vm0, %v6638_v48, 0.0  ;;  %v12646_v26 = vld [vmem:[#allocation17_spill] sm:$0xff] }
 0x112   :  { %v403_v40 = vsub.f32 %v12643_v51, %v295_v7  ;;  %5204 = vpow2.f32 %v544_v56  ;;  %v12647_v7 = vld [vmem:[#allocation18_spill] sm:$0xff] }
 0x113   :  { %v6646_v36 = vpop.eup %5194  ;;  %v546_v50 = vmul.f32 1.442695, %v402_v52  ;;  %747 = vadd.xlane.f32.xlu0 %v746_v60 }
 0x114   :  { %12644 = vst [vmem:[#allocation14_spill] sm:$0xff] %v6646_v36  ;;  %v548_v34 = vmul.f32 1.442695, %v403_v40  ;;  %v6648_v6 = vpop.eup %5196  ;;  %v298_v3 = vpop.xlane.xlu0 %297  ;;  %v752_v59 = vsel %vm97_vm0, %v6646_v36, 0.0 }
 0x115   :  { %12645 = vst [vmem:[#allocation15_spill] sm:$0xff] %v6648_v6  ;;  %v301_v42 = vpop.xlane.xlu1 %300  ;;  %5206 = vpow2.f32 %v546_v50  ;;  %v404_v10 = vsub.f32 %v12646_v26, %v298_v3  ;;  %750 = vadd.xlane.f32.xlu1 %v749_v22  ;;  %v755_v51 = vsel %vm97_vm0, %v6648_v6, 0.0  ;;  %v12650_v22 = vld [vmem:[#allocation19_spill] sm:$0xff] }
 0x116   :  { %v405_v56 = vsub.f32 %v12647_v7, %v301_v42  ;;  %5208 = vpow2.f32 %v548_v34  ;;  %v12651_v42 = vld [vmem:[#allocation20_spill] sm:$0xff] }
 0x117   :  { %v6656_v52 = vpop.eup %5198  ;;  %v550_v40 = vmul.f32 1.442695, %v404_v10  ;;  %753 = vadd.xlane.f32.xlu0 %v752_v59 }
 0x118   :  { %12648 = vst [vmem:[#allocation16_spill] sm:$0xff] %v6656_v52  ;;  %v552_v60 = vmul.f32 1.442695, %v405_v56  ;;  %v6658_v48 = vpop.eup %5200  ;;  %v304_v50 = vpop.xlane.xlu0 %303  ;;  %v758_v26 = vsel %vm97_vm0, %v6656_v52, 0.0 }
 0x119   :  { %12649 = vst [vmem:[#allocation17_spill] sm:$0xff] %v6658_v48  ;;  %v307_v58 = vpop.xlane.xlu1 %306  ;;  %5210 = vpow2.f32 %v550_v40  ;;  %v406_v3 = vsub.f32 %v12650_v22, %v304_v50  ;;  %756 = vadd.xlane.f32.xlu1 %v755_v51  ;;  %v761_v7 = vsel %vm97_vm0, %v6658_v48, 0.0  ;;  %v12654_v51 = vld [vmem:[#allocation21_spill] sm:$0xff] }
 0x11a   :  { %v407_v34 = vsub.f32 %v12651_v42, %v307_v58  ;;  %5212 = vpow2.f32 %v552_v60  ;;  %v12655_v58 = vld [vmem:[#allocation22_spill] sm:$0xff] }
 0x11b   :  { %v6666_v10 = vpop.eup %5202  ;;  %v554_v56 = vmul.f32 1.442695, %v406_v3  ;;  %759 = vadd.xlane.f32.xlu0 %v758_v26 }
 0x11c   :  { %12652 = vst [vmem:[#allocation18_spill] sm:$0xff] %v6666_v10  ;;  %v556_v59 = vmul.f32 1.442695, %v407_v34  ;;  %v6668_v6 = vpop.eup %5204  ;;  %v310_v40 = vpop.xlane.xlu0 %309  ;;  %v764_v22 = vsel %vm97_vm0, %v6666_v10, 0.0 }
 0x11d   :  { %12653 = vst [vmem:[#allocation19_spill] sm:$0xff] %v6668_v6  ;;  %v313_v36 = vpop.xlane.xlu1 %312  ;;  %5214 = vpow2.f32 %v554_v56  ;;  %v408_v50 = vsub.f32 %v12654_v51, %v310_v40  ;;  %762 = vadd.xlane.f32.xlu1 %v761_v7  ;;  %v767_v42 = vsel %vm97_vm0, %v6668_v6, 0.0  ;;  %v12656_v7 = vld [vmem:[#allocation23_spill] sm:$0xff] }
 0x11e   :  { %v409_v60 = vsub.f32 %v12655_v58, %v313_v36  ;;  %5216 = vpow2.f32 %v556_v59  ;;  %v12657_v36 = vld [vmem:[#allocation24_spill] sm:$0xff] }
 0x11f   :  { %v6676_v3 = vpop.eup %5206  ;;  %v558_v34 = vmul.f32 1.442695, %v408_v50  ;;  %765 = vadd.xlane.f32.xlu0 %v764_v22 }
 0x120   :  { %v560_v26 = vmul.f32 1.442695, %v409_v60  ;;  %v6678_v48 = vpop.eup %5208  ;;  %v316_v56 = vpop.xlane.xlu0 %315  ;;  %v770_v51 = vsel %vm97_vm0, %v6676_v3, 0.0 }
 0x121   :  { %v319_v52 = vpop.xlane.xlu1 %318  ;;  %5218 = vpow2.f32 %v558_v34  ;;  %v410_v40 = vsub.f32 %v12656_v7, %v316_v56  ;;  %768 = vadd.xlane.f32.xlu1 %v767_v42  ;;  %v773_v58 = vsel %vm97_vm0, %v6678_v48, 0.0 }
 0x122   :  { %v411_v59 = vsub.f32 %v12657_v36, %v319_v52  ;;  %5220 = vpow2.f32 %v560_v26  ;;  %v5558_v52 = vld [vmem:[%s12263_s0 + $0x250] sm:$0xff]  ;;  %v5559_v26 = vld [vmem:[%s12263_s0 + $0x258] sm:$0xff] }
 0x123   :  { %v6686_v50 = vpop.eup %5210  ;;  %v562_v60 = vmul.f32 1.442695, %v410_v40  ;;  %771 = vadd.xlane.f32.xlu0 %v770_v51 }
 0x124   :  { %12658 = vst [vmem:[#allocation20_spill] sm:$0xff] %v6686_v50  ;;  %v564_v22 = vmul.f32 1.442695, %v411_v59  ;;  %v6688_v6 = vpop.eup %5212  ;;  %v322_v34 = vpop.xlane.xlu0 %321  ;;  %v776_v7 = vsel %vm97_vm0, %v6686_v50, 0.0 }
 0x125   :  { %12659 = vst [vmem:[#allocation21_spill] sm:$0xff] %v6688_v6  ;;  %v325_v10 = vpop.xlane.xlu1 %324  ;;  %5222 = vpow2.f32 %v562_v60  ;;  %v412_v42 = vsub.f32 %v5558_v52, %v322_v34  ;;  %774 = vadd.xlane.f32.xlu1 %v773_v58  ;;  %v779_v40 = vsel %vm97_vm0, %v6688_v6, 0.0  ;;  %v5561_v52 = vld [vmem:[%s12263_s0 + $0x268] sm:$0xff] }
 0x126   :  { %v413_v56 = vsub.f32 %v5559_v26, %v325_v10  ;;  %5224 = vpow2.f32 %v564_v22  ;;  %v5560_v10 = vld [vmem:[%s12263_s0 + $0x260] sm:$0xff] }
 0x127   :  { %v6700_v36 = vpop.eup %5214  ;;  %v566_v59 = vmul.f32 1.442695, %v412_v42  ;;  %777 = vadd.xlane.f32.xlu0 %v776_v7 }
 0x128   :  { %12660 = vst [vmem:[#allocation22_spill] sm:$0xff] %v6700_v36  ;;  %v568_v51 = vmul.f32 1.442695, %v413_v56  ;;  %v6702_v60 = vpop.eup %5216  ;;  %v328_v58 = vpop.xlane.xlu0 %327  ;;  %v782_v42 = vsel %vm97_vm0, %v6700_v36, 0.0 }
 0x129   :  { %12661 = vst [vmem:[#allocation23_spill] sm:$0xff] %v6702_v60  ;;  %v331_v34 = vpop.xlane.xlu1 %330  ;;  %5226 = vpow2.f32 %v566_v59  ;;  %v414_v22 = vsub.f32 %v5560_v10, %v328_v58  ;;  %780 = vadd.xlane.f32.xlu1 %v779_v40  ;;  %v785_v56 = vsel %vm97_vm0, %v6702_v60, 0.0  ;;  %v5563_v10 = vld [vmem:[%s12263_s0 + $0x278] sm:$0xff] }
 0x12a   :  { %v415_v26 = vsub.f32 %v5561_v52, %v331_v34  ;;  %5228 = vpow2.f32 %v568_v51  ;;  %v5562_v51 = vld [vmem:[%s12263_s0 + $0x270] sm:$0xff] }
 0x12b   :  { %v6714_v7 = vpop.eup %5218  ;;  %v570_v59 = vmul.f32 1.442695, %v414_v22  ;;  %783 = vadd.xlane.f32.xlu0 %v782_v42 }
 0x12c   :  { %v572_v6 = vmul.f32 1.442695, %v415_v26  ;;  %v6716_v50 = vpop.eup %5220  ;;  %v334_v40 = vpop.xlane.xlu0 %333  ;;  %v788_v22 = vsel %vm97_vm0, %v6714_v7, 0.0 }
 0x12d   :  { %12662 = vst [vmem:[#allocation24_spill] sm:$0xff] %v6716_v50  ;;  %v337_v58 = vpop.xlane.xlu1 %336  ;;  %5230 = vpow2.f32 %v570_v59  ;;  %v416_v34 = vsub.f32 %v5562_v51, %v334_v40  ;;  %786 = vadd.xlane.f32.xlu1 %v785_v56  ;;  %v791_v26 = vsel %vm97_vm0, %v6716_v50, 0.0 }
 0x12e   :  { %v417_v52 = vsub.f32 %v5563_v10, %v337_v58  ;;  %5232 = vpow2.f32 %v572_v6 }
 0x12f   :  { %v6728_v42 = vpop.eup %5222  ;;  %v574_v59 = vmul.f32 1.442695, %v416_v34  ;;  %789 = vadd.xlane.f32.xlu0 %v788_v22 }
 0x130   :  { %12663 = vst [vmem:[#allocation25_spill] sm:$0xff] %v6728_v42  ;;  %v576_v60 = vmul.f32 1.442695, %v417_v52  ;;  %v6730_v36 = vpop.eup %5224  ;;  %v580_v56 = vpop.xlane.xlu0 %579  ;;  %v794_v6 = vsel %vm97_vm0, %v6728_v42, 0.0  ;;  %v978_v52 = vlaneseq }
 0x131   :  { %12664 = vst [vmem:[#allocation26_spill] sm:$0xff] %v6730_v36  ;;  %5234 = vpow2.f32 %v574_v59  ;;  %792 = vadd.xlane.f32.xlu1 %v791_v26  ;;  %v797_v58 = vsel %vm97_vm0, %v6730_v36, 0.0 }
 0x132   :  { %5236 = vpow2.f32 %v576_v60  ;;  %v583_v40 = vpop.xlane.xlu1 %582 }
 0x133   :  { %v6736_v51 = vpop.eup %5226  ;;  %5238 = vrcp.f32 %v580_v56  ;;  %795 = vadd.xlane.f32.xlu0 %v794_v6 }
 0x134   :  { %12665 = vst [vmem:[#allocation27_spill] sm:$0xff] %v6736_v51  ;;  %v6738_v34 = vpop.eup %5228  ;;  %5240 = vrcp.f32 %v583_v40  ;;  %v586_v10 = vpop.xlane.xlu0 %585  ;;  %v800_v60 = vsel %vm97_vm0, %v6736_v51, 0.0  ;;  %v6748_v40 = vand.u32 127, %v978_v52 }
 0x135   :  { %12666 = vst [vmem:[#allocation28_spill] sm:$0xff] %v6738_v34  ;;  %5242 = vrcp.f32 %v586_v10  ;;  %798 = vadd.xlane.f32.xlu1 %v797_v58  ;;  %v803_v26 = vsel %vm97_vm0, %v6738_v34, 0.0 }
 0x136   :  { %v589_v22 = vpop.xlane.xlu1 %588  ;;  %vm980_vm1 = vcmp.eq.s32.totalorder %v6748_v40, 0 }
 0x137   :  { %v6744_v59 = vpop.eup %5230  ;;  %5244 = vrcp.f32 %v589_v22  ;;  %801 = vadd.xlane.f32.xlu0 %v800_v60 }
 0x138   :  { %12667 = vst [vmem:[#allocation29_spill] sm:$0xff] %v6744_v59  ;;  %v6746_v56 = vpop.eup %5232  ;;  %v592_v6 = vpop.xlane.xlu0 %591  ;;  %v806_v10 = vsel %vm97_vm0, %v6744_v59, 0.0 }
 0x139   :  { %12668 = vst [vmem:[#allocation30_spill] sm:$0xff] %v6746_v56  ;;  %5246 = vrcp.f32 %v592_v6  ;;  %804 = vadd.xlane.f32.xlu1 %v803_v26  ;;  %v809_v51 = vsel %vm97_vm0, %v6746_v56, 0.0 }
 0x13a   :  { %v595_v58 = vpop.xlane.xlu1 %594 }
 0x13b   :  { %v6754_v36 = vpop.eup %5234  ;;  %5248 = vrcp.f32 %v595_v58  ;;  %807 = vadd.xlane.f32.xlu0 %v806_v10 }
 0x13c   :  { %v6756_v22 = vpop.eup %5236  ;;  %v598_v60 = vpop.xlane.xlu0 %597  ;;  %v812_v6 = vsel %vm97_vm0, %v6754_v36, 0.0 }
 0x13d   :  { %12669 = vst [vmem:[#allocation31_spill] sm:$0xff] %v6756_v22  ;;  %v5239_v34 = vpop.eup %5238  ;;  %5250 = vrcp.f32 %v598_v60  ;;  %810 = vadd.xlane.f32.xlu1 %v809_v51  ;;  %v815_v56 = vsel %vm97_vm0, %v6756_v22, 0.0 }
 0x13e   :  { %v5241_v52 = vpop.eup %5240  ;;  %v601_v26 = vpop.xlane.xlu1 %600  ;;  %v819_v59 = vmul.f32 %v5239_v34, %v6356_v54 }
 0x13f   :  { %v5243_v58 = vpop.eup %5242  ;;  %5252 = vrcp.f32 %v601_v26  ;;  %813 = vadd.xlane.f32.xlu0 %v812_v6  ;;  %v821_v10 = vmul.f32 %v5241_v52, %v6364_v13 }
 0x140   :  { %v604_v42 = vpop.xlane.xlu0 %603  ;;  %v6767_v51 = vsel %vm980_vm1, -1.0, %v819_v59  ;;  %v823_v60 = vmul.f32 %v5243_v58, %v6358_v62 }
 0x141   :  { %v5245_v50 = vpop.eup %5244  ;;  %5254 = vrcp.f32 %v604_v42  ;;  %816 = vadd.xlane.f32.xlu1 %v815_v56  ;;  %v6772_v22 = vsel %vm980_vm1, -1.0, %v821_v10  ;;  %v1061_v34 = vsel %vm97_vm0, %v6767_v51, -inf }
 0x142   :  { %v607_v54 = vpop.xlane.xlu1 %606  ;;  %v825_v13 = vmul.f32 %v5245_v50, %v6366_v38  ;;  %v6779_v59 = vsel %vm980_vm1, -1.0, %v823_v60  ;;  %v1064_v42 = vsel %vm97_vm0, %v6772_v22, -inf }
 0x143   :  { %v5247_v52 = vpop.eup %5246  ;;  %5256 = vrcp.f32 %v607_v54  ;;  %1062 = vmax.xlane.f32.xlu0 %v1061_v34  ;;  %v1067_v50 = vsel %vm97_vm0, %v6779_v59, -inf }
 0x144   :  { %v610_v62 = vpop.xlane.xlu0 %609  ;;  %v827_v56 = vmul.f32 %v5247_v52, %v6376_v8  ;;  %v6786_v6 = vsel %vm980_vm1, -1.0, %v825_v13 }
 0x145   :  { %v5249_v26 = vpop.eup %5248  ;;  %5258 = vrcp.f32 %v610_v62  ;;  %1065 = vmax.xlane.f32.xlu1 %v1064_v42  ;;  %v1070_v54 = vsel %vm97_vm0, %v6786_v6, -inf }
 0x146   :  { %v613_v38 = vpop.xlane.xlu1 %612  ;;  %v829_v58 = vmul.f32 %v5249_v26, %v6378_v55  ;;  %v6793_v60 = vsel %vm980_vm1, -1.0, %v827_v56 }
 0x147   :  { %v5251_v10 = vpop.eup %5250  ;;  %5260 = vrcp.f32 %v613_v38  ;;  %1068 = vmax.xlane.f32.xlu0 %v1067_v50  ;;  %v1073_v62 = vsel %vm97_vm0, %v6793_v60, -inf }
 0x148   :  { %v616_v8 = vpop.xlane.xlu0 %615  ;;  %v831_v34 = vmul.f32 %v5251_v10, %v6386_v5  ;;  %v6800_v52 = vsel %vm980_vm1, -1.0, %v829_v58 }
 0x149   :  { %v5253_v13 = vpop.eup %5252  ;;  %5262 = vrcp.f32 %v616_v8  ;;  %1071 = vmax.xlane.f32.xlu1 %v1070_v54  ;;  %v1076_v38 = vsel %vm97_vm0, %v6800_v52, -inf }
 0x14a   :  { %v619_v55 = vpop.xlane.xlu1 %618  ;;  %v833_v42 = vmul.f32 %v5253_v13, %v6388_v14  ;;  %v6807_v26 = vsel %vm980_vm1, -1.0, %v831_v34 }
 0x14b   :  { %v5255_v56 = vpop.eup %5254  ;;  %5264 = vrcp.f32 %v619_v55  ;;  %1074 = vmax.xlane.f32.xlu0 %v1073_v62  ;;  %v1079_v8 = vsel %vm97_vm0, %v6807_v26, -inf }
 0x14c   :  { %v622_v5 = vpop.xlane.xlu0 %621  ;;  %v835_v50 = vmul.f32 %v5255_v56, %v6396_v17  ;;  %v6814_v10 = vsel %vm980_vm1, -1.0, %v833_v42 }
 0x14d   :  { %v5257_v58 = vpop.eup %5256  ;;  %5266 = vrcp.f32 %v622_v5  ;;  %1077 = vmax.xlane.f32.xlu1 %v1076_v38  ;;  %v1082_v55 = vsel %vm97_vm0, %v6814_v10, -inf }
 0x14e   :  { %v625_v14 = vpop.xlane.xlu1 %624  ;;  %v837_v54 = vmul.f32 %v5257_v58, %v6398_v9  ;;  %v6821_v13 = vsel %vm980_vm1, -1.0, %v835_v50 }
 0x14f   :  { %v5259_v34 = vpop.eup %5258  ;;  %5268 = vrcp.f32 %v625_v14  ;;  %1080 = vmax.xlane.f32.xlu0 %v1079_v8  ;;  %v1085_v5 = vsel %vm97_vm0, %v6821_v13, -inf }
 0x150   :  { %v628_v17 = vpop.xlane.xlu0 %627  ;;  %v839_v62 = vmul.f32 %v5259_v34, %v6406_v20  ;;  %v6828_v56 = vsel %vm980_vm1, -1.0, %v837_v54 }
 0x151   :  { %v5261_v42 = vpop.eup %5260  ;;  %5270 = vrcp.f32 %v628_v17  ;;  %1083 = vmax.xlane.f32.xlu1 %v1082_v55  ;;  %v1088_v14 = vsel %vm97_vm0, %v6828_v56, -inf }
 0x152   :  { %v631_v9 = vpop.xlane.xlu1 %630  ;;  %v841_v38 = vmul.f32 %v5261_v42, %v6408_v12  ;;  %v6835_v58 = vsel %vm980_vm1, -1.0, %v839_v62 }
 0x153   :  { %v5263_v50 = vpop.eup %5262  ;;  %5272 = vrcp.f32 %v631_v9  ;;  %1086 = vmax.xlane.f32.xlu0 %v1085_v5  ;;  %v1091_v17 = vsel %vm97_vm0, %v6835_v58, -inf }
 0x154   :  { %v634_v20 = vpop.xlane.xlu0 %633  ;;  %v843_v8 = vmul.f32 %v5263_v50, %v6416_v25  ;;  %v6842_v34 = vsel %vm980_vm1, -1.0, %v841_v38 }
 0x155   :  { %v5265_v54 = vpop.eup %5264  ;;  %5274 = vrcp.f32 %v634_v20  ;;  %1089 = vmax.xlane.f32.xlu1 %v1088_v14  ;;  %v1094_v9 = vsel %vm97_vm0, %v6842_v34, -inf }
 0x156   :  { %v637_v12 = vpop.xlane.xlu1 %636  ;;  %v845_v55 = vmul.f32 %v5265_v54, %v6418_v1  ;;  %v6849_v42 = vsel %vm980_vm1, -1.0, %v843_v8 }
 0x157   :  { %v5267_v62 = vpop.eup %5266  ;;  %5276 = vrcp.f32 %v637_v12  ;;  %1092 = vmax.xlane.f32.xlu0 %v1091_v17  ;;  %v1097_v20 = vsel %vm97_vm0, %v6849_v42, -inf }
 0x158   :  { %v640_v25 = vpop.xlane.xlu0 %639  ;;  %v847_v5 = vmul.f32 %v5267_v62, %v6426_v29  ;;  %v6856_v50 = vsel %vm980_vm1, -1.0, %v845_v55 }
 0x159   :  { %v5269_v38 = vpop.eup %5268  ;;  %5278 = vrcp.f32 %v640_v25  ;;  %1095 = vmax.xlane.f32.xlu1 %v1094_v9  ;;  %v1100_v12 = vsel %vm97_vm0, %v6856_v50, -inf }
 0x15a   :  { %v643_v1 = vpop.xlane.xlu1 %642  ;;  %v849_v14 = vmul.f32 %v5269_v38, %v6428_v21  ;;  %v6863_v54 = vsel %vm980_vm1, -1.0, %v847_v5 }
 0x15b   :  { %v5271_v8 = vpop.eup %5270  ;;  %5280 = vrcp.f32 %v643_v1  ;;  %1098 = vmax.xlane.f32.xlu0 %v1097_v20  ;;  %v1103_v25 = vsel %vm97_vm0, %v6863_v54, -inf }
 0x15c   :  { %v646_v29 = vpop.xlane.xlu0 %645  ;;  %v851_v17 = vmul.f32 %v5271_v8, %v6436_v33  ;;  %v6870_v62 = vsel %vm980_vm1, -1.0, %v849_v14 }
 0x15d   :  { %v5273_v55 = vpop.eup %5272  ;;  %5282 = vrcp.f32 %v646_v29  ;;  %1101 = vmax.xlane.f32.xlu1 %v1100_v12  ;;  %v1106_v1 = vsel %vm97_vm0, %v6870_v62, -inf }
 0x15e   :  { %v649_v21 = vpop.xlane.xlu1 %648  ;;  %v853_v9 = vmul.f32 %v5273_v55, %v6438_v0  ;;  %v6877_v38 = vsel %vm980_vm1, -1.0, %v851_v17 }
 0x15f   :  { %v5275_v5 = vpop.eup %5274  ;;  %5284 = vrcp.f32 %v649_v21  ;;  %1104 = vmax.xlane.f32.xlu0 %v1103_v25  ;;  %v1109_v29 = vsel %vm97_vm0, %v6877_v38, -inf }
 0x160   :  { %v652_v33 = vpop.xlane.xlu0 %651  ;;  %v855_v20 = vmul.f32 %v5275_v5, %v6446_v37  ;;  %v6884_v8 = vsel %vm980_vm1, -1.0, %v853_v9 }
 0x161   :  { %v5277_v14 = vpop.eup %5276  ;;  %5286 = vrcp.f32 %v652_v33  ;;  %1107 = vmax.xlane.f32.xlu1 %v1106_v1  ;;  %v1112_v21 = vsel %vm97_vm0, %v6884_v8, -inf }
 0x162   :  { %v655_v0 = vpop.xlane.xlu1 %654  ;;  %v857_v12 = vmul.f32 %v5277_v14, %v6448_v39  ;;  %v6891_v55 = vsel %vm980_vm1, -1.0, %v855_v20 }
 0x163   :  { %v5279_v17 = vpop.eup %5278  ;;  %5288 = vrcp.f32 %v655_v0  ;;  %1110 = vmax.xlane.f32.xlu0 %v1109_v29  ;;  %v1115_v33 = vsel %vm97_vm0, %v6891_v55, -inf }
 0x164   :  { %v658_v37 = vpop.xlane.xlu0 %657  ;;  %v859_v25 = vmul.f32 %v5279_v17, %v6456_v41  ;;  %v6898_v5 = vsel %vm980_vm1, -1.0, %v857_v12 }
 0x165   :  { %v5281_v9 = vpop.eup %5280  ;;  %5290 = vrcp.f32 %v658_v37  ;;  %1113 = vmax.xlane.f32.xlu1 %v1112_v21  ;;  %v1118_v0 = vsel %vm97_vm0, %v6898_v5, -inf }
 0x166   :  { %v661_v39 = vpop.xlane.xlu1 %660  ;;  %v861_v1 = vmul.f32 %v5281_v9, %v6458_v63  ;;  %v6905_v14 = vsel %vm980_vm1, -1.0, %v859_v25 }
 0x167   :  { %v5283_v20 = vpop.eup %5282  ;;  %5292 = vrcp.f32 %v661_v39  ;;  %1116 = vmax.xlane.f32.xlu0 %v1115_v33  ;;  %v1121_v37 = vsel %vm97_vm0, %v6905_v14, -inf }
 0x168   :  { %v664_v41 = vpop.xlane.xlu0 %663  ;;  %v863_v29 = vmul.f32 %v5283_v20, %v6466_v45  ;;  %v6912_v17 = vsel %vm980_vm1, -1.0, %v861_v1 }
 0x169   :  { %v5285_v12 = vpop.eup %5284  ;;  %5294 = vrcp.f32 %v664_v41  ;;  %1119 = vmax.xlane.f32.xlu1 %v1118_v0  ;;  %v1124_v39 = vsel %vm97_vm0, %v6912_v17, -inf }
 0x16a   :  { %v667_v63 = vpop.xlane.xlu1 %666  ;;  %v865_v21 = vmul.f32 %v5285_v12, %v6468_v46  ;;  %v6919_v9 = vsel %vm980_vm1, -1.0, %v863_v29 }
 0x16b   :  { %v5287_v25 = vpop.eup %5286  ;;  %5296 = vrcp.f32 %v667_v63  ;;  %1122 = vmax.xlane.f32.xlu0 %v1121_v37  ;;  %v1127_v41 = vsel %vm97_vm0, %v6919_v9, -inf }
 0x16c   :  { %v670_v45 = vpop.xlane.xlu0 %669  ;;  %v867_v33 = vmul.f32 %v5287_v25, %v6476_v49  ;;  %v6926_v20 = vsel %vm980_vm1, -1.0, %v865_v21 }
 0x16d   :  { %v5289_v1 = vpop.eup %5288  ;;  %5298 = vrcp.f32 %v670_v45  ;;  %1125 = vmax.xlane.f32.xlu1 %v1124_v39  ;;  %v1130_v63 = vsel %vm97_vm0, %v6926_v20, -inf }
 0x16e   :  { %v673_v46 = vpop.xlane.xlu1 %672  ;;  %v869_v0 = vmul.f32 %v5289_v1, %v6478_v15  ;;  %v6933_v12 = vsel %vm980_vm1, -1.0, %v867_v33 }
 0x16f   :  { %v5291_v29 = vpop.eup %5290  ;;  %5300 = vrcp.f32 %v673_v46  ;;  %1128 = vmax.xlane.f32.xlu0 %v1127_v41  ;;  %v1133_v45 = vsel %vm97_vm0, %v6933_v12, -inf }
 0x170   :  { %v676_v49 = vpop.xlane.xlu0 %675  ;;  %v871_v37 = vmul.f32 %v5291_v29, %v6486_v53  ;;  %v6940_v25 = vsel %vm980_vm1, -1.0, %v869_v0 }
 0x171   :  { %v5293_v21 = vpop.eup %5292  ;;  %5302 = vrcp.f32 %v676_v49  ;;  %1131 = vmax.xlane.f32.xlu1 %v1130_v63  ;;  %v1136_v46 = vsel %vm97_vm0, %v6940_v25, -inf }
 0x172   :  { %v679_v15 = vpop.xlane.xlu1 %678  ;;  %v873_v39 = vmul.f32 %v5293_v21, %v6488_v31  ;;  %v6947_v1 = vsel %vm980_vm1, -1.0, %v871_v37 }
 0x173   :  { %v5295_v33 = vpop.eup %5294  ;;  %5304 = vrcp.f32 %v679_v15  ;;  %1134 = vmax.xlane.f32.xlu0 %v1133_v45  ;;  %v1139_v49 = vsel %vm97_vm0, %v6947_v1, -inf }
 0x174   :  { %v682_v53 = vpop.xlane.xlu0 %681  ;;  %v875_v41 = vmul.f32 %v5295_v33, %v6496_v57  ;;  %v6954_v29 = vsel %vm980_vm1, -1.0, %v873_v39 }
 0x175   :  { %v5297_v0 = vpop.eup %5296  ;;  %5306 = vrcp.f32 %v682_v53  ;;  %1137 = vmax.xlane.f32.xlu1 %v1136_v46  ;;  %v1142_v15 = vsel %vm97_vm0, %v6954_v29, -inf }
 0x176   :  { %v685_v31 = vpop.xlane.xlu1 %684  ;;  %v877_v63 = vmul.f32 %v5297_v0, %v6498_v23  ;;  %v6961_v21 = vsel %vm980_vm1, -1.0, %v875_v41 }
 0x177   :  { %v5299_v37 = vpop.eup %5298  ;;  %5308 = vrcp.f32 %v685_v31  ;;  %1140 = vmax.xlane.f32.xlu0 %v1139_v49  ;;  %v1145_v53 = vsel %vm97_vm0, %v6961_v21, -inf }
 0x178   :  { %v688_v57 = vpop.xlane.xlu0 %687  ;;  %v879_v45 = vmul.f32 %v5299_v37, %v6506_v61  ;;  %v6968_v33 = vsel %vm980_vm1, -1.0, %v877_v63 }
 0x179   :  { %v5301_v39 = vpop.eup %5300  ;;  %5310 = vrcp.f32 %v688_v57  ;;  %1143 = vmax.xlane.f32.xlu1 %v1142_v15  ;;  %v1148_v31 = vsel %vm97_vm0, %v6968_v33, -inf }
 0x17a   :  { %v691_v23 = vpop.xlane.xlu1 %690  ;;  %v881_v46 = vmul.f32 %v5301_v39, %v6508_v30  ;;  %v6975_v0 = vsel %vm980_vm1, -1.0, %v879_v45 }
 0x17b   :  { %v5303_v41 = vpop.eup %5302  ;;  %5312 = vrcp.f32 %v691_v23  ;;  %1146 = vmax.xlane.f32.xlu0 %v1145_v53  ;;  %v1151_v57 = vsel %vm97_vm0, %v6975_v0, -inf }
 0x17c   :  { %v694_v61 = vpop.xlane.xlu0 %693  ;;  %v883_v49 = vmul.f32 %v5303_v41, %v6516_v4  ;;  %v6982_v37 = vsel %vm980_vm1, -1.0, %v881_v46 }
 0x17d   :  { %v5305_v63 = vpop.eup %5304  ;;  %5314 = vrcp.f32 %v694_v61  ;;  %1149 = vmax.xlane.f32.xlu1 %v1148_v31  ;;  %v1154_v23 = vsel %vm97_vm0, %v6982_v37, -inf }
 0x17e   :  { %v697_v30 = vpop.xlane.xlu1 %696  ;;  %v885_v15 = vmul.f32 %v5305_v63, %v6518_v2  ;;  %v6989_v39 = vsel %vm980_vm1, -1.0, %v883_v49 }
 0x17f   :  { %v5307_v45 = vpop.eup %5306  ;;  %5316 = vrcp.f32 %v697_v30  ;;  %1152 = vmax.xlane.f32.xlu0 %v1151_v57  ;;  %v1157_v61 = vsel %vm97_vm0, %v6989_v39, -inf }
 0x180   :  { %v700_v4 = vpop.xlane.xlu0 %699  ;;  %v887_v53 = vmul.f32 %v5307_v45, %v6526_v11  ;;  %v6996_v41 = vsel %vm980_vm1, -1.0, %v885_v15 }
 0x181   :  { %v5309_v46 = vpop.eup %5308  ;;  %5318 = vrcp.f32 %v700_v4  ;;  %1155 = vmax.xlane.f32.xlu1 %v1154_v23  ;;  %v1160_v30 = vsel %vm97_vm0, %v6996_v41, -inf }
 0x182   :  { %v703_v2 = vpop.xlane.xlu1 %702  ;;  %v889_v31 = vmul.f32 %v5309_v46, %v6528_v16  ;;  %v7003_v63 = vsel %vm980_vm1, -1.0, %v887_v53 }
 0x183   :  { %v5311_v49 = vpop.eup %5310  ;;  %5320 = vrcp.f32 %v703_v2  ;;  %1158 = vmax.xlane.f32.xlu0 %v1157_v61  ;;  %v1163_v4 = vsel %vm97_vm0, %v7003_v63, -inf }
 0x184   :  { %v706_v11 = vpop.xlane.xlu0 %705  ;;  %v891_v57 = vmul.f32 %v5311_v49, %v6536_v19  ;;  %v7010_v45 = vsel %vm980_vm1, -1.0, %v889_v31 }
 0x185   :  { %v5313_v15 = vpop.eup %5312  ;;  %5322 = vrcp.f32 %v706_v11  ;;  %1161 = vmax.xlane.f32.xlu1 %v1160_v30  ;;  %v1166_v2 = vsel %vm97_vm0, %v7010_v45, -inf }
 0x186   :  { %v709_v16 = vpop.xlane.xlu1 %708  ;;  %v893_v23 = vmul.f32 %v5313_v15, %v6538_v47  ;;  %v7017_v46 = vsel %vm980_vm1, -1.0, %v891_v57 }
 0x187   :  { %v5315_v53 = vpop.eup %5314  ;;  %5324 = vrcp.f32 %v709_v16  ;;  %1164 = vmax.xlane.f32.xlu0 %v1163_v4  ;;  %v1169_v11 = vsel %vm97_vm0, %v7017_v46, -inf }
 0x188   :  { %v712_v19 = vpop.xlane.xlu0 %711  ;;  %v895_v61 = vmul.f32 %v5315_v53, %v6546_v27  ;;  %v7024_v49 = vsel %vm980_vm1, -1.0, %v893_v23 }
 0x189   :  { %v5317_v31 = vpop.eup %5316  ;;  %5326 = vrcp.f32 %v712_v19  ;;  %1167 = vmax.xlane.f32.xlu1 %v1166_v2  ;;  %v1172_v16 = vsel %vm97_vm0, %v7024_v49, -inf }
 0x18a   :  { %v715_v47 = vpop.xlane.xlu1 %714  ;;  %v897_v30 = vmul.f32 %v5317_v31, %v6548_v24  ;;  %v7031_v15 = vsel %vm980_vm1, -1.0, %v895_v61 }
 0x18b   :  { %v5319_v57 = vpop.eup %5318  ;;  %5328 = vrcp.f32 %v715_v47  ;;  %1170 = vmax.xlane.f32.xlu0 %v1169_v11  ;;  %v1175_v19 = vsel %vm97_vm0, %v7031_v15, -inf }
 0x18c   :  { %v718_v27 = vpop.xlane.xlu0 %717  ;;  %v899_v4 = vmul.f32 %v5319_v57, %v6556_v35  ;;  %v7038_v53 = vsel %vm980_vm1, -1.0, %v897_v30 }
 0x18d   :  { %v5321_v23 = vpop.eup %5320  ;;  %5330 = vrcp.f32 %v718_v27  ;;  %1173 = vmax.xlane.f32.xlu1 %v1172_v16  ;;  %v1178_v47 = vsel %vm97_vm0, %v7038_v53, -inf }
 0x18e   :  { %v721_v24 = vpop.xlane.xlu1 %720  ;;  %v901_v2 = vmul.f32 %v5321_v23, %v6558_v28  ;;  %v7045_v31 = vsel %vm980_vm1, -1.0, %v899_v4 }
 0x18f   :  { %v5323_v61 = vpop.eup %5322  ;;  %5332 = vrcp.f32 %v721_v24  ;;  %1176 = vmax.xlane.f32.xlu0 %v1175_v19  ;;  %v1181_v27 = vsel %vm97_vm0, %v7045_v31, -inf }
 0x190   :  { %v724_v35 = vpop.xlane.xlu0 %723  ;;  %v903_v11 = vmul.f32 %v5323_v61, %v6566_v43  ;;  %v7052_v57 = vsel %vm980_vm1, -1.0, %v901_v2 }
 0x191   :  { %v5325_v30 = vpop.eup %5324  ;;  %5334 = vrcp.f32 %v724_v35  ;;  %1179 = vmax.xlane.f32.xlu1 %v1178_v47  ;;  %v1184_v24 = vsel %vm97_vm0, %v7052_v57, -inf }
 0x192   :  { %v727_v28 = vpop.xlane.xlu1 %726  ;;  %v905_v16 = vmul.f32 %v5325_v30, %v6568_v32  ;;  %v7059_v23 = vsel %vm980_vm1, -1.0, %v903_v11 }
 0x193   :  { %v5327_v4 = vpop.eup %5326  ;;  %5336 = vrcp.f32 %v727_v28  ;;  %1182 = vmax.xlane.f32.xlu0 %v1181_v27  ;;  %v1187_v35 = vsel %vm97_vm0, %v7059_v23, -inf  ;;  %v12672_v27 = vld [vmem:[#allocation2_spill] sm:$0xff] }
 0x194   :  { %v730_v43 = vpop.xlane.xlu0 %729  ;;  %v907_v19 = vmul.f32 %v5327_v4, %v6576_v44  ;;  %v7066_v61 = vsel %vm980_vm1, -1.0, %v905_v16 }
 0x195   :  { %v5329_v2 = vpop.eup %5328  ;;  %5338 = vrcp.f32 %v730_v43  ;;  %1185 = vmax.xlane.f32.xlu1 %v1184_v24  ;;  %12670 = vst [vmem:[#allocation32_spill] sm:$0xff] %v7066_v61  ;;  %v1190_v28 = vsel %vm97_vm0, %v7066_v61, -inf }
 0x196   :  { %v733_v32 = vpop.xlane.xlu1 %732  ;;  %v909_v47 = vmul.f32 %v5329_v2, %v6578_v18  ;;  %v7073_v30 = vsel %vm980_vm1, -1.0, %v907_v19  ;;  %v12674_v2 = vld [vmem:[#allocation3_spill] sm:$0xff] }
 0x197   :  { %v5331_v11 = vpop.eup %5330  ;;  %5340 = vrcp.f32 %v733_v32  ;;  %1188 = vmax.xlane.f32.xlu0 %v1187_v35  ;;  %12671 = vst [vmem:[#allocation33_spill] sm:$0xff] %v7073_v30  ;;  %v1193_v24 = vsel %vm97_vm0, %v7073_v30, -inf }
 0x198   :  { %v736_v44 = vpop.xlane.xlu0 %735  ;;  %v911_v16 = vmul.f32 %v5331_v11, %v12672_v27  ;;  %v7080_v43 = vsel %vm980_vm1, -1.0, %v909_v47 }
 0x199   :  { %v5333_v4 = vpop.eup %5332  ;;  %5342 = vrcp.f32 %v736_v44  ;;  %1191 = vmax.xlane.f32.xlu1 %v1190_v28  ;;  %12673 = vst [vmem:[#allocation2_spill] sm:$0xff] %v7080_v43  ;;  %v1196_v44 = vsel %vm97_vm0, %v7080_v43, -inf  ;;  %v12676_v28 = vld [vmem:[#allocation4_spill] sm:$0xff] }
 0x19a   :  { %v739_v18 = vpop.xlane.xlu1 %738  ;;  %v913_v19 = vmul.f32 %v5333_v4, %v12674_v2  ;;  %v7087_v35 = vsel %vm980_vm1, -1.0, %v911_v16 }
 0x19b   :  { %v5335_v32 = vpop.eup %5334  ;;  %5344 = vrcp.f32 %v739_v18  ;;  %1194 = vmax.xlane.f32.xlu0 %v1193_v24  ;;  %12675 = vst [vmem:[#allocation3_spill] sm:$0xff] %v7087_v35  ;;  %v1199_v18 = vsel %vm97_vm0, %v7087_v35, -inf  ;;  %v12678_v24 = vld [vmem:[#allocation5_spill] sm:$0xff] }
 0x19c   :  { %v742_v11 = vpop.xlane.xlu0 %741  ;;  %v915_v47 = vmul.f32 %v5335_v32, %v12676_v28  ;;  %v7094_v30 = vsel %vm980_vm1, -1.0, %v913_v19 }
 0x19d   :  { %v5337_v27 = vpop.eup %5336  ;;  %5346 = vrcp.f32 %v742_v11  ;;  %1197 = vmax.xlane.f32.xlu1 %v1196_v44  ;;  %12677 = vst [vmem:[#allocation4_spill] sm:$0xff] %v7094_v30  ;;  %v1202_v11 = vsel %vm97_vm0, %v7094_v30, -inf  ;;  %v12680_v44 = vld [vmem:[#allocation6_spill] sm:$0xff] }
 0x19e   :  { %v745_v4 = vpop.xlane.xlu1 %744  ;;  %v917_v16 = vmul.f32 %v5337_v27, %v12678_v24  ;;  %v7101_v43 = vsel %vm980_vm1, -1.0, %v915_v47 }
 0x19f   :  { %v5339_v2 = vpop.eup %5338  ;;  %5348 = vrcp.f32 %v745_v4  ;;  %1200 = vmax.xlane.f32.xlu0 %v1199_v18  ;;  %12679 = vst [vmem:[#allocation5_spill] sm:$0xff] %v7101_v43  ;;  %v1205_v4 = vsel %vm97_vm0, %v7101_v43, -inf  ;;  %v12682_v18 = vld [vmem:[#allocation7_spill] sm:$0xff] }
 0x1a0   :  { %v748_v32 = vpop.xlane.xlu0 %747  ;;  %v919_v19 = vmul.f32 %v5339_v2, %v12680_v44  ;;  %v7108_v35 = vsel %vm980_vm1, -1.0, %v917_v16 }
 0x1a1   :  { %v5341_v28 = vpop.eup %5340  ;;  %5350 = vrcp.f32 %v748_v32  ;;  %1203 = vmax.xlane.f32.xlu1 %v1202_v11  ;;  %12681 = vst [vmem:[#allocation6_spill] sm:$0xff] %v7108_v35  ;;  %v1208_v32 = vsel %vm97_vm0, %v7108_v35, -inf  ;;  %v12684_v11 = vld [vmem:[#allocation8_spill] sm:$0xff] }
 0x1a2   :  { %v751_v27 = vpop.xlane.xlu1 %750  ;;  %v921_v47 = vmul.f32 %v5341_v28, %v12682_v18  ;;  %v7115_v30 = vsel %vm980_vm1, -1.0, %v919_v19 }
 0x1a3   :  { %v5343_v24 = vpop.eup %5342  ;;  %5352 = vrcp.f32 %v751_v27  ;;  %1206 = vmax.xlane.f32.xlu0 %v1205_v4  ;;  %12683 = vst [vmem:[#allocation7_spill] sm:$0xff] %v7115_v30  ;;  %v1211_v27 = vsel %vm97_vm0, %v7115_v30, -inf  ;;  %v12686_v4 = vld [vmem:[#allocation9_spill] sm:$0xff] }
 0x1a4   :  { %v754_v2 = vpop.xlane.xlu0 %753  ;;  %v923_v16 = vmul.f32 %v5343_v24, %v12684_v11  ;;  %v7122_v43 = vsel %vm980_vm1, -1.0, %v921_v47 }
 0x1a5   :  { %v5345_v44 = vpop.eup %5344  ;;  %5354 = vrcp.f32 %v754_v2  ;;  %1209 = vmax.xlane.f32.xlu1 %v1208_v32  ;;  %12685 = vst [vmem:[#allocation8_spill] sm:$0xff] %v7122_v43  ;;  %v1214_v2 = vsel %vm97_vm0, %v7122_v43, -inf  ;;  %v12688_v32 = vld [vmem:[#allocation10_spill] sm:$0xff] }
 0x1a6   :  { %v757_v28 = vpop.xlane.xlu1 %756  ;;  %v925_v19 = vmul.f32 %v5345_v44, %v12686_v4  ;;  %v7129_v35 = vsel %vm980_vm1, -1.0, %v923_v16 }
 0x1a7   :  { %v5347_v18 = vpop.eup %5346  ;;  %5356 = vrcp.f32 %v757_v28  ;;  %1212 = vmax.xlane.f32.xlu0 %v1211_v27  ;;  %12687 = vst [vmem:[#allocation9_spill] sm:$0xff] %v7129_v35  ;;  %v1217_v28 = vsel %vm97_vm0, %v7129_v35, -inf  ;;  %v12690_v27 = vld [vmem:[#allocation11_spill] sm:$0xff] }
 0x1a8   :  { %v760_v24 = vpop.xlane.xlu0 %759  ;;  %v927_v47 = vmul.f32 %v5347_v18, %v12688_v32  ;;  %v7136_v30 = vsel %vm980_vm1, -1.0, %v925_v19 }
 0x1a9   :  { %v5349_v11 = vpop.eup %5348  ;;  %5358 = vrcp.f32 %v760_v24  ;;  %1215 = vmax.xlane.f32.xlu1 %v1214_v2  ;;  %12689 = vst [vmem:[#allocation10_spill] sm:$0xff] %v7136_v30  ;;  %v1220_v24 = vsel %vm97_vm0, %v7136_v30, -inf  ;;  %v12692_v2 = vld [vmem:[#allocation12_spill] sm:$0xff] }
 0x1aa   :  { %v763_v44 = vpop.xlane.xlu1 %762  ;;  %v929_v16 = vmul.f32 %v5349_v11, %v12690_v27  ;;  %v7143_v43 = vsel %vm980_vm1, -1.0, %v927_v47 }
 0x1ab   :  { %v5351_v4 = vpop.eup %5350  ;;  %5360 = vrcp.f32 %v763_v44  ;;  %1218 = vmax.xlane.f32.xlu0 %v1217_v28  ;;  %12691 = vst [vmem:[#allocation11_spill] sm:$0xff] %v7143_v43  ;;  %v1223_v44 = vsel %vm97_vm0, %v7143_v43, -inf  ;;  %v12694_v28 = vld [vmem:[#allocation13_spill] sm:$0xff] }
 0x1ac   :  { %v766_v18 = vpop.xlane.xlu0 %765  ;;  %v931_v19 = vmul.f32 %v5351_v4, %v12692_v2  ;;  %v7150_v35 = vsel %vm980_vm1, -1.0, %v929_v16 }
 0x1ad   :  { %v5353_v32 = vpop.eup %5352  ;;  %5362 = vrcp.f32 %v766_v18  ;;  %1221 = vmax.xlane.f32.xlu1 %v1220_v24  ;;  %12693 = vst [vmem:[#allocation12_spill] sm:$0xff] %v7150_v35  ;;  %v1226_v18 = vsel %vm97_vm0, %v7150_v35, -inf  ;;  %v12696_v24 = vld [vmem:[#allocation14_spill] sm:$0xff] }
 0x1ae   :  { %v769_v11 = vpop.xlane.xlu1 %768  ;;  %v933_v47 = vmul.f32 %v5353_v32, %v12694_v28  ;;  %v7157_v30 = vsel %vm980_vm1, -1.0, %v931_v19 }
 0x1af   :  { %v5355_v27 = vpop.eup %5354  ;;  %5364 = vrcp.f32 %v769_v11  ;;  %1224 = vmax.xlane.f32.xlu0 %v1223_v44  ;;  %12695 = vst [vmem:[#allocation13_spill] sm:$0xff] %v7157_v30  ;;  %v1229_v11 = vsel %vm97_vm0, %v7157_v30, -inf  ;;  %v12698_v44 = vld [vmem:[#allocation15_spill] sm:$0xff] }
 0x1b0   :  { %v772_v4 = vpop.xlane.xlu0 %771  ;;  %v935_v16 = vmul.f32 %v5355_v27, %v12696_v24  ;;  %v7164_v43 = vsel %vm980_vm1, -1.0, %v933_v47 }
 0x1b1   :  { %v5357_v2 = vpop.eup %5356  ;;  %5366 = vrcp.f32 %v772_v4  ;;  %1227 = vmax.xlane.f32.xlu1 %v1226_v18  ;;  %12697 = vst [vmem:[#allocation14_spill] sm:$0xff] %v7164_v43  ;;  %v1232_v4 = vsel %vm97_vm0, %v7164_v43, -inf  ;;  %v12700_v18 = vld [vmem:[#allocation16_spill] sm:$0xff] }
 0x1b2   :  { %v775_v32 = vpop.xlane.xlu1 %774  ;;  %v937_v19 = vmul.f32 %v5357_v2, %v12698_v44  ;;  %v7171_v35 = vsel %vm980_vm1, -1.0, %v935_v16 }
 0x1b3   :  { %v5359_v28 = vpop.eup %5358  ;;  %5368 = vrcp.f32 %v775_v32  ;;  %1230 = vmax.xlane.f32.xlu0 %v1229_v11  ;;  %12699 = vst [vmem:[#allocation15_spill] sm:$0xff] %v7171_v35  ;;  %v1235_v32 = vsel %vm97_vm0, %v7171_v35, -inf  ;;  %v12702_v11 = vld [vmem:[#allocation17_spill] sm:$0xff] }
 0x1b4   :  { %v778_v27 = vpop.xlane.xlu0 %777  ;;  %v939_v47 = vmul.f32 %v5359_v28, %v12700_v18  ;;  %v7178_v30 = vsel %vm980_vm1, -1.0, %v937_v19 }
 0x1b5   :  { %v5361_v24 = vpop.eup %5360  ;;  %5370 = vrcp.f32 %v778_v27  ;;  %1233 = vmax.xlane.f32.xlu1 %v1232_v4  ;;  %12701 = vst [vmem:[#allocation16_spill] sm:$0xff] %v7178_v30  ;;  %v1238_v27 = vsel %vm97_vm0, %v7178_v30, -inf  ;;  %v12704_v4 = vld [vmem:[#allocation18_spill] sm:$0xff] }
 0x1b6   :  { %v781_v2 = vpop.xlane.xlu1 %780  ;;  %v941_v16 = vmul.f32 %v5361_v24, %v12702_v11  ;;  %v7185_v43 = vsel %vm980_vm1, -1.0, %v939_v47 }
 0x1b7   :  { %v5363_v44 = vpop.eup %5362  ;;  %5372 = vrcp.f32 %v781_v2  ;;  %1236 = vmax.xlane.f32.xlu0 %v1235_v32  ;;  %12703 = vst [vmem:[#allocation17_spill] sm:$0xff] %v7185_v43  ;;  %v1241_v2 = vsel %vm97_vm0, %v7185_v43, -inf  ;;  %v12706_v32 = vld [vmem:[#allocation19_spill] sm:$0xff] }
 0x1b8   :  { %v784_v28 = vpop.xlane.xlu0 %783  ;;  %v943_v19 = vmul.f32 %v5363_v44, %v12704_v4  ;;  %v7192_v35 = vsel %vm980_vm1, -1.0, %v941_v16 }
 0x1b9   :  { %v5365_v18 = vpop.eup %5364  ;;  %5374 = vrcp.f32 %v784_v28  ;;  %1239 = vmax.xlane.f32.xlu1 %v1238_v27  ;;  %12705 = vst [vmem:[#allocation18_spill] sm:$0xff] %v7192_v35  ;;  %v1244_v28 = vsel %vm97_vm0, %v7192_v35, -inf }
 0x1ba   :  { %v787_v24 = vpop.xlane.xlu1 %786  ;;  %v945_v47 = vmul.f32 %v5365_v18, %v12706_v32  ;;  %v7199_v30 = vsel %vm980_vm1, -1.0, %v943_v19 }
 0x1bb   :  { %v5367_v11 = vpop.eup %5366  ;;  %5376 = vrcp.f32 %v787_v24  ;;  %1242 = vmax.xlane.f32.xlu0 %v1241_v2  ;;  %12707 = vst [vmem:[#allocation19_spill] sm:$0xff] %v7199_v30  ;;  %v1247_v24 = vsel %vm97_vm0, %v7199_v30, -inf }
 0x1bc   :  { %v790_v44 = vpop.xlane.xlu0 %789  ;;  %v947_v16 = vmul.f32 %v5367_v11, %v6676_v3  ;;  %v7206_v4 = vsel %vm980_vm1, -1.0, %v945_v47 }
 0x1bd   :  { %v5369_v27 = vpop.eup %5368  ;;  %5378 = vrcp.f32 %v790_v44  ;;  %1245 = vmax.xlane.f32.xlu1 %v1244_v28  ;;  %12708 = vst [vmem:[#allocation34_spill] sm:$0xff] %v7206_v4  ;;  %v1250_v11 = vsel %vm97_vm0, %v7206_v4, -inf  ;;  %v12710_v44 = vld [vmem:[#allocation20_spill] sm:$0xff] }
 0x1be   :  { %v793_v18 = vpop.xlane.xlu1 %792  ;;  %v949_v19 = vmul.f32 %v5369_v27, %v6678_v48  ;;  %v7213_v32 = vsel %vm980_vm1, -1.0, %v947_v16 }
 0x1bf   :  { %v5371_v2 = vpop.eup %5370  ;;  %5380 = vrcp.f32 %v793_v18  ;;  %1248 = vmax.xlane.f32.xlu0 %v1247_v24  ;;  %12709 = vst [vmem:[#allocation35_spill] sm:$0xff] %v7213_v32  ;;  %v1253_v27 = vsel %vm97_vm0, %v7213_v32, -inf  ;;  %v12712_v18 = vld [vmem:[#allocation21_spill] sm:$0xff] }
 0x1c0   :  { %v796_v3 = vpop.xlane.xlu0 %795  ;;  %v951_v47 = vmul.f32 %v5371_v2, %v12710_v44  ;;  %v7220_v30 = vsel %vm980_vm1, -1.0, %v949_v19 }
 0x1c1   :  { %v5373_v28 = vpop.eup %5372  ;;  %5382 = vrcp.f32 %v796_v3  ;;  %1251 = vmax.xlane.f32.xlu1 %v1250_v11  ;;  %12711 = vst [vmem:[#allocation20_spill] sm:$0xff] %v7220_v30  ;;  %v1256_v3 = vsel %vm97_vm0, %v7220_v30, -inf  ;;  %v12714_v11 = vld [vmem:[#allocation22_spill] sm:$0xff] }
 0x1c2   :  { %v799_v48 = vpop.xlane.xlu1 %798  ;;  %v953_v16 = vmul.f32 %v5373_v28, %v12712_v18  ;;  %v7227_v4 = vsel %vm980_vm1, -1.0, %v951_v47 }
 0x1c3   :  { %v5375_v24 = vpop.eup %5374  ;;  %5384 = vrcp.f32 %v799_v48  ;;  %1254 = vmax.xlane.f32.xlu0 %v1253_v27  ;;  %12713 = vst [vmem:[#allocation21_spill] sm:$0xff] %v7227_v4  ;;  %v1259_v48 = vsel %vm97_vm0, %v7227_v4, -inf  ;;  %v12716_v27 = vld [vmem:[#allocation23_spill] sm:$0xff] }
 0x1c4   :  { %v802_v2 = vpop.xlane.xlu0 %801  ;;  %v955_v19 = vmul.f32 %v5375_v24, %v12714_v11  ;;  %v7234_v32 = vsel %vm980_vm1, -1.0, %v953_v16 }
 0x1c5   :  { %v5377_v44 = vpop.eup %5376  ;;  %5386 = vrcp.f32 %v802_v2  ;;  %1257 = vmax.xlane.f32.xlu1 %v1256_v3  ;;  %12715 = vst [vmem:[#allocation22_spill] sm:$0xff] %v7234_v32  ;;  %v1262_v2 = vsel %vm97_vm0, %v7234_v32, -inf }
 0x1c6   :  { %v805_v28 = vpop.xlane.xlu1 %804  ;;  %v957_v47 = vmul.f32 %v5377_v44, %v12716_v27  ;;  %v7241_v30 = vsel %vm980_vm1, -1.0, %v955_v19 }
 0x1c7   :  { %v5379_v18 = vpop.eup %5378  ;;  %5388 = vrcp.f32 %v805_v28  ;;  %1260 = vmax.xlane.f32.xlu0 %v1259_v48  ;;  %12717 = vst [vmem:[#allocation23_spill] sm:$0xff] %v7241_v30  ;;  %v1265_v28 = vsel %vm97_vm0, %v7241_v30, -inf  ;;  %v12719_v48 = vld [vmem:[#allocation24_spill] sm:$0xff] }
 0x1c8   :  { %v808_v24 = vpop.xlane.xlu0 %807  ;;  %v959_v16 = vmul.f32 %v5379_v18, %v6714_v7  ;;  %v7248_v11 = vsel %vm980_vm1, -1.0, %v957_v47 }
 0x1c9   :  { %v5381_v3 = vpop.eup %5380  ;;  %5390 = vrcp.f32 %v808_v24  ;;  %1263 = vmax.xlane.f32.xlu1 %v1262_v2  ;;  %12718 = vst [vmem:[#allocation36_spill] sm:$0xff] %v7248_v11  ;;  %v1268_v18 = vsel %vm97_vm0, %v7248_v11, -inf  ;;  %v12721_v24 = vld [vmem:[#allocation25_spill] sm:$0xff] }
 0x1ca   :  { %v811_v44 = vpop.xlane.xlu1 %810  ;;  %v961_v19 = vmul.f32 %v5381_v3, %v12719_v48  ;;  %v7255_v32 = vsel %vm980_vm1, -1.0, %v959_v16  ;;  %v12723_v16 = vld [vmem:[#allocation26_spill] sm:$0xff] }
 0x1cb   :  { %v5383_v27 = vpop.eup %5382  ;;  %5392 = vrcp.f32 %v811_v44  ;;  %1266 = vmax.xlane.f32.xlu0 %v1265_v28  ;;  %12720 = vst [vmem:[#allocation24_spill] sm:$0xff] %v7255_v32  ;;  %v1271_v44 = vsel %vm97_vm0, %v7255_v32, -inf }
 0x1cc   :  { %v814_v7 = vpop.xlane.xlu0 %813  ;;  %v963_v47 = vmul.f32 %v5383_v27, %v12721_v24  ;;  %v7262_v30 = vsel %vm980_vm1, -1.0, %v961_v19  ;;  %v12725_v19 = vld [vmem:[#allocation27_spill] sm:$0xff] }
 0x1cd   :  { %v5385_v2 = vpop.eup %5384  ;;  %5394 = vrcp.f32 %v814_v7  ;;  %1269 = vmax.xlane.f32.xlu1 %v1268_v18  ;;  %12722 = vst [vmem:[#allocation25_spill] sm:$0xff] %v7262_v30  ;;  %v1274_v18 = vsel %vm97_vm0, %v7262_v30, -inf }
 0x1ce   :  { %v817_v3 = vpop.xlane.xlu1 %816  ;;  %v965_v28 = vmul.f32 %v5385_v2, %v12723_v16  ;;  %v7269_v27 = vsel %vm980_vm1, -1.0, %v963_v47 }
 0x1cf   :  { %v5387_v48 = vpop.eup %5386  ;;  %5396 = vrcp.f32 %v817_v3  ;;  %1272 = vmax.xlane.f32.xlu0 %v1271_v44  ;;  %12724 = vst [vmem:[#allocation26_spill] sm:$0xff] %v7269_v27  ;;  %v1277_v47 = vsel %vm97_vm0, %v7269_v27, -inf  ;;  %v12727_v44 = vld [vmem:[#allocation28_spill] sm:$0xff] }
 0x1d0   :  { %v1063_v7 = vpop.xlane.xlu0 %1062  ;;  %v967_v24 = vmul.f32 %v5387_v48, %v12725_v19  ;;  %v7280_v2 = vsel %vm980_vm1, -1.0, %v965_v28  ;;  %v12729_v19 = vld [vmem:[#allocation29_spill] sm:$0xff] }
 0x1d1   :  { %v5389_v11 = vpop.eup %5388  ;;  %1302 = vst.msk [vmem:[%s12264_s3] sm:$0xff] %vm1301_vm2, %v1063_v7  ;;  %1275 = vmax.xlane.f32.xlu1 %v1274_v18  ;;  %12726 = vst [vmem:[#allocation27_spill] sm:$0xff] %v7280_v2  ;;  %vm1382_vm3 = vcmp.ge.f32.partialorder %v6767_v51, %v1063_v7  ;;  %v1280_v18 = vsel %vm97_vm0, %v7280_v2, -inf  ;;  %v12731_v7 = vld [vmem:[#allocation30_spill] sm:$0xff] }
 0x1d2   :  { %v1066_v3 = vpop.xlane.xlu1 %1065  ;;  %v969_v16 = vmul.f32 %v5389_v11, %v12727_v44  ;;  %v7291_v48 = vsel %vm980_vm1, -1.0, %v967_v24 }
 0x1d3   :  { %v5391_v30 = vpop.eup %5390  ;;  %1303 = vst.msk [vmem:[%s12264_s3 + $0x8] sm:$0xff] %vm1301_vm2, %v1066_v3  ;;  %1278 = vmax.xlane.f32.xlu0 %v1277_v47  ;;  %12728 = vst [vmem:[#allocation28_spill] sm:$0xff] %v7291_v48  ;;  %v1283_v51 = vsel %vm97_vm0, %v7291_v48, -inf  ;;  %vm1383_vm4 = vcmp.ge.f32.partialorder %v6772_v22, %v1066_v3  ;;  %v12734_v3 = vld [vmem:[#allocation31_spill] sm:$0xff] }
 0x1d4   :  { %v1069_v28 = vpop.xlane.xlu0 %1068  ;;  %v971_v27 = vmul.f32 %v5391_v30, %v12729_v19  ;;  %v7303_v47 = vsel %vm980_vm1, -1.0, %v969_v16  ;;  %v1462_v30 = vsel %vm1382_vm3, %v6748_v40, 1073741824 }
 0x1d5   :  { %v5393_v11 = vpop.eup %5392  ;;  %1304 = vst.msk [vmem:[%s12264_s3 + $0x10] sm:$0xff] %vm1301_vm2, %v1069_v28  ;;  %1281 = vmax.xlane.f32.xlu1 %v1280_v18  ;;  %12730 = vst [vmem:[#allocation29_spill] sm:$0xff] %v7303_v47  ;;  %v1286_v19 = vsel %vm97_vm0, %v7303_v47, -inf  ;;  %v7333_v47 = vsel %vm97_vm0, %v1462_v30, 2147483647  ;;  %vm1384_vm5 = vcmp.ge.f32.partialorder %v6779_v59, %v1069_v28 }
 0x1d6   :  { %v1072_v24 = vpop.xlane.xlu1 %1071  ;;  %v973_v44 = vmul.f32 %v5393_v11, %v12731_v7  ;;  %v7315_v18 = vsel %vm980_vm1, -1.0, %v971_v27 }
 0x1d7   :  { %v5395_v2 = vpop.eup %5394  ;;  %1305 = vst.msk [vmem:[%s12264_s3 + $0x18] sm:$0xff] %vm1301_vm2, %v1072_v24  ;;  %1284 = vmax.xlane.f32.xlu0 %v1283_v51  ;;  %12732 = vst [vmem:[#allocation30_spill] sm:$0xff] %v7315_v18  ;;  %v1289_v22 = vsel %vm97_vm0, %v7315_v18, -inf  ;;  %vm1385_vm6 = vcmp.ge.f32.partialorder %v6786_v6, %v1072_v24 }
 0x1d8   :  { %v1075_v16 = vpop.xlane.xlu0 %1074  ;;  %v975_v11 = vmul.f32 %v5395_v2, %v6754_v36  ;;  %v7327_v51 = vsel %vm980_vm1, -1.0, %v973_v44  ;;  %v1463_v36 = vsel %vm1383_vm4, %v6748_v40, 1073741824  ;;  %v1465_v6 = vsel %vm1385_vm6, %v6748_v40, 1073741824 }
 0x1d9   :  { %v5397_v7 = vpop.eup %5396  ;;  %1306 = vst.msk [vmem:[%s12264_s3 + $0x20] sm:$0xff] %vm1301_vm2, %v1075_v16  ;;  %1287 = vmax.xlane.f32.xlu1 %v1286_v19  ;;  %12733 = vst [vmem:[#allocation37_spill] sm:$0xff] %v7327_v51  ;;  %v1292_v19 = vsel %vm97_vm0, %v7327_v51, -inf  ;;  %v7359_v28 = vsel %vm97_vm0, %v1463_v36, 2147483647  ;;  %vm1386_vm7 = vcmp.ge.f32.partialorder %v6793_v60, %v1075_v16 }
 0x1da   :  { %v1078_v27 = vpop.xlane.xlu1 %1077  ;;  %v977_v48 = vmul.f32 %v5397_v7, %v12734_v3  ;;  %v7342_v2 = vsel %vm980_vm1, -1.0, %v975_v11  ;;  %v1544_v7 = vshra.s32 %v7333_v47, 16  ;;  %v1466_v51 = vsel %vm1386_vm7, %v6748_v40, 1073741824 }
 0x1db   :  { %1307 = vst.msk [vmem:[%s12264_s3 + $0x28] sm:$0xff] %vm1301_vm2, %v1078_v27  ;;  %1290 = vmax.xlane.f32.xlu0 %v1289_v22  ;;  %12735 = vst [vmem:[#allocation31_spill] sm:$0xff] %v7342_v2  ;;  %v1295_v59 = vsel %vm97_vm0, %v7342_v2, -inf  ;;  %v1464_v22 = vsel %vm1384_vm5, %v6748_v40, 1073741824  ;;  %vm1387_vm8 = vcmp.ge.f32.partialorder %v6800_v52, %v1078_v27  ;;  %v7425_v18 = vsel %vm97_vm0, %v1466_v51, 2147483647 }
 0x1dc   :  { %v1081_v44 = vpop.xlane.xlu0 %1080  ;;  %v7353_v30 = vsel %vm980_vm1, -1.0, %v977_v48  ;;  %v7373_v36 = vcvt.s32.f32 %v1544_v7  ;;  %v1467_v32 = vsel %vm1387_vm8, %v6748_v40, 1073741824  ;;  %v1604_v27 = vshra.s32 %v7425_v18, 16 }
 0x1dd   :  { %1308 = vst.msk [vmem:[%s12264_s3 + $0x30] sm:$0xff] %vm1301_vm2, %v1081_v44  ;;  %1293 = vmax.xlane.f32.xlu1 %v1292_v19  ;;  %12736 = vst [vmem:[#allocation38_spill] sm:$0xff] %v7353_v30  ;;  %v1298_v3 = vsel %vm97_vm0, %v7353_v30, -inf  ;;  %v1559_v19 = vshra.s32 %v7359_v28, 16  ;;  %v7402_v30 = vsel %vm97_vm0, %v1465_v6, 2147483647  ;;  %vm1388_vm9 = vcmp.ge.f32.partialorder %v6807_v26, %v1081_v44 }
 0x1de   :  { %v1084_v11 = vpop.xlane.xlu1 %1083  ;;  %v7448_v4 = vsel %vm97_vm0, %v1467_v32, 2147483647  ;;  %v1468_v35 = vsel %vm1388_vm9, %v6748_v40, 1073741824  ;;  %v7465_v32 = vcvt.s32.f32 %v1604_v27 }
 0x1df   :  { %1309 = vst.msk [vmem:[%s12264_s3 + $0x38] sm:$0xff] %vm1301_vm2, %v1084_v11  ;;  %1296 = vmax.xlane.f32.xlu0 %v1295_v59  ;;  %v7379_v59 = vsel %vm97_vm0, %v1464_v22, 2147483647  ;;  %v7396_v7 = vcvt.s32.f32 %v1559_v19  ;;  %v1589_v19 = vshra.s32 %v7402_v30, 16  ;;  %12737 = vst [vmem:[#allocation39_spill] sm:$0xff] %v7448_v4  ;;  %vm1389_vm10 = vcmp.ge.f32.partialorder %v6814_v10, %v1084_v11 }
 0x1e0   :  { %v1087_v48 = vpop.xlane.xlu0 %1086  ;;  %v1574_v22 = vshra.s32 %v7379_v59, 16  ;;  %12738 = vst [vmem:[#allocation40_spill] sm:$0xff] %v7465_v32  ;;  %v1619_v44 = vshra.s32 %v7448_v4, 16  ;;  %v7471_v43 = vsel %vm97_vm0, %v1468_v35, 2147483647  ;;  %v1469_v61 = vsel %vm1389_vm10, %v6748_v40, 1073741824 }
 0x1e1   :  { %1310 = vst.msk [vmem:[%s12264_s3 + $0x40] sm:$0xff] %vm1301_vm2, %v1087_v48  ;;  %1299 = vmax.xlane.f32.xlu1 %v1298_v3  ;;  %v7442_v51 = vcvt.s32.f32 %v1589_v19  ;;  %12739 = vst [vmem:[#allocation41_spill] sm:$0xff] %v7471_v43  ;;  %vm1390_vm11 = vcmp.ge.f32.partialorder %v6821_v13, %v1087_v48  ;;  %v1634_v11 = vshra.s32 %v7471_v43, 16  ;;  %v7494_v4 = vsel %vm97_vm0, %v1469_v61, 2147483647 }
 0x1e2   :  { %v7376_v2 = vpop.xlane.xlu1 %1089  ;;  %v7419_v16 = vcvt.s32.f32 %v1574_v22  ;;  %v7488_v35 = vcvt.s32.f32 %v1619_v44  ;;  %12741 = vst [vmem:[#allocation43_spill] sm:$0xff] %v7494_v4  ;;  %v1649_v48 = vshra.s32 %v7494_v4, 16 }
 0x1e3   :  { %1311 = vst.msk [vmem:[%s12264_s3 + $0x48] sm:$0xff] %vm1301_vm2, %v7376_v2  ;;  %1547 = vmin.xlane.f32.xlu0 %v7373_v36  ;;  %vm1391_vm12 = vcmp.ge.f32.partialorder %v6828_v56, %v7376_v2  ;;  %v7512_v61 = vcvt.s32.f32 %v1634_v11 }
 0x1e4   :  { %v7389_v24 = vpop.xlane.xlu0 %1092  ;;  %12740 = vst [vmem:[#allocation42_spill] sm:$0xff] %v7488_v35  ;;  %v7536_v2 = vcvt.s32.f32 %v1649_v48 }
 0x1e5   :  { %1312 = vst.msk [vmem:[%s12264_s3 + $0x50] sm:$0xff] %vm1301_vm2, %v7389_v24  ;;  %12742 = vst [vmem:[#allocation44_spill] sm:$0xff] %v7512_v61  ;;  %vm1392_vm13 = vcmp.ge.f32.partialorder %v6835_v58, %v7389_v24 }
 0x1e6   :  { %v7399_v3 = vpop.xlane.xlu1 %1095  ;;  %12744 = vst [vmem:[#allocation46_spill] sm:$0xff] %v7536_v2 }
 0x1e7   :  { %1313 = vst.msk [vmem:[%s12264_s3 + $0x58] sm:$0xff] %vm1301_vm2, %v7399_v3  ;;  %1562 = vmin.xlane.f32.xlu0 %v7396_v7  ;;  %vm1393_vm14 = vcmp.ge.f32.partialorder %v6842_v34, %v7399_v3 }
 0x1e8   :  { %v7412_v60 = vpop.xlane.xlu0 %1098 }
 0x1e9   :  { %1314 = vst.msk [vmem:[%s12264_s3 + $0x60] sm:$0xff] %vm1301_vm2, %v7412_v60  ;;  %vm1394_vm15 = vcmp.ge.f32.partialorder %v6849_v42, %v7412_v60 }
 0x1ea   :  { %v7422_v6 = vpop.xlane.xlu1 %1101 }
 0x1eb   :  { %1315 = vst.msk [vmem:[%s12264_s3 + $0x68] sm:$0xff] %vm1301_vm2, %v7422_v6  ;;  %1577 = vmin.xlane.f32.xlu0 %v7419_v16  ;;  %vm1395_vm1 = vcmp.ge.f32.partialorder %v6856_v50, %v7422_v6 }
 0x1ec   :  { %v7435_v52 = vpop.xlane.xlu0 %1104 }
 0x1ed   :  { %1316 = vst.msk [vmem:[%s12264_s3 + $0x70] sm:$0xff] %vm1301_vm2, %v7435_v52  ;;  %vm1396_vm3 = vcmp.ge.f32.partialorder %v6863_v54, %v7435_v52 }
 0x1ee   :  { %v7445_v22 = vpop.xlane.xlu1 %1107 }
 0x1ef   :  { %1317 = vst.msk [vmem:[%s12264_s3 + $0x78] sm:$0xff] %vm1301_vm2, %v7445_v22  ;;  %1592 = vmin.xlane.f32.xlu0 %v7442_v51  ;;  %vm1397_vm4 = vcmp.ge.f32.partialorder %v6870_v62, %v7445_v22 }
 0x1f0   :  { %v7458_v26 = vpop.xlane.xlu0 %1110 }
 0x1f1   :  { %1318 = vst.msk [vmem:[%s12264_s3 + $0x80] sm:$0xff] %vm1301_vm2, %v7458_v26  ;;  %vm1398_vm5 = vcmp.ge.f32.partialorder %v6877_v38, %v7458_v26 }
 0x1f2   :  { %v7468_v19 = vpop.xlane.xlu1 %1113 }
 0x1f3   :  { %1319 = vst.msk [vmem:[%s12264_s3 + $0x88] sm:$0xff] %vm1301_vm2, %v7468_v19  ;;  %1607 = vmin.xlane.f32.xlu0 %v7465_v32  ;;  %v1470_v32 = vsel %vm1390_vm11, %v6748_v40, 1073741824  ;;  %vm1399_vm6 = vcmp.ge.f32.partialorder %v6884_v8, %v7468_v19 }
 0x1f4   :  { %v7481_v10 = vpop.xlane.xlu0 %1116  ;;  %v7518_v43 = vsel %vm97_vm0, %v1470_v32, 2147483647 }
 0x1f5   :  { %1320 = vst.msk [vmem:[%s12264_s3 + $0x90] sm:$0xff] %vm1301_vm2, %v7481_v10  ;;  %12743 = vst [vmem:[#allocation45_spill] sm:$0xff] %v7518_v43  ;;  %v1664_v32 = vshra.s32 %v7518_v43, 16  ;;  %vm1400_vm7 = vcmp.ge.f32.partialorder %v6891_v55, %v7481_v10 }
 0x1f6   :  { %v7491_v27 = vpop.xlane.xlu1 %1119 }
 0x1f7   :  { %1321 = vst.msk [vmem:[%s12264_s3 + $0x98] sm:$0xff] %vm1301_vm2, %v7491_v27  ;;  %1622 = vmin.xlane.f32.xlu0 %v7488_v35  ;;  %v1471_v35 = vsel %vm1391_vm12, %v6748_v40, 1073741824  ;;  %v7560_v24 = vcvt.s32.f32 %v1664_v32  ;;  %vm1401_vm8 = vcmp.ge.f32.partialorder %v6898_v5, %v7491_v27 }
 0x1f8   :  { %v7505_v13 = vpop.xlane.xlu0 %1122  ;;  %v7542_v4 = vsel %vm97_vm0, %v1471_v35, 2147483647 }
 0x1f9   :  { %1322 = vst.msk [vmem:[%s12264_s3 + $0xa0] sm:$0xff] %vm1301_vm2, %v7505_v13  ;;  %12745 = vst [vmem:[#allocation47_spill] sm:$0xff] %v7542_v4  ;;  %v1679_v35 = vshra.s32 %v7542_v4, 16  ;;  %vm1402_vm9 = vcmp.ge.f32.partialorder %v6905_v14, %v7505_v13 }
 0x1fa   :  { %v7515_v44 = vpop.xlane.xlu1 %1125  ;;  %12746 = vst [vmem:[#allocation48_spill] sm:$0xff] %v7560_v24 }
 0x1fb   :  { %1323 = vst.msk [vmem:[%s12264_s3 + $0xa8] sm:$0xff] %vm1301_vm2, %v7515_v44  ;;  %1637 = vmin.xlane.f32.xlu0 %v7512_v61  ;;  %v1472_v61 = vsel %vm1392_vm13, %v6748_v40, 1073741824  ;;  %v7584_v3 = vcvt.s32.f32 %v1679_v35  ;;  %vm1403_vm10 = vcmp.ge.f32.partialorder %v6912_v17, %v7515_v44 }
 0x1fc   :  { %v7529_v56 = vpop.xlane.xlu0 %1128  ;;  %v7566_v43 = vsel %vm97_vm0, %v1472_v61, 2147483647 }
 0x1fd   :  { %1324 = vst.msk [vmem:[%s12264_s3 + $0xb0] sm:$0xff] %vm1301_vm2, %v7529_v56  ;;  %12747 = vst [vmem:[#allocation49_spill] sm:$0xff] %v7566_v43  ;;  %v1694_v61 = vshra.s32 %v7566_v43, 16  ;;  %vm1404_vm11 = vcmp.ge.f32.partialorder %v6919_v9, %v7529_v56 }
 0x1fe   :  { %v7539_v11 = vpop.xlane.xlu1 %1131  ;;  %12748 = vst [vmem:[#allocation50_spill] sm:$0xff] %v7584_v3 }
 0x1ff   :  { %1325 = vst.msk [vmem:[%s12264_s3 + $0xb8] sm:$0xff] %vm1301_vm2, %v7539_v11  ;;  %1652 = vmin.xlane.f32.xlu0 %v7536_v2  ;;  %v1473_v2 = vsel %vm1393_vm14, %v6748_v40, 1073741824  ;;  %v7608_v60 = vcvt.s32.f32 %v1694_v61  ;;  %vm1405_vm12 = vcmp.ge.f32.partialorder %v6926_v20, %v7539_v11 }
 0x200   :  { %v7553_v58 = vpop.xlane.xlu0 %1134  ;;  %v7590_v4 = vsel %vm97_vm0, %v1473_v2, 2147483647 }
 0x201   :  { %1326 = vst.msk [vmem:[%s12264_s3 + $0xc0] sm:$0xff] %vm1301_vm2, %v7553_v58  ;;  %12749 = vst [vmem:[#allocation51_spill] sm:$0xff] %v7590_v4  ;;  %v1709_v2 = vshra.s32 %v7590_v4, 16  ;;  %vm1406_vm13 = vcmp.ge.f32.partialorder %v6933_v12, %v7553_v58 }
 0x202   :  { %v7563_v48 = vpop.xlane.xlu1 %1137  ;;  %12750 = vst [vmem:[#allocation52_spill] sm:$0xff] %v7608_v60 }
 0x203   :  { %1327 = vst.msk [vmem:[%s12264_s3 + $0xc8] sm:$0xff] %vm1301_vm2, %v7563_v48  ;;  %1667 = vmin.xlane.f32.xlu0 %v7560_v24  ;;  %v1474_v24 = vsel %vm1394_vm15, %v6748_v40, 1073741824  ;;  %v7632_v6 = vcvt.s32.f32 %v1709_v2  ;;  %vm1407_vm14 = vcmp.ge.f32.partialorder %v6940_v25, %v7563_v48 }
 0x204   :  { %v7577_v34 = vpop.xlane.xlu0 %1140  ;;  %v7614_v43 = vsel %vm97_vm0, %v1474_v24, 2147483647 }
 0x205   :  { %1328 = vst.msk [vmem:[%s12264_s3 + $0xd0] sm:$0xff] %vm1301_vm2, %v7577_v34  ;;  %12751 = vst [vmem:[#allocation53_spill] sm:$0xff] %v7614_v43  ;;  %v1724_v24 = vshra.s32 %v7614_v43, 16  ;;  %vm1408_vm15 = vcmp.ge.f32.partialorder %v6947_v1, %v7577_v34 }
 0x206   :  { %v7587_v32 = vpop.xlane.xlu1 %1143  ;;  %12752 = vst [vmem:[#allocation54_spill] sm:$0xff] %v7632_v6 }
 0x207   :  { %1329 = vst.msk [vmem:[%s12264_s3 + $0xd8] sm:$0xff] %vm1301_vm2, %v7587_v32  ;;  %1682 = vmin.xlane.f32.xlu0 %v7584_v3  ;;  %v1475_v3 = vsel %vm1395_vm1, %v6748_v40, 1073741824  ;;  %v7656_v52 = vcvt.s32.f32 %v1724_v24  ;;  %vm1409_vm1 = vcmp.ge.f32.partialorder %v6954_v29, %v7587_v32 }
 0x208   :  { %v7601_v42 = vpop.xlane.xlu0 %1146  ;;  %v7638_v4 = vsel %vm97_vm0, %v1475_v3, 2147483647 }
 0x209   :  { %1330 = vst.msk [vmem:[%s12264_s3 + $0xe0] sm:$0xff] %vm1301_vm2, %v7601_v42  ;;  %12753 = vst [vmem:[#allocation55_spill] sm:$0xff] %v7638_v4  ;;  %v1739_v3 = vshra.s32 %v7638_v4, 16 }
 0x20a   :  { %v7611_v35 = vpop.xlane.xlu1 %1149  ;;  %12754 = vst [vmem:[#allocation56_spill] sm:$0xff] %v7656_v52 }
 0x20b   :  { %1331 = vst.msk [vmem:[%s12264_s3 + $0xe8] sm:$0xff] %vm1301_vm2, %v7611_v35  ;;  %1697 = vmin.xlane.f32.xlu0 %v7608_v60  ;;  %v1476_v60 = vsel %vm1396_vm3, %v6748_v40, 1073741824  ;;  %v7680_v22 = vcvt.s32.f32 %v1739_v3  ;;  %vm1410_vm3 = vcmp.ge.f32.partialorder %v6961_v21, %v7601_v42 }
 0x20c   :  { %v7625_v50 = vpop.xlane.xlu0 %1152  ;;  %v7662_v43 = vsel %vm97_vm0, %v1476_v60, 2147483647 }
 0x20d   :  { %1332 = vst.msk [vmem:[%s12264_s3 + $0xf0] sm:$0xff] %vm1301_vm2, %v7625_v50  ;;  %12755 = vst [vmem:[#allocation57_spill] sm:$0xff] %v7662_v43  ;;  %v1754_v60 = vshra.s32 %v7662_v43, 16 }
 0x20e   :  { %v7635_v61 = vpop.xlane.xlu1 %1155  ;;  %12756 = vst [vmem:[#allocation58_spill] sm:$0xff] %v7680_v22 }
 0x20f   :  { %1333 = vst.msk [vmem:[%s12264_s3 + $0xf8] sm:$0xff] %vm1301_vm2, %v7635_v61  ;;  %1712 = vmin.xlane.f32.xlu0 %v7632_v6  ;;  %v1477_v6 = vsel %vm1397_vm4, %v6748_v40, 1073741824  ;;  %v7704_v26 = vcvt.s32.f32 %v1754_v60  ;;  %vm1411_vm4 = vcmp.ge.f32.partialorder %v6968_v33, %v7611_v35 }
 0x210   :  { %v7649_v54 = vpop.xlane.xlu0 %1158  ;;  %v7686_v4 = vsel %vm97_vm0, %v1477_v6, 2147483647 }
 0x211   :  { %1334 = vst.msk [vmem:[%s12264_s3 + $0x100] sm:$0xff] %vm1301_vm2, %v7649_v54  ;;  %12757 = vst [vmem:[#allocation59_spill] sm:$0xff] %v7686_v4  ;;  %v1769_v6 = vshra.s32 %v7686_v4, 16 }
 0x212   :  { %v7659_v2 = vpop.xlane.xlu1 %1161  ;;  %12758 = vst [vmem:[#allocation60_spill] sm:$0xff] %v7704_v26 }
 0x213   :  { %1335 = vst.msk [vmem:[%s12264_s3 + $0x108] sm:$0xff] %vm1301_vm2, %v7659_v2  ;;  %1727 = vmin.xlane.f32.xlu0 %v7656_v52  ;;  %v1478_v52 = vsel %vm1398_vm5, %v6748_v40, 1073741824  ;;  %v7728_v19 = vcvt.s32.f32 %v1769_v6  ;;  %vm1412_vm5 = vcmp.ge.f32.partialorder %v6975_v0, %v7625_v50 }
 0x214   :  { %v7673_v62 = vpop.xlane.xlu0 %1164  ;;  %v7710_v43 = vsel %vm97_vm0, %v1478_v52, 2147483647 }
 0x215   :  { %1336 = vst.msk [vmem:[%s12264_s3 + $0x110] sm:$0xff] %vm1301_vm2, %v7673_v62  ;;  %12759 = vst [vmem:[#allocation61_spill] sm:$0xff] %v7710_v43  ;;  %v1784_v52 = vshra.s32 %v7710_v43, 16 }
 0x216   :  { %v7683_v24 = vpop.xlane.xlu1 %1167  ;;  %12760 = vst [vmem:[#allocation62_spill] sm:$0xff] %v7728_v19 }
 0x217   :  { %1337 = vst.msk [vmem:[%s12264_s3 + $0x118] sm:$0xff] %vm1301_vm2, %v7683_v24  ;;  %1742 = vmin.xlane.f32.xlu0 %v7680_v22  ;;  %v1479_v22 = vsel %vm1399_vm6, %v6748_v40, 1073741824  ;;  %v7752_v10 = vcvt.s32.f32 %v1784_v52  ;;  %vm1413_vm6 = vcmp.ge.f32.partialorder %v6982_v37, %v7635_v61 }
 0x218   :  { %v7697_v38 = vpop.xlane.xlu0 %1170  ;;  %v7734_v4 = vsel %vm97_vm0, %v1479_v22, 2147483647 }
 0x219   :  { %1338 = vst.msk [vmem:[%s12264_s3 + $0x120] sm:$0xff] %vm1301_vm2, %v7697_v38  ;;  %12761 = vst [vmem:[#allocation63_spill] sm:$0xff] %v7734_v4  ;;  %v1799_v22 = vshra.s32 %v7734_v4, 16 }
 0x21a   :  { %v7707_v3 = vpop.xlane.xlu1 %1173  ;;  %12762 = vst [vmem:[#allocation64_spill] sm:$0xff] %v7752_v10 }
 0x21b   :  { %1339 = vst.msk [vmem:[%s12264_s3 + $0x128] sm:$0xff] %vm1301_vm2, %v7707_v3  ;;  %1757 = vmin.xlane.f32.xlu0 %v7704_v26  ;;  %v1480_v26 = vsel %vm1400_vm7, %v6748_v40, 1073741824  ;;  %v7776_v27 = vcvt.s32.f32 %v1799_v22  ;;  %vm1414_vm7 = vcmp.ge.f32.partialorder %v6989_v39, %v7649_v54 }
 0x21c   :  { %v7721_v8 = vpop.xlane.xlu0 %1176  ;;  %v7758_v43 = vsel %vm97_vm0, %v1480_v26, 2147483647 }
 0x21d   :  { %1340 = vst.msk [vmem:[%s12264_s3 + $0x130] sm:$0xff] %vm1301_vm2, %v7721_v8  ;;  %12763 = vst [vmem:[#allocation65_spill] sm:$0xff] %v7758_v43  ;;  %v1814_v26 = vshra.s32 %v7758_v43, 16 }
 0x21e   :  { %v7731_v60 = vpop.xlane.xlu1 %1179  ;;  %12764 = vst [vmem:[#allocation66_spill] sm:$0xff] %v7776_v27 }
 0x21f   :  { %1341 = vst.msk [vmem:[%s12264_s3 + $0x138] sm:$0xff] %vm1301_vm2, %v7731_v60  ;;  %1772 = vmin.xlane.f32.xlu0 %v7728_v19  ;;  %v1481_v19 = vsel %vm1401_vm8, %v6748_v40, 1073741824  ;;  %v7800_v13 = vcvt.s32.f32 %v1814_v26  ;;  %vm1415_vm8 = vcmp.ge.f32.partialorder %v6996_v41, %v7659_v2 }
 0x220   :  { %v7745_v55 = vpop.xlane.xlu0 %1182  ;;  %v7782_v4 = vsel %vm97_vm0, %v1481_v19, 2147483647 }
 0x221   :  { %1342 = vst.msk [vmem:[%s12264_s3 + $0x140] sm:$0xff] %vm1301_vm2, %v7745_v55  ;;  %12765 = vst [vmem:[#allocation67_spill] sm:$0xff] %v7782_v4  ;;  %v1829_v19 = vshra.s32 %v7782_v4, 16 }
 0x222   :  { %v7755_v6 = vpop.xlane.xlu1 %1185  ;;  %12766 = vst [vmem:[#allocation68_spill] sm:$0xff] %v7800_v13 }
 0x223   :  { %1343 = vst.msk [vmem:[%s12264_s3 + $0x148] sm:$0xff] %vm1301_vm2, %v7755_v6  ;;  %1787 = vmin.xlane.f32.xlu0 %v7752_v10  ;;  %v1482_v10 = vsel %vm1402_vm9, %v6748_v40, 1073741824  ;;  %v7824_v44 = vcvt.s32.f32 %v1829_v19  ;;  %vm1416_vm9 = vcmp.ge.f32.partialorder %v7003_v63, %v7673_v62 }
 0x224   :  { %v7769_v5 = vpop.xlane.xlu0 %1188  ;;  %v7806_v43 = vsel %vm97_vm0, %v1482_v10, 2147483647 }
 0x225   :  { %1344 = vst.msk [vmem:[%s12264_s3 + $0x150] sm:$0xff] %vm1301_vm2, %v7769_v5  ;;  %12767 = vst [vmem:[#allocation69_spill] sm:$0xff] %v7806_v43  ;;  %v1844_v10 = vshra.s32 %v7806_v43, 16 }
 0x226   :  { %v7779_v52 = vpop.xlane.xlu1 %1191  ;;  %12768 = vst [vmem:[#allocation70_spill] sm:$0xff] %v7824_v44 }
 0x227   :  { %1345 = vst.msk [vmem:[%s12264_s3 + $0x158] sm:$0xff] %vm1301_vm2, %v7779_v52  ;;  %1802 = vmin.xlane.f32.xlu0 %v7776_v27  ;;  %v1483_v27 = vsel %vm1403_vm10, %v6748_v40, 1073741824  ;;  %v7848_v56 = vcvt.s32.f32 %v1844_v10  ;;  %vm1417_vm10 = vcmp.ge.f32.partialorder %v7010_v45, %v7683_v24 }
 0x228   :  { %v7793_v14 = vpop.xlane.xlu0 %1194  ;;  %v7830_v4 = vsel %vm97_vm0, %v1483_v27, 2147483647 }
 0x229   :  { %1346 = vst.msk [vmem:[%s12264_s3 + $0x160] sm:$0xff] %vm1301_vm2, %v7793_v14  ;;  %12769 = vst [vmem:[#allocation71_spill] sm:$0xff] %v7830_v4  ;;  %v1859_v27 = vshra.s32 %v7830_v4, 16 }
 0x22a   :  { %v7803_v22 = vpop.xlane.xlu1 %1197  ;;  %12770 = vst [vmem:[#allocation72_spill] sm:$0xff] %v7848_v56 }
 0x22b   :  { %1347 = vst.msk [vmem:[%s12264_s3 + $0x168] sm:$0xff] %vm1301_vm2, %v7803_v22  ;;  %1817 = vmin.xlane.f32.xlu0 %v7800_v13  ;;  %v1484_v13 = vsel %vm1404_vm11, %v6748_v40, 1073741824  ;;  %v7872_v11 = vcvt.s32.f32 %v1859_v27  ;;  %vm1418_vm11 = vcmp.ge.f32.partialorder %v7017_v46, %v7697_v38 }
 0x22c   :  { %v7817_v17 = vpop.xlane.xlu0 %1200  ;;  %v7854_v43 = vsel %vm97_vm0, %v1484_v13, 2147483647 }
 0x22d   :  { %1348 = vst.msk [vmem:[%s12264_s3 + $0x170] sm:$0xff] %vm1301_vm2, %v7817_v17  ;;  %12771 = vst [vmem:[#allocation73_spill] sm:$0xff] %v7854_v43  ;;  %v1874_v13 = vshra.s32 %v7854_v43, 16 }
 0x22e   :  { %v7827_v26 = vpop.xlane.xlu1 %1203  ;;  %12772 = vst [vmem:[#allocation74_spill] sm:$0xff] %v7872_v11 }
 0x22f   :  { %1349 = vst.msk [vmem:[%s12264_s3 + $0x178] sm:$0xff] %vm1301_vm2, %v7827_v26  ;;  %1832 = vmin.xlane.f32.xlu0 %v7824_v44  ;;  %v1485_v44 = vsel %vm1405_vm12, %v6748_v40, 1073741824  ;;  %v7896_v58 = vcvt.s32.f32 %v1874_v13  ;;  %vm1419_vm12 = vcmp.ge.f32.partialorder %v7024_v49, %v7707_v3  ;;  %v1543_v3 = vand.u32 65535, %v7333_v47 }
 0x230   :  { %v7841_v9 = vpop.xlane.xlu0 %1206  ;;  %v7878_v4 = vsel %vm97_vm0, %v1485_v44, 2147483647 }
 0x231   :  { %1350 = vst.msk [vmem:[%s12264_s3 + $0x180] sm:$0xff] %vm1301_vm2, %v7841_v9  ;;  %12773 = vst [vmem:[#allocation75_spill] sm:$0xff] %v7878_v4  ;;  %v1889_v44 = vshra.s32 %v7878_v4, 16 }
 0x232   :  { %v7851_v19 = vpop.xlane.xlu1 %1209  ;;  %12774 = vst [vmem:[#allocation76_spill] sm:$0xff] %v7896_v58 }
 0x233   :  { %1351 = vst.msk [vmem:[%s12264_s3 + $0x188] sm:$0xff] %vm1301_vm2, %v7851_v19  ;;  %1847 = vmin.xlane.f32.xlu0 %v7848_v56  ;;  %v1486_v56 = vsel %vm1406_vm13, %v6748_v40, 1073741824  ;;  %v7920_v48 = vcvt.s32.f32 %v1889_v44  ;;  %vm1420_vm13 = vcmp.ge.f32.partialorder %v7031_v15, %v7721_v8  ;;  %v1545_v8 = vcvt.s32.f32 %v1543_v3 }
 0x234   :  { %v7865_v20 = vpop.xlane.xlu0 %1212  ;;  %v7902_v43 = vsel %vm97_vm0, %v1486_v56, 2147483647  ;;  %v1500_v15 = vsel %vm1420_vm13, %v6748_v40, 1073741824 }
 0x235   :  { %1352 = vst.msk [vmem:[%s12264_s3 + $0x190] sm:$0xff] %vm1301_vm2, %v7865_v20  ;;  %12775 = vst [vmem:[#allocation77_spill] sm:$0xff] %v7902_v43  ;;  %v1904_v56 = vshra.s32 %v7902_v43, 16 }
 0x236   :  { %v7875_v10 = vpop.xlane.xlu1 %1215  ;;  %12776 = vst [vmem:[#allocation78_spill] sm:$0xff] %v7920_v48 }
 0x237   :  { %1353 = vst.msk [vmem:[%s12264_s3 + $0x198] sm:$0xff] %vm1301_vm2, %v7875_v10  ;;  %1862 = vmin.xlane.f32.xlu0 %v7872_v11  ;;  %v1487_v11 = vsel %vm1407_vm14, %v6748_v40, 1073741824  ;;  %v7944_v34 = vcvt.s32.f32 %v1904_v56  ;;  %vm1421_vm14 = vcmp.ge.f32.partialorder %v7038_v53, %v7731_v60  ;;  %v1573_v60 = vand.u32 65535, %v7379_v59 }
 0x238   :  { %v7889_v12 = vpop.xlane.xlu0 %1218  ;;  %v7926_v4 = vsel %vm97_vm0, %v1487_v11, 2147483647 }
 0x239   :  { %1354 = vst.msk [vmem:[%s12264_s3 + $0x1a0] sm:$0xff] %vm1301_vm2, %v7889_v12  ;;  %12777 = vst [vmem:[#allocation79_spill] sm:$0xff] %v7926_v4  ;;  %v1919_v11 = vshra.s32 %v7926_v4, 16  ;;  %v1575_v59 = vcvt.s32.f32 %v1573_v60 }
 0x23a   :  { %v7899_v27 = vpop.xlane.xlu1 %1221  ;;  %12778 = vst [vmem:[#allocation80_spill] sm:$0xff] %v7944_v34 }
 0x23b   :  { %1355 = vst.msk [vmem:[%s12264_s3 + $0x1a8] sm:$0xff] %vm1301_vm2, %v7899_v27  ;;  %1877 = vmin.xlane.f32.xlu0 %v7896_v58  ;;  %v1488_v58 = vsel %vm1408_vm15, %v6748_v40, 1073741824  ;;  %v7968_v32 = vcvt.s32.f32 %v1919_v11 }
 0x23c   :  { %v7913_v25 = vpop.xlane.xlu0 %1224  ;;  %v7950_v43 = vsel %vm97_vm0, %v1488_v58, 2147483647 }
 0x23d   :  { %1356 = vst.msk [vmem:[%s12264_s3 + $0x1b0] sm:$0xff] %vm1301_vm2, %v7913_v25  ;;  %12779 = vst [vmem:[#allocation81_spill] sm:$0xff] %v7950_v43  ;;  %v1934_v58 = vshra.s32 %v7950_v43, 16 }
 0x23e   :  { %v7923_v13 = vpop.xlane.xlu1 %1227  ;;  %12780 = vst [vmem:[#allocation82_spill] sm:$0xff] %v7968_v32 }
 0x23f   :  { %1357 = vst.msk [vmem:[%s12264_s3 + $0x1b8] sm:$0xff] %vm1301_vm2, %v7923_v13  ;;  %1892 = vmin.xlane.f32.xlu0 %v7920_v48  ;;  %v1489_v48 = vsel %vm1409_vm1, %v6748_v40, 1073741824  ;;  %v7992_v42 = vcvt.s32.f32 %v1934_v58  ;;  %vm1422_vm1 = vcmp.ge.f32.partialorder %v7045_v31, %v7745_v55  ;;  %v1588_v55 = vand.u32 65535, %v7402_v30 }
 0x240   :  { %v7937_v1 = vpop.xlane.xlu0 %1230  ;;  %v7974_v4 = vsel %vm97_vm0, %v1489_v48, 2147483647 }
 0x241   :  { %1358 = vst.msk [vmem:[%s12264_s3 + $0x1c0] sm:$0xff] %vm1301_vm2, %v7937_v1  ;;  %12781 = vst [vmem:[#allocation83_spill] sm:$0xff] %v7974_v4  ;;  %v1949_v48 = vshra.s32 %v7974_v4, 16  ;;  %v1590_v30 = vcvt.s32.f32 %v1588_v55  ;;  %v12807_v55 = vld [vmem:[#allocation40_spill] sm:$0xff] }
 0x242   :  { %v7947_v44 = vpop.xlane.xlu1 %1233  ;;  %12782 = vst [vmem:[#allocation84_spill] sm:$0xff] %v7992_v42 }
 0x243   :  { %1359 = vst.msk [vmem:[%s12264_s3 + $0x1c8] sm:$0xff] %vm1301_vm2, %v7947_v44  ;;  %1907 = vmin.xlane.f32.xlu0 %v7944_v34  ;;  %v1490_v34 = vsel %vm1410_vm3, %v6748_v40, 1073741824  ;;  %v8016_v35 = vcvt.s32.f32 %v1949_v48 }
 0x244   :  { %v7961_v29 = vpop.xlane.xlu0 %1236  ;;  %v7998_v43 = vsel %vm97_vm0, %v1490_v34, 2147483647 }
 0x245   :  { %1360 = vst.msk [vmem:[%s12264_s3 + $0x1d0] sm:$0xff] %vm1301_vm2, %v7961_v29  ;;  %12783 = vst [vmem:[#allocation85_spill] sm:$0xff] %v7998_v43  ;;  %v1964_v34 = vshra.s32 %v7998_v43, 16 }
 0x246   :  { %v7971_v56 = vpop.xlane.xlu1 %1239  ;;  %12784 = vst [vmem:[#allocation86_spill] sm:$0xff] %v8016_v35 }
 0x247   :  { %1361 = vst.msk [vmem:[%s12264_s3 + $0x1d8] sm:$0xff] %vm1301_vm2, %v7971_v56  ;;  %1922 = vmin.xlane.f32.xlu0 %v7968_v32  ;;  %v1491_v32 = vsel %vm1411_vm4, %v6748_v40, 1073741824  ;;  %v8040_v50 = vcvt.s32.f32 %v1964_v34  ;;  %vm1423_vm4 = vcmp.ge.f32.partialorder %v7052_v57, %v7755_v6  ;;  %v1603_v6 = vand.u32 65535, %v7425_v18 }
 0x248   :  { %v7985_v21 = vpop.xlane.xlu0 %1242  ;;  %v8022_v4 = vsel %vm97_vm0, %v1491_v32, 2147483647 }
 0x249   :  { %1362 = vst.msk [vmem:[%s12264_s3 + $0x1e0] sm:$0xff] %vm1301_vm2, %v7985_v21  ;;  %12785 = vst [vmem:[#allocation87_spill] sm:$0xff] %v8022_v4  ;;  %v1979_v32 = vshra.s32 %v8022_v4, 16 }
 0x24a   :  { %v7995_v11 = vpop.xlane.xlu1 %1245  ;;  %12786 = vst [vmem:[#allocation88_spill] sm:$0xff] %v8040_v50 }
 0x24b   :  { %1363 = vst.msk [vmem:[%s12264_s3 + $0x1e8] sm:$0xff] %vm1301_vm2, %v7995_v11  ;;  %1937 = vmin.xlane.f32.xlu0 %v7992_v42  ;;  %v1492_v42 = vsel %vm1412_vm5, %v6748_v40, 1073741824  ;;  %v8064_v61 = vcvt.s32.f32 %v1979_v32 }
 0x24c   :  { %v8009_v33 = vpop.xlane.xlu0 %1248  ;;  %v8046_v43 = vsel %vm97_vm0, %v1492_v42, 2147483647 }
 0x24d   :  { %1364 = vst.msk [vmem:[%s12264_s3 + $0x1f0] sm:$0xff] %vm1301_vm2, %v8009_v33  ;;  %12787 = vst [vmem:[#allocation89_spill] sm:$0xff] %v8046_v43  ;;  %v1994_v42 = vshra.s32 %v8046_v43, 16 }
 0x24e   :  { %v8019_v58 = vpop.xlane.xlu1 %1251  ;;  %12788 = vst [vmem:[#allocation90_spill] sm:$0xff] %v8064_v61 }
 0x24f   :  { %1365 = vst.msk [vmem:[%s12264_s3 + $0x1f8] sm:$0xff] %vm1301_vm2, %v8019_v58  ;;  %1952 = vmin.xlane.f32.xlu0 %v8016_v35  ;;  %v1493_v35 = vsel %vm1413_vm6, %v6748_v40, 1073741824  ;;  %v8088_v54 = vcvt.s32.f32 %v1994_v42  ;;  %vm1424_vm6 = vcmp.ge.f32.partialorder %v7059_v23, %v7769_v5  ;;  %v12804_v23 = vld [vmem:[#allocation32_spill] sm:$0xff]  ;;  %v1605_v5 = vcvt.s32.f32 %v1603_v6 }
 0x250   :  { %v8033_v0 = vpop.xlane.xlu0 %1254  ;;  %v8070_v4 = vsel %vm97_vm0, %v1493_v35, 2147483647 }
 0x251   :  { %1366 = vst.msk [vmem:[%s12264_s3 + $0x200] sm:$0xff] %vm1301_vm2, %v8033_v0  ;;  %12789 = vst [vmem:[#allocation91_spill] sm:$0xff] %v8070_v4  ;;  %v2009_v35 = vshra.s32 %v8070_v4, 16 }
 0x252   :  { %v8043_v48 = vpop.xlane.xlu1 %1257  ;;  %12790 = vst [vmem:[#allocation92_spill] sm:$0xff] %v8088_v54 }
 0x253   :  { %1367 = vst.msk [vmem:[%s12264_s3 + $0x208] sm:$0xff] %vm1301_vm2, %v8043_v48  ;;  %1967 = vmin.xlane.f32.xlu0 %v8040_v50  ;;  %v1494_v50 = vsel %vm1414_vm7, %v6748_v40, 1073741824  ;;  %v8112_v2 = vcvt.s32.f32 %v2009_v35 }
 0x254   :  { %v8057_v37 = vpop.xlane.xlu0 %1260  ;;  %v8094_v43 = vsel %vm97_vm0, %v1494_v50, 2147483647 }
 0x255   :  { %1368 = vst.msk [vmem:[%s12264_s3 + $0x210] sm:$0xff] %vm1301_vm2, %v8057_v37  ;;  %12791 = vst [vmem:[#allocation93_spill] sm:$0xff] %v8112_v2  ;;  %v2024_v50 = vshra.s32 %v8094_v43, 16 }
 0x256   :  { %v8067_v34 = vpop.xlane.xlu1 %1263 }
 0x257   :  { %1369 = vst.msk [vmem:[%s12264_s3 + $0x218] sm:$0xff] %vm1301_vm2, %v8067_v34  ;;  %1982 = vmin.xlane.f32.xlu0 %v8064_v61  ;;  %v1495_v61 = vsel %vm1415_vm8, %v6748_v40, 1073741824  ;;  %v8136_v62 = vcvt.s32.f32 %v2024_v50  ;;  %vm1425_vm8 = vcmp.ge.f32.partialorder %v12804_v23, %v7779_v52  ;;  %v12809_v52 = vld [vmem:[#allocation33_spill] sm:$0xff] }
 0x258   :  { %v8081_v39 = vpop.xlane.xlu0 %1266  ;;  %v8118_v4 = vsel %vm97_vm0, %v1495_v61, 2147483647 }
 0x259   :  { %1370 = vst.msk [vmem:[%s12264_s3 + $0x220] sm:$0xff] %vm1301_vm2, %v8081_v39  ;;  %v2039_v61 = vshra.s32 %v8118_v4, 16 }
 0x25a   :  { %v8091_v32 = vpop.xlane.xlu1 %1269 }
 0x25b   :  { %1371 = vst.msk [vmem:[%s12264_s3 + $0x228] sm:$0xff] %vm1301_vm2, %v8091_v32  ;;  %1997 = vmin.xlane.f32.xlu0 %v8088_v54  ;;  %v1496_v54 = vsel %vm1416_vm9, %v6748_v40, 1073741824  ;;  %v8160_v24 = vcvt.s32.f32 %v2039_v61 }
 0x25c   :  { %v8105_v41 = vpop.xlane.xlu0 %1272 }
 0x25d   :  { %1372 = vst.msk [vmem:[%s12264_s3 + $0x230] sm:$0xff] %vm1301_vm2, %v8105_v41 }
 0x25e   :  { %v8115_v42 = vpop.xlane.xlu1 %1275 }
 0x25f   :  { %12792 = vst [vmem:[#allocation94_spill] sm:$0xff] %v8115_v42  ;;  %1373 = vst.msk [vmem:[%s12264_s3 + $0x238] sm:$0xff] %vm1301_vm2, %v8115_v42  ;;  %2012 = vmin.xlane.f32.xlu0 %v8112_v2  ;;  %v8142_v42 = vsel %vm97_vm0, %v1496_v54, 2147483647  ;;  %v1497_v2 = vsel %vm1417_vm10, %v6748_v40, 1073741824  ;;  %vm1426_vm10 = vcmp.ge.f32.partialorder %v12809_v52, %v7793_v14  ;;  %v12814_v14 = vld [vmem:[#allocation2_spill] sm:$0xff] }
 0x260   :  { %v8129_v63 = vpop.xlane.xlu0 %1278  ;;  %v2054_v54 = vshra.s32 %v8142_v42, 16  ;;  %v12815_v52 = vld [vmem:[#allocation43_spill] sm:$0xff] }
 0x261   :  { %12793 = vst [vmem:[#allocation95_spill] sm:$0xff] %v8129_v63  ;;  %1374 = vst.msk [vmem:[%s12264_s3 + $0x240] sm:$0xff] %vm1301_vm2, %v8129_v63  ;;  %v1498_v63 = vsel %vm1418_vm11, %v6748_v40, 1073741824 }
 0x262   :  { %v8139_v35 = vpop.xlane.xlu1 %1281  ;;  %v8184_v38 = vcvt.s32.f32 %v2054_v54 }
 0x263   :  { %12794 = vst [vmem:[#allocation96_spill] sm:$0xff] %v8139_v35  ;;  %1375 = vst.msk [vmem:[%s12264_s3 + $0x248] sm:$0xff] %vm1301_vm2, %v8139_v35  ;;  %2027 = vmin.xlane.f32.xlu0 %v8136_v62  ;;  %v8166_v35 = vsel %vm97_vm0, %v1497_v2, 2147483647 }
 0x264   :  { %v8153_v45 = vpop.xlane.xlu0 %1284  ;;  %v2069_v2 = vshra.s32 %v8166_v35, 16 }
 0x265   :  { %12795 = vst [vmem:[#allocation97_spill] sm:$0xff] %v8153_v45  ;;  %1376 = vst.msk [vmem:[%s12264_s3 + $0x250] sm:$0xff] %vm1301_vm2, %v8153_v45  ;;  %v1499_v45 = vsel %vm1419_vm12, %v6748_v40, 1073741824  ;;  %vm1427_vm12 = vcmp.ge.f32.partialorder %v12814_v14, %v7803_v22  ;;  %v12819_v22 = vld [vmem:[#allocation3_spill] sm:$0xff]  ;;  %v12820_v14 = vld [vmem:[#allocation45_spill] sm:$0xff] }
 0x266   :  { %v8163_v50 = vpop.xlane.xlu1 %1287 }
 0x267   :  { %12796 = vst [vmem:[#allocation98_spill] sm:$0xff] %v8163_v50  ;;  %1377 = vst.msk [vmem:[%s12264_s3 + $0x258] sm:$0xff] %vm1301_vm2, %v8163_v50  ;;  %2042 = vmin.xlane.f32.xlu0 %v8160_v24  ;;  %v8190_v50 = vsel %vm97_vm0, %v1498_v63, 2147483647  ;;  %v8209_v63 = vcvt.s32.f32 %v2069_v2  ;;  %v1558_v2 = vand.u32 65535, %v7359_v28 }
 0x268   :  { %v8177_v46 = vpop.xlane.xlu0 %1290  ;;  %12799 = vst [vmem:[#allocation101_spill] sm:$0xff] %v8190_v50  ;;  %v2084_v54 = vshra.s32 %v8190_v50, 16 }
 0x269   :  { %12797 = vst [vmem:[#allocation99_spill] sm:$0xff] %v8177_v46  ;;  %1378 = vst.msk [vmem:[%s12264_s3 + $0x260] sm:$0xff] %vm1301_vm2, %v8177_v46  ;;  %v8215_v46 = vsel %vm97_vm0, %v1499_v45, 2147483647  ;;  %v1560_v28 = vcvt.s32.f32 %v1558_v2  ;;  %v1503_v2 = vsel %vm1423_vm4, %v6748_v40, 1073741824 }
 0x26a   :  { %v8187_v61 = vpop.xlane.xlu1 %1293  ;;  %12801 = vst [vmem:[#allocation103_spill] sm:$0xff] %v8209_v63  ;;  %v8229_v45 = vcvt.s32.f32 %v2084_v54 }
 0x26b   :  { %12798 = vst [vmem:[#allocation100_spill] sm:$0xff] %v8187_v61  ;;  %1379 = vst.msk [vmem:[%s12264_s3 + $0x268] sm:$0xff] %vm1301_vm2, %v8187_v61  ;;  %2057 = vmin.xlane.f32.xlu0 %v8184_v38 }
 0x26c   :  { %v8201_v49 = vpop.xlane.xlu0 %1296 }
 0x26d   :  { %12800 = vst [vmem:[#allocation102_spill] sm:$0xff] %v8201_v49  ;;  %1380 = vst.msk [vmem:[%s12264_s3 + $0x270] sm:$0xff] %vm1301_vm2, %v8201_v49  ;;  %v2099_v49 = vshra.s32 %v8215_v46, 16 }
 0x26e   :  { %v8212_v61 = vpop.xlane.xlu1 %1299 }
 0x26f   :  { %12802 = vst [vmem:[#allocation104_spill] sm:$0xff] %v8212_v61  ;;  %1381 = vst.msk [vmem:[%s12264_s3 + $0x278] sm:$0xff] %vm1301_vm2, %v8212_v61  ;;  %2072 = vmin.xlane.f32.xlu0 %v8209_v63  ;;  %v8235_v61 = vsel %vm97_vm0, %v1500_v15, 2147483647  ;;  %v1501_v63 = vsel %vm1421_vm14, %v6748_v40, 1073741824  ;;  %vm1428_vm14 = vcmp.ge.f32.partialorder %v12819_v22, %v7817_v17  ;;  %v12824_v17 = vld [vmem:[#allocation4_spill] sm:$0xff] }
 0x270   :  { %v8226_v47 = vpop.xlane.xlu0 %1547  ;;  %v2114_v3 = vshra.s32 %v8235_v61, 16  ;;  %v8250_v15 = vsel %vm97_vm0, %v1501_v63, 2147483647  ;;  %v12825_v22 = vld [vmem:[#allocation47_spill] sm:$0xff] }
 0x271   :  { %vm1549_vm15 = vcmp.eq.f32.partialorder %v7373_v36, %v8226_v47  ;;  %v8244_v36 = vcvt.s32.f32 %v2099_v49  ;;  %v2129_v49 = vshra.s32 %v8250_v15, 16 }
 0x272   :  { %v1550_v50 = vsel %vm1549_vm15, %v1545_v8, inf }
 0x273   :  { %2087 = vmin.xlane.f32.xlu0 %v8229_v45  ;;  %1551 = vmin.xlane.f32.xlu1 %v1550_v50  ;;  %v1502_v50 = vsel %vm1422_vm1, %v6748_v40, 1073741824  ;;  %vm1429_vm1 = vcmp.ge.f32.partialorder %v12824_v17, %v7827_v26  ;;  %v12829_v26 = vld [vmem:[#allocation5_spill] sm:$0xff] }
 0x274   :  { %v8241_v53 = vpop.xlane.xlu0 %1562  ;;  %v8265_v8 = vsel %vm97_vm0, %v1502_v50, 2147483647  ;;  %v12805_v50 = vld [vmem:[#allocation39_spill] sm:$0xff]  ;;  %vm1430_vm4 = vcmp.ge.f32.partialorder %v12829_v26, %v7841_v9  ;;  %v12830_v17 = vld [vmem:[#allocation49_spill] sm:$0xff]  ;;  %v12834_v9 = vld [vmem:[#allocation6_spill] sm:$0xff] }
 0x275   :  { %vm1564_vm3 = vcmp.eq.f32.partialorder %v7396_v7, %v8241_v53  ;;  %v8259_v7 = vcvt.s32.f32 %v2114_v3  ;;  %v8280_v3 = vsel %vm97_vm0, %v1503_v2, 2147483647  ;;  %v12835_v26 = vld [vmem:[#allocation51_spill] sm:$0xff] }
 0x276   :  { %v1565_v54 = vsel %vm1564_vm3, %v1560_v28, inf  ;;  %v2144_v28 = vshra.s32 %v8265_v8, 16  ;;  %12803 = vst [vmem:[#allocation105_spill] sm:$0xff] %v8280_v3 }
 0x277   :  { %2102 = vmin.xlane.f32.xlu0 %v8244_v36  ;;  %1566 = vmin.xlane.f32.xlu1 %v1565_v54  ;;  %v1504_v54 = vsel %vm1424_vm6, %v6748_v40, 1073741824  ;;  %vm1431_vm6 = vcmp.ge.f32.partialorder %v12834_v9, %v7851_v19  ;;  %v12839_v19 = vld [vmem:[#allocation7_spill] sm:$0xff]  ;;  %v12840_v9 = vld [vmem:[#allocation53_spill] sm:$0xff] }
 0x278   :  { %v8256_v31 = vpop.xlane.xlu0 %1577  ;;  %v8295_v2 = vsel %vm97_vm0, %v1504_v54, 2147483647 }
 0x279   :  { %vm1579_vm5 = vcmp.eq.f32.partialorder %v7419_v16, %v8256_v31  ;;  %v8274_v16 = vcvt.s32.f32 %v2129_v49  ;;  %v2159_v49 = vshra.s32 %v8280_v3, 16  ;;  %12808 = vst [vmem:[#allocation39_spill] sm:$0xff] %v8295_v2  ;;  %v2174_v54 = vshra.s32 %v8295_v2, 16 }
 0x27a   :  { %v1580_v63 = vsel %vm1579_vm5, %v1575_v59, inf  ;;  %v1618_v59 = vand.u32 65535, %v12805_v50 }
 0x27b   :  { %2117 = vmin.xlane.f32.xlu0 %v8259_v7  ;;  %1581 = vmin.xlane.f32.xlu1 %v1580_v63  ;;  %v8304_v50 = vcvt.s32.f32 %v2159_v49 }
 0x27c   :  { %v8271_v57 = vpop.xlane.xlu0 %1592 }
 0x27d   :  { %vm1594_vm7 = vcmp.eq.f32.partialorder %v7442_v51, %v8271_v57  ;;  %v8289_v51 = vcvt.s32.f32 %v2144_v28  ;;  %v1620_v28 = vcvt.s32.f32 %v1618_v59  ;;  %12811 = vst [vmem:[#allocation40_spill] sm:$0xff] %v8304_v50 }
 0x27e   :  { %v1595_v60 = vsel %vm1594_vm7, %v1590_v30, inf  ;;  %v1505_v30 = vsel %vm1425_vm8, %v6748_v40, 1073741824  ;;  %vm1432_vm8 = vcmp.ge.f32.partialorder %v12839_v19, %v7865_v20  ;;  %v12844_v20 = vld [vmem:[#allocation8_spill] sm:$0xff]  ;;  %v12845_v19 = vld [vmem:[#allocation55_spill] sm:$0xff] }
 0x27f   :  { %2132 = vmin.xlane.f32.xlu0 %v8274_v16  ;;  %1596 = vmin.xlane.f32.xlu1 %v1595_v60  ;;  %12806 = vst [vmem:[#allocation32_spill] sm:$0xff] %v8289_v51  ;;  %v12810_v60 = vld [vmem:[#allocation41_spill] sm:$0xff]  ;;  %v8310_v3 = vsel %vm97_vm0, %v1505_v30, 2147483647 }
 0x280   :  { %v8286_v18 = vpop.xlane.xlu0 %1607  ;;  %v1633_v23 = vand.u32 65535, %v12810_v60  ;;  %12813 = vst [vmem:[#allocation33_spill] sm:$0xff] %v8310_v3  ;;  %v1648_v60 = vand.u32 65535, %v12815_v52  ;;  %v2189_v30 = vshra.s32 %v8310_v3, 16  ;;  %v1663_v52 = vand.u32 65535, %v12820_v14 }
 0x281   :  { %vm1609_vm9 = vcmp.eq.f32.partialorder %v12807_v55, %v8286_v18  ;;  %v1678_v14 = vand.u32 65535, %v12825_v22  ;;  %v1693_v22 = vand.u32 65535, %v12830_v17  ;;  %v1708_v17 = vand.u32 65535, %v12835_v26 }
 0x282   :  { %v1610_v63 = vsel %vm1609_vm9, %v1605_v5, inf  ;;  %v12812_v5 = vld [vmem:[#allocation42_spill] sm:$0xff]  ;;  %v1635_v49 = vcvt.s32.f32 %v1633_v23  ;;  %v1723_v26 = vand.u32 65535, %v12840_v9  ;;  %v1738_v9 = vand.u32 65535, %v12845_v19 }
 0x283   :  { %2147 = vmin.xlane.f32.xlu0 %v8289_v51  ;;  %1611 = vmin.xlane.f32.xlu1 %v1610_v63  ;;  %v1506_v63 = vsel %vm1426_vm10, %v6748_v40, 1073741824  ;;  %vm1433_vm10 = vcmp.ge.f32.partialorder %v12844_v20, %v7875_v10  ;;  %v12849_v10 = vld [vmem:[#allocation9_spill] sm:$0xff] }
 0x284   :  { %v8301_v6 = vpop.xlane.xlu0 %1622  ;;  %v8325_v51 = vsel %vm97_vm0, %v1506_v63, 2147483647  ;;  %v12850_v20 = vld [vmem:[#allocation57_spill] sm:$0xff] }
 0x285   :  { %vm1624_vm11 = vcmp.eq.f32.partialorder %v12812_v5, %v8301_v6  ;;  %v8319_v5 = vcvt.s32.f32 %v2174_v54  ;;  %12818 = vst [vmem:[#allocation42_spill] sm:$0xff] %v8325_v51  ;;  %v1650_v54 = vcvt.s32.f32 %v1648_v60  ;;  %v2204_v63 = vshra.s32 %v8325_v51, 16 }
 0x286   :  { %v1625_v55 = vsel %vm1624_vm11, %v1620_v28, inf  ;;  %v12817_v28 = vld [vmem:[#allocation44_spill] sm:$0xff]  ;;  %v1753_v19 = vand.u32 65535, %v12850_v20 }
 0x287   :  { %2162 = vmin.xlane.f32.xlu0 %v8304_v50  ;;  %1626 = vmin.xlane.f32.xlu1 %v1625_v55  ;;  %12816 = vst [vmem:[#allocation41_spill] sm:$0xff] %v8319_v5  ;;  %v1507_v55 = vsel %vm1427_vm12, %v6748_v40, 1073741824  ;;  %vm1434_vm12 = vcmp.ge.f32.partialorder %v12849_v10, %v7889_v12  ;;  %v12854_v12 = vld [vmem:[#allocation10_spill] sm:$0xff]  ;;  %v12855_v10 = vld [vmem:[#allocation59_spill] sm:$0xff] }
 0x288   :  { %v8316_v59 = vpop.xlane.xlu0 %1637  ;;  %v8340_v50 = vsel %vm97_vm0, %v1507_v55, 2147483647  ;;  %v1768_v20 = vand.u32 65535, %v12855_v10 }
 0x289   :  { %vm1639_vm13 = vcmp.eq.f32.partialorder %v12817_v28, %v8316_v59  ;;  %v8334_v28 = vcvt.s32.f32 %v2189_v30  ;;  %12823 = vst [vmem:[#allocation43_spill] sm:$0xff] %v8340_v50  ;;  %v1665_v30 = vcvt.s32.f32 %v1663_v52  ;;  %v2219_v55 = vshra.s32 %v8340_v50, 16 }
 0x28a   :  { %v1640_v2 = vsel %vm1639_vm13, %v1635_v49, inf  ;;  %v12822_v49 = vld [vmem:[#allocation46_spill] sm:$0xff] }
 0x28b   :  { %2177 = vmin.xlane.f32.xlu0 %v8319_v5  ;;  %1641 = vmin.xlane.f32.xlu1 %v1640_v2  ;;  %12821 = vst [vmem:[#allocation2_spill] sm:$0xff] %v8334_v28  ;;  %v1508_v2 = vsel %vm1428_vm14, %v6748_v40, 1073741824  ;;  %vm1435_vm14 = vcmp.ge.f32.partialorder %v12854_v12, %v7899_v27  ;;  %v12859_v27 = vld [vmem:[#allocation11_spill] sm:$0xff]  ;;  %v12860_v12 = vld [vmem:[#allocation61_spill] sm:$0xff] }
 0x28c   :  { %v8331_v23 = vpop.xlane.xlu0 %1652  ;;  %v8355_v5 = vsel %vm97_vm0, %v1508_v2, 2147483647  ;;  %v1783_v10 = vand.u32 65535, %v12860_v12 }
 0x28d   :  { %vm1654_vm15 = vcmp.eq.f32.partialorder %v12822_v49, %v8331_v23  ;;  %v8349_v49 = vcvt.s32.f32 %v2204_v63  ;;  %12828 = vst [vmem:[#allocation3_spill] sm:$0xff] %v8355_v5  ;;  %v1680_v63 = vcvt.s32.f32 %v1678_v14  ;;  %v2234_v2 = vshra.s32 %v8355_v5, 16 }
 0x28e   :  { %v1655_v3 = vsel %vm1654_vm15, %v1650_v54, inf  ;;  %v12827_v54 = vld [vmem:[#allocation48_spill] sm:$0xff] }
 0x28f   :  { %2192 = vmin.xlane.f32.xlu0 %v8334_v28  ;;  %1656 = vmin.xlane.f32.xlu1 %v1655_v3  ;;  %12826 = vst [vmem:[#allocation44_spill] sm:$0xff] %v8349_v49  ;;  %v1509_v3 = vsel %vm1429_vm1, %v6748_v40, 1073741824  ;;  %vm1436_vm1 = vcmp.ge.f32.partialorder %v12859_v27, %v7913_v25  ;;  %v12864_v25 = vld [vmem:[#allocation12_spill] sm:$0xff]  ;;  %v12865_v27 = vld [vmem:[#allocation63_spill] sm:$0xff] }
 0x290   :  { %v8346_v60 = vpop.xlane.xlu0 %1667  ;;  %v8370_v28 = vsel %vm97_vm0, %v1509_v3, 2147483647  ;;  %v1798_v12 = vand.u32 65535, %v12865_v27 }
 0x291   :  { %vm1669_vm3 = vcmp.eq.f32.partialorder %v12827_v54, %v8346_v60  ;;  %v8364_v54 = vcvt.s32.f32 %v2219_v55  ;;  %12833 = vst [vmem:[#allocation46_spill] sm:$0xff] %v8370_v28  ;;  %v1695_v55 = vcvt.s32.f32 %v1693_v22  ;;  %v2249_v3 = vshra.s32 %v8370_v28, 16 }
 0x292   :  { %v1670_v51 = vsel %vm1669_vm3, %v1665_v30, inf  ;;  %v12832_v30 = vld [vmem:[#allocation50_spill] sm:$0xff] }
 0x293   :  { %2207 = vmin.xlane.f32.xlu0 %v8349_v49  ;;  %1671 = vmin.xlane.f32.xlu1 %v1670_v51  ;;  %12831 = vst [vmem:[#allocation45_spill] sm:$0xff] %v8364_v54  ;;  %v1510_v51 = vsel %vm1430_vm4, %v6748_v40, 1073741824  ;;  %vm1437_vm4 = vcmp.ge.f32.partialorder %v12864_v25, %v7923_v13  ;;  %v12869_v13 = vld [vmem:[#allocation13_spill] sm:$0xff] }
 0x294   :  { %v8361_v52 = vpop.xlane.xlu0 %1682  ;;  %v8385_v49 = vsel %vm97_vm0, %v1510_v51, 2147483647  ;;  %v12870_v25 = vld [vmem:[#allocation65_spill] sm:$0xff] }
 0x295   :  { %vm1684_vm5 = vcmp.eq.f32.partialorder %v12832_v30, %v8361_v52  ;;  %v8379_v30 = vcvt.s32.f32 %v2234_v2  ;;  %12838 = vst [vmem:[#allocation47_spill] sm:$0xff] %v8385_v49  ;;  %v1710_v2 = vcvt.s32.f32 %v1708_v17  ;;  %v2264_v51 = vshra.s32 %v8385_v49, 16 }
 0x296   :  { %v1685_v50 = vsel %vm1684_vm5, %v1680_v63, inf  ;;  %v12837_v63 = vld [vmem:[#allocation52_spill] sm:$0xff]  ;;  %v1813_v27 = vand.u32 65535, %v12870_v25 }
 0x297   :  { %2222 = vmin.xlane.f32.xlu0 %v8364_v54  ;;  %1686 = vmin.xlane.f32.xlu1 %v1685_v50  ;;  %12836 = vst [vmem:[#allocation4_spill] sm:$0xff] %v8379_v30  ;;  %v1511_v50 = vsel %vm1431_vm6, %v6748_v40, 1073741824  ;;  %vm1438_vm6 = vcmp.ge.f32.partialorder %v12869_v13, %v7937_v1  ;;  %v12874_v1 = vld [vmem:[#allocation14_spill] sm:$0xff]  ;;  %v12875_v13 = vld [vmem:[#allocation67_spill] sm:$0xff] }
 0x298   :  { %v8376_v14 = vpop.xlane.xlu0 %1697  ;;  %v8400_v54 = vsel %vm97_vm0, %v1511_v50, 2147483647  ;;  %v1828_v25 = vand.u32 65535, %v12875_v13 }
 0x299   :  { %vm1699_vm7 = vcmp.eq.f32.partialorder %v12837_v63, %v8376_v14  ;;  %v8394_v63 = vcvt.s32.f32 %v2249_v3  ;;  %12843 = vst [vmem:[#allocation5_spill] sm:$0xff] %v8400_v54  ;;  %v1725_v3 = vcvt.s32.f32 %v1723_v26  ;;  %v2279_v50 = vshra.s32 %v8400_v54, 16 }
 0x29a   :  { %v1700_v5 = vsel %vm1699_vm7, %v1695_v55, inf  ;;  %v12842_v55 = vld [vmem:[#allocation54_spill] sm:$0xff] }
 0x29b   :  { %2237 = vmin.xlane.f32.xlu0 %v8379_v30  ;;  %1701 = vmin.xlane.f32.xlu1 %v1700_v5  ;;  %12841 = vst [vmem:[#allocation48_spill] sm:$0xff] %v8394_v63  ;;  %v1512_v5 = vsel %vm1432_vm8, %v6748_v40, 1073741824  ;;  %vm1439_vm8 = vcmp.ge.f32.partialorder %v12874_v1, %v7947_v44  ;;  %v12879_v44 = vld [vmem:[#allocation15_spill] sm:$0xff]  ;;  %v12880_v1 = vld [vmem:[#allocation69_spill] sm:$0xff] }
 0x29c   :  { %v8391_v22 = vpop.xlane.xlu0 %1712  ;;  %v8415_v30 = vsel %vm97_vm0, %v1512_v5, 2147483647  ;;  %v1843_v13 = vand.u32 65535, %v12880_v1 }
 0x29d   :  { %vm1714_vm9 = vcmp.eq.f32.partialorder %v12842_v55, %v8391_v22  ;;  %v8409_v55 = vcvt.s32.f32 %v2264_v51  ;;  %12848 = vst [vmem:[#allocation50_spill] sm:$0xff] %v8415_v30  ;;  %v1740_v51 = vcvt.s32.f32 %v1738_v9  ;;  %v2294_v5 = vshra.s32 %v8415_v30, 16 }
 0x29e   :  { %v1715_v28 = vsel %vm1714_vm9, %v1710_v2, inf  ;;  %v12847_v2 = vld [vmem:[#allocation56_spill] sm:$0xff] }
 0x29f   :  { %2252 = vmin.xlane.f32.xlu0 %v8394_v63  ;;  %1716 = vmin.xlane.f32.xlu1 %v1715_v28  ;;  %12846 = vst [vmem:[#allocation49_spill] sm:$0xff] %v8409_v55  ;;  %v1513_v28 = vsel %vm1433_vm10, %v6748_v40, 1073741824  ;;  %vm1440_vm10 = vcmp.ge.f32.partialorder %v12879_v44, %v7961_v29  ;;  %v12884_v29 = vld [vmem:[#allocation16_spill] sm:$0xff]  ;;  %v12885_v44 = vld [vmem:[#allocation71_spill] sm:$0xff] }
 0x2a0   :  { %v8406_v17 = vpop.xlane.xlu0 %1727  ;;  %v8430_v63 = vsel %vm97_vm0, %v1513_v28, 2147483647  ;;  %v1858_v1 = vand.u32 65535, %v12885_v44 }
 0x2a1   :  { %vm1729_vm11 = vcmp.eq.f32.partialorder %v12847_v2, %v8406_v17  ;;  %v8424_v2 = vcvt.s32.f32 %v2279_v50  ;;  %12853 = vst [vmem:[#allocation51_spill] sm:$0xff] %v8430_v63  ;;  %v1755_v50 = vcvt.s32.f32 %v1753_v19  ;;  %v2309_v28 = vshra.s32 %v8430_v63, 16 }
 0x2a2   :  { %v1730_v49 = vsel %vm1729_vm11, %v1725_v3, inf  ;;  %v12852_v3 = vld [vmem:[#allocation58_spill] sm:$0xff] }
 0x2a3   :  { %2267 = vmin.xlane.f32.xlu0 %v8409_v55  ;;  %1731 = vmin.xlane.f32.xlu1 %v1730_v49  ;;  %12851 = vst [vmem:[#allocation6_spill] sm:$0xff] %v8424_v2  ;;  %v1514_v49 = vsel %vm1434_vm12, %v6748_v40, 1073741824  ;;  %vm1441_vm12 = vcmp.ge.f32.partialorder %v12884_v29, %v7971_v56  ;;  %v12889_v56 = vld [vmem:[#allocation17_spill] sm:$0xff] }
 0x2a4   :  { %v8421_v26 = vpop.xlane.xlu0 %1742  ;;  %v8445_v55 = vsel %vm97_vm0, %v1514_v49, 2147483647  ;;  %v12890_v29 = vld [vmem:[#allocation73_spill] sm:$0xff] }
 0x2a5   :  { %vm1744_vm13 = vcmp.eq.f32.partialorder %v12852_v3, %v8421_v26  ;;  %v8439_v3 = vcvt.s32.f32 %v2294_v5  ;;  %12858 = vst [vmem:[#allocation7_spill] sm:$0xff] %v8445_v55  ;;  %v1770_v5 = vcvt.s32.f32 %v1768_v20  ;;  %v2324_v49 = vshra.s32 %v8445_v55, 16 }
 0x2a6   :  { %v1745_v54 = vsel %vm1744_vm13, %v1740_v51, inf  ;;  %v12857_v51 = vld [vmem:[#allocation60_spill] sm:$0xff]  ;;  %v1873_v44 = vand.u32 65535, %v12890_v29 }
 0x2a7   :  { %2282 = vmin.xlane.f32.xlu0 %v8424_v2  ;;  %1746 = vmin.xlane.f32.xlu1 %v1745_v54  ;;  %12856 = vst [vmem:[#allocation52_spill] sm:$0xff] %v8439_v3  ;;  %v1515_v54 = vsel %vm1435_vm14, %v6748_v40, 1073741824  ;;  %vm1442_vm14 = vcmp.ge.f32.partialorder %v12889_v56, %v7985_v21  ;;  %v12894_v21 = vld [vmem:[#allocation18_spill] sm:$0xff]  ;;  %v12895_v56 = vld [vmem:[#allocation75_spill] sm:$0xff] }
 0x2a8   :  { %v8436_v9 = vpop.xlane.xlu0 %1757  ;;  %v8460_v2 = vsel %vm97_vm0, %v1515_v54, 2147483647  ;;  %v1888_v29 = vand.u32 65535, %v12895_v56 }
 0x2a9   :  { %vm1759_vm15 = vcmp.eq.f32.partialorder %v12857_v51, %v8436_v9  ;;  %v8454_v51 = vcvt.s32.f32 %v2309_v28  ;;  %12863 = vst [vmem:[#allocation54_spill] sm:$0xff] %v8460_v2  ;;  %v1785_v28 = vcvt.s32.f32 %v1783_v10  ;;  %v2339_v54 = vshra.s32 %v8460_v2, 16 }
 0x2aa   :  { %v1760_v30 = vsel %vm1759_vm15, %v1755_v50, inf  ;;  %v12862_v50 = vld [vmem:[#allocation62_spill] sm:$0xff] }
 0x2ab   :  { %2297 = vmin.xlane.f32.xlu0 %v8439_v3  ;;  %1761 = vmin.xlane.f32.xlu1 %v1760_v30  ;;  %12861 = vst [vmem:[#allocation53_spill] sm:$0xff] %v8454_v51  ;;  %v1516_v30 = vsel %vm1436_vm1, %v6748_v40, 1073741824  ;;  %vm1443_vm1 = vcmp.ge.f32.partialorder %v12894_v21, %v7995_v11  ;;  %v12899_v11 = vld [vmem:[#allocation19_spill] sm:$0xff]  ;;  %v12900_v21 = vld [vmem:[#allocation77_spill] sm:$0xff] }
 0x2ac   :  { %v8451_v19 = vpop.xlane.xlu0 %1772  ;;  %v8475_v3 = vsel %vm97_vm0, %v1516_v30, 2147483647  ;;  %v1903_v56 = vand.u32 65535, %v12900_v21 }
 0x2ad   :  { %vm1774_vm3 = vcmp.eq.f32.partialorder %v12862_v50, %v8451_v19  ;;  %v8469_v50 = vcvt.s32.f32 %v2324_v49  ;;  %12868 = vst [vmem:[#allocation55_spill] sm:$0xff] %v8475_v3  ;;  %v1800_v49 = vcvt.s32.f32 %v1798_v12  ;;  %v2354_v30 = vshra.s32 %v8475_v3, 16 }
 0x2ae   :  { %v1775_v63 = vsel %vm1774_vm3, %v1770_v5, inf  ;;  %v12867_v5 = vld [vmem:[#allocation64_spill] sm:$0xff] }
 0x2af   :  { %2312 = vmin.xlane.f32.xlu0 %v8454_v51  ;;  %1776 = vmin.xlane.f32.xlu1 %v1775_v63  ;;  %12866 = vst [vmem:[#allocation8_spill] sm:$0xff] %v8469_v50  ;;  %v1517_v63 = vsel %vm1437_vm4, %v6748_v40, 1073741824  ;;  %vm1444_vm4 = vcmp.ge.f32.partialorder %v12899_v11, %v8009_v33  ;;  %v12904_v33 = vld [vmem:[#allocation34_spill] sm:$0xff]  ;;  %v12905_v11 = vld [vmem:[#allocation79_spill] sm:$0xff] }
 0x2b0   :  { %v8466_v20 = vpop.xlane.xlu0 %1787  ;;  %v8490_v51 = vsel %vm97_vm0, %v1517_v63, 2147483647  ;;  %v1918_v21 = vand.u32 65535, %v12905_v11 }
 0x2b1   :  { %vm1789_vm5 = vcmp.eq.f32.partialorder %v12867_v5, %v8466_v20  ;;  %v8484_v5 = vcvt.s32.f32 %v2339_v54  ;;  %12873 = vst [vmem:[#allocation9_spill] sm:$0xff] %v8490_v51  ;;  %v1815_v54 = vcvt.s32.f32 %v1813_v27  ;;  %v2369_v63 = vshra.s32 %v8490_v51, 16 }
 0x2b2   :  { %v1790_v55 = vsel %vm1789_vm5, %v1785_v28, inf  ;;  %v12872_v28 = vld [vmem:[#allocation66_spill] sm:$0xff] }
 0x2b3   :  { %2327 = vmin.xlane.f32.xlu0 %v8469_v50  ;;  %1791 = vmin.xlane.f32.xlu1 %v1790_v55  ;;  %12871 = vst [vmem:[#allocation56_spill] sm:$0xff] %v8484_v5  ;;  %v1518_v55 = vsel %vm1438_vm6, %v6748_v40, 1073741824  ;;  %vm1445_vm6 = vcmp.ge.f32.partialorder %v12904_v33, %v8019_v58  ;;  %v12909_v58 = vld [vmem:[#allocation35_spill] sm:$0xff]  ;;  %v12910_v33 = vld [vmem:[#allocation81_spill] sm:$0xff] }
 0x2b4   :  { %v8481_v10 = vpop.xlane.xlu0 %1802  ;;  %v8505_v50 = vsel %vm97_vm0, %v1518_v55, 2147483647  ;;  %v1933_v11 = vand.u32 65535, %v12910_v33 }
 0x2b5   :  { %vm1804_vm7 = vcmp.eq.f32.partialorder %v12872_v28, %v8481_v10  ;;  %v8499_v28 = vcvt.s32.f32 %v2354_v30  ;;  %12878 = vst [vmem:[#allocation58_spill] sm:$0xff] %v8505_v50  ;;  %v1830_v30 = vcvt.s32.f32 %v1828_v25  ;;  %v2384_v55 = vshra.s32 %v8505_v50, 16 }
 0x2b6   :  { %v1805_v2 = vsel %vm1804_vm7, %v1800_v49, inf  ;;  %v12877_v49 = vld [vmem:[#allocation68_spill] sm:$0xff] }
 0x2b7   :  { %2342 = vmin.xlane.f32.xlu0 %v8484_v5  ;;  %1806 = vmin.xlane.f32.xlu1 %v1805_v2  ;;  %12876 = vst [vmem:[#allocation57_spill] sm:$0xff] %v8499_v28  ;;  %v1519_v2 = vsel %vm1439_vm8, %v6748_v40, 1073741824  ;;  %vm1446_vm8 = vcmp.ge.f32.partialorder %v12909_v58, %v8033_v0  ;;  %v12914_v0 = vld [vmem:[#allocation20_spill] sm:$0xff]  ;;  %v12915_v58 = vld [vmem:[#allocation83_spill] sm:$0xff] }
 0x2b8   :  { %v8496_v12 = vpop.xlane.xlu0 %1817  ;;  %v8520_v5 = vsel %vm97_vm0, %v1519_v2, 2147483647  ;;  %v1948_v33 = vand.u32 65535, %v12915_v58 }
 0x2b9   :  { %vm1819_vm9 = vcmp.eq.f32.partialorder %v12877_v49, %v8496_v12  ;;  %v8514_v49 = vcvt.s32.f32 %v2369_v63  ;;  %12883 = vst [vmem:[#allocation59_spill] sm:$0xff] %v8520_v5  ;;  %v1845_v63 = vcvt.s32.f32 %v1843_v13  ;;  %v2399_v2 = vshra.s32 %v8520_v5, 16 }
 0x2ba   :  { %v1820_v3 = vsel %vm1819_vm9, %v1815_v54, inf  ;;  %v12882_v54 = vld [vmem:[#allocation70_spill] sm:$0xff] }
 0x2bb   :  { %2357 = vmin.xlane.f32.xlu0 %v8499_v28  ;;  %1821 = vmin.xlane.f32.xlu1 %v1820_v3  ;;  %12881 = vst [vmem:[#allocation10_spill] sm:$0xff] %v8514_v49  ;;  %v1520_v3 = vsel %vm1440_vm10, %v6748_v40, 1073741824  ;;  %vm1447_vm10 = vcmp.ge.f32.partialorder %v12914_v0, %v8043_v48  ;;  %v12919_v48 = vld [vmem:[#allocation21_spill] sm:$0xff] }
 0x2bc   :  { %v8511_v27 = vpop.xlane.xlu0 %1832  ;;  %v8535_v28 = vsel %vm97_vm0, %v1520_v3, 2147483647  ;;  %v12920_v0 = vld [vmem:[#allocation85_spill] sm:$0xff] }
 0x2bd   :  { %vm1834_vm11 = vcmp.eq.f32.partialorder %v12882_v54, %v8511_v27  ;;  %v8529_v54 = vcvt.s32.f32 %v2384_v55  ;;  %12888 = vst [vmem:[#allocation11_spill] sm:$0xff] %v8535_v28  ;;  %v1860_v55 = vcvt.s32.f32 %v1858_v1  ;;  %v2414_v3 = vshra.s32 %v8535_v28, 16 }
 0x2be   :  { %v1835_v51 = vsel %vm1834_vm11, %v1830_v30, inf  ;;  %v12887_v30 = vld [vmem:[#allocation72_spill] sm:$0xff]  ;;  %v1963_v58 = vand.u32 65535, %v12920_v0 }
 0x2bf   :  { %2372 = vmin.xlane.f32.xlu0 %v8514_v49  ;;  %1836 = vmin.xlane.f32.xlu1 %v1835_v51  ;;  %12886 = vst [vmem:[#allocation60_spill] sm:$0xff] %v8529_v54  ;;  %v1521_v51 = vsel %vm1441_vm12, %v6748_v40, 1073741824  ;;  %vm1448_vm12 = vcmp.ge.f32.partialorder %v12919_v48, %v8057_v37  ;;  %v12924_v37 = vld [vmem:[#allocation22_spill] sm:$0xff]  ;;  %v12925_v48 = vld [vmem:[#allocation87_spill] sm:$0xff] }
 0x2c0   :  { %v8526_v25 = vpop.xlane.xlu0 %1847  ;;  %v8550_v49 = vsel %vm97_vm0, %v1521_v51, 2147483647  ;;  %v1978_v0 = vand.u32 65535, %v12925_v48 }
 0x2c1   :  { %vm1849_vm13 = vcmp.eq.f32.partialorder %v12887_v30, %v8526_v25  ;;  %v8544_v30 = vcvt.s32.f32 %v2399_v2  ;;  %12893 = vst [vmem:[#allocation62_spill] sm:$0xff] %v8550_v49  ;;  %v1875_v2 = vcvt.s32.f32 %v1873_v44  ;;  %v2429_v51 = vshra.s32 %v8550_v49, 16 }
 0x2c2   :  { %v1850_v50 = vsel %vm1849_vm13, %v1845_v63, inf  ;;  %v12892_v63 = vld [vmem:[#allocation74_spill] sm:$0xff] }
 0x2c3   :  { %2387 = vmin.xlane.f32.xlu0 %v8529_v54  ;;  %1851 = vmin.xlane.f32.xlu1 %v1850_v50  ;;  %12891 = vst [vmem:[#allocation61_spill] sm:$0xff] %v8544_v30  ;;  %v1522_v50 = vsel %vm1442_vm14, %v6748_v40, 1073741824  ;;  %vm1449_vm14 = vcmp.ge.f32.partialorder %v12924_v37, %v8067_v34  ;;  %v12929_v34 = vld [vmem:[#allocation23_spill] sm:$0xff]  ;;  %v12930_v37 = vld [vmem:[#allocation89_spill] sm:$0xff] }
 0x2c4   :  { %v8541_v13 = vpop.xlane.xlu0 %1862  ;;  %v8565_v54 = vsel %vm97_vm0, %v1522_v50, 2147483647  ;;  %v1993_v48 = vand.u32 65535, %v12930_v37 }
 0x2c5   :  { %vm1864_vm15 = vcmp.eq.f32.partialorder %v12892_v63, %v8541_v13  ;;  %v8559_v63 = vcvt.s32.f32 %v2414_v3  ;;  %12898 = vst [vmem:[#allocation63_spill] sm:$0xff] %v8565_v54  ;;  %v1890_v3 = vcvt.s32.f32 %v1888_v29  ;;  %v2444_v50 = vshra.s32 %v8565_v54, 16 }
 0x2c6   :  { %v1865_v5 = vsel %vm1864_vm15, %v1860_v55, inf  ;;  %v12897_v55 = vld [vmem:[#allocation76_spill] sm:$0xff] }
 0x2c7   :  { %2402 = vmin.xlane.f32.xlu0 %v8544_v30  ;;  %1866 = vmin.xlane.f32.xlu1 %v1865_v5  ;;  %12896 = vst [vmem:[#allocation12_spill] sm:$0xff] %v8559_v63  ;;  %v1523_v5 = vsel %vm1443_vm1, %v6748_v40, 1073741824  ;;  %vm1450_vm1 = vcmp.ge.f32.partialorder %v12929_v34, %v8081_v39  ;;  %v12933_v39 = vld [vmem:[#allocation36_spill] sm:$0xff]  ;;  %v12934_v34 = vld [vmem:[#allocation91_spill] sm:$0xff] }
 0x2c8   :  { %v8556_v1 = vpop.xlane.xlu0 %1877  ;;  %v8580_v30 = vsel %vm97_vm0, %v1523_v5, 2147483647  ;;  %v2008_v37 = vand.u32 65535, %v12934_v34 }
 0x2c9   :  { %vm1879_vm3 = vcmp.eq.f32.partialorder %v12897_v55, %v8556_v1  ;;  %v8574_v55 = vcvt.s32.f32 %v2429_v51  ;;  %12903 = vst [vmem:[#allocation13_spill] sm:$0xff] %v8580_v30  ;;  %v1905_v51 = vcvt.s32.f32 %v1903_v56  ;;  %v2459_v5 = vshra.s32 %v8580_v30, 16 }
 0x2ca   :  { %v1880_v28 = vsel %vm1879_vm3, %v1875_v2, inf  ;;  %v12902_v2 = vld [vmem:[#allocation78_spill] sm:$0xff] }
 0x2cb   :  { %2417 = vmin.xlane.f32.xlu0 %v8559_v63  ;;  %1881 = vmin.xlane.f32.xlu1 %v1880_v28  ;;  %12901 = vst [vmem:[#allocation64_spill] sm:$0xff] %v8574_v55  ;;  %v1524_v28 = vsel %vm1444_vm4, %v6748_v40, 1073741824  ;;  %vm1451_vm4 = vcmp.ge.f32.partialorder %v12933_v39, %v8091_v32  ;;  %v12937_v32 = vld [vmem:[#allocation24_spill] sm:$0xff]  ;;  %v2023_v39 = vand.u32 65535, %v8094_v43 }
 0x2cc   :  { %v8571_v44 = vpop.xlane.xlu0 %1892  ;;  %v8595_v63 = vsel %vm97_vm0, %v1524_v28, 2147483647 }
 0x2cd   :  { %vm1894_vm5 = vcmp.eq.f32.partialorder %v12902_v2, %v8571_v44  ;;  %v8589_v2 = vcvt.s32.f32 %v2444_v50  ;;  %12908 = vst [vmem:[#allocation66_spill] sm:$0xff] %v8595_v63  ;;  %v1920_v50 = vcvt.s32.f32 %v1918_v21  ;;  %v2474_v28 = vshra.s32 %v8595_v63, 16 }
 0x2ce   :  { %v1895_v49 = vsel %vm1894_vm5, %v1890_v3, inf  ;;  %v12907_v3 = vld [vmem:[#allocation80_spill] sm:$0xff] }
 0x2cf   :  { %2432 = vmin.xlane.f32.xlu0 %v8574_v55  ;;  %1896 = vmin.xlane.f32.xlu1 %v1895_v49  ;;  %12906 = vst [vmem:[#allocation65_spill] sm:$0xff] %v8589_v2  ;;  %v1525_v49 = vsel %vm1445_vm6, %v6748_v40, 1073741824  ;;  %vm1452_vm6 = vcmp.ge.f32.partialorder %v12937_v32, %v8105_v41  ;;  %v12941_v41 = vld [vmem:[#allocation25_spill] sm:$0xff] }
 0x2d0   :  { %v8586_v29 = vpop.xlane.xlu0 %1907  ;;  %v8610_v55 = vsel %vm97_vm0, %v1525_v49, 2147483647 }
 0x2d1   :  { %vm1909_vm7 = vcmp.eq.f32.partialorder %v12907_v3, %v8586_v29  ;;  %v8604_v3 = vcvt.s32.f32 %v2459_v5  ;;  %12913 = vst [vmem:[#allocation67_spill] sm:$0xff] %v8610_v55  ;;  %v1935_v5 = vcvt.s32.f32 %v1933_v11  ;;  %v2489_v49 = vshra.s32 %v8610_v55, 16 }
 0x2d2   :  { %v1910_v54 = vsel %vm1909_vm7, %v1905_v51, inf  ;;  %v12912_v51 = vld [vmem:[#allocation82_spill] sm:$0xff] }
 0x2d3   :  { %2447 = vmin.xlane.f32.xlu0 %v8589_v2  ;;  %1911 = vmin.xlane.f32.xlu1 %v1910_v54  ;;  %12911 = vst [vmem:[#allocation14_spill] sm:$0xff] %v8604_v3  ;;  %v1526_v54 = vsel %vm1446_vm8, %v6748_v40, 1073741824 }
 0x2d4   :  { %v8601_v56 = vpop.xlane.xlu0 %1922  ;;  %v8625_v2 = vsel %vm97_vm0, %v1526_v54, 2147483647 }
 0x2d5   :  { %vm1924_vm9 = vcmp.eq.f32.partialorder %v12912_v51, %v8601_v56  ;;  %v8619_v51 = vcvt.s32.f32 %v2474_v28  ;;  %12918 = vst [vmem:[#allocation15_spill] sm:$0xff] %v8625_v2  ;;  %v1950_v28 = vcvt.s32.f32 %v1948_v33  ;;  %v2504_v54 = vshra.s32 %v8625_v2, 16 }
 0x2d6   :  { %v1925_v30 = vsel %vm1924_vm9, %v1920_v50, inf  ;;  %v12917_v50 = vld [vmem:[#allocation84_spill] sm:$0xff] }
 0x2d7   :  { %2462 = vmin.xlane.f32.xlu0 %v8604_v3  ;;  %1926 = vmin.xlane.f32.xlu1 %v1925_v30  ;;  %12916 = vst [vmem:[#allocation68_spill] sm:$0xff] %v8619_v51  ;;  %v1527_v30 = vsel %vm1447_vm10, %v6748_v40, 1073741824 }
 0x2d8   :  { %v8616_v21 = vpop.xlane.xlu0 %1937  ;;  %v8640_v3 = vsel %vm97_vm0, %v1527_v30, 2147483647 }
 0x2d9   :  { %vm1939_vm11 = vcmp.eq.f32.partialorder %v12917_v50, %v8616_v21  ;;  %v8634_v50 = vcvt.s32.f32 %v2489_v49  ;;  %12923 = vst [vmem:[#allocation70_spill] sm:$0xff] %v8640_v3  ;;  %v1965_v49 = vcvt.s32.f32 %v1963_v58  ;;  %v2519_v30 = vshra.s32 %v8640_v3, 16 }
 0x2da   :  { %v1940_v63 = vsel %vm1939_vm11, %v1935_v5, inf  ;;  %v12922_v5 = vld [vmem:[#allocation86_spill] sm:$0xff] }
 0x2db   :  { %2477 = vmin.xlane.f32.xlu0 %v8619_v51  ;;  %1941 = vmin.xlane.f32.xlu1 %v1940_v63  ;;  %12921 = vst [vmem:[#allocation69_spill] sm:$0xff] %v8634_v50  ;;  %v1528_v63 = vsel %vm1448_vm12, %v6748_v40, 1073741824 }
 0x2dc   :  { %v8631_v11 = vpop.xlane.xlu0 %1952  ;;  %v8655_v51 = vsel %vm97_vm0, %v1528_v63, 2147483647 }
 0x2dd   :  { %vm1954_vm13 = vcmp.eq.f32.partialorder %v12922_v5, %v8631_v11  ;;  %v8649_v5 = vcvt.s32.f32 %v2504_v54  ;;  %12928 = vst [vmem:[#allocation71_spill] sm:$0xff] %v8655_v51  ;;  %v1980_v54 = vcvt.s32.f32 %v1978_v0  ;;  %v2534_v63 = vshra.s32 %v8655_v51, 16 }
 0x2de   :  { %v1955_v55 = vsel %vm1954_vm13, %v1950_v28, inf  ;;  %v12927_v28 = vld [vmem:[#allocation88_spill] sm:$0xff] }
 0x2df   :  { %2492 = vmin.xlane.f32.xlu0 %v8634_v50  ;;  %1956 = vmin.xlane.f32.xlu1 %v1955_v55  ;;  %12926 = vst [vmem:[#allocation16_spill] sm:$0xff] %v8649_v5  ;;  %v1529_v55 = vsel %vm1449_vm14, %v6748_v40, 1073741824 }
 0x2e0   :  { %v8646_v33 = vpop.xlane.xlu0 %1967  ;;  %v8670_v50 = vsel %vm97_vm0, %v1529_v55, 2147483647 }
 0x2e1   :  { %vm1969_vm15 = vcmp.eq.f32.partialorder %v12927_v28, %v8646_v33  ;;  %v8664_v28 = vcvt.s32.f32 %v2519_v30  ;;  %12932 = vst [vmem:[#allocation72_spill] sm:$0xff] %v8670_v50  ;;  %v1995_v30 = vcvt.s32.f32 %v1993_v48  ;;  %v2549_v55 = vshra.s32 %v8670_v50, 16 }
 0x2e2   :  { %v1970_v2 = vsel %vm1969_vm15, %v1965_v49, inf  ;;  %v12931_v49 = vld [vmem:[#allocation90_spill] sm:$0xff] }
 0x2e3   :  { %2507 = vmin.xlane.f32.xlu0 %v8649_v5  ;;  %1971 = vmin.xlane.f32.xlu1 %v1970_v2  ;;  %v1530_v2 = vsel %vm1450_vm1, %v6748_v40, 1073741824  ;;  %v8694_v34 = vcvt.s32.f32 %v2549_v55  ;;  %v2038_v55 = vand.u32 65535, %v8118_v4 }
 0x2e4   :  { %v8661_v58 = vpop.xlane.xlu0 %1982  ;;  %v8685_v5 = vsel %vm97_vm0, %v1530_v2, 2147483647 }
 0x2e5   :  { %vm1984_vm3 = vcmp.eq.f32.partialorder %v12931_v49, %v8661_v58  ;;  %v8679_v49 = vcvt.s32.f32 %v2534_v63  ;;  %v2010_v63 = vcvt.s32.f32 %v2008_v37  ;;  %v2564_v2 = vshra.s32 %v8685_v5, 16 }
 0x2e6   :  { %v1985_v3 = vsel %vm1984_vm3, %v1980_v54, inf  ;;  %v12936_v54 = vld [vmem:[#allocation92_spill] sm:$0xff]  ;;  %v2025_v37 = vcvt.s32.f32 %v2023_v39  ;;  %v2040_v39 = vcvt.s32.f32 %v2038_v55 }
 0x2e7   :  { %2522 = vmin.xlane.f32.xlu0 %v8664_v28  ;;  %1986 = vmin.xlane.f32.xlu1 %v1985_v3  ;;  %12935 = vst [vmem:[#allocation17_spill] sm:$0xff] %v8679_v49  ;;  %v1531_v3 = vsel %vm1451_vm4, %v6748_v40, 1073741824  ;;  %v8709_v32 = vcvt.s32.f32 %v2564_v2  ;;  %v2053_v2 = vand.u32 65535, %v8142_v42 }
 0x2e8   :  { %v8676_v0 = vpop.xlane.xlu0 %1997  ;;  %v8700_v50 = vsel %vm97_vm0, %v1531_v3, 2147483647 }
 0x2e9   :  { %vm1999_vm5 = vcmp.eq.f32.partialorder %v12936_v54, %v8676_v0  ;;  %12939 = vst [vmem:[#allocation73_spill] sm:$0xff] %v8700_v50  ;;  %12942 = vst [vmem:[#allocation74_spill] sm:$0xff] %v8709_v32  ;;  %v2579_v3 = vshra.s32 %v8700_v50, 16  ;;  %v2055_v55 = vcvt.s32.f32 %v2053_v2  ;;  %v12955_v2 = vld [vmem:[#allocation101_spill] sm:$0xff] }
 0x2ea   :  { %v2000_v51 = vsel %vm1999_vm5, %v1995_v30, inf  ;;  %v12938_v30 = vld [vmem:[#allocation93_spill] sm:$0xff] }
 0x2eb   :  { %2537 = vmin.xlane.f32.xlu0 %v8679_v49  ;;  %2001 = vmin.xlane.f32.xlu1 %v2000_v51  ;;  %v1532_v51 = vsel %vm1452_vm6, %v6748_v40, 1073741824  ;;  %v12940_v49 = vld [vmem:[#allocation94_spill] sm:$0xff] }
 0x2ec   :  { %v8691_v48 = vpop.xlane.xlu0 %2012  ;;  %vm1453_vm8 = vcmp.ge.f32.partialorder %v12941_v41, %v12940_v49  ;;  %v8716_v49 = vsel %vm97_vm0, %v1532_v51, 2147483647  ;;  %v12944_v41 = vld [vmem:[#allocation95_spill] sm:$0xff] }
 0x2ed   :  { %vm2014_vm7 = vcmp.eq.f32.partialorder %v12938_v30, %v8691_v48  ;;  %12943 = vst [vmem:[#allocation18_spill] sm:$0xff] %v8716_v49 }
 0x2ee   :  { %v2015_v54 = vsel %vm2014_vm7, %v2010_v63, inf  ;;  %v1533_v63 = vsel %vm1453_vm8, %v6748_v40, 1073741824 }
 0x2ef   :  { %2552 = vmin.xlane.f32.xlu0 %v8694_v34  ;;  %2016 = vmin.xlane.f32.xlu1 %v2015_v54  ;;  %v12945_v54 = vld [vmem:[#allocation26_spill] sm:$0xff]  ;;  %v8730_v51 = vsel %vm97_vm0, %v1533_v63, 2147483647 }
 0x2f0   :  { %v8706_v43 = vpop.xlane.xlu0 %2027  ;;  %vm1454_vm10 = vcmp.ge.f32.partialorder %v12945_v54, %v12944_v41  ;;  %12947 = vst [vmem:[#allocation76_spill] sm:$0xff] %v8730_v51  ;;  %v12948_v54 = vld [vmem:[#allocation96_spill] sm:$0xff] }
 0x2f1   :  { %vm2029_vm9 = vcmp.eq.f32.partialorder %v8136_v62, %v8706_v43  ;;  %v8724_v62 = vcvt.s32.f32 %v2579_v3  ;;  %v1534_v41 = vsel %vm1454_vm10, %v6748_v40, 1073741824  ;;  %v2609_v3 = vshra.s32 %v8730_v51, 16 }
 0x2f2   :  { %v2030_v30 = vsel %vm2029_vm9, %v2025_v37, inf  ;;  %v2594_v37 = vshra.s32 %v8716_v49, 16  ;;  %v2083_v51 = vand.u32 65535, %v12955_v2 }
 0x2f3   :  { %2567 = vmin.xlane.f32.xlu0 %v8709_v32  ;;  %2031 = vmin.xlane.f32.xlu1 %v2030_v30  ;;  %12946 = vst [vmem:[#allocation75_spill] sm:$0xff] %v8724_v62  ;;  %v12949_v32 = vld [vmem:[#allocation27_spill] sm:$0xff] }
 0x2f4   :  { %v8721_v4 = vpop.xlane.xlu0 %2042  ;;  %vm1455_vm12 = vcmp.ge.f32.partialorder %v12949_v32, %v12948_v54  ;;  %v8741_v63 = vcvt.s32.f32 %v2594_v37  ;;  %v8746_v32 = vsel %vm97_vm0, %v1534_v41, 2147483647  ;;  %v12954_v54 = vld [vmem:[#allocation28_spill] sm:$0xff] }
 0x2f5   :  { %vm2044_vm11 = vcmp.eq.f32.partialorder %v8160_v24, %v8721_v4  ;;  %v2068_v24 = vand.u32 65535, %v8166_v35  ;;  %v1535_v49 = vsel %vm1455_vm12, %v6748_v40, 1073741824  ;;  %12952 = vst [vmem:[#allocation78_spill] sm:$0xff] %v8746_v32  ;;  %v2624_v50 = vshra.s32 %v8746_v32, 16  ;;  %v12962_v32 = vld [vmem:[#allocation99_spill] sm:$0xff] }
 0x2f6   :  { %v2045_v30 = vsel %vm2044_vm11, %v2040_v39, inf  ;;  %12951 = vst [vmem:[#allocation77_spill] sm:$0xff] %v8741_v63  ;;  %v12953_v39 = vld [vmem:[#allocation97_spill] sm:$0xff] }
 0x2f7   :  { %2582 = vmin.xlane.f32.xlu0 %v8724_v62  ;;  %2046 = vmin.xlane.f32.xlu1 %v2045_v30  ;;  %vm1456_vm14 = vcmp.ge.f32.partialorder %v12954_v54, %v12953_v39  ;;  %v8754_v62 = vcvt.s32.f32 %v2609_v3  ;;  %v2070_v37 = vcvt.s32.f32 %v2068_v24  ;;  %v12960_v39 = vld [vmem:[#allocation29_spill] sm:$0xff]  ;;  %v12961_v54 = vld [vmem:[#allocation103_spill] sm:$0xff]  ;;  %v2085_v3 = vcvt.s32.f32 %v2083_v51 }
 0x2f8   :  { %v8736_v42 = vpop.xlane.xlu0 %2057  ;;  %v1536_v41 = vsel %vm1456_vm14, %v6748_v40, 1073741824  ;;  %v1569_v51 = vcvt.f32.s32 %v8241_v53  ;;  %v12964_v53 = vld [vmem:[#allocation100_spill] sm:$0xff] }
 0x2f9   :  { %12950 = vst [vmem:[#allocation19_spill] sm:$0xff] %v8736_v42  ;;  %vm2059_vm13 = vcmp.eq.f32.partialorder %v8184_v38, %v8736_v42  ;;  %12957 = vst [vmem:[#allocation79_spill] sm:$0xff] %v8754_v62  ;;  %v8758_v38 = vsel %vm97_vm0, %v1535_v49, 2147483647  ;;  %v12959_v42 = vld [vmem:[#allocation98_spill] sm:$0xff]  ;;  %v2098_v49 = vand.u32 65535, %v8215_v46 }
 0x2fa   :  { %v2060_v30 = vsel %vm2059_vm13, %v2055_v55, inf  ;;  %12958 = vst [vmem:[#allocation80_spill] sm:$0xff] %v8758_v38  ;;  %vm1457_vm15 = vcmp.ge.f32.partialorder %v12960_v39, %v12959_v42  ;;  %v1554_v55 = vcvt.f32.s32 %v8226_v47  ;;  %v2639_v24 = vshra.s32 %v8758_v38, 16 }
 0x2fb   :  { %2597 = vmin.xlane.f32.xlu0 %v8741_v63  ;;  %2061 = vmin.xlane.f32.xlu1 %v2060_v30  ;;  %v1537_v2 = vsel %vm1457_vm15, %v6748_v40, 1073741824  ;;  %v12963_v63 = vld [vmem:[#allocation30_spill] sm:$0xff]  ;;  %v8774_v47 = vcvt.s32.f32 %v2624_v50  ;;  %v2113_v50 = vand.u32 65535, %v8235_v61 }
 0x2fc   :  { %v8752_v35 = vpop.xlane.xlu0 %2072  ;;  %vm1458_vm3 = vcmp.ge.f32.partialorder %v12963_v63, %v12962_v32 }
 0x2fd   :  { %12956 = vst [vmem:[#allocation34_spill] sm:$0xff] %v8752_v35  ;;  %vm2074_vm1 = vcmp.eq.f32.partialorder %v12961_v54, %v8752_v35  ;;  %v1555_v54 = vshll.u32 %v1554_v55, 16  ;;  %v2100_v35 = vcvt.s32.f32 %v2098_v49  ;;  %v12965_v55 = vld [vmem:[#allocation37_spill] sm:$0xff]  ;;  %v1584_v49 = vcvt.f32.s32 %v8256_v31 }
 0x2fe   :  { %v2075_v30 = vsel %vm2074_vm1, %v2070_v37, inf  ;;  %v8777_v37 = vsel %vm97_vm0, %v1536_v41, 2147483647  ;;  %v1538_v41 = vsel %vm1458_vm3, %v6748_v40, 1073741824  ;;  %vm1459_vm5 = vcmp.ge.f32.partialorder %v12965_v55, %v12964_v53 }
 0x2ff   :  { %2612 = vmin.xlane.f32.xlu0 %v8754_v62  ;;  %2076 = vmin.xlane.f32.xlu1 %v2075_v30  ;;  %v8783_v62 = vcvt.s32.f32 %v2639_v24  ;;  %v1570_v24 = vshll.u32 %v1569_v51, 16  ;;  %v2128_v51 = vand.u32 65535, %v8250_v15  ;;  %v1539_v31 = vsel %vm1459_vm5, %v6748_v40, 1073741824 }
 0x300   :  { %v1552_v42 = vpop.xlane.xlu1 %1551  ;;  %v8772_v39 = vpop.xlane.xlu0 %2087 }
 0x301   :  { %v1553_v30 = vcvt.f32.s32 %v1552_v42  ;;  %vm2089_vm4 = vcmp.eq.f32.partialorder %v8229_v45, %v8772_v39 }
 0x302   :  { %v2090_v46 = vsel %vm2089_vm4, %v2085_v3, inf  ;;  %v2654_v3 = vshra.s32 %v8777_v37, 16 }
 0x303   :  { %v1556_v38 = vadd.s32 %v1555_v54, %v1553_v30  ;;  %2627 = vmin.xlane.f32.xlu0 %v8774_v47  ;;  %2091 = vmin.xlane.f32.xlu1 %v2090_v46  ;;  %v8796_v54 = vsel %vm97_vm0, %v1537_v2, 2147483647  ;;  %v2115_v30 = vcvt.s32.f32 %v2113_v50  ;;  %v12967_v46 = vld [vmem:[#allocation31_spill] sm:$0xff]  ;;  %v1585_v50 = vshll.u32 %v1584_v49, 16 }
 0x304   :  { %v1567_v42 = vpop.xlane.xlu1 %1566  ;;  %v8792_v45 = vpop.xlane.xlu0 %2102  ;;  %v2669_v2 = vshra.s32 %v8796_v54, 16  ;;  %v2143_v49 = vand.u32 65535, %v8265_v8 }
 0x305   :  { %2742 = vst.msk [vmem:[%s12265_s4] sm:$0xff] %vm1301_vm2, %v1556_v38  ;;  %v1568_v61 = vcvt.f32.s32 %v1567_v42  ;;  %vm2104_vm6 = vcmp.eq.f32.partialorder %v8244_v36, %v8792_v45  ;;  %v12966_v38 = vld [vmem:[#allocation102_spill] sm:$0xff] }
 0x306   :  { %v2105_v63 = vsel %vm2104_vm6, %v2100_v35, inf  ;;  %vm1460_vm7 = vcmp.ge.f32.partialorder %v12967_v46, %v12966_v38  ;;  %v8816_v35 = vcvt.s32.f32 %v2654_v3  ;;  %v8829_v3 = vcvt.s32.f32 %v2669_v2 }
 0x307   :  { %v1571_v32 = vadd.s32 %v1570_v24, %v1568_v61  ;;  %2642 = vmin.xlane.f32.xlu0 %v8783_v62  ;;  %2106 = vmin.xlane.f32.xlu1 %v2105_v63  ;;  %v8819_v24 = vsel %vm97_vm0, %v1538_v41, 2147483647  ;;  %v1599_v61 = vcvt.f32.s32 %v8271_v57  ;;  %v2130_v41 = vcvt.s32.f32 %v2128_v51  ;;  %v12969_v63 = vld [vmem:[#allocation104_spill] sm:$0xff] }
 0x308   :  { %v1582_v42 = vpop.xlane.xlu1 %1581  ;;  %v8814_v36 = vpop.xlane.xlu0 %2117  ;;  %12968 = vst [vmem:[#allocation35_spill] sm:$0xff] %v8819_v24  ;;  %v1540_v57 = vsel %vm1460_vm7, %v6748_v40, 1073741824  ;;  %v1614_v51 = vcvt.f32.s32 %v8286_v18 }
 0x309   :  { %2743 = vst.msk [vmem:[%s12265_s4 + $0x8] sm:$0xff] %vm1301_vm2, %v1571_v32  ;;  %v1583_v15 = vcvt.f32.s32 %v1582_v42  ;;  %vm2119_vm8 = vcmp.eq.f32.partialorder %v8259_v7, %v8814_v36  ;;  %v12970_v32 = vld [vmem:[#allocation38_spill] sm:$0xff]  ;;  %v1600_v2 = vshll.u32 %v1599_v61, 16 }
 0x30a   :  { %v2120_v53 = vsel %vm2119_vm8, %v2115_v30, inf  ;;  %vm1461_vm9 = vcmp.ge.f32.partialorder %v12970_v32, %v12969_v63  ;;  %v2684_v30 = vshra.s32 %v8819_v24, 16 }
 0x30b   :  { %v1586_v55 = vadd.s32 %v1585_v50, %v1583_v15  ;;  %2657 = vmin.xlane.f32.xlu0 %v8816_v35  ;;  %2121 = vmin.xlane.f32.xlu1 %v2120_v53  ;;  %v8842_v50 = vsel %vm97_vm0, %v1539_v31, 2147483647  ;;  %v2145_v15 = vcvt.s32.f32 %v2143_v49  ;;  %v12971_v31 = vld [vmem:[#allocation105_spill] sm:$0xff]  ;;  %v1541_v18 = vsel %vm1461_vm9, %v6748_v40, 1073741824  ;;  %v12973_v40 = vld [vmem:[#allocation32_spill] sm:$0xff] }
 0x30c   :  { %v1597_v42 = vpop.xlane.xlu1 %1596  ;;  %v8838_v7 = vpop.xlane.xlu0 %2132  ;;  %v2158_v53 = vand.u32 65535, %v12971_v31  ;;  %v1629_v49 = vcvt.f32.s32 %v8301_v6 }
 0x30d   :  { %2744 = vst.msk [vmem:[%s12265_s4 + $0x10] sm:$0xff] %vm1301_vm2, %v1586_v55  ;;  %v1598_v8 = vcvt.f32.s32 %v1597_v42  ;;  %vm2134_vm10 = vcmp.eq.f32.partialorder %v8274_v16, %v8838_v7  ;;  %v8859_v55 = vcvt.s32.f32 %v2684_v30  ;;  %v2699_v16 = vshra.s32 %v8842_v50, 16 }
 0x30e   :  { %v2135_v38 = vsel %vm2134_vm10, %v2130_v41, inf  ;;  %v8863_v41 = vsel %vm97_vm0, %v1540_v57, 2147483647  ;;  %v1615_v42 = vshll.u32 %v1614_v51, 16 }
 0x30f   :  { %v1601_v46 = vadd.s32 %v1600_v2, %v1598_v8  ;;  %2672 = vmin.xlane.f32.xlu0 %v8829_v3  ;;  %2136 = vmin.xlane.f32.xlu1 %v2135_v38  ;;  %12972 = vst [vmem:[#allocation81_spill] sm:$0xff] %v8863_v41  ;;  %v2160_v2 = vcvt.s32.f32 %v2158_v53  ;;  %v8875_v51 = vcvt.s32.f32 %v2699_v16  ;;  %v2714_v6 = vshra.s32 %v8863_v41, 16  ;;  %v12974_v38 = vld [vmem:[#allocation39_spill] sm:$0xff] }
 0x310   :  { %v1612_v61 = vpop.xlane.xlu1 %1611  ;;  %v8857_v24 = vpop.xlane.xlu0 %2147  ;;  %v2173_v31 = vand.u32 65535, %v12974_v38  ;;  %v12977_v38 = vld [vmem:[#allocation33_spill] sm:$0xff] }
 0x311   :  { %2745 = vst.msk [vmem:[%s12265_s4 + $0x18] sm:$0xff] %vm1301_vm2, %v1601_v46  ;;  %v1613_v63 = vcvt.f32.s32 %v1612_v61  ;;  %vm2149_vm11 = vcmp.eq.f32.partialorder %v12973_v40, %v8857_v24  ;;  %v8880_v46 = vsel %vm97_vm0, %v1541_v18, 2147483647  ;;  %v1630_v61 = vshll.u32 %v1629_v49, 16 }
 0x312   :  { %v2150_v32 = vsel %vm2149_vm11, %v2145_v15, inf  ;;  %12975 = vst [vmem:[#allocation82_spill] sm:$0xff] %v8880_v46  ;;  %v1644_v15 = vcvt.f32.s32 %v8316_v59  ;;  %v8892_v49 = vcvt.s32.f32 %v2714_v6  ;;  %v2175_v59 = vcvt.s32.f32 %v2173_v31 }
 0x313   :  { %v1616_v30 = vadd.s32 %v1615_v42, %v1613_v63  ;;  %2687 = vmin.xlane.f32.xlu0 %v8859_v55  ;;  %2151 = vmin.xlane.f32.xlu1 %v2150_v32  ;;  %v12976_v42 = vld [vmem:[#allocation40_spill] sm:$0xff]  ;;  %v2729_v32 = vshra.s32 %v8880_v46, 16  ;;  %v2188_v41 = vand.u32 65535, %v12977_v38 }
 0x314   :  { %v1627_v57 = vpop.xlane.xlu1 %1626  ;;  %v8873_v8 = vpop.xlane.xlu0 %2162 }
 0x315   :  { %2746 = vst.msk [vmem:[%s12265_s4 + $0x20] sm:$0xff] %vm1301_vm2, %v1616_v30  ;;  %v1628_v53 = vcvt.f32.s32 %v1627_v57  ;;  %vm2164_vm12 = vcmp.eq.f32.partialorder %v12976_v42, %v8873_v8  ;;  %v1645_v30 = vshll.u32 %v1644_v15, 16  ;;  %v1659_v57 = vcvt.f32.s32 %v8331_v23 }
 0x316   :  { %v2165_v16 = vsel %vm2164_vm12, %v2160_v2, inf  ;;  %v8906_v15 = vcvt.s32.f32 %v2729_v32  ;;  %v2190_v23 = vcvt.s32.f32 %v2188_v41 }
 0x317   :  { %v1631_v63 = vadd.s32 %v1630_v61, %v1628_v53  ;;  %2702 = vmin.xlane.f32.xlu0 %v8875_v51  ;;  %2166 = vmin.xlane.f32.xlu1 %v2165_v16  ;;  %v12978_v61 = vld [vmem:[#allocation41_spill] sm:$0xff]  ;;  %v12979_v16 = vld [vmem:[#allocation42_spill] sm:$0xff]  ;;  %v1660_v46 = vshll.u32 %v1659_v57, 16 }
 0x318   :  { %v1642_v40 = vpop.xlane.xlu1 %1641  ;;  %v8890_v18 = vpop.xlane.xlu0 %2177  ;;  %v2203_v38 = vand.u32 65535, %v12979_v16  ;;  %v1689_v16 = vcvt.f32.s32 %v8361_v52  ;;  %v1704_v52 = vcvt.f32.s32 %v8376_v14  ;;  %v1719_v14 = vcvt.f32.s32 %v8391_v22 }
 0x319   :  { %2747 = vst.msk [vmem:[%s12265_s4 + $0x28] sm:$0xff] %vm1301_vm2, %v1631_v63  ;;  %v1643_v2 = vcvt.f32.s32 %v1642_v40  ;;  %vm2179_vm0 = vcmp.eq.f32.partialorder %v12978_v61, %v8890_v18  ;;  %v1674_v63 = vcvt.f32.s32 %v8346_v60  ;;  %v12981_v61 = vld [vmem:[#allocation43_spill] sm:$0xff]  ;;  %v1734_v22 = vcvt.f32.s32 %v8406_v17 }
 0x31a   :  { %v2180_v53 = vsel %vm2179_vm0, %v2175_v59, inf  ;;  %v12980_v59 = vld [vmem:[#allocation2_spill] sm:$0xff]  ;;  %v2205_v57 = vcvt.s32.f32 %v2203_v38  ;;  %v2218_v60 = vand.u32 65535, %v12981_v61  ;;  %v1690_v61 = vshll.u32 %v1689_v16, 16 }
 0x31b   :  { %v1646_v6 = vadd.s32 %v1645_v30, %v1643_v2  ;;  %2717 = vmin.xlane.f32.xlu0 %v8892_v49  ;;  %2181 = vmin.xlane.f32.xlu1 %v2180_v53  ;;  %v1675_v53 = vshll.u32 %v1674_v63, 16 }
 0x31c   :  { %v1657_v31 = vpop.xlane.xlu1 %1656  ;;  %v8904_v42 = vpop.xlane.xlu0 %2192  ;;  %v2220_v38 = vcvt.s32.f32 %v2218_v60 }
 0x31d   :  { %2748 = vst.msk [vmem:[%s12265_s4 + $0x30] sm:$0xff] %vm1301_vm2, %v1646_v6  ;;  %v1658_v40 = vcvt.f32.s32 %v1657_v31  ;;  %vm2194_vm13 = vcmp.eq.f32.partialorder %v12980_v59, %v8904_v42 }
 0x31e   :  { %v2195_v30 = vsel %vm2194_vm13, %v2190_v23, inf }
 0x31f   :  { %v1661_v2 = vadd.s32 %v1660_v46, %v1658_v40  ;;  %2732 = vmin.xlane.f32.xlu0 %v8906_v15  ;;  %2196 = vmin.xlane.f32.xlu1 %v2195_v30  ;;  %v12982_v46 = vld [vmem:[#allocation44_spill] sm:$0xff]  ;;  %v12983_v30 = vld [vmem:[#allocation3_spill] sm:$0xff] }
 0x320   :  { %v1672_v41 = vpop.xlane.xlu1 %1671  ;;  %v8917_v32 = vpop.xlane.xlu0 %2207  ;;  %v2233_v63 = vand.u32 65535, %v12983_v30  ;;  %v1705_v30 = vshll.u32 %v1704_v52, 16 }
 0x321   :  { %2749 = vst.msk [vmem:[%s12265_s4 + $0x38] sm:$0xff] %vm1301_vm2, %v1661_v2  ;;  %v1673_v6 = vcvt.f32.s32 %v1672_v41  ;;  %vm2209_vm14 = vcmp.eq.f32.partialorder %v12982_v46, %v8917_v32  ;;  %v12984_v41 = vld [vmem:[#allocation45_spill] sm:$0xff] }
 0x322   :  { %v2210_v31 = vsel %vm2209_vm14, %v2205_v57, inf  ;;  %v2235_v60 = vcvt.s32.f32 %v2233_v63 }
 0x323   :  { %v1676_v23 = vadd.s32 %v1675_v53, %v1673_v6  ;;  %2211 = vmin.xlane.f32.xlu1 %v2210_v31  ;;  %v12986_v31 = vld [vmem:[#allocation46_spill] sm:$0xff] }
 0x324   :  { %v1687_v40 = vpop.xlane.xlu1 %1686  ;;  %v8927_v59 = vpop.xlane.xlu0 %2222  ;;  %v2248_v16 = vand.u32 65535, %v12986_v31  ;;  %v1720_v31 = vshll.u32 %v1719_v14, 16  ;;  %v1749_v14 = vcvt.f32.s32 %v8421_v26  ;;  %v2906_v26 = vld [vmem:[%s12266_s2 + $0x20] sm:$0xff] }
 0x325   :  { %2750 = vst.msk [vmem:[%s12265_s4 + $0x40] sm:$0xff] %vm1301_vm2, %v1676_v23  ;;  %v1688_v2 = vcvt.f32.s32 %v1687_v40  ;;  %vm2224_vm15 = vcmp.eq.f32.partialorder %v12984_v41, %v8927_v59  ;;  %v12987_v40 = vld [vmem:[#allocation4_spill] sm:$0xff] }
 0x326   :  { %v2225_v57 = vsel %vm2224_vm15, %v2220_v38, inf  ;;  %v2250_v63 = vcvt.s32.f32 %v2248_v16 }
 0x327   :  { %v1691_v53 = vadd.s32 %v1690_v61, %v1688_v2  ;;  %2226 = vmin.xlane.f32.xlu1 %v2225_v57  ;;  %v12989_v57 = vld [vmem:[#allocation47_spill] sm:$0xff] }
 0x328   :  { %v1702_v6 = vpop.xlane.xlu1 %1701  ;;  %v8937_v46 = vpop.xlane.xlu0 %2237  ;;  %v2263_v52 = vand.u32 65535, %v12989_v57 }
 0x329   :  { %12985 = vst [vmem:[#allocation20_spill] sm:$0xff] %v8937_v46  ;;  %2751 = vst.msk [vmem:[%s12265_s4 + $0x48] sm:$0xff] %vm1301_vm2, %v1691_v53  ;;  %v1703_v23 = vcvt.f32.s32 %v1702_v6  ;;  %vm2239_vm1 = vcmp.eq.f32.partialorder %v12987_v40, %v8937_v46  ;;  %v12990_v6 = vld [vmem:[#allocation48_spill] sm:$0xff] }
 0x32a   :  { %v2240_v38 = vsel %vm2239_vm1, %v2235_v60, inf  ;;  %v2265_v40 = vcvt.s32.f32 %v2263_v52  ;;  %v1750_v52 = vshll.u32 %v1749_v14, 16  ;;  %v2986_v14 = vmul.f32 0.1, %v2906_v26 }
 0x32b   :  { %v1706_v61 = vadd.s32 %v1705_v30, %v1703_v23  ;;  %2241 = vmin.xlane.f32.xlu1 %v2240_v38  ;;  %v2902_v30 = vld [vmem:[%s12266_s2] sm:$0xff]  ;;  %v12991_v38 = vld [vmem:[#allocation5_spill] sm:$0xff] }
 0x32c   :  { %v1717_v2 = vpop.xlane.xlu1 %1716  ;;  %v8947_v41 = vpop.xlane.xlu0 %2252  ;;  %v2278_v57 = vand.u32 65535, %v12991_v38 }
 0x32d   :  { %12988 = vst [vmem:[#allocation83_spill] sm:$0xff] %v8947_v41  ;;  %2752 = vst.msk [vmem:[%s12265_s4 + $0x50] sm:$0xff] %vm1301_vm2, %v1706_v61  ;;  %v1718_v53 = vcvt.f32.s32 %v1717_v2  ;;  %vm2254_vm3 = vcmp.eq.f32.partialorder %v12990_v6, %v8947_v41  ;;  %v1735_v61 = vshll.u32 %v1734_v22, 16  ;;  %v12993_v41 = vld [vmem:[#allocation50_spill] sm:$0xff] }
 0x32e   :  { %v2255_v60 = vsel %vm2254_vm3, %v2250_v63, inf  ;;  %v12992_v63 = vld [vmem:[#allocation49_spill] sm:$0xff]  ;;  %v2280_v38 = vcvt.s32.f32 %v2278_v57  ;;  %v2293_v46 = vand.u32 65535, %v12993_v41  ;;  %v2908_v41 = vld [vmem:[%s12266_s2 + $0x30] sm:$0xff] }
 0x32f   :  { %v1721_v16 = vadd.s32 %v1720_v31, %v1718_v53  ;;  %2256 = vmin.xlane.f32.xlu1 %v2255_v60  ;;  %v2982_v31 = vmul.f32 0.1, %v2902_v30 }
 0x330   :  { %v1732_v23 = vpop.xlane.xlu1 %1731  ;;  %v8961_v17 = vpop.xlane.xlu0 %2267 }
 0x331   :  { %2753 = vst.msk [vmem:[%s12265_s4 + $0x58] sm:$0xff] %vm1301_vm2, %v1721_v16  ;;  %v1733_v2 = vcvt.f32.s32 %v1732_v23  ;;  %vm2269_vm4 = vcmp.eq.f32.partialorder %v12992_v63, %v8961_v17  ;;  %v1764_v16 = vcvt.f32.s32 %v8436_v9  ;;  %v12994_v23 = vld [vmem:[#allocation6_spill] sm:$0xff]  ;;  %v1779_v9 = vcvt.f32.s32 %v8451_v19 }
 0x332   :  { %v2270_v53 = vsel %vm2269_vm4, %v2265_v40, inf  ;;  %v2295_v63 = vcvt.s32.f32 %v2293_v46  ;;  %v2910_v46 = vld [vmem:[%s12266_s2 + $0x40] sm:$0xff] }
 0x333   :  { %v1736_v6 = vadd.s32 %v1735_v61, %v1733_v2  ;;  %2271 = vmin.xlane.f32.xlu1 %v2270_v53  ;;  %v12995_v53 = vld [vmem:[#allocation51_spill] sm:$0xff] }
 0x334   :  { %v1747_v60 = vpop.xlane.xlu1 %1746  ;;  %v8973_v22 = vpop.xlane.xlu0 %2282 }
 0x335   :  { %2754 = vst.msk [vmem:[%s12265_s4 + $0x60] sm:$0xff] %vm1301_vm2, %v1736_v6  ;;  %v1748_v30 = vcvt.f32.s32 %v1747_v60  ;;  %3142 = vrot.lane.b32.xlu0 %v2982_v31, %s5774_s20  ;;  %vm2284_vm5 = vcmp.eq.f32.partialorder %v12994_v23, %v8973_v22  ;;  %v2308_v6 = vand.u32 65535, %v12995_v53  ;;  %v1765_v31 = vshll.u32 %v1764_v16, 16 }
 0x336   :  { %v2285_v40 = vsel %vm2284_vm5, %v2280_v38, inf  ;;  %v2988_v60 = vmul.f32 0.1, %v2908_v41  ;;  %v1780_v16 = vshll.u32 %v1779_v9, 16  ;;  %v2990_v9 = vmul.f32 0.1, %v2910_v46 }
 0x337   :  { %v1751_v57 = vadd.s32 %v1750_v52, %v1748_v30  ;;  %2286 = vmin.xlane.f32.xlu1 %v2285_v40  ;;  %v12996_v52 = vld [vmem:[#allocation52_spill] sm:$0xff]  ;;  %v2310_v40 = vcvt.s32.f32 %v2308_v6 }
 0x338   :  { %v1762_v61 = vpop.xlane.xlu1 %1761  ;;  %v8988_v2 = vpop.xlane.xlu0 %2297  ;;  %v2912_v6 = vld [vmem:[%s12266_s2 + $0x50] sm:$0xff] }
 0x339   :  { %2755 = vst.msk [vmem:[%s12265_s4 + $0x68] sm:$0xff] %vm1301_vm2, %v1751_v57  ;;  %v1763_v26 = vcvt.f32.s32 %v1762_v61  ;;  %3150 = vrot.lane.b32.xlu0 %v2986_v14, %s5774_s20  ;;  %vm2299_vm6 = vcmp.eq.f32.partialorder %v12996_v52, %v8988_v2  ;;  %v12997_v57 = vld [vmem:[#allocation7_spill] sm:$0xff]  ;;  %v1794_v14 = vcvt.f32.s32 %v8466_v20  ;;  %v1809_v20 = vcvt.f32.s32 %v8481_v10 }
 0x33a   :  { %v2300_v19 = vsel %vm2299_vm6, %v2295_v63, inf  ;;  %v2323_v61 = vand.u32 65535, %v12997_v57  ;;  %v12998_v63 = vld [vmem:[#allocation53_spill] sm:$0xff]  ;;  %v2914_v57 = vld [vmem:[%s12266_s2 + $0x60] sm:$0xff] }
 0x33b   :  { %v1766_v38 = vadd.s32 %v1765_v31, %v1763_v26  ;;  %2301 = vmin.xlane.f32.xlu1 %v2300_v19 }
 0x33c   :  { %v1777_v30 = vpop.xlane.xlu1 %1776  ;;  %v9001_v23 = vpop.xlane.xlu0 %2312  ;;  %v2325_v19 = vcvt.s32.f32 %v2323_v61 }
 0x33d   :  { %2756 = vst.msk [vmem:[%s12265_s4 + $0x70] sm:$0xff] %vm1301_vm2, %v1766_v38  ;;  %v1778_v41 = vcvt.f32.s32 %v1777_v30  ;;  %3154 = vrot.lane.b32.xlu0 %v2988_v60, %s5774_s20  ;;  %vm2314_vm7 = vcmp.eq.f32.partialorder %v12998_v63, %v9001_v23  ;;  %v12999_v38 = vld [vmem:[#allocation54_spill] sm:$0xff]  ;;  %v1795_v60 = vshll.u32 %v1794_v14, 16  ;;  %v1810_v14 = vshll.u32 %v1809_v20, 16 }
 0x33e   :  { %v2315_v53 = vsel %vm2314_vm7, %v2310_v40, inf  ;;  %v2338_v30 = vand.u32 65535, %v12999_v38  ;;  %v2992_v40 = vmul.f32 0.1, %v2912_v6  ;;  %v2994_v20 = vmul.f32 0.1, %v2914_v57 }
 0x33f   :  { %v1781_v31 = vadd.s32 %v1780_v16, %v1778_v41  ;;  %2316 = vmin.xlane.f32.xlu1 %v2315_v53  ;;  %v13000_v16 = vld [vmem:[#allocation8_spill] sm:$0xff] }
 0x340   :  { %v1792_v26 = vpop.xlane.xlu1 %1791  ;;  %v9016_v52 = vpop.xlane.xlu0 %2327  ;;  %v2340_v53 = vcvt.s32.f32 %v2338_v30  ;;  %v2916_v30 = vld [vmem:[%s12266_s2 + $0x70] sm:$0xff] }
 0x341   :  { %2757 = vst.msk [vmem:[%s12265_s4 + $0x78] sm:$0xff] %vm1301_vm2, %v1781_v31  ;;  %v1793_v46 = vcvt.f32.s32 %v1792_v26  ;;  %3158 = vrot.lane.b32.xlu0 %v2990_v9, %s5774_s20  ;;  %vm2329_vm8 = vcmp.eq.f32.partialorder %v13000_v16, %v9016_v52  ;;  %v13001_v31 = vld [vmem:[#allocation55_spill] sm:$0xff]  ;;  %v1824_v9 = vcvt.f32.s32 %v8496_v12  ;;  %v1839_v12 = vcvt.f32.s32 %v8511_v27 }
 0x342   :  { %v2330_v10 = vsel %vm2329_vm8, %v2325_v19, inf  ;;  %v2353_v26 = vand.u32 65535, %v13001_v31  ;;  %v13002_v19 = vld [vmem:[#allocation56_spill] sm:$0xff]  ;;  %v2918_v31 = vld [vmem:[%s12266_s2 + $0x80] sm:$0xff] }
 0x343   :  { %v1796_v61 = vadd.s32 %v1795_v60, %v1793_v46  ;;  %2331 = vmin.xlane.f32.xlu1 %v2330_v10 }
 0x344   :  { %v1807_v41 = vpop.xlane.xlu1 %1806  ;;  %v9029_v63 = vpop.xlane.xlu0 %2342  ;;  %v2355_v10 = vcvt.s32.f32 %v2353_v26 }
 0x345   :  { %2758 = vst.msk [vmem:[%s12265_s4 + $0x80] sm:$0xff] %vm1301_vm2, %v1796_v61  ;;  %v1808_v6 = vcvt.f32.s32 %v1807_v41  ;;  %3162 = vrot.lane.b32.xlu0 %v2992_v40, %s5774_s20  ;;  %vm2344_vm9 = vcmp.eq.f32.partialorder %v13002_v19, %v9029_v63  ;;  %v13003_v61 = vld [vmem:[#allocation9_spill] sm:$0xff]  ;;  %v1825_v40 = vshll.u32 %v1824_v9, 16  ;;  %v1840_v9 = vshll.u32 %v1839_v12, 16 }
 0x346   :  { %v2345_v38 = vsel %vm2344_vm9, %v2340_v53, inf  ;;  %v2368_v41 = vand.u32 65535, %v13003_v61  ;;  %v2996_v53 = vmul.f32 0.1, %v2916_v30  ;;  %v2998_v12 = vmul.f32 0.1, %v2918_v31 }
 0x347   :  { %v1811_v60 = vadd.s32 %v1810_v14, %v1808_v6  ;;  %2346 = vmin.xlane.f32.xlu1 %v2345_v38  ;;  %v13004_v14 = vld [vmem:[#allocation57_spill] sm:$0xff] }
 0x348   :  { %v1822_v46 = vpop.xlane.xlu1 %1821  ;;  %v9044_v16 = vpop.xlane.xlu0 %2357  ;;  %v2370_v38 = vcvt.s32.f32 %v2368_v41  ;;  %v2920_v41 = vld [vmem:[%s12266_s2 + $0x90] sm:$0xff] }
 0x349   :  { %2759 = vst.msk [vmem:[%s12265_s4 + $0x88] sm:$0xff] %vm1301_vm2, %v1811_v60  ;;  %v1823_v57 = vcvt.f32.s32 %v1822_v46  ;;  %3166 = vrot.lane.b32.xlu0 %v2994_v20, %s5774_s20  ;;  %vm2359_vm10 = vcmp.eq.f32.partialorder %v13004_v14, %v9044_v16  ;;  %v13005_v60 = vld [vmem:[#allocation58_spill] sm:$0xff]  ;;  %v1854_v20 = vcvt.f32.s32 %v8526_v25  ;;  %v1869_v25 = vcvt.f32.s32 %v8541_v13 }
 0x34a   :  { %v2360_v27 = vsel %vm2359_vm10, %v2355_v10, inf  ;;  %v2383_v46 = vand.u32 65535, %v13005_v60  ;;  %v13006_v10 = vld [vmem:[#allocation10_spill] sm:$0xff] }
 0x34b   :  { %v1826_v26 = vadd.s32 %v1825_v40, %v1823_v57  ;;  %2361 = vmin.xlane.f32.xlu1 %v2360_v27  ;;  %v2922_v60 = vld [vmem:[%s12266_s2 + $0xa0] sm:$0xff] }
 0x34c   :  { %v1837_v6 = vpop.xlane.xlu1 %1836  ;;  %v9057_v19 = vpop.xlane.xlu0 %2372  ;;  %v2385_v27 = vcvt.s32.f32 %v2383_v46 }
 0x34d   :  { %2760 = vst.msk [vmem:[%s12265_s4 + $0x90] sm:$0xff] %vm1301_vm2, %v1826_v26  ;;  %v1838_v30 = vcvt.f32.s32 %v1837_v6  ;;  %3170 = vrot.lane.b32.xlu0 %v2996_v53, %s5774_s20  ;;  %vm2374_vm11 = vcmp.eq.f32.partialorder %v13006_v10, %v9057_v19  ;;  %v13007_v26 = vld [vmem:[#allocation59_spill] sm:$0xff]  ;;  %v1855_v53 = vshll.u32 %v1854_v20, 16  ;;  %v1870_v20 = vshll.u32 %v1869_v25, 16 }
 0x34e   :  { %v2375_v61 = vsel %vm2374_vm11, %v2370_v38, inf  ;;  %v2398_v6 = vand.u32 65535, %v13007_v26  ;;  %v3000_v38 = vmul.f32 0.1, %v2920_v41  ;;  %v3002_v25 = vmul.f32 0.1, %v2922_v60 }
 0x34f   :  { %v1841_v40 = vadd.s32 %v1840_v9, %v1838_v30  ;;  %2376 = vmin.xlane.f32.xlu1 %v2375_v61  ;;  %v13008_v9 = vld [vmem:[#allocation60_spill] sm:$0xff] }
 0x350   :  { %v1852_v57 = vpop.xlane.xlu1 %1851  ;;  %v9072_v14 = vpop.xlane.xlu0 %2387  ;;  %v2400_v61 = vcvt.s32.f32 %v2398_v6  ;;  %v2924_v6 = vld [vmem:[%s12266_s2 + $0xb0] sm:$0xff] }
 0x351   :  { %2761 = vst.msk [vmem:[%s12265_s4 + $0x98] sm:$0xff] %vm1301_vm2, %v1841_v40  ;;  %v1853_v31 = vcvt.f32.s32 %v1852_v57  ;;  %3174 = vrot.lane.b32.xlu0 %v2998_v12, %s5774_s20  ;;  %vm2389_vm12 = vcmp.eq.f32.partialorder %v13008_v9, %v9072_v14  ;;  %v13009_v40 = vld [vmem:[#allocation11_spill] sm:$0xff]  ;;  %v1884_v12 = vcvt.f32.s32 %v8556_v1  ;;  %v1899_v1 = vcvt.f32.s32 %v8571_v44 }
 0x352   :  { %v2390_v13 = vsel %vm2389_vm12, %v2385_v27, inf  ;;  %v2413_v57 = vand.u32 65535, %v13009_v40  ;;  %v13010_v27 = vld [vmem:[#allocation61_spill] sm:$0xff]  ;;  %v2926_v40 = vld [vmem:[%s12266_s2 + $0xc0] sm:$0xff] }
 0x353   :  { %v1856_v46 = vadd.s32 %v1855_v53, %v1853_v31  ;;  %2391 = vmin.xlane.f32.xlu1 %v2390_v13 }
 0x354   :  { %v1867_v30 = vpop.xlane.xlu1 %1866  ;;  %v9085_v10 = vpop.xlane.xlu0 %2402  ;;  %v2415_v13 = vcvt.s32.f32 %v2413_v57 }
 0x355   :  { %2762 = vst.msk [vmem:[%s12265_s4 + $0xa0] sm:$0xff] %vm1301_vm2, %v1856_v46  ;;  %v1868_v41 = vcvt.f32.s32 %v1867_v30  ;;  %3178 = vrot.lane.b32.xlu0 %v3000_v38, %s5774_s20  ;;  %vm2404_vm0 = vcmp.eq.f32.partialorder %v13010_v27, %v9085_v10  ;;  %v13011_v46 = vld [vmem:[#allocation62_spill] sm:$0xff]  ;;  %v1885_v38 = vshll.u32 %v1884_v12, 16  ;;  %v1900_v12 = vshll.u32 %v1899_v1, 16 }
 0x356   :  { %v2405_v26 = vsel %vm2404_vm0, %v2400_v61, inf  ;;  %v2428_v30 = vand.u32 65535, %v13011_v46  ;;  %v3004_v61 = vmul.f32 0.1, %v2924_v6  ;;  %v3006_v1 = vmul.f32 0.1, %v2926_v40 }
 0x357   :  { %v1871_v53 = vadd.s32 %v1870_v20, %v1868_v41  ;;  %2406 = vmin.xlane.f32.xlu1 %v2405_v26  ;;  %v13012_v20 = vld [vmem:[#allocation12_spill] sm:$0xff] }
 0x358   :  { %v1882_v31 = vpop.xlane.xlu1 %1881  ;;  %v9100_v9 = vpop.xlane.xlu0 %2417  ;;  %v2430_v26 = vcvt.s32.f32 %v2428_v30  ;;  %v2928_v30 = vld [vmem:[%s12266_s2 + $0xd0] sm:$0xff] }
 0x359   :  { %2763 = vst.msk [vmem:[%s12265_s4 + $0xa8] sm:$0xff] %vm1301_vm2, %v1871_v53  ;;  %v1883_v60 = vcvt.f32.s32 %v1882_v31  ;;  %3182 = vrot.lane.b32.xlu0 %v3002_v25, %s5774_s20  ;;  %vm2419_vm13 = vcmp.eq.f32.partialorder %v13012_v20, %v9100_v9  ;;  %v13013_v53 = vld [vmem:[#allocation63_spill] sm:$0xff]  ;;  %v1914_v25 = vcvt.f32.s32 %v8586_v29  ;;  %v1929_v29 = vcvt.f32.s32 %v8601_v56 }
 0x35a   :  { %v2420_v44 = vsel %vm2419_vm13, %v2415_v13, inf  ;;  %v2443_v31 = vand.u32 65535, %v13013_v53  ;;  %v13014_v13 = vld [vmem:[#allocation64_spill] sm:$0xff]  ;;  %v2930_v53 = vld [vmem:[%s12266_s2 + $0xe0] sm:$0xff] }
 0x35b   :  { %v1886_v57 = vadd.s32 %v1885_v38, %v1883_v60  ;;  %2421 = vmin.xlane.f32.xlu1 %v2420_v44 }
 0x35c   :  { %v1897_v41 = vpop.xlane.xlu1 %1896  ;;  %v9113_v27 = vpop.xlane.xlu0 %2432  ;;  %v2445_v44 = vcvt.s32.f32 %v2443_v31 }
 0x35d   :  { %2764 = vst.msk [vmem:[%s12265_s4 + $0xb0] sm:$0xff] %vm1301_vm2, %v1886_v57  ;;  %v1898_v6 = vcvt.f32.s32 %v1897_v41  ;;  %3186 = vrot.lane.b32.xlu0 %v3004_v61, %s5774_s20  ;;  %vm2434_vm14 = vcmp.eq.f32.partialorder %v13014_v13, %v9113_v27  ;;  %v13015_v57 = vld [vmem:[#allocation13_spill] sm:$0xff]  ;;  %v1915_v61 = vshll.u32 %v1914_v25, 16  ;;  %v1930_v25 = vshll.u32 %v1929_v29, 16 }
 0x35e   :  { %v2435_v46 = vsel %vm2434_vm14, %v2430_v26, inf  ;;  %v2458_v41 = vand.u32 65535, %v13015_v57  ;;  %v3008_v26 = vmul.f32 0.1, %v2928_v30  ;;  %v3010_v29 = vmul.f32 0.1, %v2930_v53 }
 0x35f   :  { %v1901_v38 = vadd.s32 %v1900_v12, %v1898_v6  ;;  %2436 = vmin.xlane.f32.xlu1 %v2435_v46  ;;  %v13016_v12 = vld [vmem:[#allocation65_spill] sm:$0xff] }
 0x360   :  { %v1912_v60 = vpop.xlane.xlu1 %1911  ;;  %v9128_v20 = vpop.xlane.xlu0 %2447  ;;  %v2460_v46 = vcvt.s32.f32 %v2458_v41  ;;  %v2932_v41 = vld [vmem:[%s12266_s2 + $0xf0] sm:$0xff] }
 0x361   :  { %2765 = vst.msk [vmem:[%s12265_s4 + $0xb8] sm:$0xff] %vm1301_vm2, %v1901_v38  ;;  %v1913_v40 = vcvt.f32.s32 %v1912_v60  ;;  %3190 = vrot.lane.b32.xlu0 %v3006_v1, %s5774_s20  ;;  %vm2449_vm15 = vcmp.eq.f32.partialorder %v13016_v12, %v9128_v20  ;;  %v13017_v38 = vld [vmem:[#allocation66_spill] sm:$0xff]  ;;  %v1944_v1 = vcvt.f32.s32 %v8616_v21  ;;  %v1959_v21 = vcvt.f32.s32 %v8631_v11 }
 0x362   :  { %v2450_v56 = vsel %vm2449_vm15, %v2445_v44, inf  ;;  %v2473_v60 = vand.u32 65535, %v13017_v38  ;;  %v13018_v44 = vld [vmem:[#allocation14_spill] sm:$0xff] }
 0x363   :  { %v1916_v31 = vadd.s32 %v1915_v61, %v1913_v40  ;;  %2451 = vmin.xlane.f32.xlu1 %v2450_v56  ;;  %v2934_v38 = vld [vmem:[%s12266_s2 + $0x100] sm:$0xff] }
 0x364   :  { %v1927_v6 = vpop.xlane.xlu1 %1926  ;;  %v9141_v13 = vpop.xlane.xlu0 %2462  ;;  %v2475_v56 = vcvt.s32.f32 %v2473_v60 }
 0x365   :  { %2766 = vst.msk [vmem:[%s12265_s4 + $0xc0] sm:$0xff] %vm1301_vm2, %v1916_v31  ;;  %v1928_v30 = vcvt.f32.s32 %v1927_v6  ;;  %3194 = vrot.lane.b32.xlu0 %v3008_v26, %s5774_s20  ;;  %vm2464_vm1 = vcmp.eq.f32.partialorder %v13018_v44, %v9141_v13  ;;  %v13019_v31 = vld [vmem:[#allocation67_spill] sm:$0xff]  ;;  %v1945_v26 = vshll.u32 %v1944_v1, 16  ;;  %v1960_v1 = vshll.u32 %v1959_v21, 16 }
 0x366   :  { %v2465_v57 = vsel %vm2464_vm1, %v2460_v46, inf  ;;  %v2488_v6 = vand.u32 65535, %v13019_v31  ;;  %v3012_v46 = vmul.f32 0.1, %v2932_v41  ;;  %v3014_v21 = vmul.f32 0.1, %v2934_v38 }
 0x367   :  { %v1931_v61 = vadd.s32 %v1930_v25, %v1928_v30  ;;  %2466 = vmin.xlane.f32.xlu1 %v2465_v57  ;;  %v13020_v25 = vld [vmem:[#allocation68_spill] sm:$0xff] }
 0x368   :  { %v1942_v40 = vpop.xlane.xlu1 %1941  ;;  %v9156_v12 = vpop.xlane.xlu0 %2477  ;;  %v2490_v57 = vcvt.s32.f32 %v2488_v6  ;;  %v2936_v6 = vld [vmem:[%s12266_s2 + $0x110] sm:$0xff] }
 0x369   :  { %2767 = vst.msk [vmem:[%s12265_s4 + $0xc8] sm:$0xff] %vm1301_vm2, %v1931_v61  ;;  %v1943_v53 = vcvt.f32.s32 %v1942_v40  ;;  %3198 = vrot.lane.b32.xlu0 %v3010_v29, %s5774_s20  ;;  %vm2479_vm3 = vcmp.eq.f32.partialorder %v13020_v25, %v9156_v12  ;;  %v13021_v61 = vld [vmem:[#allocation15_spill] sm:$0xff]  ;;  %v1974_v29 = vcvt.f32.s32 %v8646_v33  ;;  %v1989_v33 = vcvt.f32.s32 %v8661_v58 }
 0x36a   :  { %v2480_v11 = vsel %vm2479_vm3, %v2475_v56, inf  ;;  %v2503_v40 = vand.u32 65535, %v13021_v61  ;;  %v13022_v56 = vld [vmem:[#allocation69_spill] sm:$0xff]  ;;  %v2938_v61 = vld [vmem:[%s12266_s2 + $0x120] sm:$0xff] }
 0x36b   :  { %v1946_v60 = vadd.s32 %v1945_v26, %v1943_v53  ;;  %2481 = vmin.xlane.f32.xlu1 %v2480_v11 }
 0x36c   :  { %v1957_v30 = vpop.xlane.xlu1 %1956  ;;  %v9169_v44 = vpop.xlane.xlu0 %2492  ;;  %v2505_v11 = vcvt.s32.f32 %v2503_v40 }
 0x36d   :  { %2768 = vst.msk [vmem:[%s12265_s4 + $0xd0] sm:$0xff] %vm1301_vm2, %v1946_v60  ;;  %v1958_v41 = vcvt.f32.s32 %v1957_v30  ;;  %3202 = vrot.lane.b32.xlu0 %v3012_v46, %s5774_s20  ;;  %vm2494_vm4 = vcmp.eq.f32.partialorder %v13022_v56, %v9169_v44  ;;  %v13023_v60 = vld [vmem:[#allocation70_spill] sm:$0xff]  ;;  %v1975_v46 = vshll.u32 %v1974_v29, 16  ;;  %v1990_v29 = vshll.u32 %v1989_v33, 16 }
 0x36e   :  { %v2495_v31 = vsel %vm2494_vm4, %v2490_v57, inf  ;;  %v2518_v30 = vand.u32 65535, %v13023_v60  ;;  %v3016_v57 = vmul.f32 0.1, %v2936_v6  ;;  %v3018_v33 = vmul.f32 0.1, %v2938_v61 }
 0x36f   :  { %v1961_v26 = vadd.s32 %v1960_v1, %v1958_v41  ;;  %2496 = vmin.xlane.f32.xlu1 %v2495_v31  ;;  %v13024_v1 = vld [vmem:[#allocation16_spill] sm:$0xff]  ;;  %v13027_v61 = vld [vmem:[#allocation17_spill] sm:$0xff] }
 0x370   :  { %v1972_v53 = vpop.xlane.xlu1 %1971  ;;  %v9184_v25 = vpop.xlane.xlu0 %2507  ;;  %v2520_v31 = vcvt.s32.f32 %v2518_v30  ;;  %v2940_v60 = vld [vmem:[%s12266_s2 + $0x130] sm:$0xff] }
 0x371   :  { %2769 = vst.msk [vmem:[%s12265_s4 + $0xd8] sm:$0xff] %vm1301_vm2, %v1961_v26  ;;  %v1973_v38 = vcvt.f32.s32 %v1972_v53  ;;  %3206 = vrot.lane.b32.xlu0 %v3014_v21, %s5774_s20  ;;  %vm2509_vm5 = vcmp.eq.f32.partialorder %v13024_v1, %v9184_v25  ;;  %v13025_v26 = vld [vmem:[#allocation71_spill] sm:$0xff]  ;;  %v2004_v21 = vcvt.f32.s32 %v8676_v0  ;;  %v2019_v0 = vcvt.f32.s32 %v8691_v48 }
 0x372   :  { %v2510_v58 = vsel %vm2509_vm5, %v2505_v11, inf  ;;  %v2533_v53 = vand.u32 65535, %v13025_v26 }
 0x373   :  { %v1976_v40 = vadd.s32 %v1975_v46, %v1973_v38  ;;  %2511 = vmin.xlane.f32.xlu1 %v2510_v58  ;;  %v13026_v58 = vld [vmem:[#allocation72_spill] sm:$0xff]  ;;  %v2020_v26 = vshll.u32 %v2019_v0, 16 }
 0x374   :  { %v1987_v41 = vpop.xlane.xlu1 %1986  ;;  %v9197_v56 = vpop.xlane.xlu0 %2522  ;;  %v2535_v1 = vcvt.s32.f32 %v2533_v53 }
 0x375   :  { %2770 = vst.msk [vmem:[%s12265_s4 + $0xe0] sm:$0xff] %vm1301_vm2, %v1976_v40  ;;  %v1988_v6 = vcvt.f32.s32 %v1987_v41  ;;  %3210 = vrot.lane.b32.xlu0 %v3016_v57, %s5774_s20  ;;  %vm2524_vm6 = vcmp.eq.f32.partialorder %v8664_v28, %v9197_v56  ;;  %v2548_v40 = vand.u32 65535, %v13026_v58  ;;  %v2005_v57 = vshll.u32 %v2004_v21, 16  ;;  %v2942_v41 = vld [vmem:[%s12266_s2 + $0x140] sm:$0xff] }
 0x376   :  { %v2525_v11 = vsel %vm2524_vm6, %v2520_v31, inf  ;;  %vm4983_vm6 = vcmask 31744  }
 0x377   :  { %v1991_v30 = vadd.s32 %v1990_v29, %v1988_v6  ;;  %2526 = vmin.xlane.f32.xlu1 %v2525_v11  ;;  %v3020_v29 = vmul.f32 0.1, %v2940_v60  ;;  %v2550_v6 = vcvt.s32.f32 %v2548_v40  ;;  %v2563_v11 = vand.u32 65535, %v8685_v5 }
 0x378   :  { %v2002_v46 = vpop.xlane.xlu1 %2001  ;;  %v9212_v38 = vpop.xlane.xlu0 %2537 }
 0x379   :  { %2771 = vst.msk [vmem:[%s12265_s4 + $0xe8] sm:$0xff] %vm1301_vm2, %v1991_v30  ;;  %v2003_v28 = vcvt.f32.s32 %v2002_v46  ;;  %3214 = vrot.lane.b32.xlu0 %v3018_v33, %s5774_s20  ;;  %vm2539_vm7 = vcmp.eq.f32.partialorder %v13027_v61, %v9212_v38  ;;  %v2034_v33 = vcvt.f32.s32 %v8706_v43  ;;  %v3022_v30 = vmul.f32 0.1, %v2942_v41  ;;  %v2944_v46 = vld [vmem:[%s12266_s2 + $0x150] sm:$0xff]  ;;  %v2946_v41 = vld [vmem:[%s12266_s2 + $0x160] sm:$0xff] }
 0x37a   :  { %v2540_v48 = vsel %vm2539_vm7, %v2535_v1, inf  ;;  %v2049_v43 = vcvt.f32.s32 %v8721_v4  ;;  %v2565_v40 = vcvt.s32.f32 %v2563_v11 }
 0x37b   :  { %v2006_v31 = vadd.s32 %v2005_v57, %v2003_v28  ;;  %2541 = vmin.xlane.f32.xlu1 %v2540_v48  ;;  %v13028_v57 = vld [vmem:[#allocation73_spill] sm:$0xff]  ;;  %v2035_v61 = vshll.u32 %v2034_v33, 16  ;;  %v3024_v48 = vmul.f32 0.1, %v2944_v46  ;;  %v13030_v33 = vld [vmem:[#allocation18_spill] sm:$0xff] }
 0x37c   :  { %v2017_v53 = vpop.xlane.xlu1 %2016  ;;  %v9225_v21 = vpop.xlane.xlu0 %2552  ;;  %v2578_v28 = vand.u32 65535, %v13028_v57 }
 0x37d   :  { %2772 = vst.msk [vmem:[%s12265_s4 + $0xf0] sm:$0xff] %vm1301_vm2, %v2006_v31  ;;  %v2018_v60 = vcvt.f32.s32 %v2017_v53  ;;  %3218 = vrot.lane.b32.xlu0 %v3020_v29, %s5774_s20  ;;  %vm2554_vm8 = vcmp.eq.f32.partialorder %v8694_v34, %v9225_v21  ;;  %v13029_v29 = vld [vmem:[#allocation74_spill] sm:$0xff] }
 0x37e   :  { %v2555_v0 = vsel %vm2554_vm8, %v2550_v6, inf  ;;  %v2580_v11 = vcvt.s32.f32 %v2578_v28  ;;  %v13033_v28 = vld [vmem:[#allocation34_spill] sm:$0xff] }
 0x37f   :  { %v2021_v5 = vadd.s32 %v2020_v26, %v2018_v60  ;;  %2556 = vmin.xlane.f32.xlu1 %v2555_v0  ;;  %v2050_v26 = vshll.u32 %v2049_v43, 16  ;;  %v2593_v60 = vand.u32 65535, %v13030_v33  ;;  %v13031_v0 = vld [vmem:[#allocation19_spill] sm:$0xff]  ;;  %v3026_v43 = vmul.f32 0.1, %v2946_v41 }
 0x380   :  { %v2032_v1 = vpop.xlane.xlu1 %2031  ;;  %v9240_v58 = vpop.xlane.xlu0 %2567 }
 0x381   :  { %2773 = vst.msk [vmem:[%s12265_s4 + $0xf8] sm:$0xff] %vm1301_vm2, %v2021_v5  ;;  %v2033_v34 = vcvt.f32.s32 %v2032_v1  ;;  %3222 = vrot.lane.b32.xlu0 %v3022_v30, %s5774_s20  ;;  %vm2569_vm9 = vcmp.eq.f32.partialorder %v13029_v29, %v9240_v58  ;;  %v2064_v30 = vcvt.f32.s32 %v13031_v0  ;;  %v13032_v5 = vld [vmem:[#allocation75_spill] sm:$0xff] }
 0x382   :  { %v2570_v4 = vsel %vm2569_vm9, %v2565_v40, inf  ;;  %v2948_v40 = vld [vmem:[%s12266_s2 + $0x170] sm:$0xff] }
 0x383   :  { %v2036_v31 = vadd.s32 %v2035_v61, %v2033_v34  ;;  %2571 = vmin.xlane.f32.xlu1 %v2570_v4  ;;  %v2079_v61 = vcvt.f32.s32 %v13033_v28  ;;  %v2595_v4 = vcvt.s32.f32 %v2593_v60  ;;  %v2950_v60 = vld [vmem:[%s12266_s2 + $0x180] sm:$0xff] }
 0x384   :  { %v2047_v53 = vpop.xlane.xlu1 %2046  ;;  %v9253_v6 = vpop.xlane.xlu0 %2582 }
 0x385   :  { %2774 = vst.msk [vmem:[%s12265_s4 + $0x100] sm:$0xff] %vm1301_vm2, %v2036_v31  ;;  %v2048_v46 = vcvt.f32.s32 %v2047_v53  ;;  %3226 = vrot.lane.b32.xlu0 %v3024_v48, %s5774_s20  ;;  %vm2584_vm10 = vcmp.eq.f32.partialorder %v13032_v5, %v9253_v6  ;;  %v13034_v31 = vld [vmem:[#allocation76_spill] sm:$0xff]  ;;  %v2065_v48 = vshll.u32 %v2064_v30, 16  ;;  %v2080_v30 = vshll.u32 %v2079_v61, 16 }
 0x386   :  { %v2585_v1 = vsel %vm2584_vm10, %v2580_v11, inf  ;;  %v2608_v53 = vand.u32 65535, %v13034_v31  ;;  %v3028_v11 = vmul.f32 0.1, %v2948_v40  ;;  %v3030_v61 = vmul.f32 0.1, %v2950_v60 }
 0x387   :  { %v2051_v57 = vadd.s32 %v2050_v26, %v2048_v46  ;;  %2586 = vmin.xlane.f32.xlu1 %v2585_v1  ;;  %v13035_v26 = vld [vmem:[#allocation77_spill] sm:$0xff]  ;;  %v2952_v31 = vld [vmem:[%s12266_s2 + $0x190] sm:$0xff] }
 0x388   :  { %v2062_v34 = vpop.xlane.xlu1 %2061  ;;  %v9268_v29 = vpop.xlane.xlu0 %2597  ;;  %v2610_v1 = vcvt.s32.f32 %v2608_v53 }
 0x389   :  { %2775 = vst.msk [vmem:[%s12265_s4 + $0x108] sm:$0xff] %vm1301_vm2, %v2051_v57  ;;  %v2063_v41 = vcvt.f32.s32 %v2062_v34  ;;  %3230 = vrot.lane.b32.xlu0 %v3026_v43, %s5774_s20  ;;  %vm2599_vm11 = vcmp.eq.f32.partialorder %v13035_v26, %v9268_v29  ;;  %v13036_v57 = vld [vmem:[#allocation78_spill] sm:$0xff]  ;;  %v2094_v43 = vcvt.f32.s32 %v8772_v39  ;;  %v13037_v34 = vld [vmem:[#allocation79_spill] sm:$0xff]  ;;  %v2109_v39 = vcvt.f32.s32 %v8792_v45 }
 0x38a   :  { %v2600_v33 = vsel %vm2599_vm11, %v2595_v4, inf  ;;  %v2623_v28 = vand.u32 65535, %v13036_v57 }
 0x38b   :  { %v2066_v0 = vadd.s32 %v2065_v48, %v2063_v41  ;;  %2601 = vmin.xlane.f32.xlu1 %v2600_v33  ;;  %v13038_v33 = vld [vmem:[#allocation80_spill] sm:$0xff]  ;;  %v2110_v57 = vshll.u32 %v2109_v39, 16 }
 0x38c   :  { %v2077_v46 = vpop.xlane.xlu1 %2076  ;;  %v9281_v5 = vpop.xlane.xlu0 %2612  ;;  %v2625_v26 = vcvt.s32.f32 %v2623_v28 }
 0x38d   :  { %2776 = vst.msk [vmem:[%s12265_s4 + $0x110] sm:$0xff] %vm1301_vm2, %v2066_v0  ;;  %v2078_v40 = vcvt.f32.s32 %v2077_v46  ;;  %3234 = vrot.lane.b32.xlu0 %v3028_v11, %s5774_s20  ;;  %vm2614_vm12 = vcmp.eq.f32.partialorder %v13037_v34, %v9281_v5  ;;  %v2638_v0 = vand.u32 65535, %v13038_v33  ;;  %v2095_v11 = vshll.u32 %v2094_v43, 16  ;;  %v2954_v46 = vld [vmem:[%s12266_s2 + $0x1a0] sm:$0xff] }
 0x38e   :  { %v2615_v4 = vsel %vm2614_vm12, %v2610_v1, inf  ;;  %v2653_v34 = vand.u32 65535, %v8777_v37  ;;  %v2668_v33 = vand.u32 65535, %v8796_v54 }
 0x38f   :  { %v2081_v53 = vadd.s32 %v2080_v30, %v2078_v40  ;;  %2616 = vmin.xlane.f32.xlu1 %v2615_v4  ;;  %v3032_v30 = vmul.f32 0.1, %v2952_v31  ;;  %v2640_v40 = vcvt.s32.f32 %v2638_v0  ;;  %v3034_v4 = vmul.f32 0.1, %v2954_v46 }
 0x390   :  { %v2092_v48 = vpop.xlane.xlu1 %2091  ;;  %v9296_v41 = vpop.xlane.xlu0 %2627 }
 0x391   :  { %2777 = vst.msk [vmem:[%s12265_s4 + $0x118] sm:$0xff] %vm1301_vm2, %v2081_v53  ;;  %v2093_v60 = vcvt.f32.s32 %v2092_v48  ;;  %3238 = vrot.lane.b32.xlu0 %v3030_v61, %s5774_s20  ;;  %vm2629_vm0 = vcmp.eq.f32.partialorder %v8774_v47, %v9296_v41  ;;  %v2124_v61 = vcvt.f32.s32 %v8814_v36  ;;  %v2956_v53 = vld [vmem:[%s12266_s2 + $0x1b0] sm:$0xff]  ;;  %v2139_v36 = vcvt.f32.s32 %v8838_v7 }
 0x392   :  { %v2630_v45 = vsel %vm2629_vm0, %v2625_v26, inf  ;;  %v2655_v26 = vcvt.s32.f32 %v2653_v34 }
 0x393   :  { %v2096_v1 = vadd.s32 %v2095_v11, %v2093_v60  ;;  %2631 = vmin.xlane.f32.xlu1 %v2630_v45  ;;  %v2125_v0 = vshll.u32 %v2124_v61, 16  ;;  %v3036_v11 = vmul.f32 0.1, %v2956_v53  ;;  %v2958_v60 = vld [vmem:[%s12266_s2 + $0x1c0] sm:$0xff]  ;;  %v2140_v54 = vshll.u32 %v2139_v36, 16 }
 0x394   :  { %v2107_v28 = vpop.xlane.xlu1 %2106  ;;  %v9309_v43 = vpop.xlane.xlu0 %2642  ;;  %v3038_v34 = vmul.f32 0.1, %v2958_v60  ;;  %v2698_v36 = vand.u32 65535, %v8842_v50  ;;  %v13040_v60 = vld [vmem:[#allocation81_spill] sm:$0xff] }
 0x395   :  { %2778 = vst.msk [vmem:[%s12265_s4 + $0x120] sm:$0xff] %vm1301_vm2, %v2096_v1  ;;  %v2108_v47 = vcvt.f32.s32 %v2107_v28  ;;  %3242 = vrot.lane.b32.xlu0 %v3032_v30, %s5774_s20  ;;  %vm2644_vm13 = vcmp.eq.f32.partialorder %v8783_v62, %v9309_v43  ;;  %v2670_v1 = vcvt.s32.f32 %v2668_v33  ;;  %v2962_v33 = vld [vmem:[%s12266_s2 + $0x1e0] sm:$0xff] }
 0x396   :  { %v2645_v31 = vsel %vm2644_vm13, %v2640_v40, inf  ;;  %v2154_v40 = vcvt.f32.s32 %v8857_v24  ;;  %v2169_v24 = vcvt.f32.s32 %v8873_v8 }
 0x397   :  { %v2111_v37 = vadd.s32 %v2110_v57, %v2108_v47  ;;  %2646 = vmin.xlane.f32.xlu1 %v2645_v31  ;;  %v13039_v57 = vld [vmem:[#allocation35_spill] sm:$0xff]  ;;  %v2960_v47 = vld [vmem:[%s12266_s2 + $0x1d0] sm:$0xff] }
 0x398   :  { %v2122_v39 = vpop.xlane.xlu1 %2121  ;;  %v9324_v48 = vpop.xlane.xlu0 %2657  ;;  %v2683_v28 = vand.u32 65535, %v13039_v57  ;;  %v2170_v50 = vshll.u32 %v2169_v24, 16  ;;  %v2964_v57 = vld [vmem:[%s12266_s2 + $0x1f0] sm:$0xff] }
 0x399   :  { %2779 = vst.msk [vmem:[%s12265_s4 + $0x128] sm:$0xff] %vm1301_vm2, %v2111_v37  ;;  %v2123_v62 = vcvt.f32.s32 %v2122_v39  ;;  %3246 = vrot.lane.b32.xlu0 %v3034_v4, %s5774_s20  ;;  %vm2659_vm14 = vcmp.eq.f32.partialorder %v8816_v35, %v9324_v48  ;;  %v2155_v39 = vshll.u32 %v2154_v40, 16  ;;  %v3044_v24 = vmul.f32 0.1, %v2964_v57 }
 0x39a   :  { %v2660_v7 = vsel %vm2659_vm14, %v2655_v26, inf  ;;  %v2685_v37 = vcvt.s32.f32 %v2683_v28  ;;  %v3040_v26 = vmul.f32 0.1, %v2960_v47 }
 0x39b   :  { %v2126_v30 = vadd.s32 %v2125_v0, %v2123_v62  ;;  %2661 = vmin.xlane.f32.xlu1 %v2660_v7  ;;  %v2700_v7 = vcvt.s32.f32 %v2698_v36 }
 0x39c   :  { %v2137_v45 = vpop.xlane.xlu1 %2136  ;;  %v9337_v46 = vpop.xlane.xlu0 %2672 }
 0x39d   :  { %2780 = vst.msk [vmem:[%s12265_s4 + $0x130] sm:$0xff] %vm1301_vm2, %v2126_v30  ;;  %v2138_v35 = vcvt.f32.s32 %v2137_v45  ;;  %3250 = vrot.lane.b32.xlu0 %v3036_v11, %s5774_s20  ;;  %vm2674_vm15 = vcmp.eq.f32.partialorder %v8829_v3, %v9337_v46  ;;  %v2713_v30 = vand.u32 65535, %v13040_v60  ;;  %v3042_v45 = vmul.f32 0.1, %v2962_v33 }
 0x39e   :  { %v2675_v61 = vsel %vm2674_vm15, %v2670_v1, inf }
 0x39f   :  { %v2141_v4 = vadd.s32 %v2140_v54, %v2138_v35  ;;  %2676 = vmin.xlane.f32.xlu1 %v2675_v61  ;;  %v2184_v54 = vcvt.f32.s32 %v8890_v18  ;;  %v2199_v18 = vcvt.f32.s32 %v8904_v42  ;;  %v13041_v61 = vld [vmem:[#allocation82_spill] sm:$0xff] }
 0x3a0   :  { %v2152_v31 = vpop.xlane.xlu1 %2151  ;;  %v9352_v53 = vpop.xlane.xlu0 %2687  ;;  %v2728_v47 = vand.u32 65535, %v13041_v61 }
 0x3a1   :  { %2781 = vst.msk [vmem:[%s12265_s4 + $0x138] sm:$0xff] %vm1301_vm2, %v2141_v4  ;;  %v2153_v3 = vcvt.f32.s32 %v2152_v31  ;;  %3254 = vrot.lane.b32.xlu0 %v3038_v34, %s5774_s20  ;;  %vm2689_vm1 = vcmp.eq.f32.partialorder %v8859_v55, %v9352_v53  ;;  %v2715_v34 = vcvt.s32.f32 %v2713_v30  ;;  %v2185_v4 = vshll.u32 %v2184_v54, 16  ;;  %v2966_v31 = vld [vmem:[%s12266_s2 + $0x200] sm:$0xff] }
 0x3a2   :  { %v2690_v8 = vsel %vm2689_vm1, %v2685_v37, inf  ;;  %v2200_v36 = vshll.u32 %v2199_v18, 16  ;;  %v3046_v33 = vmul.f32 0.1, %v2966_v31  ;;  %v2229_v30 = vcvt.f32.s32 %v8927_v59  ;;  %v2822_v54 = vld [vmem:[%s12267_s1] sm:$0xff] }
 0x3a3   :  { %v2156_v0 = vadd.s32 %v2155_v39, %v2153_v3  ;;  %2691 = vmin.xlane.f32.xlu1 %v2690_v8  ;;  %v2214_v8 = vcvt.f32.s32 %v8917_v32  ;;  %v3542_v57 = vmul.f32 0.2, %v2822_v54 }
 0x3a4   :  { %v2167_v62 = vpop.xlane.xlu1 %2166  ;;  %v9365_v11 = vpop.xlane.xlu0 %2702  ;;  %v2230_v18 = vshll.u32 %v2229_v30, 16 }
 0x3a5   :  { %2782 = vst.msk [vmem:[%s12265_s4 + $0x140] sm:$0xff] %vm1301_vm2, %v2156_v0  ;;  %v2168_v55 = vcvt.f32.s32 %v2167_v62  ;;  %3258 = vrot.lane.b32.xlu0 %v3040_v26, %s5774_s20  ;;  %vm2704_vm3 = vcmp.eq.f32.partialorder %v8875_v51, %v9365_v11  ;;  %v2730_v26 = vcvt.s32.f32 %v2728_v47  ;;  %v2215_v60 = vshll.u32 %v2214_v8, 16 }
 0x3a6   :  { %v2705_v1 = vsel %vm2704_vm3, %v2700_v7, inf }
 0x3a7   :  { %v2171_v28 = vadd.s32 %v2170_v50, %v2168_v55  ;;  %2706 = vmin.xlane.f32.xlu1 %v2705_v1  ;;  %v2968_v50 = vld [vmem:[%s12266_s2 + $0x210] sm:$0xff] }
 0x3a8   :  { %v2182_v40 = vpop.xlane.xlu1 %2181  ;;  %v9380_v35 = vpop.xlane.xlu0 %2717  ;;  %v3048_v55 = vmul.f32 0.1, %v2968_v50  ;;  %v2903_v50 = vld [vmem:[%s12266_s2 + $0x8] sm:$0xff] }
 0x3a9   :  { %2783 = vst.msk [vmem:[%s12265_s4 + $0x148] sm:$0xff] %vm1301_vm2, %v2171_v28  ;;  %v2183_v51 = vcvt.f32.s32 %v2182_v40  ;;  %3262 = vrot.lane.b32.xlu0 %v3042_v45, %s5774_s20  ;;  %vm2719_vm4 = vcmp.eq.f32.partialorder %v8892_v49, %v9380_v35  ;;  %v2970_v45 = vld [vmem:[%s12266_s2 + $0x220] sm:$0xff]  ;;  %v13042_v40 = vld [vmem:[#allocation20_spill] sm:$0xff]  ;;  %v2983_v54 = vmul.f32 0.1, %v2903_v50 }
 0x3aa   :  { %v2720_v42 = vsel %vm2719_vm4, %v2715_v34, inf  ;;  %v2244_v34 = vcvt.f32.s32 %v13042_v40  ;;  %v3050_v47 = vmul.f32 0.1, %v2970_v45  ;;  %v9465_v40 = vld [vmem:[%s12266_s2 + $0x10] sm:$0xff] }
 0x3ab   :  { %v2186_v37 = vadd.s32 %v2185_v4, %v2183_v51  ;;  %2721 = vmin.xlane.f32.xlu1 %v2720_v42  ;;  %v2824_v4 = vld [vmem:[%s12267_s1 + $0x10] sm:$0xff]  ;;  %v3622_v42 = vmul.f32 1.442695, %v3542_v57 }
 0x3ac   :  { %v2197_v39 = vpop.xlane.xlu1 %2196  ;;  %v9393_v3 = vpop.xlane.xlu0 %2732  ;;  %v2972_v51 = vld [vmem:[%s12266_s2 + $0x230] sm:$0xff] }
 0x3ad   :  { %2784 = vst.msk [vmem:[%s12265_s4 + $0x150] sm:$0xff] %vm1301_vm2, %v2186_v37  ;;  %v2198_v49 = vcvt.f32.s32 %v2197_v39  ;;  %3266 = vrot.lane.b32.xlu0 %v3044_v24, %s5774_s20  ;;  %vm2734_vm5 = vcmp.eq.f32.partialorder %v8906_v15, %v9393_v3  ;;  %v2245_v39 = vshll.u32 %v2244_v34, 16  ;;  %5398 = vpow2.f32 %v3622_v42  ;;  %v2828_v57 = vld [vmem:[%s12267_s1 + $0x30] sm:$0xff] }
 0x3ae   :  { %v2735_v0 = vsel %vm2734_vm5, %v2730_v26, inf  ;;  %v13043_v26 = vld [vmem:[#allocation83_spill] sm:$0xff] }
 0x3af   :  { %v2201_v62 = vadd.s32 %v2200_v36, %v2198_v49  ;;  %2736 = vmin.xlane.f32.xlu1 %v2735_v0  ;;  %v3544_v36 = vmul.f32 0.2, %v2824_v4  ;;  %v2259_v8 = vcvt.f32.s32 %v13043_v26  ;;  %v2826_v49 = vld [vmem:[%s12267_s1 + $0x20] sm:$0xff]  ;;  %v3052_v0 = vmul.f32 0.1, %v2972_v51 }
 0x3b0   :  { %v2212_v32 = vpop.xlane.xlu1 %2211  ;;  %v9406_v7 = vpop.permute.xlu0 %3142 }
 0x3b1   :  { %2785 = vst.msk [vmem:[%s12265_s4 + $0x158] sm:$0xff] %vm1301_vm2, %v2201_v62  ;;  %v2213_v15 = vcvt.f32.s32 %v2212_v32  ;;  %3270 = vrot.lane.b32.xlu0 %v3046_v33, %s5774_s20  ;;  %v2974_v62 = vld [vmem:[%s12266_s2 + $0x240] sm:$0xff]  ;;  %v2260_v45 = vshll.u32 %v2259_v8, 16  ;;  %v2905_v8 = vld [vmem:[%s12266_s2 + $0x18] sm:$0xff] }
 0x3b3   :  { %v2216_v1 = vadd.s32 %v2215_v60, %v2213_v15  ;;  %v3546_v60 = vmul.f32 0.2, %v2826_v49  ;;  %v2304_v49 = vcvt.f32.s32 %v8988_v2  ;;  %v2832_v2 = vld [vmem:[%s12267_s1 + $0x50] sm:$0xff] }
 0x3b4   :  { %v2227_v59 = vpop.xlane.xlu1 %2226  ;;  %v9420_v28 = vpop.permute.xlu0 %3150 }
 0x3b5   :  { %2786 = vst.msk [vmem:[%s12265_s4 + $0x160] sm:$0xff] %vm1301_vm2, %v2216_v1  ;;  %v2228_v61 = vcvt.f32.s32 %v2227_v59  ;;  %3274 = vrot.lane.b32.xlu0 %v3048_v55, %s5774_s20  ;;  %v3626_v55 = vmul.f32 1.442695, %v3544_v36  ;;  %v2274_v1 = vcvt.f32.s32 %v8961_v17  ;;  %v2976_v17 = vld [vmem:[%s12266_s2 + $0x250] sm:$0xff]  ;;  %v2830_v36 = vld [vmem:[%s12267_s1 + $0x40] sm:$0xff] }
 0x3b6   :  { %v3056_v26 = vmul.f32 0.1, %v2976_v17  ;;  %v3550_v50 = vmul.f32 0.2, %v2830_v36 }
 0x3b7   :  { %v2231_v24 = vadd.s32 %v2230_v18, %v2228_v61  ;;  %v3054_v18 = vmul.f32 0.1, %v2974_v62  ;;  %v3630_v61 = vmul.f32 1.442695, %v3546_v60  ;;  %5400 = vpow2.f32 %v3626_v55 }
 0x3b8   :  { %v2242_v31 = vpop.xlane.xlu1 %2241  ;;  %v9434_v37 = vpop.permute.xlu0 %3154  ;;  %v2275_v42 = vshll.u32 %v2274_v1, 16  ;;  %v2985_v60 = vmul.f32 0.1, %v2905_v8  ;;  %v3638_v17 = vmul.f32 1.442695, %v3550_v50 }
 0x3b9   :  { %2787 = vst.msk [vmem:[%s12265_s4 + $0x168] sm:$0xff] %vm1301_vm2, %v2231_v24  ;;  %v2243_v33 = vcvt.f32.s32 %v2242_v31  ;;  %3278 = vrot.lane.b32.xlu0 %v3050_v47, %s5774_s20  ;;  %v3548_v47 = vmul.f32 0.2, %v2828_v57  ;;  %v2984_v24 = vmul.f32 0.1, %v9465_v40  ;;  %v2289_v31 = vcvt.f32.s32 %v8973_v22  ;;  %v2978_v22 = vld [vmem:[%s12266_s2 + $0x260] sm:$0xff]  ;;  %v5399_v1 = vpop.eup %5398 }
 0x3ba   :  { %5402 = vpow2.f32 %v3630_v61  ;;  %v3058_v55 = vmul.f32 0.1, %v2978_v22  ;;  %v2980_v57 = vld [vmem:[%s12266_s2 + $0x270] sm:$0xff]  ;;  %v2334_v22 = vcvt.f32.s32 %v9016_v52 }
 0x3bb   :  { %v2246_v32 = vadd.s32 %v2245_v39, %v2243_v33  ;;  %v3060_v36 = vmul.f32 0.1, %v2980_v57  ;;  %v2836_v52 = vld [vmem:[%s12267_s1 + $0x70] sm:$0xff] }
 0x3bc   :  { %v2257_v30 = vpop.xlane.xlu1 %2256  ;;  %v9451_v15 = vpop.permute.xlu0 %3158  ;;  %v2335_v57 = vshll.u32 %v2334_v22, 16 }
 0x3bd   :  { %2788 = vst.msk [vmem:[%s12265_s4 + $0x170] sm:$0xff] %vm1301_vm2, %v2246_v32  ;;  %v2258_v59 = vcvt.f32.s32 %v2257_v30  ;;  %3282 = vrot.lane.b32.xlu0 %v3052_v0, %s5774_s20  ;;  %v3634_v0 = vmul.f32 1.442695, %v3548_v47  ;;  %v2290_v30 = vshll.u32 %v2289_v31, 16 }
 0x3bf   :  { %v2261_v34 = vadd.s32 %v2260_v45, %v2258_v59  ;;  %v2907_v45 = vld [vmem:[%s12266_s2 + $0x28] sm:$0xff]  ;;  %v2305_v59 = vshll.u32 %v2304_v49, 16  ;;  %5404 = vpow2.f32 %v3634_v0 }
 0x3c0   :  { %v2272_v4 = vpop.xlane.xlu1 %2271  ;;  %3144 = vrot.lane.b32.xlu1 %v2983_v54, %s5774_s20  ;;  %v9471_v51 = vpop.permute.xlu0 %3162  ;;  %5406 = vpow2.f32 %v3638_v17  ;;  %v3556_v17 = vmul.f32 0.2, %v2836_v52 }
 0x3c1   :  { %2789 = vst.msk [vmem:[%s12265_s4 + $0x178] sm:$0xff] %vm1301_vm2, %v2261_v34  ;;  %v2273_v39 = vcvt.f32.s32 %v2272_v4  ;;  %3286 = vrot.lane.b32.xlu0 %v3054_v18, %s5774_s20  ;;  %v3552_v34 = vmul.f32 0.2, %v2832_v2  ;;  %v2987_v4 = vmul.f32 0.1, %v2907_v45  ;;  %v5401_v8 = vpop.eup %5400 }
 0x3c2   :  { %v3784_v45 = vmul.f32 %v5401_v8, %v9465_v40  ;;  %v2838_v40 = vld [vmem:[%s12267_s1 + $0x80] sm:$0xff]  ;;  %v3650_v22 = vmul.f32 1.442695, %v3556_v17 }
 0x3c3   :  { %v2276_v33 = vadd.s32 %v2275_v42, %v2273_v39  ;;  %v2834_v42 = vld [vmem:[%s12267_s1 + $0x60] sm:$0xff]  ;;  %v2909_v39 = vld [vmem:[%s12266_s2 + $0x38] sm:$0xff] }
 0x3c4   :  { %v2287_v62 = vpop.xlane.xlu1 %2286  ;;  %3146 = vrot.lane.b32.xlu1 %v2984_v24, %s5774_s20  ;;  %v9491_v32 = vpop.permute.xlu0 %3166  ;;  %v2319_v24 = vcvt.f32.s32 %v9001_v23  ;;  %v5564_v23 = vld [vmem:[%s12266_s2] sm:$0xff]  ;;  %v3554_v0 = vmul.f32 0.2, %v2834_v42 }
 0x3c5   :  { %2790 = vst.msk [vmem:[%s12265_s4 + $0x180] sm:$0xff] %vm1301_vm2, %v2276_v33  ;;  %v2288_v54 = vcvt.f32.s32 %v2287_v62  ;;  %3290 = vrot.lane.b32.xlu0 %v3056_v26, %s5774_s20  ;;  %v3782_v26 = vmul.f32 %v5564_v23, %v5399_v1  ;;  %v3642_v33 = vmul.f32 1.442695, %v3552_v34  ;;  %v5403_v1 = vpop.eup %5402 }
 0x3c7   :  { %v2291_v18 = vadd.s32 %v2290_v30, %v2288_v54  ;;  %v2320_v30 = vshll.u32 %v2319_v24, 16  ;;  %v3862_v54 = vmul.f32 0.5, %v3782_v26  ;;  %5408 = vpow2.f32 %v3642_v33 }
 0x3c8   :  { %v2302_v61 = vpop.xlane.xlu1 %2301  ;;  %3148 = vrot.lane.b32.xlu1 %v2985_v60, %s5774_s20  ;;  %v9508_v47 = vpop.permute.xlu0 %3170  ;;  %v2989_v60 = vmul.f32 0.1, %v2909_v39  ;;  %v2349_v24 = vcvt.f32.s32 %v9029_v63  ;;  %v5565_v63 = vld [vmem:[%s12266_s2 + $0x20] sm:$0xff]  ;;  %v2364_v26 = vcvt.f32.s32 %v9044_v16  ;;  %v2840_v16 = vld [vmem:[%s12267_s1 + $0x90] sm:$0xff] }
 0x3c9   :  { %2791 = vst.msk [vmem:[%s12265_s4 + $0x188] sm:$0xff] %vm1301_vm2, %v2291_v18  ;;  %v2303_v31 = vcvt.f32.s32 %v2302_v61  ;;  %3294 = vrot.lane.b32.xlu0 %v3058_v55, %s5774_s20  ;;  %v2911_v55 = vld [vmem:[%s12266_s2 + $0x48] sm:$0xff]  ;;  %v3646_v18 = vmul.f32 1.442695, %v3554_v0  ;;  %v3786_v39 = vmul.f32 %v5565_v63, %v5403_v1  ;;  %v5405_v23 = vpop.eup %5404 }
 0x3ca   :  { %v2365_v1 = vshll.u32 %v2364_v26, 16 }
 0x3cb   :  { %v2306_v49 = vadd.s32 %v2305_v59, %v2303_v31  ;;  %v3864_v31 = vmul.f32 0.5, %v3784_v45  ;;  %5410 = vpow2.f32 %v3646_v18  ;;  %v3866_v52 = vmul.f32 0.5, %v3786_v39  ;;  %v5407_v45 = vpop.eup %5406 }
 0x3cc   :  { %v2317_v50 = vpop.xlane.xlu1 %2316  ;;  %3152 = vrot.lane.b32.xlu1 %v2987_v4, %s5774_s20  ;;  %v9527_v62 = vpop.permute.xlu0 %3174  ;;  %v2991_v4 = vmul.f32 0.1, %v2911_v55  ;;  %5412 = vpow2.f32 %v3650_v22  ;;  %v3560_v18 = vmul.f32 0.2, %v2840_v16 }
 0x3cd   :  { %2792 = vst.msk [vmem:[%s12265_s4 + $0x190] sm:$0xff] %vm1301_vm2, %v2306_v49  ;;  %v2318_v2 = vcvt.f32.s32 %v2317_v50  ;;  %3298 = vrot.lane.b32.xlu0 %v3060_v36, %s5774_s20  ;;  %v2913_v36 = vld [vmem:[%s12266_s2 + $0x58] sm:$0xff]  ;;  %v3558_v49 = vmul.f32 0.2, %v2838_v40  ;;  %v2842_v40 = vld [vmem:[%s12267_s1 + $0xa0] sm:$0xff] }
 0x3ce   :  { %v2993_v50 = vmul.f32 0.1, %v2913_v36  ;;  %v2917_v36 = vld [vmem:[%s12266_s2 + $0x78] sm:$0xff]  ;;  %v3562_v22 = vmul.f32 0.2, %v2842_v40  ;;  %v2846_v40 = vld [vmem:[%s12267_s1 + $0xc0] sm:$0xff] }
 0x3cf   :  { %v2321_v59 = vadd.s32 %v2320_v30, %v2318_v2  ;;  %v2915_v2 = vld [vmem:[%s12266_s2 + $0x68] sm:$0xff] }
 0x3d0   :  { %v2332_v34 = vpop.xlane.xlu1 %2331  ;;  %3156 = vrot.lane.b32.xlu1 %v2989_v60, %s5774_s20  ;;  %v9542_v61 = vpop.permute.xlu0 %3178  ;;  %v2350_v60 = vshll.u32 %v2349_v24, 16  ;;  %v2379_v24 = vcvt.f32.s32 %v9057_v19  ;;  %v5567_v19 = vld [vmem:[%s12266_s2 + $0x40] sm:$0xff] }
 0x3d1   :  { %2793 = vst.msk [vmem:[%s12265_s4 + $0x198] sm:$0xff] %vm1301_vm2, %v2321_v59  ;;  %v2333_v42 = vcvt.f32.s32 %v2332_v34  ;;  %4022 = vrot.lane.b32.xlu0 %v3862_v54, %s5774_s20  ;;  %v5566_v54 = vld [vmem:[%s12266_s2 + $0x30] sm:$0xff]  ;;  %v3654_v59 = vmul.f32 1.442695, %v3558_v49  ;;  %v3790_v63 = vmul.f32 %v5567_v19, %v5407_v45  ;;  %v5409_v39 = vpop.eup %5408 }
 0x3d2   :  { %v3788_v55 = vmul.f32 %v5566_v54, %v5405_v23  ;;  %v2394_v23 = vcvt.f32.s32 %v9072_v14  ;;  %v2844_v14 = vld [vmem:[%s12267_s1 + $0xb0] sm:$0xff] }
 0x3d3   :  { %v2336_v8 = vadd.s32 %v2335_v57, %v2333_v42  ;;  %5414 = vpow2.f32 %v3654_v59  ;;  %v3564_v59 = vmul.f32 0.2, %v2844_v14 }
 0x3d4   :  { %v2347_v33 = vpop.xlane.xlu1 %2346  ;;  %3160 = vrot.lane.b32.xlu1 %v2991_v4, %s5774_s20  ;;  %v9561_v0 = vpop.permute.xlu0 %3182  ;;  %v2995_v4 = vmul.f32 0.1, %v2915_v2  ;;  %v5568_v2 = vld [vmem:[%s12266_s2 + $0x50] sm:$0xff]  ;;  %v2395_v45 = vshll.u32 %v2394_v23, 16 }
 0x3d5   :  { %2794 = vst.msk [vmem:[%s12265_s4 + $0x1a0] sm:$0xff] %vm1301_vm2, %v2336_v8  ;;  %v2348_v30 = vcvt.f32.s32 %v2347_v33  ;;  %4026 = vrot.lane.b32.xlu0 %v3864_v31, %s5774_s20  ;;  %v3868_v31 = vmul.f32 0.5, %v3788_v55  ;;  %v3658_v8 = vmul.f32 1.442695, %v3560_v18  ;;  %v3792_v54 = vmul.f32 %v5568_v2, %v5409_v39  ;;  %v5411_v55 = vpop.eup %5410 }
 0x3d6   :  { %v2424_v39 = vcvt.f32.s32 %v9100_v9  ;;  %v2848_v9 = vld [vmem:[%s12267_s1 + $0xd0] sm:$0xff] }
 0x3d7   :  { %v2351_v57 = vadd.s32 %v2350_v60, %v2348_v30  ;;  %v2380_v60 = vshll.u32 %v2379_v24, 16  ;;  %v3870_v30 = vmul.f32 0.5, %v3790_v63  ;;  %5416 = vpow2.f32 %v3658_v8  ;;  %v5413_v63 = vpop.eup %5412 }
 0x3d8   :  { %v2362_v17 = vpop.xlane.xlu1 %2361  ;;  %3164 = vrot.lane.b32.xlu1 %v2993_v50, %s5774_s20  ;;  %v9578_v34 = vpop.permute.xlu0 %3186  ;;  %v2997_v50 = vmul.f32 0.1, %v2917_v36  ;;  %v2409_v24 = vcvt.f32.s32 %v9085_v10  ;;  %v2921_v36 = vld [vmem:[%s12266_s2 + $0x98] sm:$0xff]  ;;  %v5569_v10 = vld [vmem:[%s12266_s2 + $0x60] sm:$0xff]  ;;  %v3566_v8 = vmul.f32 0.2, %v2846_v40 }
 0x3d9   :  { %2795 = vst.msk [vmem:[%s12265_s4 + $0x1a8] sm:$0xff] %vm1301_vm2, %v2351_v57  ;;  %v2363_v42 = vcvt.f32.s32 %v2362_v17  ;;  %4030 = vrot.lane.b32.xlu0 %v3866_v52, %s5774_s20  ;;  %v2919_v52 = vld [vmem:[%s12266_s2 + $0x88] sm:$0xff]  ;;  %v3662_v57 = vmul.f32 1.442695, %v3562_v22  ;;  %v3794_v19 = vmul.f32 %v5569_v10, %v5411_v55  ;;  %v2425_v55 = vshll.u32 %v2424_v39, 16  ;;  %v2850_v40 = vld [vmem:[%s12267_s1 + $0xe0] sm:$0xff] }
 0x3db   :  { %v2366_v26 = vadd.s32 %v2365_v1, %v2363_v42  ;;  %5418 = vpow2.f32 %v3662_v57  ;;  %v3568_v57 = vmul.f32 0.2, %v2848_v9 }
 0x3dc   :  { %v2377_v49 = vpop.xlane.xlu1 %2376  ;;  %3168 = vrot.lane.b32.xlu1 %v2995_v4, %s5774_s20  ;;  %v9597_v33 = vpop.permute.xlu0 %3190  ;;  %v2999_v4 = vmul.f32 0.1, %v2919_v52  ;;  %v5570_v52 = vld [vmem:[%s12266_s2 + $0x70] sm:$0xff] }
 0x3dd   :  { %2796 = vst.msk [vmem:[%s12265_s4 + $0x1b0] sm:$0xff] %vm1301_vm2, %v2366_v26  ;;  %v2378_v16 = vcvt.f32.s32 %v2377_v49  ;;  %4034 = vrot.lane.b32.xlu0 %v3868_v31, %s5774_s20  ;;  %v3872_v31 = vmul.f32 0.5, %v3792_v54  ;;  %v3666_v26 = vmul.f32 1.442695, %v3564_v59  ;;  %v3796_v2 = vmul.f32 %v5570_v52, %v5413_v63  ;;  %v5415_v54 = vpop.eup %5414 }
 0x3de   :  { %v2454_v63 = vcvt.f32.s32 %v9128_v20  ;;  %v2852_v20 = vld [vmem:[%s12267_s1 + $0xf0] sm:$0xff] }
 0x3df   :  { %v2381_v1 = vadd.s32 %v2380_v60, %v2378_v16  ;;  %v2410_v60 = vshll.u32 %v2409_v24, 16  ;;  %v3874_v16 = vmul.f32 0.5, %v3794_v19  ;;  %5420 = vpow2.f32 %v3666_v26 }
 0x3e0   :  { %v2392_v18 = vpop.xlane.xlu1 %2391  ;;  %3172 = vrot.lane.b32.xlu1 %v2997_v50, %s5774_s20  ;;  %v9614_v17 = vpop.permute.xlu0 %3194  ;;  %v3001_v50 = vmul.f32 0.1, %v2921_v36  ;;  %v2439_v24 = vcvt.f32.s32 %v9113_v27  ;;  %v2925_v36 = vld [vmem:[%s12266_s2 + $0xb8] sm:$0xff]  ;;  %v5571_v27 = vld [vmem:[%s12266_s2 + $0x80] sm:$0xff]  ;;  %v3570_v26 = vmul.f32 0.2, %v2850_v40 }
 0x3e1   :  { %2797 = vst.msk [vmem:[%s12265_s4 + $0x1b8] sm:$0xff] %vm1301_vm2, %v2381_v1  ;;  %v2393_v42 = vcvt.f32.s32 %v2392_v18  ;;  %4038 = vrot.lane.b32.xlu0 %v3870_v30, %s5774_s20  ;;  %v2923_v30 = vld [vmem:[%s12266_s2 + $0xa8] sm:$0xff]  ;;  %v3670_v1 = vmul.f32 1.442695, %v3566_v8  ;;  %v3798_v10 = vmul.f32 %v5571_v27, %v5415_v54  ;;  %v5417_v19 = vpop.eup %5416  ;;  %v2455_v54 = vshll.u32 %v2454_v63, 16  ;;  %v2854_v40 = vld [vmem:[%s12267_s1 + $0x100] sm:$0xff] }
 0x3e3   :  { %v2396_v23 = vadd.s32 %v2395_v45, %v2393_v42  ;;  %5422 = vpow2.f32 %v3670_v1  ;;  %v3572_v1 = vmul.f32 0.2, %v2852_v20 }
 0x3e4   :  { %v2407_v22 = vpop.xlane.xlu1 %2406  ;;  %3176 = vrot.lane.b32.xlu1 %v2999_v4, %s5774_s20  ;;  %v9633_v49 = vpop.permute.xlu0 %3198  ;;  %v3003_v4 = vmul.f32 0.1, %v2923_v30  ;;  %v5572_v30 = vld [vmem:[%s12266_s2 + $0x90] sm:$0xff] }
 0x3e5   :  { %2798 = vst.msk [vmem:[%s12265_s4 + $0x1c0] sm:$0xff] %vm1301_vm2, %v2396_v23  ;;  %v2408_v14 = vcvt.f32.s32 %v2407_v22  ;;  %4042 = vrot.lane.b32.xlu0 %v3872_v31, %s5774_s20  ;;  %v3876_v31 = vmul.f32 0.5, %v3796_v2  ;;  %v3674_v23 = vmul.f32 1.442695, %v3568_v57  ;;  %v3800_v52 = vmul.f32 %v5572_v30, %v5417_v19  ;;  %v5419_v2 = vpop.eup %5418 }
 0x3e6   :  { %v2484_v19 = vcvt.f32.s32 %v9156_v12  ;;  %v2856_v12 = vld [vmem:[%s12267_s1 + $0x110] sm:$0xff] }
 0x3e7   :  { %v2411_v45 = vadd.s32 %v2410_v60, %v2408_v14  ;;  %v2440_v60 = vshll.u32 %v2439_v24, 16  ;;  %v3878_v14 = vmul.f32 0.5, %v3798_v10  ;;  %5424 = vpow2.f32 %v3674_v23 }
 0x3e8   :  { %v2422_v59 = vpop.xlane.xlu1 %2421  ;;  %3180 = vrot.lane.b32.xlu1 %v3001_v50, %s5774_s20  ;;  %v9650_v18 = vpop.permute.xlu0 %3202  ;;  %v3005_v50 = vmul.f32 0.1, %v2925_v36  ;;  %v2469_v24 = vcvt.f32.s32 %v9141_v13  ;;  %v2929_v36 = vld [vmem:[%s12266_s2 + $0xd8] sm:$0xff]  ;;  %v5573_v13 = vld [vmem:[%s12266_s2 + $0xa0] sm:$0xff]  ;;  %v3574_v23 = vmul.f32 0.2, %v2854_v40 }
 0x3e9   :  { %2799 = vst.msk [vmem:[%s12265_s4 + $0x1c8] sm:$0xff] %vm1301_vm2, %v2411_v45  ;;  %v2423_v42 = vcvt.f32.s32 %v2422_v59  ;;  %4046 = vrot.lane.b32.xlu0 %v3874_v16, %s5774_s20  ;;  %v2927_v16 = vld [vmem:[%s12266_s2 + $0xc8] sm:$0xff]  ;;  %v3678_v45 = vmul.f32 1.442695, %v3570_v26  ;;  %v3802_v27 = vmul.f32 %v5573_v13, %v5419_v2  ;;  %v5421_v10 = vpop.eup %5420  ;;  %v2485_v2 = vshll.u32 %v2484_v19, 16  ;;  %v2858_v40 = vld [vmem:[%s12267_s1 + $0x120] sm:$0xff] }
 0x3eb   :  { %v2426_v39 = vadd.s32 %v2425_v55, %v2423_v42  ;;  %5426 = vpow2.f32 %v3678_v45  ;;  %v3576_v45 = vmul.f32 0.2, %v2856_v12 }
 0x3ec   :  { %v2437_v8 = vpop.xlane.xlu1 %2436  ;;  %3184 = vrot.lane.b32.xlu1 %v3003_v4, %s5774_s20  ;;  %v9669_v22 = vpop.permute.xlu0 %3206  ;;  %v3007_v4 = vmul.f32 0.1, %v2927_v16  ;;  %v5574_v16 = vld [vmem:[%s12266_s2 + $0xb0] sm:$0xff] }
 0x3ed   :  { %2800 = vst.msk [vmem:[%s12265_s4 + $0x1d0] sm:$0xff] %vm1301_vm2, %v2426_v39  ;;  %v2438_v9 = vcvt.f32.s32 %v2437_v8  ;;  %4050 = vrot.lane.b32.xlu0 %v3876_v31, %s5774_s20  ;;  %v3880_v31 = vmul.f32 0.5, %v3800_v52  ;;  %v3682_v39 = vmul.f32 1.442695, %v3572_v1  ;;  %v3804_v30 = vmul.f32 %v5574_v16, %v5421_v10  ;;  %v5423_v52 = vpop.eup %5422 }
 0x3ee   :  { %v2514_v10 = vcvt.f32.s32 %v9184_v25  ;;  %v2860_v25 = vld [vmem:[%s12267_s1 + $0x130] sm:$0xff] }
 0x3ef   :  { %v2441_v55 = vadd.s32 %v2440_v60, %v2438_v9  ;;  %v2470_v60 = vshll.u32 %v2469_v24, 16  ;;  %v3882_v9 = vmul.f32 0.5, %v3802_v27  ;;  %5428 = vpow2.f32 %v3682_v39 }
 0x3f0   :  { %v2452_v57 = vpop.xlane.xlu1 %2451  ;;  %3188 = vrot.lane.b32.xlu1 %v3005_v50, %s5774_s20  ;;  %v9686_v59 = vpop.permute.xlu0 %3210  ;;  %v3009_v50 = vmul.f32 0.1, %v2929_v36  ;;  %v2499_v24 = vcvt.f32.s32 %v9169_v44  ;;  %v2933_v36 = vld [vmem:[%s12266_s2 + $0xf8] sm:$0xff]  ;;  %v5575_v44 = vld [vmem:[%s12266_s2 + $0xc0] sm:$0xff]  ;;  %v3578_v39 = vmul.f32 0.2, %v2858_v40 }
 0x3f1   :  { %2801 = vst.msk [vmem:[%s12265_s4 + $0x1d8] sm:$0xff] %vm1301_vm2, %v2441_v55  ;;  %v2453_v42 = vcvt.f32.s32 %v2452_v57  ;;  %4054 = vrot.lane.b32.xlu0 %v3878_v14, %s5774_s20  ;;  %v2931_v14 = vld [vmem:[%s12266_s2 + $0xe8] sm:$0xff]  ;;  %v3686_v55 = vmul.f32 1.442695, %v3574_v23  ;;  %v3806_v13 = vmul.f32 %v5575_v44, %v5423_v52  ;;  %v5425_v27 = vpop.eup %5424  ;;  %v2515_v52 = vshll.u32 %v2514_v10, 16  ;;  %v2862_v40 = vld [vmem:[%s12267_s1 + $0x140] sm:$0xff] }
 0x3f3   :  { %v2456_v63 = vadd.s32 %v2455_v54, %v2453_v42  ;;  %5430 = vpow2.f32 %v3686_v55  ;;  %v3580_v55 = vmul.f32 0.2, %v2860_v25 }
 0x3f4   :  { %v2467_v26 = vpop.xlane.xlu1 %2466  ;;  %3192 = vrot.lane.b32.xlu1 %v3007_v4, %s5774_s20  ;;  %v9705_v8 = vpop.permute.xlu0 %3214  ;;  %v3011_v4 = vmul.f32 0.1, %v2931_v14  ;;  %v5576_v14 = vld [vmem:[%s12266_s2 + $0xd0] sm:$0xff] }
 0x3f5   :  { %2802 = vst.msk [vmem:[%s12265_s4 + $0x1e0] sm:$0xff] %vm1301_vm2, %v2456_v63  ;;  %v2468_v20 = vcvt.f32.s32 %v2467_v26  ;;  %4058 = vrot.lane.b32.xlu0 %v3880_v31, %s5774_s20  ;;  %v3884_v31 = vmul.f32 0.5, %v3804_v30  ;;  %v3690_v63 = vmul.f32 1.442695, %v3576_v45  ;;  %v3808_v16 = vmul.f32 %v5576_v14, %v5425_v27  ;;  %v5427_v30 = vpop.eup %5426 }
 0x3f6   :  { %v2544_v27 = vcvt.f32.s32 %v9212_v38  ;;  %v2864_v38 = vld [vmem:[%s12267_s1 + $0x150] sm:$0xff] }
 0x3f7   :  { %v2471_v54 = vadd.s32 %v2470_v60, %v2468_v20  ;;  %v2500_v60 = vshll.u32 %v2499_v24, 16  ;;  %v3886_v20 = vmul.f32 0.5, %v3806_v13  ;;  %5432 = vpow2.f32 %v3690_v63 }
 0x3f8   :  { %v2482_v1 = vpop.xlane.xlu1 %2481  ;;  %3196 = vrot.lane.b32.xlu1 %v3009_v50, %s5774_s20  ;;  %v9722_v57 = vpop.permute.xlu0 %3218  ;;  %v3013_v50 = vmul.f32 0.1, %v2933_v36  ;;  %v2529_v24 = vcvt.f32.s32 %v9197_v56  ;;  %v2937_v36 = vld [vmem:[%s12266_s2 + $0x118] sm:$0xff]  ;;  %v5577_v56 = vld [vmem:[%s12266_s2 + $0xe0] sm:$0xff]  ;;  %v3582_v63 = vmul.f32 0.2, %v2862_v40 }
 0x3f9   :  { %2803 = vst.msk [vmem:[%s12265_s4 + $0x1e8] sm:$0xff] %vm1301_vm2, %v2471_v54  ;;  %v2483_v42 = vcvt.f32.s32 %v2482_v1  ;;  %4062 = vrot.lane.b32.xlu0 %v3882_v9, %s5774_s20  ;;  %v2935_v9 = vld [vmem:[%s12266_s2 + $0x108] sm:$0xff]  ;;  %v3694_v54 = vmul.f32 1.442695, %v3578_v39  ;;  %v3810_v44 = vmul.f32 %v5577_v56, %v5427_v30  ;;  %v5429_v13 = vpop.eup %5428  ;;  %v2545_v30 = vshll.u32 %v2544_v27, 16  ;;  %v2866_v40 = vld [vmem:[%s12267_s1 + $0x160] sm:$0xff] }
 0x3fb   :  { %v2486_v19 = vadd.s32 %v2485_v2, %v2483_v42  ;;  %5434 = vpow2.f32 %v3694_v54  ;;  %v3584_v54 = vmul.f32 0.2, %v2864_v38 }
 0x3fc   :  { %v2497_v23 = vpop.xlane.xlu1 %2496  ;;  %3200 = vrot.lane.b32.xlu1 %v3011_v4, %s5774_s20  ;;  %v9741_v26 = vpop.permute.xlu0 %3222  ;;  %v3015_v4 = vmul.f32 0.1, %v2935_v9  ;;  %v5578_v9 = vld [vmem:[%s12266_s2 + $0xf0] sm:$0xff] }
 0x3fd   :  { %2804 = vst.msk [vmem:[%s12265_s4 + $0x1f0] sm:$0xff] %vm1301_vm2, %v2486_v19  ;;  %v2498_v12 = vcvt.f32.s32 %v2497_v23  ;;  %4066 = vrot.lane.b32.xlu0 %v3884_v31, %s5774_s20  ;;  %v3888_v31 = vmul.f32 0.5, %v3808_v16  ;;  %v3698_v19 = vmul.f32 1.442695, %v3580_v55  ;;  %v3812_v14 = vmul.f32 %v5578_v9, %v5429_v13  ;;  %v5431_v16 = vpop.eup %5430 }
 0x3fe   :  { %v2574_v13 = vcvt.f32.s32 %v9240_v58  ;;  %v2868_v58 = vld [vmem:[%s12267_s1 + $0x170] sm:$0xff] }
 0x3ff   :  { %v2501_v2 = vadd.s32 %v2500_v60, %v2498_v12  ;;  %v2530_v60 = vshll.u32 %v2529_v24, 16  ;;  %v3890_v12 = vmul.f32 0.5, %v3810_v44  ;;  %5436 = vpow2.f32 %v3698_v19 }
 0x400   :  { %v2512_v45 = vpop.xlane.xlu1 %2511  ;;  %3204 = vrot.lane.b32.xlu1 %v3013_v50, %s5774_s20  ;;  %v9758_v1 = vpop.permute.xlu0 %3226  ;;  %v3017_v50 = vmul.f32 0.1, %v2937_v36  ;;  %v2559_v24 = vcvt.f32.s32 %v9225_v21  ;;  %v2941_v36 = vld [vmem:[%s12266_s2 + $0x138] sm:$0xff]  ;;  %v5579_v21 = vld [vmem:[%s12266_s2 + $0x100] sm:$0xff]  ;;  %v3586_v19 = vmul.f32 0.2, %v2866_v40 }
 0x401   :  { %2805 = vst.msk [vmem:[%s12265_s4 + $0x1f8] sm:$0xff] %vm1301_vm2, %v2501_v2  ;;  %v2513_v42 = vcvt.f32.s32 %v2512_v45  ;;  %4070 = vrot.lane.b32.xlu0 %v3886_v20, %s5774_s20  ;;  %v2939_v20 = vld [vmem:[%s12266_s2 + $0x128] sm:$0xff]  ;;  %v3702_v2 = vmul.f32 1.442695, %v3582_v63  ;;  %v3814_v56 = vmul.f32 %v5579_v21, %v5431_v16  ;;  %v5433_v44 = vpop.eup %5432  ;;  %v2575_v16 = vshll.u32 %v2574_v13, 16  ;;  %v2870_v40 = vld [vmem:[%s12267_s1 + $0x180] sm:$0xff] }
 0x403   :  { %v2516_v10 = vadd.s32 %v2515_v52, %v2513_v42  ;;  %5438 = vpow2.f32 %v3702_v2  ;;  %v3588_v2 = vmul.f32 0.2, %v2868_v58 }
 0x404   :  { %v2527_v39 = vpop.xlane.xlu1 %2526  ;;  %3208 = vrot.lane.b32.xlu1 %v3015_v4, %s5774_s20  ;;  %v9777_v23 = vpop.permute.xlu0 %3230  ;;  %v3019_v4 = vmul.f32 0.1, %v2939_v20  ;;  %v5580_v20 = vld [vmem:[%s12266_s2 + $0x110] sm:$0xff] }
 0x405   :  { %2806 = vst.msk [vmem:[%s12265_s4 + $0x200] sm:$0xff] %vm1301_vm2, %v2516_v10  ;;  %v2528_v25 = vcvt.f32.s32 %v2527_v39  ;;  %4074 = vrot.lane.b32.xlu0 %v3888_v31, %s5774_s20  ;;  %v3892_v31 = vmul.f32 0.5, %v3812_v14  ;;  %v3706_v10 = vmul.f32 1.442695, %v3584_v54  ;;  %v3816_v9 = vmul.f32 %v5580_v20, %v5433_v44  ;;  %v5435_v14 = vpop.eup %5434 }
 0x406   :  { %v2604_v44 = vcvt.f32.s32 %v9268_v29  ;;  %v2872_v29 = vld [vmem:[%s12267_s1 + $0x190] sm:$0xff] }
 0x407   :  { %v2531_v52 = vadd.s32 %v2530_v60, %v2528_v25  ;;  %v2560_v60 = vshll.u32 %v2559_v24, 16  ;;  %v3894_v25 = vmul.f32 0.5, %v3814_v56  ;;  %5440 = vpow2.f32 %v3706_v10 }
 0x408   :  { %v2542_v55 = vpop.xlane.xlu1 %2541  ;;  %3212 = vrot.lane.b32.xlu1 %v3017_v50, %s5774_s20  ;;  %v9794_v45 = vpop.permute.xlu0 %3234  ;;  %v3021_v50 = vmul.f32 0.1, %v2941_v36  ;;  %v2589_v24 = vcvt.f32.s32 %v9253_v6  ;;  %v2945_v36 = vld [vmem:[%s12266_s2 + $0x158] sm:$0xff]  ;;  %v5581_v6 = vld [vmem:[%s12266_s2 + $0x120] sm:$0xff]  ;;  %v3590_v10 = vmul.f32 0.2, %v2870_v40 }
 0x409   :  { %2807 = vst.msk [vmem:[%s12265_s4 + $0x208] sm:$0xff] %vm1301_vm2, %v2531_v52  ;;  %v2543_v42 = vcvt.f32.s32 %v2542_v55  ;;  %4078 = vrot.lane.b32.xlu0 %v3890_v12, %s5774_s20  ;;  %v2943_v12 = vld [vmem:[%s12266_s2 + $0x148] sm:$0xff]  ;;  %v3710_v52 = vmul.f32 1.442695, %v3586_v19  ;;  %v3818_v21 = vmul.f32 %v5581_v6, %v5435_v14  ;;  %v5437_v56 = vpop.eup %5436  ;;  %v2605_v14 = vshll.u32 %v2604_v44, 16  ;;  %v2874_v40 = vld [vmem:[%s12267_s1 + $0x1a0] sm:$0xff] }
 0x40b   :  { %v2546_v27 = vadd.s32 %v2545_v30, %v2543_v42  ;;  %5442 = vpow2.f32 %v3710_v52  ;;  %v3592_v52 = vmul.f32 0.2, %v2872_v29 }
 0x40c   :  { %v2557_v63 = vpop.xlane.xlu1 %2556  ;;  %3216 = vrot.lane.b32.xlu1 %v3019_v4, %s5774_s20  ;;  %v9813_v39 = vpop.permute.xlu0 %3238  ;;  %v3023_v4 = vmul.f32 0.1, %v2943_v12  ;;  %v5582_v12 = vld [vmem:[%s12266_s2 + $0x130] sm:$0xff] }
 0x40d   :  { %2808 = vst.msk [vmem:[%s12265_s4 + $0x210] sm:$0xff] %vm1301_vm2, %v2546_v27  ;;  %v2558_v38 = vcvt.f32.s32 %v2557_v63  ;;  %4082 = vrot.lane.b32.xlu0 %v3892_v31, %s5774_s20  ;;  %v3896_v31 = vmul.f32 0.5, %v3816_v9  ;;  %v3714_v27 = vmul.f32 1.442695, %v3588_v2  ;;  %v3820_v20 = vmul.f32 %v5582_v12, %v5437_v56  ;;  %v5439_v9 = vpop.eup %5438 }
 0x40e   :  { %v2634_v56 = vcvt.f32.s32 %v9296_v41  ;;  %v2876_v41 = vld [vmem:[%s12267_s1 + $0x1b0] sm:$0xff] }
 0x40f   :  { %v2561_v30 = vadd.s32 %v2560_v60, %v2558_v38  ;;  %v2590_v60 = vshll.u32 %v2589_v24, 16  ;;  %v3898_v38 = vmul.f32 0.5, %v3818_v21  ;;  %5444 = vpow2.f32 %v3714_v27 }
 0x410   :  { %v2572_v54 = vpop.xlane.xlu1 %2571  ;;  %3220 = vrot.lane.b32.xlu1 %v3021_v50, %s5774_s20  ;;  %v9830_v55 = vpop.permute.xlu0 %3242  ;;  %v3025_v50 = vmul.f32 0.1, %v2945_v36  ;;  %v2619_v24 = vcvt.f32.s32 %v9281_v5  ;;  %v2949_v36 = vld [vmem:[%s12266_s2 + $0x178] sm:$0xff]  ;;  %v5583_v5 = vld [vmem:[%s12266_s2 + $0x140] sm:$0xff]  ;;  %v3594_v27 = vmul.f32 0.2, %v2874_v40 }
 0x411   :  { %2809 = vst.msk [vmem:[%s12265_s4 + $0x218] sm:$0xff] %vm1301_vm2, %v2561_v30  ;;  %v2573_v42 = vcvt.f32.s32 %v2572_v54  ;;  %4086 = vrot.lane.b32.xlu0 %v3894_v25, %s5774_s20  ;;  %v2947_v25 = vld [vmem:[%s12266_s2 + $0x168] sm:$0xff]  ;;  %v3718_v30 = vmul.f32 1.442695, %v3590_v10  ;;  %v3822_v6 = vmul.f32 %v5583_v5, %v5439_v9  ;;  %v5441_v21 = vpop.eup %5440  ;;  %v2635_v9 = vshll.u32 %v2634_v56, 16  ;;  %v2878_v40 = vld [vmem:[%s12267_s1 + $0x1c0] sm:$0xff] }
 0x413   :  { %v2576_v13 = vadd.s32 %v2575_v16, %v2573_v42  ;;  %5446 = vpow2.f32 %v3718_v30  ;;  %v3596_v30 = vmul.f32 0.2, %v2876_v41 }
 0x414   :  { %v2587_v19 = vpop.xlane.xlu1 %2586  ;;  %3224 = vrot.lane.b32.xlu1 %v3023_v4, %s5774_s20  ;;  %v9849_v63 = vpop.permute.xlu0 %3246  ;;  %v3027_v4 = vmul.f32 0.1, %v2947_v25  ;;  %v5584_v25 = vld [vmem:[%s12266_s2 + $0x150] sm:$0xff] }
 0x415   :  { %2810 = vst.msk [vmem:[%s12265_s4 + $0x220] sm:$0xff] %vm1301_vm2, %v2576_v13  ;;  %v2588_v58 = vcvt.f32.s32 %v2587_v19  ;;  %4090 = vrot.lane.b32.xlu0 %v3896_v31, %s5774_s20  ;;  %v3900_v31 = vmul.f32 0.5, %v3820_v20  ;;  %v3722_v13 = vmul.f32 1.442695, %v3592_v52  ;;  %v3824_v12 = vmul.f32 %v5584_v25, %v5441_v21  ;;  %v5443_v20 = vpop.eup %5442 }
 0x416   :  { %v2664_v21 = vcvt.f32.s32 %v9324_v48  ;;  %v2880_v48 = vld [vmem:[%s12267_s1 + $0x1d0] sm:$0xff] }
 0x417   :  { %v2591_v16 = vadd.s32 %v2590_v60, %v2588_v58  ;;  %v2620_v60 = vshll.u32 %v2619_v24, 16  ;;  %v3902_v58 = vmul.f32 0.5, %v3822_v6  ;;  %5448 = vpow2.f32 %v3722_v13 }
 0x418   :  { %v2602_v2 = vpop.xlane.xlu1 %2601  ;;  %3228 = vrot.lane.b32.xlu1 %v3025_v50, %s5774_s20  ;;  %v9866_v54 = vpop.permute.xlu0 %3250  ;;  %v3029_v50 = vmul.f32 0.1, %v2949_v36  ;;  %v2649_v24 = vcvt.f32.s32 %v9309_v43  ;;  %v2953_v36 = vld [vmem:[%s12266_s2 + $0x198] sm:$0xff]  ;;  %v5585_v43 = vld [vmem:[%s12266_s2 + $0x160] sm:$0xff]  ;;  %v3598_v13 = vmul.f32 0.2, %v2878_v40 }
 0x419   :  { %2811 = vst.msk [vmem:[%s12265_s4 + $0x228] sm:$0xff] %vm1301_vm2, %v2591_v16  ;;  %v2603_v42 = vcvt.f32.s32 %v2602_v2  ;;  %4094 = vrot.lane.b32.xlu0 %v3898_v38, %s5774_s20  ;;  %v2951_v38 = vld [vmem:[%s12266_s2 + $0x188] sm:$0xff]  ;;  %v3726_v16 = vmul.f32 1.442695, %v3594_v27  ;;  %v3826_v5 = vmul.f32 %v5585_v43, %v5443_v20  ;;  %v5445_v6 = vpop.eup %5444  ;;  %v2665_v20 = vshll.u32 %v2664_v21, 16  ;;  %v2882_v40 = vld [vmem:[%s12267_s1 + $0x1e0] sm:$0xff] }
 0x41b   :  { %v2606_v44 = vadd.s32 %v2605_v14, %v2603_v42  ;;  %5450 = vpow2.f32 %v3726_v16  ;;  %v3600_v16 = vmul.f32 0.2, %v2880_v48 }
 0x41c   :  { %v2617_v10 = vpop.xlane.xlu1 %2616  ;;  %3232 = vrot.lane.b32.xlu1 %v3027_v4, %s5774_s20  ;;  %v9885_v19 = vpop.permute.xlu0 %3254  ;;  %v3031_v4 = vmul.f32 0.1, %v2951_v38  ;;  %v5586_v38 = vld [vmem:[%s12266_s2 + $0x170] sm:$0xff] }
 0x41d   :  { %13044 = vst [vmem:[#allocation84_spill] sm:$0xff] %v9885_v19  ;;  %2812 = vst.msk [vmem:[%s12265_s4 + $0x230] sm:$0xff] %vm1301_vm2, %v2606_v44  ;;  %v2618_v29 = vcvt.f32.s32 %v2617_v10  ;;  %4098 = vrot.lane.b32.xlu0 %v3900_v31, %s5774_s20  ;;  %v3904_v31 = vmul.f32 0.5, %v3824_v12  ;;  %v3730_v44 = vmul.f32 1.442695, %v3596_v30  ;;  %v3828_v25 = vmul.f32 %v5586_v38, %v5445_v6  ;;  %v5447_v12 = vpop.eup %5446 }
 0x41e   :  { %v2694_v6 = vcvt.f32.s32 %v9352_v53  ;;  %v2884_v53 = vld [vmem:[%s12267_s1 + $0x1f0] sm:$0xff] }
 0x41f   :  { %v2621_v14 = vadd.s32 %v2620_v60, %v2618_v29  ;;  %v2650_v60 = vshll.u32 %v2649_v24, 16  ;;  %v3906_v29 = vmul.f32 0.5, %v3826_v5  ;;  %5452 = vpow2.f32 %v3730_v44 }
 0x420   :  { %v2632_v52 = vpop.xlane.xlu1 %2631  ;;  %3236 = vrot.lane.b32.xlu1 %v3029_v50, %s5774_s20  ;;  %v9902_v2 = vpop.permute.xlu0 %3258  ;;  %v3033_v50 = vmul.f32 0.1, %v2953_v36  ;;  %v2679_v24 = vcvt.f32.s32 %v9337_v46  ;;  %v2957_v36 = vld [vmem:[%s12266_s2 + $0x1b8] sm:$0xff]  ;;  %v5587_v46 = vld [vmem:[%s12266_s2 + $0x180] sm:$0xff]  ;;  %v3602_v44 = vmul.f32 0.2, %v2882_v40 }
 0x421   :  { %13045 = vst [vmem:[#allocation21_spill] sm:$0xff] %v9902_v2  ;;  %2813 = vst.msk [vmem:[%s12265_s4 + $0x238] sm:$0xff] %vm1301_vm2, %v2621_v14  ;;  %v2633_v42 = vcvt.f32.s32 %v2632_v52  ;;  %4102 = vrot.lane.b32.xlu0 %v3902_v58, %s5774_s20  ;;  %v2955_v58 = vld [vmem:[%s12266_s2 + $0x1a8] sm:$0xff]  ;;  %v3734_v14 = vmul.f32 1.442695, %v3598_v13  ;;  %v3830_v43 = vmul.f32 %v5587_v46, %v5447_v12  ;;  %v5449_v5 = vpop.eup %5448  ;;  %v2695_v12 = vshll.u32 %v2694_v6, 16 }
 0x422   :  { %v2886_v40 = vld [vmem:[%s12267_s1 + $0x200] sm:$0xff] }
 0x423   :  { %v2636_v56 = vadd.s32 %v2635_v9, %v2633_v42  ;;  %5454 = vpow2.f32 %v3734_v14  ;;  %v3604_v14 = vmul.f32 0.2, %v2884_v53 }
 0x424   :  { %v2647_v27 = vpop.xlane.xlu1 %2646  ;;  %3240 = vrot.lane.b32.xlu1 %v3031_v4, %s5774_s20  ;;  %v9921_v10 = vpop.permute.xlu0 %3262  ;;  %v3035_v4 = vmul.f32 0.1, %v2955_v58  ;;  %v5588_v58 = vld [vmem:[%s12266_s2 + $0x190] sm:$0xff] }
 0x425   :  { %13046 = vst [vmem:[#allocation85_spill] sm:$0xff] %v9921_v10  ;;  %2814 = vst.msk [vmem:[%s12265_s4 + $0x240] sm:$0xff] %vm1301_vm2, %v2636_v56  ;;  %v2648_v41 = vcvt.f32.s32 %v2647_v27  ;;  %4106 = vrot.lane.b32.xlu0 %v3904_v31, %s5774_s20  ;;  %v3908_v31 = vmul.f32 0.5, %v3828_v25  ;;  %v3738_v56 = vmul.f32 1.442695, %v3600_v16  ;;  %v3832_v38 = vmul.f32 %v5588_v58, %v5449_v5  ;;  %v5451_v25 = vpop.eup %5450  ;;  %v5600_v10 = vld [vmem:[%s12266_s2 + $0x8] sm:$0xff] }
 0x426   :  { %v2724_v5 = vcvt.f32.s32 %v9380_v35  ;;  %v2888_v35 = vld [vmem:[%s12267_s1 + $0x210] sm:$0xff] }
 0x427   :  { %v2651_v9 = vadd.s32 %v2650_v60, %v2648_v41  ;;  %v2680_v60 = vshll.u32 %v2679_v24, 16  ;;  %v3910_v41 = vmul.f32 0.5, %v3830_v43  ;;  %5456 = vpow2.f32 %v3738_v56 }
 0x428   :  { %v2662_v30 = vpop.xlane.xlu1 %2661  ;;  %3244 = vrot.lane.b32.xlu1 %v3033_v50, %s5774_s20  ;;  %v9938_v52 = vpop.permute.xlu0 %3266  ;;  %v3037_v50 = vmul.f32 0.1, %v2957_v36  ;;  %v2709_v24 = vcvt.f32.s32 %v9365_v11  ;;  %v2961_v36 = vld [vmem:[%s12266_s2 + $0x1d8] sm:$0xff]  ;;  %v5589_v11 = vld [vmem:[%s12266_s2 + $0x1a0] sm:$0xff]  ;;  %v3606_v56 = vmul.f32 0.2, %v2886_v40 }
 0x429   :  { %2815 = vst.msk [vmem:[%s12265_s4 + $0x248] sm:$0xff] %vm1301_vm2, %v2651_v9  ;;  %v2663_v42 = vcvt.f32.s32 %v2662_v30  ;;  %4110 = vrot.lane.b32.xlu0 %v3906_v29, %s5774_s20  ;;  %v2959_v29 = vld [vmem:[%s12266_s2 + $0x1c8] sm:$0xff]  ;;  %v3742_v9 = vmul.f32 1.442695, %v3602_v44  ;;  %v3834_v46 = vmul.f32 %v5589_v11, %v5451_v25  ;;  %v5453_v43 = vpop.eup %5452  ;;  %v2725_v25 = vshll.u32 %v2724_v5, 16  ;;  %v2890_v40 = vld [vmem:[%s12267_s1 + $0x220] sm:$0xff] }
 0x42b   :  { %v2666_v21 = vadd.s32 %v2665_v20, %v2663_v42  ;;  %5458 = vpow2.f32 %v3742_v9  ;;  %v3608_v9 = vmul.f32 0.2, %v2888_v35 }
 0x42c   :  { %v2677_v13 = vpop.xlane.xlu1 %2676  ;;  %3248 = vrot.lane.b32.xlu1 %v3035_v4, %s5774_s20  ;;  %v9957_v27 = vpop.permute.xlu0 %3270  ;;  %v3039_v4 = vmul.f32 0.1, %v2959_v29  ;;  %v5590_v29 = vld [vmem:[%s12266_s2 + $0x1b0] sm:$0xff] }
 0x42d   :  { %2816 = vst.msk [vmem:[%s12265_s4 + $0x250] sm:$0xff] %vm1301_vm2, %v2666_v21  ;;  %v2678_v48 = vcvt.f32.s32 %v2677_v13  ;;  %4114 = vrot.lane.b32.xlu0 %v3908_v31, %s5774_s20  ;;  %v3912_v31 = vmul.f32 0.5, %v3832_v38  ;;  %v3746_v21 = vmul.f32 1.442695, %v3604_v14  ;;  %v3836_v58 = vmul.f32 %v5590_v29, %v5453_v43  ;;  %v5455_v38 = vpop.eup %5454 }
 0x42e   :  { %v3754_v5 = vmul.f32 1.442695, %v3608_v9 }
 0x42f   :  { %v2681_v20 = vadd.s32 %v2680_v60, %v2678_v48  ;;  %v2710_v60 = vshll.u32 %v2709_v24, 16  ;;  %v3914_v48 = vmul.f32 0.5, %v3834_v46  ;;  %5460 = vpow2.f32 %v3746_v21 }
 0x430   :  { %v2692_v16 = vpop.xlane.xlu1 %2691  ;;  %3252 = vrot.lane.b32.xlu1 %v3037_v50, %s5774_s20  ;;  %v9974_v30 = vpop.permute.xlu0 %3274  ;;  %v3041_v50 = vmul.f32 0.1, %v2961_v36  ;;  %v2739_v24 = vcvt.f32.s32 %v9393_v3  ;;  %v2965_v36 = vld [vmem:[%s12266_s2 + $0x1f8] sm:$0xff]  ;;  %v5591_v3 = vld [vmem:[%s12266_s2 + $0x1c0] sm:$0xff] }
 0x431   :  { %2817 = vst.msk [vmem:[%s12265_s4 + $0x258] sm:$0xff] %vm1301_vm2, %v2681_v20  ;;  %v2693_v42 = vcvt.f32.s32 %v2692_v16  ;;  %4118 = vrot.lane.b32.xlu0 %v3910_v41, %s5774_s20  ;;  %v2963_v41 = vld [vmem:[%s12266_s2 + $0x1e8] sm:$0xff]  ;;  %v3750_v20 = vmul.f32 1.442695, %v3606_v56  ;;  %v3838_v11 = vmul.f32 %v5591_v3, %v5455_v38  ;;  %v5457_v46 = vpop.eup %5456 }
 0x433   :  { %v2696_v6 = vadd.s32 %v2695_v12, %v2693_v42  ;;  %5462 = vpow2.f32 %v3750_v20 }
 0x434   :  { %v2707_v44 = vpop.xlane.xlu1 %2706  ;;  %3256 = vrot.lane.b32.xlu1 %v3039_v4, %s5774_s20  ;;  %v9993_v13 = vpop.permute.xlu0 %3278  ;;  %v3043_v4 = vmul.f32 0.1, %v2963_v41  ;;  %v5592_v41 = vld [vmem:[%s12266_s2 + $0x1d0] sm:$0xff]  ;;  %5464 = vpow2.f32 %v3754_v5 }
 0x435   :  { %2818 = vst.msk [vmem:[%s12265_s4 + $0x260] sm:$0xff] %vm1301_vm2, %v2696_v6  ;;  %v2708_v53 = vcvt.f32.s32 %v2707_v44  ;;  %4122 = vrot.lane.b32.xlu0 %v3912_v31, %s5774_s20  ;;  %v3916_v31 = vmul.f32 0.5, %v3836_v58  ;;  %v3610_v6 = vmul.f32 0.2, %v2890_v40  ;;  %v3045_v44 = vmul.f32 0.1, %v2965_v36  ;;  %v5459_v58 = vpop.eup %5458 }
 0x436   :  { %v3840_v29 = vmul.f32 %v5592_v41, %v5457_v46  ;;  %v2969_v40 = vld [vmem:[%s12266_s2 + $0x218] sm:$0xff] }
 0x437   :  { %v2711_v12 = vadd.s32 %v2710_v60, %v2708_v53  ;;  %v2892_v60 = vld [vmem:[%s12267_s1 + $0x230] sm:$0xff]  ;;  %v3918_v53 = vmul.f32 0.5, %v3838_v11  ;;  %v3049_v5 = vmul.f32 0.1, %v2969_v40 }
 0x438   :  { %v2722_v14 = vpop.xlane.xlu1 %2721  ;;  %3260 = vrot.lane.b32.xlu1 %v3041_v50, %s5774_s20  ;;  %v10010_v16 = vpop.permute.xlu0 %3282  ;;  %v2740_v50 = vshll.u32 %v2739_v24, 16  ;;  %v3920_v24 = vmul.f32 0.5, %v3840_v29 }
 0x439   :  { %2819 = vst.msk [vmem:[%s12265_s4 + $0x268] sm:$0xff] %vm1301_vm2, %v2711_v12  ;;  %v2723_v42 = vcvt.f32.s32 %v2722_v14  ;;  %4126 = vrot.lane.b32.xlu0 %v3914_v48, %s5774_s20  ;;  %v2967_v48 = vld [vmem:[%s12266_s2 + $0x208] sm:$0xff]  ;;  %v3612_v12 = vmul.f32 0.2, %v2892_v60  ;;  %v5461_v36 = vpop.eup %5460 }
 0x43a   :  { %v3047_v14 = vmul.f32 0.1, %v2967_v48 }
 0x43b   :  { %v2726_v43 = vadd.s32 %v2725_v25, %v2723_v42  ;;  %v3758_v25 = vmul.f32 1.442695, %v3610_v6  ;;  %v5593_v42 = vld [vmem:[%s12266_s2 + $0x1e0] sm:$0xff]  ;;  %v3762_v3 = vmul.f32 1.442695, %v3612_v12  ;;  %v2896_v6 = vld [vmem:[%s12267_s1 + $0x250] sm:$0xff] }
 0x43c   :  { %3264 = vrot.lane.b32.xlu1 %v3043_v4, %s5774_s20  ;;  %v2737_v21 = vpop.xlane.xlu1 %2736  ;;  %v10028_v56 = vpop.permute.xlu0 %3286  ;;  %v2894_v4 = vld [vmem:[%s12267_s1 + $0x240] sm:$0xff]  ;;  %v3616_v29 = vmul.f32 0.2, %v2896_v6 }
 0x43d   :  { %2820 = vst.msk [vmem:[%s12265_s4 + $0x270] sm:$0xff] %vm1301_vm2, %v2726_v43  ;;  %v2738_v35 = vcvt.f32.s32 %v2737_v21  ;;  %4130 = vrot.lane.b32.xlu0 %v3916_v31, %s5774_s20  ;;  %v3842_v31 = vmul.f32 %v5593_v42, %v5459_v58  ;;  %5466 = vpow2.f32 %v3758_v25  ;;  %v3614_v11 = vmul.f32 0.2, %v2894_v4  ;;  %v2898_v12 = vld [vmem:[%s12267_s1 + $0x260] sm:$0xff]  ;;  %v2973_v4 = vld [vmem:[%s12266_s2 + $0x238] sm:$0xff] }
 0x43e   :  { %5468 = vpow2.f32 %v3762_v3 }
 0x43f   :  { %v2741_v38 = vadd.s32 %v2740_v50, %v2738_v35  ;;  %v3922_v21 = vmul.f32 0.5, %v3842_v31  ;;  %v10078_v50 = vld [vmem:[%s12266_s2 + $0x1f0] sm:$0xff]  ;;  %v5463_v35 = vpop.eup %5462  ;;  %v3766_v41 = vmul.f32 1.442695, %v3614_v11  ;;  %v2825_v31 = vld [vmem:[%s12267_s1 + $0x18] sm:$0xff] }
 0x440   :  { %3268 = vrot.lane.b32.xlu1 %v3045_v44, %s5774_s20  ;;  %v10045_v20 = vpop.permute.xlu1 %3144  ;;  %v10047_v9 = vpop.permute.xlu0 %3290  ;;  %v2971_v44 = vld [vmem:[%s12266_s2 + $0x228] sm:$0xff]  ;;  %v3844_v60 = vmul.f32 %v10078_v50, %v5461_v36  ;;  %v3545_v3 = vmul.f32 0.2, %v2825_v31  ;;  %v3770_v11 = vmul.f32 1.442695, %v3616_v29 }
 0x441   :  { %13047 = vst [vmem:[#allocation86_spill] sm:$0xff] %v10045_v20  ;;  %13048 = vst [vmem:[#allocation22_spill] sm:$0xff] %v10047_v9  ;;  %4134 = vrot.lane.b32.xlu0 %v3918_v53, %s5774_s20  ;;  %v2823_v53 = vld [vmem:[%s12267_s1 + $0x8] sm:$0xff]  ;;  %v3051_v25 = vmul.f32 0.1, %v2971_v44  ;;  %v5465_v42 = vpop.eup %5464  ;;  %5470 = vpow2.f32 %v3766_v41  ;;  %v2977_v20 = vld [vmem:[%s12266_s2 + $0x258] sm:$0xff] }
 0x442   :  { %2821 = vst.msk [vmem:[%s12265_s4 + $0x278] sm:$0xff] %vm1301_vm2, %v2741_v38  ;;  %v3543_v48 = vmul.f32 0.2, %v2823_v53  ;;  %v3053_v44 = vmul.f32 0.1, %v2973_v4  ;;  %v2975_v53 = vld [vmem:[%s12266_s2 + $0x248] sm:$0xff] }
 0x443   :  { %vm4742_vm2 = vcmask 15360  }
 0x444   :  { %3272 = vrot.lane.b32.xlu1 %v3047_v14, %s5774_s20  ;;  %v10064_v46 = vpop.permute.xlu1 %3146  ;;  %v10066_v43 = vpop.permute.xlu0 %3294  ;;  %v3924_v14 = vmul.f32 0.5, %v3844_v60  ;;  %v3624_v36 = vmul.f32 1.442695, %v3543_v48  ;;  %v2900_v60 = vld [vmem:[%s12267_s1 + $0x270] sm:$0xff] }
 0x445   :  { %13049 = vst [vmem:[#allocation87_spill] sm:$0xff] %v10066_v43  ;;  %4138 = vrot.lane.b32.xlu0 %v3920_v24, %s5774_s20  ;;  %v10099_v24 = vld [vmem:[%s12266_s2 + $0x200] sm:$0xff]  ;;  %v10120_v48 = vld [vmem:[%s12266_s2 + $0x210] sm:$0xff] }
 0x446   :  { %v3846_v40 = vmul.f32 %v10099_v24, %v5463_v35  ;;  %v3848_v41 = vmul.f32 %v10120_v48, %v5465_v42  ;;  %5472 = vpow2.f32 %v3624_v36  ;;  %v10138_v36 = vld [vmem:[%s12266_s2 + $0x220] sm:$0xff] }
 0x447   :  { %v5467_v29 = vpop.eup %5466  ;;  %5474 = vpow2.f32 %v3770_v11 }
 0x448   :  { %3276 = vrot.lane.b32.xlu1 %v3049_v5, %s5774_s20  ;;  %v10085_v58 = vpop.permute.xlu1 %3148  ;;  %v10087_v38 = vpop.permute.xlu0 %3298  ;;  %v3618_v5 = vmul.f32 0.2, %v2898_v12  ;;  %v3926_v35 = vmul.f32 0.5, %v3846_v40  ;;  %v3628_v12 = vmul.f32 1.442695, %v3545_v3  ;;  %v3928_v42 = vmul.f32 0.5, %v3848_v41 }
 0x449   :  { %13050 = vst [vmem:[#allocation88_spill] sm:$0xff] %v10085_v58  ;;  %13051 = vst [vmem:[#allocation23_spill] sm:$0xff] %v10087_v38  ;;  %4142 = vrot.lane.b32.xlu0 %v3922_v21, %s5774_s20  ;;  %v3620_v40 = vmul.f32 0.2, %v2900_v60  ;;  %v3055_v58 = vmul.f32 0.1, %v2975_v53  ;;  %v3850_v3 = vmul.f32 %v10138_v36, %v5467_v29  ;;  %v5469_v11 = vpop.eup %5468 }
 0x44a   :  { %v3774_v4 = vmul.f32 1.442695, %v3618_v5  ;;  %v2829_v5 = vld [vmem:[%s12267_s1 + $0x38] sm:$0xff]  ;;  %5476 = vpow2.f32 %v3628_v12  ;;  %v10156_v12 = vld [vmem:[%s12266_s2 + $0x230] sm:$0xff] }
 0x44b   :  { %v3549_v60 = vmul.f32 0.2, %v2829_v5  ;;  %v3930_v29 = vmul.f32 0.5, %v3850_v3  ;;  %13055 = vst [vmem:[#allocation91_spill] sm:$0xff] %v10156_v12  ;;  %v2981_v38 = vld [vmem:[%s12266_s2 + $0x278] sm:$0xff] }
 0x44c   :  { %3280 = vrot.lane.b32.xlu1 %v3051_v25, %s5774_s20  ;;  %v10106_v6 = vpop.permute.xlu1 %3152  ;;  %v10108_v21 = vpop.permute.xlu0 %4022  ;;  %v2827_v25 = vld [vmem:[%s12267_s1 + $0x28] sm:$0xff]  ;;  %5478 = vpow2.f32 %v3774_v4 }
 0x44d   :  { %13052 = vst [vmem:[#allocation89_spill] sm:$0xff] %v10106_v6  ;;  %4146 = vrot.lane.b32.xlu0 %v3924_v14, %s5774_s20  ;;  %v3547_v14 = vmul.f32 0.2, %v2827_v25  ;;  %v3057_v25 = vmul.f32 0.1, %v2977_v20  ;;  %v2831_v4 = vld [vmem:[%s12267_s1 + $0x48] sm:$0xff] }
 0x44e   :  { %v3636_v20 = vmul.f32 1.442695, %v3549_v60 }
 0x450   :  { %3284 = vrot.lane.b32.xlu1 %v3053_v44, %s5774_s20  ;;  %v10127_v31 = vpop.permute.xlu1 %3156  ;;  %v10129_v6 = vpop.permute.xlu0 %4026  ;;  %v3632_v44 = vmul.f32 1.442695, %v3547_v14  ;;  %v3852_v14 = vmul.f32 %v10156_v12, %v5469_v11 }
 0x451   :  { %13053 = vst [vmem:[#allocation90_spill] sm:$0xff] %v10127_v31  ;;  %4150 = vrot.lane.b32.xlu0 %v3926_v35, %s5774_s20  ;;  %v3778_v35 = vmul.f32 1.442695, %v3620_v40  ;;  %v2979_v31 = vld [vmem:[%s12266_s2 + $0x268] sm:$0xff]  ;;  %v3551_v40 = vmul.f32 0.2, %v2831_v4 }
 0x452   :  { %5480 = vpow2.f32 %v3632_v44  ;;  %v3059_v5 = vmul.f32 0.1, %v2979_v31  ;;  %v3932_v11 = vmul.f32 0.5, %v3852_v14  ;;  %v10174_v44 = vld [vmem:[%s12266_s2 + $0x240] sm:$0xff]  ;;  %v2833_v31 = vld [vmem:[%s12267_s1 + $0x58] sm:$0xff] }
 0x453   :  { %5482 = vpow2.f32 %v3778_v35  ;;  %13057 = vst [vmem:[#allocation24_spill] sm:$0xff] %v10174_v44 }
 0x454   :  { %3288 = vrot.lane.b32.xlu1 %v3055_v58, %s5774_s20  ;;  %v10145_v53 = vpop.permute.xlu1 %3160  ;;  %v10147_v41 = vpop.permute.xlu0 %4030  ;;  %5484 = vpow2.f32 %v3636_v20  ;;  %v10192_v20 = vld [vmem:[%s12266_s2 + $0x250] sm:$0xff] }
 0x455   :  { %13054 = vst [vmem:[#allocation36_spill] sm:$0xff] %v10145_v53  ;;  %4154 = vrot.lane.b32.xlu0 %v3928_v42, %s5774_s20  ;;  %v5471_v58 = vpop.eup %5470  ;;  %13059 = vst [vmem:[#allocation94_spill] sm:$0xff] %v10192_v20 }
 0x456   :  { %v5473_v53 = vpop.eup %5472  ;;  %v3854_v60 = vmul.f32 %v10174_v44, %v5471_v58 }
 0x457   :  { %v5475_v35 = vpop.eup %5474  ;;  %v3783_v58 = vmul.f32 %v5600_v10, %v5473_v53 }
 0x458   :  { %3292 = vrot.lane.b32.xlu1 %v3057_v25, %s5774_s20  ;;  %v10163_v42 = vpop.permute.xlu1 %3164  ;;  %v10165_v3 = vpop.permute.xlu0 %4034  ;;  %v3640_v25 = vmul.f32 1.442695, %v3551_v40  ;;  %v3934_v2 = vmul.f32 0.5, %v3854_v60  ;;  %v3856_v40 = vmul.f32 %v10192_v20, %v5475_v35  ;;  %v5602_v60 = vld [vmem:[%s12266_s2 + $0x18] sm:$0xff] }
 0x459   :  { %13056 = vst [vmem:[#allocation92_spill] sm:$0xff] %v10163_v42  ;;  %4158 = vrot.lane.b32.xlu0 %v3930_v29, %s5774_s20  ;;  %v3553_v29 = vmul.f32 0.2, %v2833_v31  ;;  %v3061_v42 = vmul.f32 0.1, %v2981_v38  ;;  %v5477_v43 = vpop.eup %5476  ;;  %v2835_v38 = vld [vmem:[%s12267_s1 + $0x68] sm:$0xff] }
 0x45a   :  { %5486 = vpow2.f32 %v3640_v25  ;;  %v3785_v35 = vmul.f32 %v5602_v60, %v5477_v43  ;;  %v3936_v44 = vmul.f32 0.5, %v3856_v40  ;;  %v10210_v25 = vld [vmem:[%s12266_s2 + $0x260] sm:$0xff]  ;;  %v5604_v60 = vld [vmem:[%s12266_s2 + $0x28] sm:$0xff] }
 0x45b   :  { %v3644_v31 = vmul.f32 1.442695, %v3553_v29  ;;  %13061 = vst [vmem:[#allocation95_spill] sm:$0xff] %v10210_v25 }
 0x45c   :  { %3296 = vrot.lane.b32.xlu1 %v3059_v5, %s5774_s20  ;;  %v10181_v14 = vpop.permute.xlu1 %3168  ;;  %v10183_v4 = vpop.permute.xlu0 %4038  ;;  %v3865_v40 = vmul.f32 0.5, %v3785_v35  ;;  %v5606_v35 = vld [vmem:[%s12267_s1] sm:$0xff] }
 0x45d   :  { %13058 = vst [vmem:[#allocation93_spill] sm:$0xff] %v10181_v14  ;;  %4162 = vrot.lane.b32.xlu0 %v3932_v11, %s5774_s20  ;;  %v5479_v5 = vpop.eup %5478  ;;  %v3555_v14 = vmul.f32 0.2, %v2835_v38  ;;  %v3863_v11 = vmul.f32 0.5, %v3783_v58  ;;  %v2837_v58 = vld [vmem:[%s12267_s1 + $0x78] sm:$0xff]  ;;  %5488 = vpow2.f32 %v3644_v31 }
 0x45e   :  { %v5481_v20 = vpop.eup %5480 }
 0x45f   :  { %v5483_v29 = vpop.eup %5482  ;;  %v3648_v38 = vmul.f32 1.442695, %v3555_v14  ;;  %v10228_v14 = vld [vmem:[%s12266_s2 + $0x270] sm:$0xff] }
 0x460   :  { %3300 = vrot.lane.b32.xlu1 %v3061_v42, %s5774_s20  ;;  %v10199_v10 = vpop.permute.xlu1 %3172  ;;  %v10201_v53 = vpop.permute.xlu0 %4042  ;;  %v3858_v42 = vmul.f32 %v10210_v25, %v5479_v5  ;;  %v3787_v5 = vmul.f32 %v5604_v60, %v5481_v20  ;;  %13063 = vst [vmem:[#allocation96_spill] sm:$0xff] %v10228_v14  ;;  %v3860_v31 = vmul.f32 %v10228_v14, %v5483_v29 }
 0x461   :  { %13060 = vst [vmem:[#allocation25_spill] sm:$0xff] %v10199_v10  ;;  %4166 = vrot.lane.b32.xlu0 %v3934_v2, %s5774_s20  ;;  %v3557_v10 = vmul.f32 0.2, %v2837_v58  ;;  %v5485_v25 = vpop.eup %5484  ;;  %v3382_v20 = vmul.f32 %v5606_v35, %v9406_v7  ;;  %5490 = vpow2.f32 %v3648_v38  ;;  %v2841_v7 = vld [vmem:[%s12267_s1 + $0x98] sm:$0xff] }
 0x462   :  { %v3938_v9 = vmul.f32 0.5, %v3858_v42  ;;  %v3867_v29 = vmul.f32 0.5, %v3787_v5  ;;  %v3940_v12 = vmul.f32 0.5, %v3860_v31  ;;  %v3561_v5 = vmul.f32 0.2, %v2841_v7  ;;  %v5609_v31 = vld [vmem:[%s12266_s2 + $0x48] sm:$0xff] }
 0x464   :  { %4024 = vrot.lane.b32.xlu1 %v3863_v11, %s5774_s20  ;;  %v10217_v43 = vpop.permute.xlu1 %3176  ;;  %v10219_v2 = vpop.permute.xlu0 %4046  ;;  %v2839_v11 = vld [vmem:[%s12267_s1 + $0x88] sm:$0xff] }
 0x465   :  { %13062 = vst [vmem:[#allocation26_spill] sm:$0xff] %v10217_v43  ;;  %4170 = vrot.lane.b32.xlu0 %v3936_v44, %s5774_s20  ;;  %v3652_v44 = vmul.f32 1.442695, %v3557_v10  ;;  %v3559_v42 = vmul.f32 0.2, %v2839_v11  ;;  %v5607_v43 = vld [vmem:[%s12266_s2 + $0x38] sm:$0xff]  ;;  %v5487_v19 = vpop.eup %5486 }
 0x466   :  { %v3789_v14 = vmul.f32 %v5607_v43, %v5485_v25  ;;  %v5608_v10 = vld [vmem:[%s12266_s2] sm:$0xff]  ;;  %v3791_v11 = vmul.f32 %v5609_v31, %v5487_v19 }
 0x467   :  { %v10253_v38 = vadd.f32 %v5608_v10, %v3382_v20  ;;  %5492 = vpow2.f32 %v3652_v44  ;;  %v5489_v35 = vpop.eup %5488  ;;  %v5610_v20 = vld [vmem:[%s12267_s1 + $0x10] sm:$0xff] }
 0x468   :  { %4028 = vrot.lane.b32.xlu1 %v3865_v40, %s5774_s20  ;;  %v10239_v58 = vpop.permute.xlu1 %3180  ;;  %v10241_v60 = vpop.permute.xlu0 %4050  ;;  %v3656_v40 = vmul.f32 1.442695, %v3559_v42  ;;  %v3384_v44 = vmul.f32 %v5610_v20, %v10064_v46  ;;  %v2843_v42 = vld [vmem:[%s12267_s1 + $0xa8] sm:$0xff]  ;;  %v3871_v31 = vmul.f32 0.5, %v3791_v11  ;;  %v5611_v46 = vld [vmem:[%s12266_s2 + $0x58] sm:$0xff] }
 0x469   :  { %13064 = vst [vmem:[#allocation27_spill] sm:$0xff] %v10239_v58  ;;  %4174 = vrot.lane.b32.xlu0 %v3938_v9, %s5774_s20  ;;  %v3869_v9 = vmul.f32 0.5, %v3789_v14  ;;  %v4342_v14 = vadd.f32 %v10108_v21, %v10253_v38  ;;  %v3563_v7 = vmul.f32 0.2, %v2843_v42  ;;  %v2845_v11 = vld [vmem:[%s12267_s1 + $0xb8] sm:$0xff]  ;;  %v5615_v58 = vld [vmem:[%s12266_s2 + $0x20] sm:$0xff] }
 0x46a   :  { %5494 = vpow2.f32 %v3656_v40 }
 0x46b   :  { %v5491_v20 = vpop.eup %5490  ;;  %v3664_v42 = vmul.f32 1.442695, %v3563_v7  ;;  %v5616_v7 = vld [vmem:[%s12267_s1 + $0x30] sm:$0xff] }
 0x46c   :  { %4032 = vrot.lane.b32.xlu1 %v3867_v29, %s5774_s20  ;;  %v10256_v25 = vpop.permute.xlu1 %3184  ;;  %v10258_v43 = vpop.permute.xlu0 %4054  ;;  %v3660_v29 = vmul.f32 1.442695, %v3561_v5  ;;  %v5613_v5 = vld [vmem:[%s12266_s2 + $0x10] sm:$0xff] }
 0x46d   :  { %13065 = vst [vmem:[#allocation97_spill] sm:$0xff] %v10256_v25  ;;  %4178 = vrot.lane.b32.xlu0 %v3940_v12, %s5774_s20  ;;  %v3793_v12 = vmul.f32 %v5611_v46, %v5489_v35  ;;  %v5612_v25 = vld [vmem:[%s12267_s1 + $0x20] sm:$0xff]  ;;  %v3565_v46 = vmul.f32 0.2, %v2845_v11 }
 0x46e   :  { %v3386_v40 = vmul.f32 %v5612_v25, %v9420_v28  ;;  %5496 = vpow2.f32 %v3660_v29 }
 0x46f   :  { %5498 = vpow2.f32 %v3664_v42  ;;  %v3668_v11 = vmul.f32 1.442695, %v3565_v46  ;;  %v5619_v46 = vld [vmem:[%s12267_s1 + $0x40] sm:$0xff] }
 0x470   :  { %4036 = vrot.lane.b32.xlu1 %v3869_v9, %s5774_s20  ;;  %v10274_v19 = vpop.permute.xlu1 %3188  ;;  %v10276_v10 = vpop.permute.xlu0 %4058  ;;  %v10288_v9 = vadd.f32 %v5613_v5, %v3384_v44  ;;  %v3873_v44 = vmul.f32 0.5, %v3793_v12  ;;  %v10307_v29 = vadd.f32 %v5615_v58, %v3386_v40  ;;  %v2847_v12 = vld [vmem:[%s12267_s1 + $0xc8] sm:$0xff] }
 0x471   :  { %13066 = vst [vmem:[#allocation28_spill] sm:$0xff] %v10274_v19  ;;  %4502 = vrot.lane.b32.xlu0 %v4342_v14, %s5775_s16  ;;  %v5614_v14 = vld [vmem:[%s12266_s2 + $0x68] sm:$0xff]  ;;  %v5493_v19 = vpop.eup %5492  ;;  %5500 = vpow2.f32 %v3668_v11 }
 0x472   :  { %v4344_v35 = vadd.f32 %v10129_v6, %v10288_v9  ;;  %v3795_v5 = vmul.f32 %v5614_v14, %v5491_v20  ;;  %13068 = vst [vmem:[#allocation98_spill] sm:$0xff] %v10307_v29  ;;  %v4346_v20 = vadd.f32 %v10147_v41, %v10307_v29  ;;  %v3567_v14 = vmul.f32 0.2, %v2847_v12  ;;  %v5618_v29 = vld [vmem:[%s12266_s2 + $0x30] sm:$0xff] }
 0x474   :  { %4040 = vrot.lane.b32.xlu1 %v3871_v31, %s5774_s20  ;;  %v10297_v28 = vpop.permute.xlu1 %3192  ;;  %v10299_v25 = vpop.permute.xlu0 %4062  ;;  %v3388_v31 = vmul.f32 %v5616_v7, %v9434_v37  ;;  %v5617_v37 = vld [vmem:[%s12266_s2 + $0x78] sm:$0xff]  ;;  %v3672_v12 = vmul.f32 1.442695, %v3567_v14 }
 0x475   :  { %13067 = vst [vmem:[#allocation101_spill] sm:$0xff] %v10297_v28  ;;  %4506 = vrot.lane.b32.xlu0 %v4344_v35, %s5775_s16  ;;  %v3875_v28 = vmul.f32 0.5, %v3795_v5  ;;  %v3797_v35 = vmul.f32 %v5617_v37, %v5493_v19  ;;  %v5495_v7 = vpop.eup %5494  ;;  %v2849_v5 = vld [vmem:[%s12267_s1 + $0xd8] sm:$0xff] }
 0x476   :  { %v10330_v42 = vadd.f32 %v5618_v29, %v3388_v31  ;;  %v3569_v37 = vmul.f32 0.2, %v2849_v5  ;;  %5502 = vpow2.f32 %v3672_v12 }
 0x478   :  { %4044 = vrot.lane.b32.xlu1 %v3873_v44, %s5774_s20  ;;  %v10320_v58 = vpop.permute.xlu1 %3196  ;;  %v10322_v40 = vpop.permute.xlu0 %4066  ;;  %13070 = vst [vmem:[#allocation103_spill] sm:$0xff] %v10330_v42  ;;  %v3390_v44 = vmul.f32 %v5619_v46, %v9451_v15  ;;  %v4348_v19 = vadd.f32 %v10165_v3, %v10330_v42  ;;  %v5620_v15 = vld [vmem:[%s12266_s2 + $0x88] sm:$0xff]  ;;  %v5621_v42 = vld [vmem:[%s12266_s2 + $0x40] sm:$0xff]  ;;  %v3676_v5 = vmul.f32 1.442695, %v3569_v37 }
 0x479   :  { %13069 = vst [vmem:[#allocation29_spill] sm:$0xff] %v10320_v58  ;;  %4510 = vrot.lane.b32.xlu0 %v4346_v20, %s5775_s16  ;;  %v3877_v58 = vmul.f32 0.5, %v3797_v35  ;;  %v3799_v20 = vmul.f32 %v5620_v15, %v5495_v7  ;;  %v5497_v46 = vpop.eup %5496  ;;  %v2851_v35 = vld [vmem:[%s12267_s1 + $0xe8] sm:$0xff] }
 0x47a   :  { %v10353_v11 = vadd.f32 %v5621_v42, %v3390_v44  ;;  %v3571_v15 = vmul.f32 0.2, %v2851_v35  ;;  %5504 = vpow2.f32 %v3676_v5 }
 0x47c   :  { %4048 = vrot.lane.b32.xlu1 %v3875_v28, %s5774_s20  ;;  %v10343_v29 = vpop.permute.xlu1 %3200  ;;  %v10345_v31 = vpop.permute.xlu0 %4070  ;;  %13072 = vst [vmem:[#allocation30_spill] sm:$0xff] %v10353_v11  ;;  %v5622_v28 = vld [vmem:[%s12267_s1 + $0x50] sm:$0xff]  ;;  %v4350_v7 = vadd.f32 %v10183_v4, %v10353_v11  ;;  %v3680_v35 = vmul.f32 1.442695, %v3571_v15 }
 0x47d   :  { %13071 = vst [vmem:[#allocation99_spill] sm:$0xff] %v10343_v29  ;;  %v3392_v14 = vmul.f32 %v5622_v28, %v9471_v51  ;;  %4514 = vrot.lane.b32.xlu0 %v4348_v19, %s5775_s16  ;;  %v3879_v29 = vmul.f32 0.5, %v3799_v20  ;;  %v5623_v51 = vld [vmem:[%s12266_s2 + $0x98] sm:$0xff]  ;;  %v5499_v28 = vpop.eup %5498  ;;  %v5624_v11 = vld [vmem:[%s12266_s2 + $0x50] sm:$0xff] }
 0x47e   :  { %v3801_v19 = vmul.f32 %v5623_v51, %v5497_v46  ;;  %v2853_v20 = vld [vmem:[%s12267_s1 + $0xf8] sm:$0xff]  ;;  %5506 = vpow2.f32 %v3680_v35 }
 0x47f   :  { %v10376_v12 = vadd.f32 %v5624_v11, %v3392_v14  ;;  %v3573_v51 = vmul.f32 0.2, %v2853_v20 }
 0x480   :  { %4052 = vrot.lane.b32.xlu1 %v3877_v58, %s5774_s20  ;;  %v10366_v42 = vpop.permute.xlu1 %3204  ;;  %v10368_v44 = vpop.permute.xlu0 %4074  ;;  %v5625_v58 = vld [vmem:[%s12267_s1 + $0x60] sm:$0xff] }
 0x481   :  { %13073 = vst [vmem:[#allocation100_spill] sm:$0xff] %v10366_v42  ;;  %13074 = vst [vmem:[#allocation37_spill] sm:$0xff] %v10376_v12  ;;  %v3394_v37 = vmul.f32 %v5625_v58, %v9491_v32  ;;  %4518 = vrot.lane.b32.xlu0 %v4350_v7, %s5775_s16  ;;  %v4352_v46 = vadd.f32 %v10201_v53, %v10376_v12  ;;  %v3881_v42 = vmul.f32 0.5, %v3801_v19  ;;  %v5626_v32 = vld [vmem:[%s12266_s2 + $0xa8] sm:$0xff]  ;;  %v5501_v58 = vpop.eup %5500  ;;  %v5627_v12 = vld [vmem:[%s12266_s2 + $0x60] sm:$0xff] }
 0x482   :  { %v3803_v7 = vmul.f32 %v5626_v32, %v5499_v28  ;;  %v2855_v19 = vld [vmem:[%s12267_s1 + $0x108] sm:$0xff]  ;;  %v3684_v20 = vmul.f32 1.442695, %v3573_v51 }
 0x483   :  { %v10399_v5 = vadd.f32 %v5627_v12, %v3394_v37  ;;  %v3575_v32 = vmul.f32 0.2, %v2855_v19 }
 0x484   :  { %4056 = vrot.lane.b32.xlu1 %v3879_v29, %s5774_s20  ;;  %v10389_v11 = vpop.permute.xlu1 %3208  ;;  %v10391_v14 = vpop.permute.xlu0 %4078  ;;  %v5628_v29 = vld [vmem:[%s12267_s1 + $0x70] sm:$0xff]  ;;  %5508 = vpow2.f32 %v3684_v20 }
 0x485   :  { %13075 = vst [vmem:[#allocation102_spill] sm:$0xff] %v10389_v11  ;;  %13076 = vst [vmem:[#allocation31_spill] sm:$0xff] %v10399_v5  ;;  %v3396_v15 = vmul.f32 %v5628_v29, %v9508_v47  ;;  %4522 = vrot.lane.b32.xlu0 %v4352_v46, %s5775_s16  ;;  %v4354_v28 = vadd.f32 %v10219_v2, %v10399_v5  ;;  %v3883_v11 = vmul.f32 0.5, %v3803_v7  ;;  %v5629_v47 = vld [vmem:[%s12266_s2 + $0xb8] sm:$0xff]  ;;  %v5503_v29 = vpop.eup %5502  ;;  %v5630_v5 = vld [vmem:[%s12266_s2 + $0x70] sm:$0xff] }
 0x486   :  { %v3805_v46 = vmul.f32 %v5629_v47, %v5501_v58  ;;  %v2857_v7 = vld [vmem:[%s12267_s1 + $0x118] sm:$0xff]  ;;  %v3688_v19 = vmul.f32 1.442695, %v3575_v32 }
 0x487   :  { %v10422_v35 = vadd.f32 %v5630_v5, %v3396_v15  ;;  %v3577_v47 = vmul.f32 0.2, %v2857_v7 }
 0x488   :  { %4060 = vrot.lane.b32.xlu1 %v3881_v42, %s5774_s20  ;;  %v10412_v12 = vpop.permute.xlu1 %3212  ;;  %v10414_v37 = vpop.permute.xlu0 %4082  ;;  %v5631_v42 = vld [vmem:[%s12267_s1 + $0x80] sm:$0xff]  ;;  %5510 = vpow2.f32 %v3688_v19 }
 0x489   :  { %13077 = vst [vmem:[#allocation104_spill] sm:$0xff] %v10412_v12  ;;  %13078 = vst [vmem:[#allocation38_spill] sm:$0xff] %v10422_v35  ;;  %v3398_v51 = vmul.f32 %v5631_v42, %v9527_v62  ;;  %4526 = vrot.lane.b32.xlu0 %v4354_v28, %s5775_s16  ;;  %v4356_v58 = vadd.f32 %v10241_v60, %v10422_v35  ;;  %v3885_v12 = vmul.f32 0.5, %v3805_v46  ;;  %v5632_v62 = vld [vmem:[%s12266_s2 + $0xc8] sm:$0xff]  ;;  %v5505_v42 = vpop.eup %5504  ;;  %v5633_v35 = vld [vmem:[%s12266_s2 + $0x80] sm:$0xff] }
 0x48a   :  { %v3807_v28 = vmul.f32 %v5632_v62, %v5503_v29  ;;  %v2859_v46 = vld [vmem:[%s12267_s1 + $0x128] sm:$0xff]  ;;  %v3692_v7 = vmul.f32 1.442695, %v3577_v47 }
 0x48b   :  { %v10445_v20 = vadd.f32 %v5633_v35, %v3398_v51  ;;  %v3579_v62 = vmul.f32 0.2, %v2859_v46 }
 0x48c   :  { %4064 = vrot.lane.b32.xlu1 %v3883_v11, %s5774_s20  ;;  %v10435_v5 = vpop.permute.xlu1 %3216  ;;  %v10437_v15 = vpop.permute.xlu0 %4086  ;;  %v5634_v11 = vld [vmem:[%s12267_s1 + $0x90] sm:$0xff]  ;;  %5512 = vpow2.f32 %v3692_v7 }
 0x48d   :  { %13079 = vst [vmem:[#allocation105_spill] sm:$0xff] %v10435_v5  ;;  %13080 = vst [vmem:[#allocation32_spill] sm:$0xff] %v10445_v20  ;;  %v3400_v32 = vmul.f32 %v5634_v11, %v9542_v61  ;;  %4530 = vrot.lane.b32.xlu0 %v4356_v58, %s5775_s16  ;;  %v4358_v29 = vadd.f32 %v10258_v43, %v10445_v20  ;;  %v3887_v5 = vmul.f32 0.5, %v3807_v28  ;;  %v5635_v61 = vld [vmem:[%s12266_s2 + $0xd8] sm:$0xff]  ;;  %v5507_v11 = vpop.eup %5506  ;;  %v5636_v20 = vld [vmem:[%s12266_s2 + $0x90] sm:$0xff] }
 0x48e   :  { %v3809_v58 = vmul.f32 %v5635_v61, %v5505_v42  ;;  %v2861_v28 = vld [vmem:[%s12267_s1 + $0x138] sm:$0xff]  ;;  %v3696_v46 = vmul.f32 1.442695, %v3579_v62 }
 0x48f   :  { %v10468_v19 = vadd.f32 %v5636_v20, %v3400_v32  ;;  %v3581_v61 = vmul.f32 0.2, %v2861_v28 }
 0x490   :  { %4068 = vrot.lane.b32.xlu1 %v3885_v12, %s5774_s20  ;;  %v10458_v35 = vpop.permute.xlu1 %3220  ;;  %v10460_v51 = vpop.permute.xlu0 %4090  ;;  %v5637_v12 = vld [vmem:[%s12267_s1 + $0xa0] sm:$0xff]  ;;  %5514 = vpow2.f32 %v3696_v46 }
 0x491   :  { %13081 = vst [vmem:[#allocation39_spill] sm:$0xff] %v10458_v35  ;;  %13082 = vst [vmem:[#allocation40_spill] sm:$0xff] %v10468_v19  ;;  %v3402_v47 = vmul.f32 %v5637_v12, %v9561_v0  ;;  %4534 = vrot.lane.b32.xlu0 %v4358_v29, %s5775_s16  ;;  %v4360_v42 = vadd.f32 %v10276_v10, %v10468_v19  ;;  %v3889_v35 = vmul.f32 0.5, %v3809_v58  ;;  %v5638_v0 = vld [vmem:[%s12266_s2 + $0xe8] sm:$0xff]  ;;  %v5509_v12 = vpop.eup %5508  ;;  %v5639_v19 = vld [vmem:[%s12266_s2 + $0xa0] sm:$0xff] }
 0x492   :  { %v3811_v29 = vmul.f32 %v5638_v0, %v5507_v11  ;;  %v2863_v58 = vld [vmem:[%s12267_s1 + $0x148] sm:$0xff]  ;;  %v3700_v28 = vmul.f32 1.442695, %v3581_v61 }
 0x493   :  { %v10491_v7 = vadd.f32 %v5639_v19, %v3402_v47  ;;  %v3583_v0 = vmul.f32 0.2, %v2863_v58 }
 0x494   :  { %4072 = vrot.lane.b32.xlu1 %v3887_v5, %s5774_s20  ;;  %v10481_v20 = vpop.permute.xlu1 %3224  ;;  %v10483_v32 = vpop.permute.xlu0 %4094  ;;  %v5640_v5 = vld [vmem:[%s12267_s1 + $0xb0] sm:$0xff]  ;;  %5516 = vpow2.f32 %v3700_v28 }
 0x495   :  { %13083 = vst [vmem:[#allocation33_spill] sm:$0xff] %v10481_v20  ;;  %13084 = vst [vmem:[#allocation41_spill] sm:$0xff] %v10491_v7  ;;  %v3404_v62 = vmul.f32 %v5640_v5, %v9578_v34  ;;  %4538 = vrot.lane.b32.xlu0 %v4360_v42, %s5775_s16  ;;  %v4362_v11 = vadd.f32 %v10299_v25, %v10491_v7  ;;  %v3891_v20 = vmul.f32 0.5, %v3811_v29  ;;  %v5641_v34 = vld [vmem:[%s12266_s2 + $0xf8] sm:$0xff]  ;;  %v5511_v5 = vpop.eup %5510  ;;  %v5642_v7 = vld [vmem:[%s12266_s2 + $0xb0] sm:$0xff] }
 0x496   :  { %v3813_v42 = vmul.f32 %v5641_v34, %v5509_v12  ;;  %v2865_v29 = vld [vmem:[%s12267_s1 + $0x158] sm:$0xff]  ;;  %v3704_v58 = vmul.f32 1.442695, %v3583_v0 }
 0x497   :  { %v10514_v46 = vadd.f32 %v5642_v7, %v3404_v62  ;;  %v3585_v34 = vmul.f32 0.2, %v2865_v29 }
 0x498   :  { %4076 = vrot.lane.b32.xlu1 %v3889_v35, %s5774_s20  ;;  %v10504_v19 = vpop.permute.xlu1 %3228  ;;  %v10506_v47 = vpop.permute.xlu0 %4098  ;;  %v5643_v35 = vld [vmem:[%s12267_s1 + $0xc0] sm:$0xff]  ;;  %5518 = vpow2.f32 %v3704_v58 }
 0x499   :  { %13085 = vst [vmem:[#allocation42_spill] sm:$0xff] %v10504_v19  ;;  %13086 = vst [vmem:[#allocation2_spill] sm:$0xff] %v10514_v46  ;;  %v3406_v61 = vmul.f32 %v5643_v35, %v9597_v33  ;;  %4542 = vrot.lane.b32.xlu0 %v4362_v11, %s5775_s16  ;;  %v4364_v12 = vadd.f32 %v10322_v40, %v10514_v46  ;;  %v3893_v19 = vmul.f32 0.5, %v3813_v42  ;;  %v5644_v33 = vld [vmem:[%s12266_s2 + $0x108] sm:$0xff]  ;;  %v5513_v35 = vpop.eup %5512  ;;  %v5645_v46 = vld [vmem:[%s12266_s2 + $0xc0] sm:$0xff] }
 0x49a   :  { %v3815_v11 = vmul.f32 %v5644_v33, %v5511_v5  ;;  %v2867_v42 = vld [vmem:[%s12267_s1 + $0x168] sm:$0xff]  ;;  %v3708_v29 = vmul.f32 1.442695, %v3585_v34 }
 0x49b   :  { %v10537_v28 = vadd.f32 %v5645_v46, %v3406_v61  ;;  %v3587_v33 = vmul.f32 0.2, %v2867_v42 }
 0x49c   :  { %4080 = vrot.lane.b32.xlu1 %v3891_v20, %s5774_s20  ;;  %v10527_v7 = vpop.permute.xlu1 %3232  ;;  %v10529_v62 = vpop.permute.xlu0 %4102  ;;  %v5646_v20 = vld [vmem:[%s12267_s1 + $0xd0] sm:$0xff]  ;;  %5520 = vpow2.f32 %v3708_v29 }
 0x49d   :  { %13087 = vst [vmem:[#allocation43_spill] sm:$0xff] %v10527_v7  ;;  %13088 = vst [vmem:[#allocation44_spill] sm:$0xff] %v10529_v62  ;;  %v3408_v0 = vmul.f32 %v5646_v20, %v9614_v17  ;;  %4546 = vrot.lane.b32.xlu0 %v4364_v12, %s5775_s16  ;;  %v4366_v5 = vadd.f32 %v10345_v31, %v10537_v28  ;;  %v3895_v7 = vmul.f32 0.5, %v3815_v11  ;;  %v5647_v17 = vld [vmem:[%s12266_s2 + $0x118] sm:$0xff]  ;;  %v5515_v20 = vpop.eup %5514  ;;  %v3712_v42 = vmul.f32 1.442695, %v3587_v33 }
 0x49e   :  { %13089 = vst [vmem:[#allocation3_spill] sm:$0xff] %v10537_v28  ;;  %v3817_v12 = vmul.f32 %v5647_v17, %v5513_v35  ;;  %v5648_v28 = vld [vmem:[%s12266_s2 + $0xd0] sm:$0xff]  ;;  %v2869_v11 = vld [vmem:[%s12267_s1 + $0x178] sm:$0xff] }
 0x49f   :  { %v10560_v58 = vadd.f32 %v5648_v28, %v3408_v0  ;;  %v3589_v17 = vmul.f32 0.2, %v2869_v11  ;;  %5522 = vpow2.f32 %v3712_v42 }
 0x4a0   :  { %4084 = vrot.lane.b32.xlu1 %v3893_v19, %s5774_s20  ;;  %v10550_v46 = vpop.permute.xlu1 %3236  ;;  %v10552_v61 = vpop.permute.xlu0 %4106  ;;  %v5649_v19 = vld [vmem:[%s12267_s1 + $0xe0] sm:$0xff] }
 0x4a1   :  { %13090 = vst [vmem:[#allocation45_spill] sm:$0xff] %v10550_v46  ;;  %13091 = vst [vmem:[#allocation46_spill] sm:$0xff] %v10560_v58  ;;  %v3410_v34 = vmul.f32 %v5649_v19, %v9633_v49  ;;  %4550 = vrot.lane.b32.xlu0 %v4366_v5, %s5775_s16  ;;  %v4368_v35 = vadd.f32 %v10368_v44, %v10560_v58  ;;  %v3897_v46 = vmul.f32 0.5, %v3817_v12  ;;  %v5650_v49 = vld [vmem:[%s12266_s2 + $0x128] sm:$0xff]  ;;  %v5517_v19 = vpop.eup %5516  ;;  %v5651_v58 = vld [vmem:[%s12266_s2 + $0xe0] sm:$0xff] }
 0x4a2   :  { %v3819_v5 = vmul.f32 %v5650_v49, %v5515_v20  ;;  %v2871_v12 = vld [vmem:[%s12267_s1 + $0x188] sm:$0xff]  ;;  %v3716_v11 = vmul.f32 1.442695, %v3589_v17 }
 0x4a3   :  { %v10583_v29 = vadd.f32 %v5651_v58, %v3410_v34  ;;  %v3591_v49 = vmul.f32 0.2, %v2871_v12 }
 0x4a4   :  { %4088 = vrot.lane.b32.xlu1 %v3895_v7, %s5774_s20  ;;  %v10573_v28 = vpop.permute.xlu1 %3240  ;;  %v10575_v0 = vpop.permute.xlu0 %4110  ;;  %v5652_v7 = vld [vmem:[%s12267_s1 + $0xf0] sm:$0xff]  ;;  %5524 = vpow2.f32 %v3716_v11 }
 0x4a5   :  { %13092 = vst [vmem:[#allocation4_spill] sm:$0xff] %v10573_v28  ;;  %13093 = vst [vmem:[#allocation47_spill] sm:$0xff] %v10583_v29  ;;  %v3412_v33 = vmul.f32 %v5652_v7, %v9650_v18  ;;  %4554 = vrot.lane.b32.xlu0 %v4368_v35, %s5775_s16  ;;  %v4370_v20 = vadd.f32 %v10391_v14, %v10583_v29  ;;  %v3899_v28 = vmul.f32 0.5, %v3819_v5  ;;  %v5653_v18 = vld [vmem:[%s12266_s2 + $0x138] sm:$0xff]  ;;  %v5519_v7 = vpop.eup %5518  ;;  %v5654_v29 = vld [vmem:[%s12266_s2 + $0xf0] sm:$0xff] }
 0x4a6   :  { %v3821_v35 = vmul.f32 %v5653_v18, %v5517_v19  ;;  %v2873_v5 = vld [vmem:[%s12267_s1 + $0x198] sm:$0xff]  ;;  %v3720_v12 = vmul.f32 1.442695, %v3591_v49 }
 0x4a7   :  { %v10606_v42 = vadd.f32 %v5654_v29, %v3412_v33  ;;  %v3593_v18 = vmul.f32 0.2, %v2873_v5 }
 0x4a8   :  { %4092 = vrot.lane.b32.xlu1 %v3897_v46, %s5774_s20  ;;  %v10596_v58 = vpop.permute.xlu1 %3244  ;;  %v10598_v34 = vpop.permute.xlu0 %4114  ;;  %v5655_v46 = vld [vmem:[%s12267_s1 + $0x100] sm:$0xff]  ;;  %5526 = vpow2.f32 %v3720_v12 }
 0x4a9   :  { %13094 = vst [vmem:[#allocation48_spill] sm:$0xff] %v10596_v58  ;;  %13095 = vst [vmem:[#allocation5_spill] sm:$0xff] %v10606_v42  ;;  %v3414_v17 = vmul.f32 %v5655_v46, %v9669_v22  ;;  %4558 = vrot.lane.b32.xlu0 %v4370_v20, %s5775_s16  ;;  %v4372_v19 = vadd.f32 %v10414_v37, %v10606_v42  ;;  %v3901_v58 = vmul.f32 0.5, %v3821_v35  ;;  %v5656_v22 = vld [vmem:[%s12266_s2 + $0x148] sm:$0xff]  ;;  %v5521_v46 = vpop.eup %5520  ;;  %v5657_v42 = vld [vmem:[%s12266_s2 + $0x100] sm:$0xff] }
 0x4aa   :  { %v3823_v20 = vmul.f32 %v5656_v22, %v5519_v7  ;;  %v2875_v35 = vld [vmem:[%s12267_s1 + $0x1a8] sm:$0xff]  ;;  %v3724_v5 = vmul.f32 1.442695, %v3593_v18 }
 0x4ab   :  { %v10629_v11 = vadd.f32 %v5657_v42, %v3414_v17  ;;  %v3595_v22 = vmul.f32 0.2, %v2875_v35 }
 0x4ac   :  { %4096 = vrot.lane.b32.xlu1 %v3899_v28, %s5774_s20  ;;  %v10619_v29 = vpop.permute.xlu1 %3248  ;;  %v10621_v33 = vpop.permute.xlu0 %4118  ;;  %v5658_v28 = vld [vmem:[%s12267_s1 + $0x110] sm:$0xff]  ;;  %5528 = vpow2.f32 %v3724_v5 }
 0x4ad   :  { %13096 = vst [vmem:[#allocation49_spill] sm:$0xff] %v10619_v29  ;;  %13097 = vst [vmem:[#allocation50_spill] sm:$0xff] %v10629_v11  ;;  %v3416_v49 = vmul.f32 %v5658_v28, %v9686_v59  ;;  %4562 = vrot.lane.b32.xlu0 %v4372_v19, %s5775_s16  ;;  %v4374_v7 = vadd.f32 %v10437_v15, %v10629_v11  ;;  %v3903_v29 = vmul.f32 0.5, %v3823_v20  ;;  %v5659_v59 = vld [vmem:[%s12266_s2 + $0x158] sm:$0xff]  ;;  %v5523_v28 = vpop.eup %5522  ;;  %v5660_v11 = vld [vmem:[%s12266_s2 + $0x110] sm:$0xff] }
 0x4ae   :  { %v3825_v19 = vmul.f32 %v5659_v59, %v5521_v46  ;;  %v2877_v20 = vld [vmem:[%s12267_s1 + $0x1b8] sm:$0xff]  ;;  %v3728_v35 = vmul.f32 1.442695, %v3595_v22 }
 0x4af   :  { %v10652_v12 = vadd.f32 %v5660_v11, %v3416_v49  ;;  %v3597_v59 = vmul.f32 0.2, %v2877_v20 }
 0x4b0   :  { %4100 = vrot.lane.b32.xlu1 %v3901_v58, %s5774_s20  ;;  %v10642_v42 = vpop.permute.xlu1 %3252  ;;  %v10644_v17 = vpop.permute.xlu0 %4122  ;;  %v5661_v58 = vld [vmem:[%s12267_s1 + $0x120] sm:$0xff]  ;;  %5530 = vpow2.f32 %v3728_v35 }
 0x4b1   :  { %13098 = vst [vmem:[#allocation6_spill] sm:$0xff] %v10642_v42  ;;  %13099 = vst [vmem:[#allocation51_spill] sm:$0xff] %v10644_v17  ;;  %v3418_v18 = vmul.f32 %v5661_v58, %v9705_v8  ;;  %4566 = vrot.lane.b32.xlu0 %v4374_v7, %s5775_s16  ;;  %v4376_v46 = vadd.f32 %v10460_v51, %v10652_v12  ;;  %v3905_v42 = vmul.f32 0.5, %v3825_v19  ;;  %v5662_v8 = vld [vmem:[%s12266_s2 + $0x168] sm:$0xff]  ;;  %v5525_v58 = vpop.eup %5524  ;;  %v3732_v20 = vmul.f32 1.442695, %v3597_v59 }
 0x4b2   :  { %13100 = vst [vmem:[#allocation52_spill] sm:$0xff] %v10652_v12  ;;  %v3827_v7 = vmul.f32 %v5662_v8, %v5523_v28  ;;  %v5663_v12 = vld [vmem:[%s12266_s2 + $0x120] sm:$0xff]  ;;  %v2879_v19 = vld [vmem:[%s12267_s1 + $0x1c8] sm:$0xff] }
 0x4b3   :  { %v10675_v5 = vadd.f32 %v5663_v12, %v3418_v18  ;;  %v3599_v8 = vmul.f32 0.2, %v2879_v19  ;;  %5532 = vpow2.f32 %v3732_v20 }
 0x4b4   :  { %4104 = vrot.lane.b32.xlu1 %v3903_v29, %s5774_s20  ;;  %v10665_v11 = vpop.permute.xlu1 %3256  ;;  %v10667_v49 = vpop.permute.xlu0 %4126  ;;  %v5664_v29 = vld [vmem:[%s12267_s1 + $0x130] sm:$0xff] }
 0x4b5   :  { %13101 = vst [vmem:[#allocation7_spill] sm:$0xff] %v10665_v11  ;;  %13102 = vst [vmem:[#allocation53_spill] sm:$0xff] %v10667_v49  ;;  %v3420_v22 = vmul.f32 %v5664_v29, %v9722_v57  ;;  %4570 = vrot.lane.b32.xlu0 %v4376_v46, %s5775_s16  ;;  %v4378_v28 = vadd.f32 %v10483_v32, %v10675_v5  ;;  %v3907_v11 = vmul.f32 0.5, %v3827_v7  ;;  %v5665_v57 = vld [vmem:[%s12266_s2 + $0x178] sm:$0xff]  ;;  %v5527_v29 = vpop.eup %5526  ;;  %v3736_v19 = vmul.f32 1.442695, %v3599_v8 }
 0x4b6   :  { %13103 = vst [vmem:[#allocation54_spill] sm:$0xff] %v10675_v5  ;;  %v3829_v46 = vmul.f32 %v5665_v57, %v5525_v58  ;;  %v5666_v5 = vld [vmem:[%s12266_s2 + $0x130] sm:$0xff]  ;;  %v2881_v7 = vld [vmem:[%s12267_s1 + $0x1d8] sm:$0xff] }
 0x4b7   :  { %v10698_v35 = vadd.f32 %v5666_v5, %v3420_v22  ;;  %v3601_v57 = vmul.f32 0.2, %v2881_v7  ;;  %5534 = vpow2.f32 %v3736_v19 }
 0x4b8   :  { %4108 = vrot.lane.b32.xlu1 %v3905_v42, %s5774_s20  ;;  %v10688_v12 = vpop.permute.xlu1 %3260  ;;  %v10690_v18 = vpop.permute.xlu0 %4130  ;;  %v5667_v42 = vld [vmem:[%s12267_s1 + $0x140] sm:$0xff] }
 0x4b9   :  { %13104 = vst [vmem:[#allocation8_spill] sm:$0xff] %v10688_v12  ;;  %13105 = vst [vmem:[#allocation55_spill] sm:$0xff] %v10690_v18  ;;  %v3422_v59 = vmul.f32 %v5667_v42, %v9741_v26  ;;  %4574 = vrot.lane.b32.xlu0 %v4378_v28, %s5775_s16  ;;  %v4380_v58 = vadd.f32 %v10506_v47, %v10698_v35  ;;  %v3909_v12 = vmul.f32 0.5, %v3829_v46  ;;  %v5668_v26 = vld [vmem:[%s12266_s2 + $0x188] sm:$0xff]  ;;  %v5529_v42 = vpop.eup %5528  ;;  %v3740_v7 = vmul.f32 1.442695, %v3601_v57 }
 0x4ba   :  { %13106 = vst [vmem:[#allocation56_spill] sm:$0xff] %v10698_v35  ;;  %v3831_v28 = vmul.f32 %v5668_v26, %v5527_v29  ;;  %v5669_v35 = vld [vmem:[%s12266_s2 + $0x140] sm:$0xff]  ;;  %v2883_v46 = vld [vmem:[%s12267_s1 + $0x1e8] sm:$0xff] }
 0x4bb   :  { %v10721_v20 = vadd.f32 %v5669_v35, %v3422_v59  ;;  %v3603_v26 = vmul.f32 0.2, %v2883_v46  ;;  %5536 = vpow2.f32 %v3740_v7 }
 0x4bc   :  { %4112 = vrot.lane.b32.xlu1 %v3907_v11, %s5774_s20  ;;  %v10711_v5 = vpop.permute.xlu1 %3264  ;;  %v10713_v22 = vpop.permute.xlu0 %4134  ;;  %v5670_v11 = vld [vmem:[%s12267_s1 + $0x150] sm:$0xff] }
 0x4bd   :  { %13107 = vst [vmem:[#allocation9_spill] sm:$0xff] %v10711_v5  ;;  %13108 = vst [vmem:[#allocation57_spill] sm:$0xff] %v10713_v22  ;;  %v3424_v8 = vmul.f32 %v5670_v11, %v9758_v1  ;;  %4578 = vrot.lane.b32.xlu0 %v4380_v58, %s5775_s16  ;;  %v4382_v29 = vadd.f32 %v10529_v62, %v10721_v20  ;;  %v3911_v5 = vmul.f32 0.5, %v3831_v28  ;;  %v5671_v1 = vld [vmem:[%s12266_s2 + $0x198] sm:$0xff]  ;;  %v5531_v11 = vpop.eup %5530 }
 0x4be   :  { %13109 = vst [vmem:[#allocation58_spill] sm:$0xff] %v10721_v20  ;;  %v3833_v58 = vmul.f32 %v5671_v1, %v5529_v42  ;;  %v5672_v20 = vld [vmem:[%s12266_s2 + $0x150] sm:$0xff]  ;;  %v10753_v28 = vld [vmem:[%s12267_s1 + $0x1f8] sm:$0xff]  ;;  %v5533_v62 = vpop.eup %5532 }
 0x4bf   :  { %v10744_v19 = vadd.f32 %v5672_v20, %v3424_v8  ;;  %13112 = vst [vmem:[#allocation60_spill] sm:$0xff] %v10753_v28  ;;  %v3605_v42 = vmul.f32 0.2, %v10753_v28  ;;  %v5674_v20 = vld [vmem:[%s12267_s1 + $0x1f0] sm:$0xff] }
 0x4c0   :  { %4116 = vrot.lane.b32.xlu1 %v3909_v12, %s5774_s20  ;;  %v10734_v35 = vpop.permute.xlu1 %3268  ;;  %v10736_v59 = vpop.permute.xlu0 %4138  ;;  %v5673_v12 = vld [vmem:[%s12267_s1 + $0x160] sm:$0xff]  ;;  %v3444_v8 = vmul.f32 %v5674_v20, %v9938_v52 }
 0x4c1   :  { %13110 = vst [vmem:[#allocation10_spill] sm:$0xff] %v10734_v35  ;;  %13111 = vst [vmem:[#allocation59_spill] sm:$0xff] %v10736_v59  ;;  %v3426_v57 = vmul.f32 %v5673_v12, %v9777_v23  ;;  %4582 = vrot.lane.b32.xlu0 %v4382_v29, %s5775_s16  ;;  %v4384_v46 = vadd.f32 %v10552_v61, %v10744_v19  ;;  %v3744_v23 = vmul.f32 1.442695, %v3603_v26  ;;  %v3913_v29 = vmul.f32 0.5, %v3833_v58  ;;  %v5675_v35 = vld [vmem:[%s12266_s2 + $0x1a8] sm:$0xff] }
 0x4c2   :  { %v3835_v28 = vmul.f32 %v5675_v35, %v5531_v11  ;;  %v5676_v52 = vld [vmem:[%s12266_s2 + $0x160] sm:$0xff]  ;;  %v3748_v58 = vmul.f32 1.442695, %v3605_v42  ;;  %v10788_v11 = vld [vmem:[%s12267_s1 + $0x208] sm:$0xff] }
 0x4c3   :  { %v10774_v20 = vadd.f32 %v5676_v52, %v3426_v57  ;;  %v5678_v26 = vld [vmem:[%s12267_s1 + $0x200] sm:$0xff]  ;;  %13114 = vst [vmem:[#allocation61_spill] sm:$0xff] %v10788_v11  ;;  %5538 = vpow2.f32 %v3744_v23  ;;  %v5680_v23 = vld [vmem:[%s12266_s2 + $0x170] sm:$0xff] }
 0x4c4   :  { %4120 = vrot.lane.b32.xlu1 %v3911_v5, %s5774_s20  ;;  %v10764_v1 = vpop.permute.xlu1 %3272  ;;  %v10766_v12 = vpop.permute.xlu0 %4142  ;;  %v5677_v5 = vld [vmem:[%s12267_s1 + $0x170] sm:$0xff]  ;;  %v3446_v35 = vmul.f32 %v5678_v26, %v9957_v27  ;;  %v3915_v42 = vmul.f32 0.5, %v3835_v28  ;;  %5540 = vpow2.f32 %v3748_v58 }
 0x4c5   :  { %13113 = vst [vmem:[#allocation11_spill] sm:$0xff] %v10764_v1  ;;  %v3428_v7 = vmul.f32 %v5677_v5, %v9794_v45  ;;  %4586 = vrot.lane.b32.xlu0 %v4384_v46, %s5775_s16  ;;  %v4386_v57 = vadd.f32 %v10575_v0, %v10774_v20  ;;  %v3607_v45 = vmul.f32 0.2, %v10788_v11  ;;  %v10794_v46 = vadd.f32 %v10078_v50, %v3444_v8  ;;  %v5679_v5 = vld [vmem:[%s12266_s2 + $0x1b8] sm:$0xff]  ;;  %v5535_v1 = vpop.eup %5534  ;;  %v5681_v50 = vld [vmem:[%s12267_s1 + $0x180] sm:$0xff] }
 0x4c6   :  { %v3837_v26 = vmul.f32 %v5679_v5, %v5533_v62  ;;  %v3430_v8 = vmul.f32 %v5681_v50, %v9813_v39  ;;  %v5682_v62 = vld [vmem:[%s12267_s1 + $0x210] sm:$0xff] }
 0x4c7   :  { %13115 = vst [vmem:[#allocation62_spill] sm:$0xff] %v10794_v46  ;;  %v10807_v11 = vadd.f32 %v5680_v23, %v3428_v7  ;;  %v10823_v7 = vld [vmem:[%s12267_s1 + $0x218] sm:$0xff]  ;;  %v3752_v5 = vmul.f32 1.442695, %v3607_v45  ;;  %v5684_v45 = vld [vmem:[%s12266_s2 + $0x180] sm:$0xff] }
 0x4c8   :  { %4124 = vrot.lane.b32.xlu1 %v3913_v29, %s5774_s20  ;;  %v10797_v52 = vpop.permute.xlu1 %3276  ;;  %v10799_v27 = vpop.permute.xlu0 %4146  ;;  %v3448_v29 = vmul.f32 %v5682_v62, %v9974_v30  ;;  %13118 = vst [vmem:[#allocation64_spill] sm:$0xff] %v10823_v7  ;;  %v3609_v23 = vmul.f32 0.2, %v10823_v7  ;;  %v3917_v58 = vmul.f32 0.5, %v3837_v26  ;;  %v5683_v62 = vld [vmem:[%s12266_s2 + $0x1c8] sm:$0xff]  ;;  %v10842_v7 = vadd.f32 %v5684_v45, %v3430_v8  ;;  %v5686_v26 = vld [vmem:[%s12267_s1 + $0x220] sm:$0xff] }
 0x4c9   :  { %13116 = vst [vmem:[#allocation12_spill] sm:$0xff] %v10797_v52  ;;  %13117 = vst [vmem:[#allocation63_spill] sm:$0xff] %v10799_v27  ;;  %4590 = vrot.lane.b32.xlu0 %v4386_v57, %s5775_s16  ;;  %v4388_v39 = vadd.f32 %v10598_v34, %v10807_v11  ;;  %v10829_v57 = vadd.f32 %v10099_v24, %v3446_v35  ;;  %v3839_v28 = vmul.f32 %v5683_v62, %v5535_v1  ;;  %v5537_v52 = vpop.eup %5536  ;;  %v5685_v24 = vld [vmem:[%s12267_s1 + $0x190] sm:$0xff] }
 0x4ca   :  { %13120 = vst [vmem:[#allocation65_spill] sm:$0xff] %v10842_v7  ;;  %v3432_v35 = vmul.f32 %v5685_v24, %v9830_v55  ;;  %v3450_v8 = vmul.f32 %v5686_v26, %v9993_v13  ;;  %v4390_v55 = vadd.f32 %v10621_v33, %v10842_v7  ;;  %5542 = vpow2.f32 %v3752_v5  ;;  %v10874_v13 = vld [vmem:[%s12266_s2 + $0x1d8] sm:$0xff]  ;;  %v5689_v5 = vld [vmem:[%s12267_s1 + $0x1a0] sm:$0xff] }
 0x4cb   :  { %v3756_v45 = vmul.f32 1.442695, %v3609_v23  ;;  %v10864_v24 = vadd.f32 %v10120_v48, %v3448_v29  ;;  %13123 = vst [vmem:[#allocation67_spill] sm:$0xff] %v10874_v13  ;;  %v3841_v26 = vmul.f32 %v10874_v13, %v5537_v52  ;;  %v5688_v48 = vld [vmem:[%s12266_s2 + $0x190] sm:$0xff] }
 0x4cc   :  { %4128 = vrot.lane.b32.xlu1 %v3915_v42, %s5774_s20  ;;  %v10832_v50 = vpop.permute.xlu1 %3280  ;;  %v10834_v30 = vpop.permute.xlu0 %4150  ;;  %v10851_v42 = vld [vmem:[%s12267_s1 + $0x228] sm:$0xff]  ;;  %v10880_v29 = vadd.f32 %v5688_v48, %v3432_v35  ;;  %v5690_v52 = vld [vmem:[%s12267_s1 + $0x230] sm:$0xff]  ;;  %v10896_v35 = vld [vmem:[%s12267_s1 + $0x238] sm:$0xff] }
 0x4cd   :  { %13119 = vst [vmem:[#allocation13_spill] sm:$0xff] %v10832_v50  ;;  %13121 = vst [vmem:[#allocation66_spill] sm:$0xff] %v10851_v42  ;;  %4594 = vrot.lane.b32.xlu0 %v4388_v39, %s5775_s16  ;;  %v3611_v62 = vmul.f32 0.2, %v10851_v42  ;;  %v3919_v50 = vmul.f32 0.5, %v3839_v28  ;;  %v5539_v42 = vpop.eup %5538  ;;  %v3434_v28 = vmul.f32 %v5689_v5, %v9849_v63  ;;  %5544 = vpow2.f32 %v3756_v45 }
 0x4ce   :  { %13124 = vst [vmem:[#allocation68_spill] sm:$0xff] %v10880_v29  ;;  %13125 = vst [vmem:[#allocation15_spill] sm:$0xff] %v10896_v35  ;;  %v4392_v63 = vadd.f32 %v10644_v17, %v10880_v29  ;;  %v3613_v48 = vmul.f32 0.2, %v10896_v35  ;;  %v5541_v5 = vpop.eup %5540 }
 0x4cf   :  { %v3760_v13 = vmul.f32 1.442695, %v3611_v62  ;;  %v3921_v62 = vmul.f32 0.5, %v3841_v26  ;;  %v13130_v26 = vld [vmem:[#allocation91_spill] sm:$0xff] }
 0x4d0   :  { %4132 = vrot.lane.b32.xlu1 %v3917_v58, %s5774_s20  ;;  %v10867_v1 = vpop.permute.xlu1 %3284  ;;  %v10869_v39 = vpop.permute.xlu0 %4154  ;;  %v3452_v58 = vmul.f32 %v5690_v52, %v10010_v16  ;;  %v10912_v52 = vld [vmem:[%s12266_s2 + $0x1e8] sm:$0xff] }
 0x4d1   :  { %13122 = vst [vmem:[#allocation14_spill] sm:$0xff] %v10867_v1  ;;  %4598 = vrot.lane.b32.xlu0 %v4390_v55, %s5775_s16  ;;  %v10902_v55 = vadd.f32 %v10138_v36, %v3450_v8  ;;  %13127 = vst [vmem:[#allocation70_spill] sm:$0xff] %v10912_v52  ;;  %v3843_v45 = vmul.f32 %v10912_v52, %v5539_v42  ;;  %v5692_v36 = vld [vmem:[%s12266_s2 + $0x1a0] sm:$0xff]  ;;  %5546 = vpow2.f32 %v3760_v13 }
 0x4d2   :  { %v10918_v8 = vadd.f32 %v5692_v36, %v3434_v28  ;;  %v5694_v42 = vld [vmem:[%s12267_s1 + $0x240] sm:$0xff]  ;;  %v10934_v28 = vld [vmem:[%s12267_s1 + $0x248] sm:$0xff]  ;;  %v3764_v36 = vmul.f32 1.442695, %v3613_v48 }
 0x4d3   :  { %v3454_v52 = vmul.f32 %v5694_v42, %v10028_v56  ;;  %13129 = vst [vmem:[#allocation71_spill] sm:$0xff] %v10934_v28  ;;  %v3923_v13 = vmul.f32 0.5, %v3843_v45  ;;  %v10950_v42 = vld [vmem:[%s12266_s2 + $0x1f8] sm:$0xff] }
 0x4d4   :  { %4136 = vrot.lane.b32.xlu1 %v3919_v50, %s5774_s20  ;;  %v10905_v23 = vpop.permute.xlu1 %3288  ;;  %v10907_v16 = vpop.permute.xlu0 %4158  ;;  %13128 = vst [vmem:[#allocation16_spill] sm:$0xff] %v10918_v8  ;;  %v5693_v50 = vld [vmem:[%s12267_s1 + $0x1b0] sm:$0xff]  ;;  %13132 = vst [vmem:[#allocation17_spill] sm:$0xff] %v10950_v42  ;;  %v3845_v35 = vmul.f32 %v10950_v42, %v5541_v5  ;;  %5548 = vpow2.f32 %v3764_v36 }
 0x4d5   :  { %13126 = vst [vmem:[#allocation69_spill] sm:$0xff] %v10905_v23  ;;  %v3436_v23 = vmul.f32 %v5693_v50, %v9866_v54  ;;  %4602 = vrot.lane.b32.xlu0 %v4392_v63, %s5775_s16  ;;  %v4394_v54 = vadd.f32 %v10667_v49, %v10918_v8  ;;  %v3615_v50 = vmul.f32 0.2, %v10934_v28  ;;  %v10940_v63 = vadd.f32 %v13130_v26, %v3452_v58  ;;  %v5543_v48 = vpop.eup %5542  ;;  %v5696_v58 = vld [vmem:[%s12266_s2 + $0x1b0] sm:$0xff]  ;;  %v10965_v28 = vld [vmem:[%s12267_s1 + $0x258] sm:$0xff] }
 0x4d6   :  { %13135 = vst [vmem:[#allocation74_spill] sm:$0xff] %v10965_v28  ;;  %v3617_v8 = vmul.f32 0.2, %v10965_v28  ;;  %v13137_v49 = vld [vmem:[#allocation24_spill] sm:$0xff]  ;;  %v3925_v17 = vmul.f32 0.5, %v3845_v35 }
 0x4d7   :  { %v10956_v26 = vadd.f32 %v5696_v58, %v3436_v23  ;;  %v5698_v23 = vld [vmem:[%s12267_s1 + $0x250] sm:$0xff]  ;;  %v13136_v58 = vld [vmem:[#allocation22_spill] sm:$0xff]  ;;  %v10978_v29 = vadd.f32 %v13137_v49, %v3454_v52  ;;  %v5545_v28 = vpop.eup %5544 }
 0x4d8   :  { %4140 = vrot.lane.b32.xlu1 %v3921_v62, %s5774_s20  ;;  %v10943_v1 = vpop.permute.xlu1 %3292  ;;  %v10945_v56 = vpop.permute.xlu0 %4162  ;;  %v5697_v62 = vld [vmem:[%s12267_s1 + $0x1c0] sm:$0xff]  ;;  %v3456_v42 = vmul.f32 %v5698_v23, %v13136_v58  ;;  %v10988_v23 = vld [vmem:[%s12266_s2 + $0x208] sm:$0xff]  ;;  %v5701_v36 = vld [vmem:[%s12267_s1 + $0x1d0] sm:$0xff] }
 0x4d9   :  { %13131 = vst [vmem:[#allocation72_spill] sm:$0xff] %v10943_v1  ;;  %13133 = vst [vmem:[#allocation73_spill] sm:$0xff] %v10956_v26  ;;  %v13134_v1 = vld [vmem:[#allocation84_spill] sm:$0xff]  ;;  %4606 = vrot.lane.b32.xlu0 %v4394_v54, %s5775_s16  ;;  %v3847_v58 = vmul.f32 %v10988_v23, %v5543_v48  ;;  %v5700_v49 = vld [vmem:[%s12266_s2 + $0x1c0] sm:$0xff] }
 0x4da   :  { %v3438_v45 = vmul.f32 %v5697_v62, %v13134_v1  ;;  %v4396_v1 = vadd.f32 %v10690_v18, %v10956_v26  ;;  %v3768_v62 = vmul.f32 1.442695, %v3615_v50  ;;  %13139 = vst [vmem:[#allocation19_spill] sm:$0xff] %v10988_v23  ;;  %v13141_v50 = vld [vmem:[#allocation21_spill] sm:$0xff]  ;;  %v5702_v48 = vld [vmem:[%s12267_s1 + $0x260] sm:$0xff] }
 0x4db   :  { %v3440_v35 = vmul.f32 %v5701_v36, %v13141_v50  ;;  %v3772_v26 = vmul.f32 1.442695, %v3617_v8  ;;  %v13144_v50 = vld [vmem:[#allocation94_spill] sm:$0xff] }
 0x4dc   :  { %4144 = vrot.lane.b32.xlu1 %v3923_v13, %s5774_s20  ;;  %v10981_v5 = vpop.permute.xlu1 %3296  ;;  %v10983_v54 = vpop.permute.xlu0 %4166  ;;  %v10994_v52 = vadd.f32 %v5700_v49, %v3438_v45  ;;  %v11010_v45 = vld [vmem:[%s12267_s1 + $0x268] sm:$0xff]  ;;  %5550 = vpow2.f32 %v3768_v62 }
 0x4dd   :  { %13138 = vst [vmem:[#allocation18_spill] sm:$0xff] %v10981_v5  ;;  %4610 = vrot.lane.b32.xlu0 %v4396_v1, %s5775_s16  ;;  %v13142_v5 = vld [vmem:[#allocation87_spill] sm:$0xff]  ;;  %13143 = vst [vmem:[#allocation34_spill] sm:$0xff] %v11010_v45  ;;  %v3619_v36 = vmul.f32 0.2, %v11010_v45  ;;  %v11016_v1 = vadd.f32 %v13144_v50, %v3456_v42  ;;  %v5547_v13 = vpop.eup %5546  ;;  %v5704_v42 = vld [vmem:[%s12266_s2 + $0x1d0] sm:$0xff]  ;;  %5552 = vpow2.f32 %v3772_v26 }
 0x4de   :  { %13140 = vst [vmem:[#allocation75_spill] sm:$0xff] %v10994_v52  ;;  %v3458_v23 = vmul.f32 %v5702_v48, %v13142_v5  ;;  %v4398_v49 = vadd.f32 %v10713_v22, %v10994_v52  ;;  %v3927_v5 = vmul.f32 0.5, %v3847_v58  ;;  %v11026_v48 = vld [vmem:[%s12266_s2 + $0x218] sm:$0xff]  ;;  %v11032_v50 = vadd.f32 %v5704_v42, %v3440_v35  ;;  %v13151_v58 = vld [vmem:[#allocation95_spill] sm:$0xff] }
 0x4df   :  { %13146 = vst [vmem:[#allocation77_spill] sm:$0xff] %v11026_v48  ;;  %v3849_v62 = vmul.f32 %v11026_v48, %v5545_v28  ;;  %v5706_v28 = vld [vmem:[%s12267_s1 + $0x270] sm:$0xff]  ;;  %v13149_v48 = vld [vmem:[#allocation23_spill] sm:$0xff]  ;;  %v11048_v35 = vld [vmem:[%s12267_s1 + $0x278] sm:$0xff]  ;;  %v3776_v42 = vmul.f32 1.442695, %v3619_v36  ;;  %v5549_v36 = vpop.eup %5548 }
 0x4e0   :  { %4148 = vrot.lane.b32.xlu1 %v3925_v17, %s5774_s20  ;;  %v11019_v18 = vpop.permute.xlu1 %3300  ;;  %v11021_v8 = vpop.permute.xlu0 %4170  ;;  %13147 = vst [vmem:[#allocation78_spill] sm:$0xff] %v11032_v50  ;;  %v5705_v17 = vld [vmem:[%s12267_s1 + $0x1e0] sm:$0xff]  ;;  %v3460_v52 = vmul.f32 %v5706_v28, %v13149_v48  ;;  %13150 = vst [vmem:[#allocation79_spill] sm:$0xff] %v11048_v35  ;;  %v11064_v28 = vld [vmem:[%s12266_s2 + $0x228] sm:$0xff] }
 0x4e1   :  { %13145 = vst [vmem:[#allocation76_spill] sm:$0xff] %v11019_v18  ;;  %v13148_v18 = vld [vmem:[#allocation85_spill] sm:$0xff]  ;;  %4614 = vrot.lane.b32.xlu0 %v4398_v49, %s5775_s16  ;;  %v11054_v49 = vadd.f32 %v13151_v58, %v3458_v23  ;;  %v3929_v26 = vmul.f32 0.5, %v3849_v62  ;;  %13152 = vst [vmem:[#allocation80_spill] sm:$0xff] %v11064_v28  ;;  %v5708_v23 = vld [vmem:[%s12266_s2 + $0x1e0] sm:$0xff]  ;;  %5554 = vpow2.f32 %v3776_v42 }
 0x4e2   :  { %v3442_v45 = vmul.f32 %v5705_v17, %v13148_v18  ;;  %v4400_v18 = vadd.f32 %v10736_v59, %v11032_v50  ;;  %v3621_v17 = vmul.f32 0.2, %v11048_v35  ;;  %v3851_v50 = vmul.f32 %v11064_v28, %v5547_v13  ;;  %v13153_v59 = vld [vmem:[#allocation96_spill] sm:$0xff]  ;;  %v11104_v42 = vld [vmem:[%s12266_s2 + $0x248] sm:$0xff] }
 0x4e3   :  { %v11078_v7 = vadd.f32 %v13153_v59, %v3460_v52  ;;  %v4262_v59 = vsub.f32 %v10253_v38, %v10108_v21  ;;  %v4404_v52 = vadd.f32 %v10799_v27, %v10794_v46 }
 0x4e4   :  { %4152 = vrot.lane.b32.xlu1 %v3927_v5, %s5774_s20  ;;  %v11057_v22 = vpop.permute.xlu1 %4024  ;;  %v11059_v48 = vpop.permute.xlu0 %4174  ;;  %v11070_v58 = vadd.f32 %v5708_v23, %v3442_v45  ;;  %v3780_v35 = vmul.f32 1.442695, %v3621_v17  ;;  %v3931_v45 = vmul.f32 0.5, %v3851_v50  ;;  %v11088_v23 = vld [vmem:[%s12266_s2 + $0x238] sm:$0xff] }
 0x4e5   :  { %4618 = vrot.lane.b32.xlu0 %v4400_v18, %s5775_s16  ;;  %13154 = vst [vmem:[#allocation35_spill] sm:$0xff] %v11088_v23  ;;  %v3853_v18 = vmul.f32 %v11088_v23, %v5549_v36 }
 0x4e6   :  { %v4402_v62 = vadd.f32 %v10766_v12, %v11070_v58  ;;  %v5551_v5 = vpop.eup %5550  ;;  %5556 = vpow2.f32 %v3780_v35  ;;  %v4264_v35 = vsub.f32 %v10288_v9, %v10129_v6 }
 0x4e7   :  { %v5553_v50 = vpop.eup %5552  ;;  %v3933_v36 = vmul.f32 0.5, %v3853_v18 }
 0x4e8   :  { %4156 = vrot.lane.b32.xlu1 %v3929_v26, %s5774_s20  ;;  %v11081_v13 = vpop.permute.xlu1 %4028  ;;  %v11083_v28 = vpop.permute.xlu0 %4178 }
 0x4e9   :  { %4622 = vrot.lane.b32.xlu0 %v4402_v62, %s5775_s16  ;;  %v3855_v62 = vmul.f32 %v11104_v42, %v5551_v5  ;;  %v11119_v5 = vld [vmem:[%s12266_s2 + $0x258] sm:$0xff] }
 0x4eb   :  { %v3935_v46 = vmul.f32 0.5, %v3855_v62  ;;  %v4408_v62 = vadd.f32 %v10869_v39, %v10864_v24 }
 0x4ec   :  { %4160 = vrot.lane.b32.xlu1 %v3931_v45, %s5774_s20  ;;  %v11099_v17 = vpop.permute.xlu1 %4032  ;;  %v4503_v26 = vpop.permute.xlu0 %4502  ;;  %v4406_v45 = vadd.f32 %v10834_v30, %v10829_v57 }
 0x4ed   :  { %v4743_v21 = vsel %vm4742_vm2, %v4262_v59, %v4503_v26  ;;  %4626 = vrot.lane.b32.xlu0 %v4404_v52, %s5775_s16  ;;  %v3857_v59 = vmul.f32 %v11119_v5, %v5553_v50  ;;  %v5555_v52 = vpop.eup %5554  ;;  %v13155_v26 = vld [vmem:[#allocation98_spill] sm:$0xff] }
 0x4ee   :  { %v4823_v38 = vmax.f32 %v4743_v21, 0.0 }
 0x4f0   :  { %v4903_v18 = vmin.f32 %v4823_v38, 32.0  ;;  %4164 = vrot.lane.b32.xlu1 %v3933_v36, %s5774_s20  ;;  %v11114_v23 = vpop.permute.xlu1 %4036  ;;  %v4507_v27 = vpop.permute.xlu0 %4506  ;;  %v4266_v36 = vsub.f32 %v13155_v26, %v10147_v41  ;;  %v3937_v38 = vmul.f32 0.5, %v3857_v59  ;;  %v13156_v59 = vld [vmem:[#allocation103_spill] sm:$0xff] }
 0x4f1   :  { %v4745_v6 = vsel %vm4742_vm2, %v4264_v35, %v4507_v27  ;;  %4630 = vrot.lane.b32.xlu0 %v4406_v45, %s5775_s16  ;;  %v11138_v35 = vld [vmem:[%s12266_s2 + $0x268] sm:$0xff] }
 0x4f2   :  { %4984 = vst.msk [vmem:[%s12268_s5] sm:$0xff] %vm4983_vm6, %v4903_v18  ;;  %v4825_v9 = vmax.f32 %v4745_v6, 0.0  ;;  %v3859_v45 = vmul.f32 %v11138_v35, %v5555_v52  ;;  %v5557_v18 = vpop.eup %5556  ;;  %v4268_v6 = vsub.f32 %v13156_v59, %v10165_v3  ;;  %v13159_v59 = vld [vmem:[#allocation86_spill] sm:$0xff] }
 0x4f4   :  { %v4905_v21 = vmin.f32 %v4825_v9, 32.0  ;;  %4168 = vrot.lane.b32.xlu1 %v3935_v46, %s5774_s20  ;;  %v11133_v50 = vpop.permute.xlu1 %4040  ;;  %v4511_v27 = vpop.permute.xlu0 %4510  ;;  %v4410_v9 = vadd.f32 %v10907_v16, %v10902_v55 }
 0x4f5   :  { %v4747_v41 = vsel %vm4742_vm2, %v4266_v36, %v4511_v27  ;;  %4634 = vrot.lane.b32.xlu0 %v4408_v62, %s5775_s16  ;;  %v3939_v27 = vmul.f32 0.5, %v3859_v45  ;;  %v11157_v62 = vld [vmem:[%s12266_s2 + $0x278] sm:$0xff] }
 0x4f6   :  { %4986 = vst.msk [vmem:[%s12268_s5 + $0x10] sm:$0xff] %vm4983_vm6, %v4905_v21  ;;  %v4827_v46 = vmax.f32 %v4747_v41, 0.0  ;;  %13157 = vst [vmem:[#allocation81_spill] sm:$0xff] %v11157_v62  ;;  %v3861_v21 = vmul.f32 %v11157_v62, %v5557_v18  ;;  %v5714_v18 = vld [vmem:[%s12267_s1 + $0x8] sm:$0xff] }
 0x4f8   :  { %v4907_v26 = vmin.f32 %v4827_v46, 32.0  ;;  %4172 = vrot.lane.b32.xlu1 %v3937_v38, %s5774_s20  ;;  %v11152_v52 = vpop.permute.xlu1 %4044  ;;  %v4515_v36 = vpop.permute.xlu0 %4514  ;;  %v13158_v38 = vld [vmem:[#allocation30_spill] sm:$0xff]  ;;  %v4412_v46 = vadd.f32 %v10945_v56, %v10940_v63 }
 0x4f9   :  { %v4749_v41 = vsel %vm4742_vm2, %v4268_v6, %v4515_v36  ;;  %4638 = vrot.lane.b32.xlu0 %v4410_v9, %s5775_s16  ;;  %v4270_v45 = vsub.f32 %v13158_v38, %v10183_v4  ;;  %v3383_v6 = vmul.f32 %v5714_v18, %v13159_v59  ;;  %v13160_v38 = vld [vmem:[#allocation37_spill] sm:$0xff] }
 0x4fa   :  { %4988 = vst.msk [vmem:[%s12268_s5 + $0x20] sm:$0xff] %vm4983_vm6, %v4907_v26  ;;  %v4829_v3 = vmax.f32 %v4749_v41, 0.0  ;;  %v3941_v26 = vmul.f32 0.5, %v3861_v21  ;;  %v4272_v18 = vsub.f32 %v13160_v38, %v10201_v53  ;;  %v5715_v21 = vld [vmem:[%s12266_s2 + $0x8] sm:$0xff] }
 0x4fc   :  { %v4909_v36 = vmin.f32 %v4829_v3, 32.0  ;;  %4176 = vrot.lane.b32.xlu1 %v3939_v27, %s5774_s20  ;;  %v11175_v9 = vpop.permute.xlu1 %4048  ;;  %v4519_v62 = vpop.permute.xlu0 %4518  ;;  %v4414_v27 = vadd.f32 %v10983_v54, %v10978_v29  ;;  %v11190_v3 = vadd.f32 %v5715_v21, %v3383_v6 }
 0x4fd   :  { %v4751_v41 = vsel %vm4742_vm2, %v4270_v45, %v4519_v62  ;;  %4642 = vrot.lane.b32.xlu0 %v4412_v46, %s5775_s16  ;;  %v5716_v62 = vld [vmem:[%s12267_s1 + $0x18] sm:$0xff]  ;;  %v13161_v45 = vld [vmem:[#allocation88_spill] sm:$0xff] }
 0x4fe   :  { %4990 = vst.msk [vmem:[%s12268_s5 + $0x30] sm:$0xff] %vm4983_vm6, %v4909_v36  ;;  %v4831_v4 = vmax.f32 %v4751_v41, 0.0  ;;  %v3385_v46 = vmul.f32 %v5716_v62, %v13161_v45  ;;  %v4343_v6 = vadd.f32 %v11057_v22, %v11190_v3  ;;  %v5718_v62 = vld [vmem:[%s12267_s1 + $0x28] sm:$0xff]  ;;  %v13164_v45 = vld [vmem:[#allocation89_spill] sm:$0xff] }
 0x500   :  { %v4911_v59 = vmin.f32 %v4831_v4, 32.0  ;;  %4180 = vrot.lane.b32.xlu1 %v3941_v26, %s5774_s20  ;;  %v11197_v36 = vpop.permute.xlu1 %4052  ;;  %v4523_v53 = vpop.permute.xlu0 %4522  ;;  %v13162_v4 = vld [vmem:[#allocation31_spill] sm:$0xff]  ;;  %v4416_v26 = vadd.f32 %v11021_v8, %v11016_v1 }
 0x501   :  { %v4753_v41 = vsel %vm4742_vm2, %v4272_v18, %v4523_v53  ;;  %4646 = vrot.lane.b32.xlu0 %v4414_v27, %s5775_s16  ;;  %v4274_v21 = vsub.f32 %v13162_v4, %v10219_v2  ;;  %v5717_v18 = vld [vmem:[%s12266_s2 + $0x18] sm:$0xff]  ;;  %v3387_v53 = vmul.f32 %v5718_v62, %v13164_v45 }
 0x502   :  { %4992 = vst.msk [vmem:[%s12268_s5 + $0x40] sm:$0xff] %vm4983_vm6, %v4911_v59  ;;  %v4833_v38 = vmax.f32 %v4753_v41, 0.0  ;;  %v11214_v27 = vadd.f32 %v5717_v18, %v3385_v46  ;;  %v5720_v45 = vld [vmem:[%s12267_s1 + $0x38] sm:$0xff] }
 0x504   :  { %13163 = vst [vmem:[#allocation82_spill] sm:$0xff] %v11214_v27  ;;  %v4913_v59 = vmin.f32 %v4833_v38, 32.0  ;;  %4504 = vrot.lane.b32.xlu1 %v4343_v6, %s5775_s16  ;;  %v11221_v41 = vpop.permute.xlu1 %4056  ;;  %v4527_v2 = vpop.permute.xlu0 %4526  ;;  %v4345_v46 = vadd.f32 %v11081_v13, %v11214_v27  ;;  %v13165_v38 = vld [vmem:[#allocation38_spill] sm:$0xff]  ;;  %v4418_v6 = vadd.f32 %v11059_v48, %v11054_v49 }
 0x505   :  { %v4755_v4 = vsel %vm4742_vm2, %v4274_v21, %v4527_v2  ;;  %4650 = vrot.lane.b32.xlu0 %v4416_v26, %s5775_s16  ;;  %v4276_v62 = vsub.f32 %v13165_v38, %v10241_v60  ;;  %v5719_v21 = vld [vmem:[%s12266_s2 + $0x28] sm:$0xff]  ;;  %v13167_v2 = vld [vmem:[#allocation90_spill] sm:$0xff] }
 0x506   :  { %4994 = vst.msk [vmem:[%s12268_s5 + $0x50] sm:$0xff] %vm4983_vm6, %v4913_v59  ;;  %v4835_v18 = vmax.f32 %v4755_v4, 0.0  ;;  %v11238_v26 = vadd.f32 %v5719_v21, %v3387_v53  ;;  %v3389_v27 = vmul.f32 %v5720_v45, %v13167_v2  ;;  %v5722_v2 = vld [vmem:[%s12267_s1 + $0x48] sm:$0xff] }
 0x508   :  { %13166 = vst [vmem:[#allocation20_spill] sm:$0xff] %v11238_v26  ;;  %v4915_v59 = vmin.f32 %v4835_v18, 32.0  ;;  %4508 = vrot.lane.b32.xlu1 %v4345_v46, %s5775_s16  ;;  %v11245_v4 = vpop.permute.xlu1 %4060  ;;  %v4531_v60 = vpop.permute.xlu0 %4530  ;;  %v4347_v53 = vadd.f32 %v11099_v17, %v11238_v26  ;;  %v13168_v18 = vld [vmem:[#allocation32_spill] sm:$0xff]  ;;  %v4420_v46 = vadd.f32 %v11083_v28, %v11078_v7 }
 0x509   :  { %v4757_v38 = vsel %vm4742_vm2, %v4276_v62, %v4531_v60  ;;  %4654 = vrot.lane.b32.xlu0 %v4418_v6, %s5775_s16  ;;  %v4278_v45 = vsub.f32 %v13168_v18, %v10258_v43  ;;  %v5721_v62 = vld [vmem:[%s12266_s2 + $0x38] sm:$0xff]  ;;  %v13170_v60 = vld [vmem:[#allocation36_spill] sm:$0xff] }
 0x50a   :  { %4996 = vst.msk [vmem:[%s12268_s5 + $0x60] sm:$0xff] %vm4983_vm6, %v4915_v59  ;;  %v4837_v21 = vmax.f32 %v4757_v38, 0.0  ;;  %v11262_v6 = vadd.f32 %v5721_v62, %v3389_v27  ;;  %v3391_v26 = vmul.f32 %v5722_v2, %v13170_v60 }
 0x50c   :  { %13169 = vst [vmem:[#allocation83_spill] sm:$0xff] %v11262_v6  ;;  %v4917_v59 = vmin.f32 %v4837_v21, 32.0  ;;  %4512 = vrot.lane.b32.xlu1 %v4347_v53, %s5775_s16  ;;  %v11269_v38 = vpop.permute.xlu1 %4064  ;;  %v4535_v43 = vpop.permute.xlu0 %4534  ;;  %v4349_v27 = vadd.f32 %v11114_v23, %v11262_v6  ;;  %v13171_v21 = vld [vmem:[#allocation40_spill] sm:$0xff]  ;;  %v5723_v53 = vld [vmem:[%s12266_s2 + $0x48] sm:$0xff] }
 0x50d   :  { %v4759_v18 = vsel %vm4742_vm2, %v4278_v45, %v4535_v43  ;;  %4658 = vrot.lane.b32.xlu0 %v4420_v46, %s5775_s16  ;;  %v4280_v2 = vsub.f32 %v13171_v21, %v10276_v10  ;;  %v11284_v60 = vadd.f32 %v5723_v53, %v3391_v26  ;;  %v5724_v45 = vld [vmem:[%s12267_s1 + $0x58] sm:$0xff]  ;;  %v13173_v46 = vld [vmem:[#allocation92_spill] sm:$0xff] }
 0x50e   :  { %4998 = vst.msk [vmem:[%s12268_s5 + $0x70] sm:$0xff] %vm4983_vm6, %v4917_v59  ;;  %v4839_v62 = vmax.f32 %v4759_v18, 0.0  ;;  %v3393_v43 = vmul.f32 %v5724_v45, %v13173_v46  ;;  %v13174_v53 = vld [vmem:[#allocation41_spill] sm:$0xff] }
 0x50f   :  { %13172 = vst [vmem:[#allocation91_spill] sm:$0xff] %v11284_v60  ;;  %v4351_v21 = vadd.f32 %v11133_v50, %v11284_v60  ;;  %v4282_v45 = vsub.f32 %v13174_v53, %v10299_v25  ;;  %v13176_v46 = vld [vmem:[#allocation93_spill] sm:$0xff] }
 0x510   :  { %v4919_v6 = vmin.f32 %v4839_v62, 32.0  ;;  %4516 = vrot.lane.b32.xlu1 %v4349_v27, %s5775_s16  ;;  %v11291_v59 = vpop.permute.xlu1 %4068  ;;  %v4539_v18 = vpop.permute.xlu0 %4538  ;;  %v5725_v27 = vld [vmem:[%s12266_s2 + $0x58] sm:$0xff] }
 0x511   :  { %v4761_v10 = vsel %vm4742_vm2, %v4280_v2, %v4539_v18  ;;  %v11305_v62 = vadd.f32 %v5725_v27, %v3393_v43  ;;  %v5726_v2 = vld [vmem:[%s12267_s1 + $0x68] sm:$0xff]  ;;  %v13177_v27 = vld [vmem:[#allocation2_spill] sm:$0xff] }
 0x512   :  { %5000 = vst.msk [vmem:[%s12268_s5 + $0x80] sm:$0xff] %vm4983_vm6, %v4919_v6  ;;  %v4841_v26 = vmax.f32 %v4761_v10, 0.0  ;;  %v3395_v18 = vmul.f32 %v5726_v2, %v13176_v46  ;;  %v4284_v2 = vsub.f32 %v13177_v27, %v10322_v40  ;;  %v13179_v46 = vld [vmem:[#allocation25_spill] sm:$0xff] }
 0x513   :  { %13175 = vst [vmem:[#allocation84_spill] sm:$0xff] %v11305_v62  ;;  %v4353_v53 = vadd.f32 %v11152_v52, %v11305_v62 }
 0x514   :  { %v4921_v60 = vmin.f32 %v4841_v26, 32.0  ;;  %4520 = vrot.lane.b32.xlu1 %v4351_v21, %s5775_s16  ;;  %v11312_v6 = vpop.permute.xlu1 %4072  ;;  %v4543_v10 = vpop.permute.xlu0 %4542  ;;  %v5727_v21 = vld [vmem:[%s12266_s2 + $0x68] sm:$0xff] }
 0x515   :  { %v4763_v25 = vsel %vm4742_vm2, %v4282_v45, %v4543_v10  ;;  %v11326_v26 = vadd.f32 %v5727_v21, %v3395_v18  ;;  %v5728_v45 = vld [vmem:[%s12267_s1 + $0x78] sm:$0xff]  ;;  %v13181_v21 = vld [vmem:[#allocation3_spill] sm:$0xff] }
 0x516   :  { %5002 = vst.msk [vmem:[%s12268_s5 + $0x90] sm:$0xff] %vm4983_vm6, %v4921_v60  ;;  %v4843_v43 = vmax.f32 %v4763_v25, 0.0  ;;  %v3397_v10 = vmul.f32 %v5728_v45, %v13179_v46  ;;  %v4286_v45 = vsub.f32 %v13181_v21, %v10345_v31  ;;  %v13183_v46 = vld [vmem:[#allocation26_spill] sm:$0xff] }
 0x517   :  { %13178 = vst [vmem:[#allocation22_spill] sm:$0xff] %v11326_v26  ;;  %v4355_v27 = vadd.f32 %v11175_v9, %v11326_v26 }
 0x518   :  { %v4923_v62 = vmin.f32 %v4843_v43, 32.0  ;;  %4524 = vrot.lane.b32.xlu1 %v4353_v53, %s5775_s16  ;;  %v11333_v60 = vpop.permute.xlu1 %4076  ;;  %v4547_v25 = vpop.permute.xlu0 %4546  ;;  %v5729_v53 = vld [vmem:[%s12266_s2 + $0x78] sm:$0xff] }
 0x519   :  { %13180 = vst [vmem:[#allocation24_spill] sm:$0xff] %v11333_v60  ;;  %v4765_v40 = vsel %vm4742_vm2, %v4284_v2, %v4547_v25  ;;  %v11347_v43 = vadd.f32 %v5729_v53, %v3397_v10  ;;  %v5730_v2 = vld [vmem:[%s12267_s1 + $0x88] sm:$0xff]  ;;  %v13184_v53 = vld [vmem:[#allocation46_spill] sm:$0xff] }
 0x51a   :  { %5004 = vst.msk [vmem:[%s12268_s5 + $0xa0] sm:$0xff] %vm4983_vm6, %v4923_v62  ;;  %v4845_v18 = vmax.f32 %v4765_v40, 0.0  ;;  %v3399_v25 = vmul.f32 %v5730_v2, %v13183_v46  ;;  %v4288_v2 = vsub.f32 %v13184_v53, %v10368_v44  ;;  %v13186_v46 = vld [vmem:[#allocation27_spill] sm:$0xff] }
 0x51b   :  { %13182 = vst [vmem:[#allocation21_spill] sm:$0xff] %v11347_v43  ;;  %v4357_v21 = vadd.f32 %v11197_v36, %v11347_v43 }
 0x51c   :  { %v4925_v26 = vmin.f32 %v4845_v18, 32.0  ;;  %4528 = vrot.lane.b32.xlu1 %v4355_v27, %s5775_s16  ;;  %v11354_v62 = vpop.permute.xlu1 %4080  ;;  %v4551_v40 = vpop.permute.xlu0 %4550  ;;  %v5731_v27 = vld [vmem:[%s12266_s2 + $0x88] sm:$0xff] }
 0x51d   :  { %v4767_v31 = vsel %vm4742_vm2, %v4286_v45, %v4551_v40  ;;  %v11368_v18 = vadd.f32 %v5731_v27, %v3399_v25  ;;  %v5732_v45 = vld [vmem:[%s12267_s1 + $0x98] sm:$0xff]  ;;  %v13187_v27 = vld [vmem:[#allocation47_spill] sm:$0xff] }
 0x51e   :  { %5006 = vst.msk [vmem:[%s12268_s5 + $0xb0] sm:$0xff] %vm4983_vm6, %v4925_v26  ;;  %v4847_v10 = vmax.f32 %v4767_v31, 0.0  ;;  %v3401_v40 = vmul.f32 %v5732_v45, %v13186_v46  ;;  %v4290_v45 = vsub.f32 %v13187_v27, %v10391_v14  ;;  %v13189_v46 = vld [vmem:[#allocation97_spill] sm:$0xff] }
 0x51f   :  { %13185 = vst [vmem:[#allocation87_spill] sm:$0xff] %v11368_v18  ;;  %v4359_v53 = vadd.f32 %v11221_v41, %v11368_v18 }
 0x520   :  { %v4927_v43 = vmin.f32 %v4847_v10, 32.0  ;;  %4532 = vrot.lane.b32.xlu1 %v4357_v21, %s5775_s16  ;;  %v11375_v26 = vpop.permute.xlu1 %4084  ;;  %v4555_v31 = vpop.permute.xlu0 %4554  ;;  %v5733_v21 = vld [vmem:[%s12266_s2 + $0x98] sm:$0xff] }
 0x521   :  { %v4769_v44 = vsel %vm4742_vm2, %v4288_v2, %v4555_v31  ;;  %v11389_v10 = vadd.f32 %v5733_v21, %v3401_v40  ;;  %v5734_v2 = vld [vmem:[%s12267_s1 + $0xa8] sm:$0xff]  ;;  %v13191_v21 = vld [vmem:[#allocation5_spill] sm:$0xff] }
 0x522   :  { %5008 = vst.msk [vmem:[%s12268_s5 + $0xc0] sm:$0xff] %vm4983_vm6, %v4927_v43  ;;  %v4849_v25 = vmax.f32 %v4769_v44, 0.0  ;;  %v3403_v31 = vmul.f32 %v5734_v2, %v13189_v46  ;;  %v4292_v2 = vsub.f32 %v13191_v21, %v10414_v37  ;;  %v13193_v46 = vld [vmem:[#allocation28_spill] sm:$0xff] }
 0x523   :  { %13188 = vst [vmem:[#allocation94_spill] sm:$0xff] %v11389_v10  ;;  %v4361_v27 = vadd.f32 %v11245_v4, %v11389_v10 }
 0x524   :  { %v4929_v18 = vmin.f32 %v4849_v25, 32.0  ;;  %4536 = vrot.lane.b32.xlu1 %v4359_v53, %s5775_s16  ;;  %v11396_v43 = vpop.permute.xlu1 %4088  ;;  %v4559_v44 = vpop.permute.xlu0 %4558  ;;  %v5735_v53 = vld [vmem:[%s12266_s2 + $0xa8] sm:$0xff] }
 0x525   :  { %13190 = vst [vmem:[#allocation85_spill] sm:$0xff] %v11396_v43  ;;  %v4771_v14 = vsel %vm4742_vm2, %v4290_v45, %v4559_v44  ;;  %v11410_v25 = vadd.f32 %v5735_v53, %v3403_v31  ;;  %v5736_v45 = vld [vmem:[%s12267_s1 + $0xb8] sm:$0xff]  ;;  %v13195_v53 = vld [vmem:[#allocation50_spill] sm:$0xff] }
 0x526   :  { %5010 = vst.msk [vmem:[%s12268_s5 + $0xd0] sm:$0xff] %vm4983_vm6, %v4929_v18  ;;  %v4851_v40 = vmax.f32 %v4771_v14, 0.0  ;;  %v3405_v44 = vmul.f32 %v5736_v45, %v13193_v46  ;;  %v4294_v45 = vsub.f32 %v13195_v53, %v10437_v15  ;;  %v13197_v46 = vld [vmem:[#allocation101_spill] sm:$0xff] }
 0x527   :  { %13192 = vst [vmem:[#allocation23_spill] sm:$0xff] %v11410_v25  ;;  %v4363_v21 = vadd.f32 %v11269_v38, %v11410_v25 }
 0x528   :  { %v4931_v10 = vmin.f32 %v4851_v40, 32.0  ;;  %4540 = vrot.lane.b32.xlu1 %v4361_v27, %s5775_s16  ;;  %v11417_v18 = vpop.permute.xlu1 %4092  ;;  %v4563_v14 = vpop.permute.xlu0 %4562  ;;  %v5737_v27 = vld [vmem:[%s12266_s2 + $0xb8] sm:$0xff] }
 0x529   :  { %13194 = vst [vmem:[#allocation95_spill] sm:$0xff] %v11417_v18  ;;  %v4773_v37 = vsel %vm4742_vm2, %v4292_v2, %v4563_v14  ;;  %v11431_v40 = vadd.f32 %v5737_v27, %v3405_v44  ;;  %v5738_v2 = vld [vmem:[%s12267_s1 + $0xc8] sm:$0xff]  ;;  %v13199_v27 = vld [vmem:[#allocation52_spill] sm:$0xff] }
 0x52a   :  { %5012 = vst.msk [vmem:[%s12268_s5 + $0xe0] sm:$0xff] %vm4983_vm6, %v4931_v10  ;;  %v4853_v31 = vmax.f32 %v4773_v37, 0.0  ;;  %v3407_v14 = vmul.f32 %v5738_v2, %v13197_v46  ;;  %v4296_v2 = vsub.f32 %v13199_v27, %v10460_v51  ;;  %v13201_v46 = vld [vmem:[#allocation29_spill] sm:$0xff] }
 0x52b   :  { %13196 = vst [vmem:[#allocation96_spill] sm:$0xff] %v11431_v40  ;;  %v4365_v53 = vadd.f32 %v11291_v59, %v11431_v40 }
 0x52c   :  { %v4933_v25 = vmin.f32 %v4853_v31, 32.0  ;;  %4544 = vrot.lane.b32.xlu1 %v4363_v21, %s5775_s16  ;;  %v11438_v10 = vpop.permute.xlu1 %4096  ;;  %v4567_v37 = vpop.permute.xlu0 %4566  ;;  %v5739_v21 = vld [vmem:[%s12266_s2 + $0xc8] sm:$0xff] }
 0x52d   :  { %13198 = vst [vmem:[#allocation98_spill] sm:$0xff] %v11438_v10  ;;  %v4775_v15 = vsel %vm4742_vm2, %v4294_v45, %v4567_v37  ;;  %v11452_v31 = vadd.f32 %v5739_v21, %v3407_v14  ;;  %v5740_v45 = vld [vmem:[%s12267_s1 + $0xd8] sm:$0xff]  ;;  %v13203_v21 = vld [vmem:[#allocation54_spill] sm:$0xff] }
 0x52e   :  { %5014 = vst.msk [vmem:[%s12268_s5 + $0xf0] sm:$0xff] %vm4983_vm6, %v4933_v25  ;;  %v4855_v44 = vmax.f32 %v4775_v15, 0.0  ;;  %v3409_v37 = vmul.f32 %v5740_v45, %v13201_v46  ;;  %v4298_v45 = vsub.f32 %v13203_v21, %v10483_v32  ;;  %v13205_v46 = vld [vmem:[#allocation99_spill] sm:$0xff] }
 0x52f   :  { %13200 = vst [vmem:[#allocation103_spill] sm:$0xff] %v11452_v31  ;;  %v4367_v27 = vadd.f32 %v11312_v6, %v11452_v31 }
 0x530   :  { %v4935_v40 = vmin.f32 %v4855_v44, 32.0  ;;  %4548 = vrot.lane.b32.xlu1 %v4365_v53, %s5775_s16  ;;  %v11459_v25 = vpop.permute.xlu1 %4100  ;;  %v4571_v15 = vpop.permute.xlu0 %4570  ;;  %v5741_v53 = vld [vmem:[%s12266_s2 + $0xd8] sm:$0xff] }
 0x531   :  { %13202 = vst [vmem:[#allocation30_spill] sm:$0xff] %v11459_v25  ;;  %v4777_v51 = vsel %vm4742_vm2, %v4296_v2, %v4571_v15  ;;  %v11473_v44 = vadd.f32 %v5741_v53, %v3409_v37  ;;  %v5742_v2 = vld [vmem:[%s12267_s1 + $0xe8] sm:$0xff]  ;;  %v13207_v53 = vld [vmem:[#allocation56_spill] sm:$0xff] }
 0x532   :  { %5016 = vst.msk [vmem:[%s12268_s5 + $0x100] sm:$0xff] %vm4983_vm6, %v4935_v40  ;;  %v4857_v14 = vmax.f32 %v4777_v51, 0.0  ;;  %v3411_v15 = vmul.f32 %v5742_v2, %v13205_v46  ;;  %v4300_v2 = vsub.f32 %v13207_v53, %v10506_v47  ;;  %v13209_v46 = vld [vmem:[#allocation100_spill] sm:$0xff] }
 0x533   :  { %13204 = vst [vmem:[#allocation86_spill] sm:$0xff] %v11473_v44  ;;  %v4369_v21 = vadd.f32 %v11333_v60, %v11473_v44  ;;  %v13212_v60 = vld [vmem:[#allocation58_spill] sm:$0xff] }
 0x534   :  { %v4937_v31 = vmin.f32 %v4857_v14, 32.0  ;;  %4552 = vrot.lane.b32.xlu1 %v4367_v27, %s5775_s16  ;;  %v11480_v40 = vpop.permute.xlu1 %4104  ;;  %v4575_v51 = vpop.permute.xlu0 %4574  ;;  %v5743_v27 = vld [vmem:[%s12266_s2 + $0xe8] sm:$0xff] }
 0x535   :  { %13206 = vst [vmem:[#allocation37_spill] sm:$0xff] %v11480_v40  ;;  %v4779_v32 = vsel %vm4742_vm2, %v4298_v45, %v4575_v51  ;;  %v11494_v14 = vadd.f32 %v5743_v27, %v3411_v15  ;;  %v5744_v45 = vld [vmem:[%s12267_s1 + $0xf8] sm:$0xff]  ;;  %v13211_v27 = vld [vmem:[#allocation44_spill] sm:$0xff] }
 0x536   :  { %5018 = vst.msk [vmem:[%s12268_s5 + $0x110] sm:$0xff] %vm4983_vm6, %v4937_v31  ;;  %v4859_v37 = vmax.f32 %v4779_v32, 0.0  ;;  %v3413_v51 = vmul.f32 %v5744_v45, %v13209_v46  ;;  %v4302_v45 = vsub.f32 %v13212_v60, %v13211_v27  ;;  %v13213_v46 = vld [vmem:[#allocation102_spill] sm:$0xff] }
 0x537   :  { %13208 = vst [vmem:[#allocation88_spill] sm:$0xff] %v11494_v14  ;;  %v4371_v53 = vadd.f32 %v11354_v62, %v11494_v14 }
 0x538   :  { %v4939_v44 = vmin.f32 %v4859_v37, 32.0  ;;  %4556 = vrot.lane.b32.xlu1 %v4369_v21, %s5775_s16  ;;  %v11501_v31 = vpop.permute.xlu1 %4108  ;;  %v4579_v32 = vpop.permute.xlu0 %4578  ;;  %v5745_v21 = vld [vmem:[%s12266_s2 + $0xf8] sm:$0xff] }
 0x539   :  { %13210 = vst [vmem:[#allocation31_spill] sm:$0xff] %v11501_v31  ;;  %v4781_v47 = vsel %vm4742_vm2, %v4300_v2, %v4579_v32  ;;  %v11515_v37 = vadd.f32 %v5745_v21, %v3413_v51  ;;  %v5746_v2 = vld [vmem:[%s12267_s1 + $0x108] sm:$0xff]  ;;  %v4304_v21 = vsub.f32 %v10744_v19, %v10552_v61 }
 0x53a   :  { %5020 = vst.msk [vmem:[%s12268_s5 + $0x120] sm:$0xff] %vm4983_vm6, %v4939_v44  ;;  %v4861_v15 = vmax.f32 %v4781_v47, 0.0  ;;  %v3415_v32 = vmul.f32 %v5746_v2, %v13213_v46  ;;  %v13216_v2 = vld [vmem:[#allocation104_spill] sm:$0xff] }
 0x53b   :  { %v4373_v27 = vadd.f32 %v11375_v26, %v11515_v37 }
 0x53c   :  { %v4941_v14 = vmin.f32 %v4861_v15, 32.0  ;;  %4560 = vrot.lane.b32.xlu1 %v4371_v53, %s5775_s16  ;;  %v11522_v44 = vpop.permute.xlu1 %4112  ;;  %v4583_v47 = vpop.permute.xlu0 %4582  ;;  %v5747_v53 = vld [vmem:[%s12266_s2 + $0x108] sm:$0xff] }
 0x53d   :  { %13214 = vst [vmem:[#allocation89_spill] sm:$0xff] %v11522_v44  ;;  %v4783_v60 = vsel %vm4742_vm2, %v4302_v45, %v4583_v47  ;;  %v11536_v15 = vadd.f32 %v5747_v53, %v3415_v32  ;;  %v5748_v45 = vld [vmem:[%s12267_s1 + $0x118] sm:$0xff]  ;;  %v4306_v53 = vsub.f32 %v10774_v20, %v10575_v0 }
 0x53e   :  { %5022 = vst.msk [vmem:[%s12268_s5 + $0x130] sm:$0xff] %vm4983_vm6, %v4941_v14  ;;  %v4863_v51 = vmax.f32 %v4783_v60, 0.0  ;;  %v3417_v46 = vmul.f32 %v5748_v45, %v13216_v2  ;;  %v13219_v45 = vld [vmem:[#allocation105_spill] sm:$0xff] }
 0x53f   :  { %13215 = vst [vmem:[#allocation38_spill] sm:$0xff] %v11536_v15  ;;  %v4375_v19 = vadd.f32 %v11396_v43, %v11536_v15 }
 0x540   :  { %v4943_v47 = vmin.f32 %v4863_v51, 32.0  ;;  %4564 = vrot.lane.b32.xlu1 %v4373_v27, %s5775_s16  ;;  %v11543_v14 = vpop.permute.xlu1 %4116  ;;  %v4587_v60 = vpop.permute.xlu0 %4586  ;;  %v5749_v27 = vld [vmem:[%s12266_s2 + $0x118] sm:$0xff] }
 0x541   :  { %13217 = vst [vmem:[#allocation90_spill] sm:$0xff] %v11543_v14  ;;  %v4785_v61 = vsel %vm4742_vm2, %v4304_v21, %v4587_v60  ;;  %v11557_v51 = vadd.f32 %v5749_v27, %v3417_v46  ;;  %v5750_v21 = vld [vmem:[%s12267_s1 + $0x128] sm:$0xff]  ;;  %v4308_v27 = vsub.f32 %v10807_v11, %v10598_v34 }
 0x542   :  { %5024 = vst.msk [vmem:[%s12268_s5 + $0x140] sm:$0xff] %vm4983_vm6, %v4943_v47  ;;  %v4865_v32 = vmax.f32 %v4785_v61, 0.0  ;;  %v3419_v2 = vmul.f32 %v5750_v21, %v13219_v45  ;;  %v13222_v21 = vld [vmem:[#allocation39_spill] sm:$0xff] }
 0x543   :  { %13218 = vst [vmem:[#allocation32_spill] sm:$0xff] %v11557_v51  ;;  %v4377_v20 = vadd.f32 %v11417_v18, %v11557_v51  ;;  %v5761_v51 = vld [vmem:[%s12266_s2 + $0x178] sm:$0xff] }
 0x544   :  { %v4945_v60 = vmin.f32 %v4865_v32, 32.0  ;;  %4568 = vrot.lane.b32.xlu1 %v4375_v19, %s5775_s16  ;;  %v11564_v47 = vpop.permute.xlu1 %4120  ;;  %v4591_v61 = vpop.permute.xlu0 %4590  ;;  %v5751_v19 = vld [vmem:[%s12266_s2 + $0x128] sm:$0xff]  ;;  %v13249_v18 = vld [vmem:[#allocation17_spill] sm:$0xff] }
 0x545   :  { %13220 = vst [vmem:[#allocation36_spill] sm:$0xff] %v11564_v47  ;;  %v4787_v0 = vsel %vm4742_vm2, %v4306_v53, %v4591_v61  ;;  %v11578_v32 = vadd.f32 %v5751_v19, %v3419_v2  ;;  %v5752_v53 = vld [vmem:[%s12267_s1 + $0x138] sm:$0xff] }
 0x546   :  { %5026 = vst.msk [vmem:[%s12268_s5 + $0x150] sm:$0xff] %vm4983_vm6, %v4945_v60  ;;  %v4867_v46 = vmax.f32 %v4787_v0, 0.0  ;;  %v3421_v45 = vmul.f32 %v5752_v53, %v13222_v21  ;;  %v13224_v19 = vld [vmem:[#allocation65_spill] sm:$0xff] }
 0x547   :  { %13221 = vst [vmem:[#allocation40_spill] sm:$0xff] %v11578_v32  ;;  %v4379_v11 = vadd.f32 %v11438_v10, %v11578_v32  ;;  %v4310_v53 = vsub.f32 %v13224_v19, %v10621_v33  ;;  %v13226_v21 = vld [vmem:[#allocation33_spill] sm:$0xff]  ;;  %v13228_v10 = vld [vmem:[#allocation68_spill] sm:$0xff] }
 0x548   :  { %v4947_v61 = vmin.f32 %v4867_v46, 32.0  ;;  %4572 = vrot.lane.b32.xlu1 %v4377_v20, %s5775_s16  ;;  %v11585_v60 = vpop.permute.xlu1 %4124  ;;  %v4595_v0 = vpop.permute.xlu0 %4594  ;;  %v5753_v20 = vld [vmem:[%s12266_s2 + $0x138] sm:$0xff] }
 0x549   :  { %13223 = vst [vmem:[#allocation92_spill] sm:$0xff] %v11585_v60  ;;  %v4789_v34 = vsel %vm4742_vm2, %v4308_v27, %v4595_v0  ;;  %v11599_v46 = vadd.f32 %v5753_v20, %v3421_v45  ;;  %v5754_v27 = vld [vmem:[%s12267_s1 + $0x148] sm:$0xff] }
 0x54a   :  { %5028 = vst.msk [vmem:[%s12268_s5 + $0x160] sm:$0xff] %vm4983_vm6, %v4947_v61  ;;  %v4869_v2 = vmax.f32 %v4789_v34, 0.0  ;;  %v3423_v0 = vmul.f32 %v5754_v27, %v13226_v21  ;;  %v13227_v20 = vld [vmem:[#allocation51_spill] sm:$0xff]  ;;  %v13230_v21 = vld [vmem:[#allocation42_spill] sm:$0xff] }
 0x54b   :  { %13225 = vst [vmem:[#allocation41_spill] sm:$0xff] %v11599_v46  ;;  %v4381_v19 = vadd.f32 %v11459_v25, %v11599_v46  ;;  %v4312_v27 = vsub.f32 %v13228_v10, %v13227_v20  ;;  %v13232_v25 = vld [vmem:[#allocation16_spill] sm:$0xff] }
 0x54c   :  { %v4949_v32 = vmin.f32 %v4869_v2, 32.0  ;;  %4576 = vrot.lane.b32.xlu1 %v4379_v11, %s5775_s16  ;;  %v11606_v61 = vpop.permute.xlu1 %4128  ;;  %v4599_v34 = vpop.permute.xlu0 %4598  ;;  %v5755_v11 = vld [vmem:[%s12266_s2 + $0x148] sm:$0xff] }
 0x54d   :  { %v4791_v33 = vsel %vm4742_vm2, %v4310_v53, %v4599_v34  ;;  %v11620_v2 = vadd.f32 %v5755_v11, %v3423_v0  ;;  %v5756_v53 = vld [vmem:[%s12267_s1 + $0x158] sm:$0xff] }
 0x54e   :  { %5030 = vst.msk [vmem:[%s12268_s5 + $0x170] sm:$0xff] %vm4983_vm6, %v4949_v32  ;;  %v4871_v45 = vmax.f32 %v4791_v33, 0.0  ;;  %v3425_v34 = vmul.f32 %v5756_v53, %v13230_v21  ;;  %v13231_v11 = vld [vmem:[#allocation53_spill] sm:$0xff]  ;;  %v13234_v21 = vld [vmem:[#allocation43_spill] sm:$0xff] }
 0x54f   :  { %13229 = vst [vmem:[#allocation93_spill] sm:$0xff] %v11620_v2  ;;  %v4383_v20 = vadd.f32 %v11480_v40, %v11620_v2  ;;  %v4314_v53 = vsub.f32 %v13232_v25, %v13231_v11  ;;  %v13236_v40 = vld [vmem:[#allocation73_spill] sm:$0xff] }
 0x550   :  { %v4951_v46 = vmin.f32 %v4871_v45, 32.0  ;;  %4580 = vrot.lane.b32.xlu1 %v4381_v19, %s5775_s16  ;;  %v11627_v32 = vpop.permute.xlu1 %4132  ;;  %v4603_v33 = vpop.permute.xlu0 %4602  ;;  %v5757_v19 = vld [vmem:[%s12266_s2 + $0x158] sm:$0xff] }
 0x551   :  { %v4793_v10 = vsel %vm4742_vm2, %v4312_v27, %v4603_v33  ;;  %v11641_v45 = vadd.f32 %v5757_v19, %v3425_v34  ;;  %v5758_v27 = vld [vmem:[%s12267_s1 + $0x168] sm:$0xff] }
 0x552   :  { %5032 = vst.msk [vmem:[%s12268_s5 + $0x180] sm:$0xff] %vm4983_vm6, %v4951_v46  ;;  %v4873_v0 = vmax.f32 %v4793_v10, 0.0  ;;  %v3427_v33 = vmul.f32 %v5758_v27, %v13234_v21  ;;  %v13235_v19 = vld [vmem:[#allocation55_spill] sm:$0xff]  ;;  %v13238_v21 = vld [vmem:[#allocation45_spill] sm:$0xff] }
 0x553   :  { %13233 = vst [vmem:[#allocation2_spill] sm:$0xff] %v11641_v45  ;;  %v4385_v11 = vadd.f32 %v11501_v31, %v11641_v45  ;;  %v4316_v27 = vsub.f32 %v13236_v40, %v13235_v19  ;;  %v13240_v31 = vld [vmem:[#allocation75_spill] sm:$0xff] }
 0x554   :  { %v4953_v2 = vmin.f32 %v4873_v0, 32.0  ;;  %4584 = vrot.lane.b32.xlu1 %v4383_v20, %s5775_s16  ;;  %v11648_v46 = vpop.permute.xlu1 %4136  ;;  %v4607_v10 = vpop.permute.xlu0 %4606  ;;  %v5759_v20 = vld [vmem:[%s12266_s2 + $0x168] sm:$0xff] }
 0x555   :  { %v4795_v25 = vsel %vm4742_vm2, %v4314_v53, %v4607_v10  ;;  %v11662_v0 = vadd.f32 %v5759_v20, %v3427_v33  ;;  %v5760_v53 = vld [vmem:[%s12267_s1 + $0x178] sm:$0xff] }
 0x556   :  { %5034 = vst.msk [vmem:[%s12268_s5 + $0x190] sm:$0xff] %vm4983_vm6, %v4953_v2  ;;  %v4875_v34 = vmax.f32 %v4795_v25, 0.0  ;;  %v3429_v10 = vmul.f32 %v5760_v53, %v13238_v21  ;;  %v13239_v20 = vld [vmem:[#allocation57_spill] sm:$0xff]  ;;  %v13242_v21 = vld [vmem:[#allocation10_spill] sm:$0xff] }
 0x557   :  { %13237 = vst [vmem:[#allocation25_spill] sm:$0xff] %v11662_v0  ;;  %v4387_v19 = vadd.f32 %v11522_v44, %v11662_v0  ;;  %v4318_v53 = vsub.f32 %v13240_v31, %v13239_v20  ;;  %v13244_v0 = vld [vmem:[#allocation4_spill] sm:$0xff] }
 0x558   :  { %v4955_v45 = vmin.f32 %v4875_v34, 32.0  ;;  %4588 = vrot.lane.b32.xlu1 %v4385_v11, %s5775_s16  ;;  %v11669_v2 = vpop.permute.xlu1 %4140  ;;  %v4611_v25 = vpop.permute.xlu0 %4610  ;;  %v13241_v34 = vld [vmem:[#allocation60_spill] sm:$0xff] }
 0x559   :  { %v4797_v40 = vsel %vm4742_vm2, %v4316_v27, %v4611_v25  ;;  %v3445_v11 = vmul.f32 %v13242_v21, %v13241_v34  ;;  %v11685_v27 = vadd.f32 %v5761_v51, %v3429_v10  ;;  %v5762_v25 = vld [vmem:[%s12267_s1 + $0x188] sm:$0xff]  ;;  %v13246_v21 = vld [vmem:[#allocation78_spill] sm:$0xff] }
 0x55a   :  { %5036 = vst.msk [vmem:[%s12268_s5 + $0x1a0] sm:$0xff] %vm4983_vm6, %v4955_v45  ;;  %v4877_v33 = vmax.f32 %v4797_v40, 0.0  ;;  %v3431_v44 = vmul.f32 %v5762_v25, %v13244_v0  ;;  %v13245_v10 = vld [vmem:[#allocation59_spill] sm:$0xff] }
 0x55b   :  { %13243 = vst [vmem:[#allocation3_spill] sm:$0xff] %v11685_v27  ;;  %v4389_v34 = vadd.f32 %v11543_v14, %v11685_v27  ;;  %v4320_v0 = vsub.f32 %v13246_v21, %v13245_v10  ;;  %v13248_v25 = vld [vmem:[#allocation11_spill] sm:$0xff]  ;;  %v11706_v15 = vadd.f32 %v13249_v18, %v3445_v11 }
 0x55c   :  { %v4957_v45 = vmin.f32 %v4877_v33, 32.0  ;;  %4592 = vrot.lane.b32.xlu1 %v4387_v19, %s5775_s16  ;;  %v11692_v40 = vpop.permute.xlu1 %4144  ;;  %v4615_v31 = vpop.permute.xlu0 %4614  ;;  %v13247_v33 = vld [vmem:[#allocation61_spill] sm:$0xff] }
 0x55d   :  { %v4799_v20 = vsel %vm4742_vm2, %v4318_v53, %v4615_v31  ;;  %v3447_v19 = vmul.f32 %v13248_v25, %v13247_v33  ;;  %v5763_v53 = vld [vmem:[%s12266_s2 + $0x188] sm:$0xff]  ;;  %v13253_v25 = vld [vmem:[#allocation12_spill] sm:$0xff] }
 0x55e   :  { %5038 = vst.msk [vmem:[%s12268_s5 + $0x1b0] sm:$0xff] %vm4983_vm6, %v4957_v45  ;;  %v4879_v51 = vmax.f32 %v4799_v20, 0.0  ;;  %v11711_v31 = vadd.f32 %v5763_v53, %v3431_v44  ;;  %v5764_v45 = vld [vmem:[%s12267_s1 + $0x198] sm:$0xff]  ;;  %v13251_v20 = vld [vmem:[#allocation48_spill] sm:$0xff] }
 0x55f   :  { %v3433_v27 = vmul.f32 %v5764_v45, %v13251_v20  ;;  %v13254_v45 = vld [vmem:[#allocation19_spill] sm:$0xff] }
 0x560   :  { %13250 = vst [vmem:[#allocation26_spill] sm:$0xff] %v11711_v31  ;;  %v4959_v14 = vmin.f32 %v4879_v51, 32.0  ;;  %4596 = vrot.lane.b32.xlu1 %v4389_v34, %s5775_s16  ;;  %v11718_v10 = vpop.permute.xlu1 %4148  ;;  %v4619_v21 = vpop.permute.xlu0 %4618  ;;  %v4391_v44 = vadd.f32 %v11564_v47, %v11711_v31  ;;  %v4322_v34 = vsub.f32 %v11070_v58, %v10766_v12  ;;  %v13252_v51 = vld [vmem:[#allocation64_spill] sm:$0xff]  ;;  %v11734_v20 = vadd.f32 %v13254_v45, %v3447_v19  ;;  %v13258_v45 = vld [vmem:[#allocation13_spill] sm:$0xff]  ;;  %v13261_v19 = vld [vmem:[#allocation6_spill] sm:$0xff] }
 0x561   :  { %v4801_v11 = vsel %vm4742_vm2, %v4320_v0, %v4619_v21  ;;  %v3449_v53 = vmul.f32 %v13253_v25, %v13252_v51  ;;  %v5765_v0 = vld [vmem:[%s12266_s2 + $0x198] sm:$0xff]  ;;  %v13267_v47 = vld [vmem:[#allocation80_spill] sm:$0xff] }
 0x562   :  { %5040 = vst.msk [vmem:[%s12268_s5 + $0x1c0] sm:$0xff] %vm4983_vm6, %v4959_v14  ;;  %v4881_v33 = vmax.f32 %v4801_v11, 0.0  ;;  %v11739_v21 = vadd.f32 %v5765_v0, %v3433_v27  ;;  %v5766_v14 = vld [vmem:[%s12267_s1 + $0x1a8] sm:$0xff]  ;;  %v13256_v11 = vld [vmem:[#allocation49_spill] sm:$0xff] }
 0x563   :  { %v3435_v18 = vmul.f32 %v5766_v14, %v13256_v11  ;;  %v13259_v0 = vld [vmem:[#allocation77_spill] sm:$0xff]  ;;  %v5767_v11 = vld [vmem:[%s12266_s2 + $0x1a8] sm:$0xff] }
 0x564   :  { %13255 = vst [vmem:[#allocation46_spill] sm:$0xff] %v11739_v21  ;;  %v4961_v31 = vmin.f32 %v4881_v33, 32.0  ;;  %4600 = vrot.lane.b32.xlu1 %v4391_v44, %s5775_s16  ;;  %v11746_v12 = vpop.permute.xlu1 %4152  ;;  %v4623_v58 = vpop.permute.xlu0 %4622  ;;  %v4393_v27 = vadd.f32 %v11585_v60, %v11739_v21  ;;  %v13257_v33 = vld [vmem:[#allocation66_spill] sm:$0xff]  ;;  %v11760_v14 = vadd.f32 %v13259_v0, %v3449_v53  ;;  %v13263_v0 = vld [vmem:[#allocation63_spill] sm:$0xff] }
 0x565   :  { %v4803_v51 = vsel %vm4742_vm2, %v4322_v34, %v4623_v58  ;;  %v3451_v44 = vmul.f32 %v13258_v45, %v13257_v33  ;;  %v11765_v34 = vadd.f32 %v5767_v11, %v3435_v18  ;;  %v5768_v58 = vld [vmem:[%s12267_s1 + $0x1b8] sm:$0xff]  ;;  %v13262_v45 = vld [vmem:[#allocation62_spill] sm:$0xff] }
 0x566   :  { %5042 = vst.msk [vmem:[%s12268_s5 + $0x1d0] sm:$0xff] %vm4983_vm6, %v4961_v31  ;;  %v4883_v25 = vmax.f32 %v4803_v51, 0.0  ;;  %v3437_v21 = vmul.f32 %v5768_v58, %v13261_v19  ;;  %v13264_v60 = vsub.f32 %v13262_v45, %v13263_v0  ;;  %v5769_v45 = vld [vmem:[%s12266_s2 + $0x1b8] sm:$0xff]  ;;  %v13269_v0 = vld [vmem:[#allocation7_spill] sm:$0xff] }
 0x567   :  { %13260 = vst [vmem:[#allocation27_spill] sm:$0xff] %v11765_v34  ;;  %v4395_v11 = vadd.f32 %v11606_v61, %v11765_v34  ;;  %v11789_v43 = vadd.f32 %v13267_v47, %v3451_v44  ;;  %v13270_v44 = vsub.f32 %v10829_v57, %v10834_v30  ;;  %v5771_v57 = vld [vmem:[%s12266_s2 + $0x1c8] sm:$0xff] }
 0x568   :  { %v4963_v31 = vmin.f32 %v4883_v25, 32.0  ;;  %4604 = vrot.lane.b32.xlu1 %v4393_v27, %s5775_s16  ;;  %v11772_v51 = vpop.permute.xlu1 %4156  ;;  %v4627_v33 = vpop.permute.xlu0 %4626  ;;  %v13265_v27 = vld [vmem:[#allocation15_spill] sm:$0xff]  ;;  %v13266_v25 = vld [vmem:[#allocation14_spill] sm:$0xff] }
 0x569   :  { %v4805_v18 = vsel %vm4742_vm2, %v13264_v60, %v4627_v33  ;;  %v3453_v58 = vmul.f32 %v13266_v25, %v13265_v27  ;;  %v11794_v60 = vadd.f32 %v5769_v45, %v3437_v21  ;;  %v5770_v33 = vld [vmem:[%s12267_s1 + $0x1c8] sm:$0xff]  ;;  %v13272_v45 = vld [vmem:[#allocation69_spill] sm:$0xff] }
 0x56a   :  { %5044 = vst.msk [vmem:[%s12268_s5 + $0x1e0] sm:$0xff] %vm4983_vm6, %v4963_v31  ;;  %v4885_v19 = vmax.f32 %v4805_v18, 0.0  ;;  %v3439_v53 = vmul.f32 %v5770_v33, %v13269_v0  ;;  %v13273_v0 = vld [vmem:[#allocation35_spill] sm:$0xff] }
 0x56b   :  { %13268 = vst [vmem:[#allocation47_spill] sm:$0xff] %v11794_v60  ;;  %v4397_v25 = vadd.f32 %v11627_v32, %v11794_v60  ;;  %v11818_v34 = vadd.f32 %v13273_v0, %v3453_v58  ;;  %v13278_v58 = vld [vmem:[#allocation67_spill] sm:$0xff] }
 0x56c   :  { %v4965_v31 = vmin.f32 %v4885_v19, 32.0  ;;  %4608 = vrot.lane.b32.xlu1 %v4395_v11, %s5775_s16  ;;  %v11801_v18 = vpop.permute.xlu1 %4160  ;;  %v4631_v27 = vpop.permute.xlu0 %4630  ;;  %v13271_v19 = vld [vmem:[#allocation71_spill] sm:$0xff]  ;;  %v11823_v30 = vadd.f32 %v5771_v57, %v3439_v53  ;;  %v13277_v57 = vld [vmem:[#allocation72_spill] sm:$0xff] }
 0x56d   :  { %v4807_v21 = vsel %vm4742_vm2, %v13270_v44, %v4631_v27  ;;  %v3455_v33 = vmul.f32 %v13272_v45, %v13271_v19  ;;  %v5772_v27 = vld [vmem:[%s12267_s1 + $0x1d8] sm:$0xff]  ;;  %v13274_v44 = vld [vmem:[#allocation8_spill] sm:$0xff]  ;;  %v13275_v45 = vsub.f32 %v10864_v24, %v10869_v39  ;;  %v5773_v24 = vld [vmem:[%s12267_s1 + $0x1e8] sm:$0xff] }
 0x56e   :  { %5046 = vst.msk [vmem:[%s12268_s5 + $0x1f0] sm:$0xff] %vm4983_vm6, %v4965_v31  ;;  %v4887_v11 = vmax.f32 %v4807_v21, 0.0  ;;  %v3441_v47 = vmul.f32 %v5772_v27, %v13274_v44  ;;  %v4399_v0 = vadd.f32 %v11648_v46, %v11823_v30  ;;  %v13279_v39 = vld [vmem:[#allocation9_spill] sm:$0xff] }
 0x56f   :  { %v11847_v44 = vadd.f32 %v11104_v42, %v3455_v33  ;;  %v13280_v42 = vsub.f32 %v10902_v55, %v10907_v16 }
 0x570   :  { %v4967_v31 = vmin.f32 %v4887_v11, 32.0  ;;  %4612 = vrot.lane.b32.xlu1 %v4397_v25, %s5775_s16  ;;  %v11830_v21 = vpop.permute.xlu1 %4164  ;;  %v4635_v19 = vpop.permute.xlu0 %4634  ;;  %v13276_v11 = vld [vmem:[#allocation74_spill] sm:$0xff]  ;;  %v11850_v60 = vadd.f32 %v13278_v58, %v3441_v47 }
 0x571   :  { %v4809_v53 = vsel %vm4742_vm2, %v13275_v45, %v4635_v19  ;;  %v3457_v27 = vmul.f32 %v13277_v57, %v13276_v11  ;;  %v3443_v19 = vmul.f32 %v5773_v24, %v13279_v39  ;;  %v13283_v39 = vld [vmem:[#allocation70_spill] sm:$0xff] }
 0x572   :  { %5048 = vst.msk [vmem:[%s12268_s5 + $0x200] sm:$0xff] %vm4983_vm6, %v4967_v31  ;;  %v4889_v25 = vmax.f32 %v4809_v53, 0.0  ;;  %v4401_v33 = vadd.f32 %v11669_v2, %v11850_v60 }
 0x573   :  { %v11874_v24 = vadd.f32 %v11119_v5, %v3457_v27  ;;  %v11877_v11 = vadd.f32 %v13283_v39, %v3443_v19  ;;  %v13285_v19 = vld [vmem:[#allocation79_spill] sm:$0xff] }
 0x574   :  { %v4969_v45 = vmin.f32 %v4889_v25, 32.0  ;;  %4616 = vrot.lane.b32.xlu1 %v4399_v0, %s5775_s16  ;;  %v11857_v31 = vpop.permute.xlu1 %4168  ;;  %v4639_v53 = vpop.permute.xlu0 %4638  ;;  %v13281_v0 = vld [vmem:[#allocation34_spill] sm:$0xff] }
 0x575   :  { %v4811_v47 = vsel %vm4742_vm2, %v13280_v42, %v4639_v53  ;;  %v13282_v25 = vld [vmem:[#allocation18_spill] sm:$0xff]  ;;  %v4403_v5 = vadd.f32 %v11692_v40, %v11877_v11 }
 0x576   :  { %5050 = vst.msk [vmem:[%s12268_s5 + $0x210] sm:$0xff] %vm4983_vm6, %v4969_v45  ;;  %v4891_v58 = vmax.f32 %v4811_v47, 0.0  ;;  %v3459_v57 = vmul.f32 %v13282_v25, %v13281_v0  ;;  %v13284_v45 = vsub.f32 %v10940_v63, %v10945_v56 }
 0x578   :  { %v4971_v55 = vmin.f32 %v4891_v58, 32.0  ;;  %4620 = vrot.lane.b32.xlu1 %v4401_v33, %s5775_s16  ;;  %v11880_v16 = vpop.permute.xlu1 %4172  ;;  %v4643_v53 = vpop.permute.xlu0 %4642  ;;  %v13286_v33 = vld [vmem:[#allocation76_spill] sm:$0xff]  ;;  %v11897_v0 = vadd.f32 %v11138_v35, %v3459_v57  ;;  %v13288_v57 = vld [vmem:[#allocation81_spill] sm:$0xff] }
 0x579   :  { %v4337_v42 = vsub.f32 %v11874_v24, %v11880_v16  ;;  %v4813_v47 = vsel %vm4742_vm2, %v13284_v45, %v4643_v53  ;;  %v3461_v58 = vmul.f32 %v13286_v33, %v13285_v19  ;;  %v13287_v53 = vsub.f32 %v10978_v29, %v10983_v54 }
 0x57a   :  { %5052 = vst.msk [vmem:[%s12268_s5 + $0x220] sm:$0xff] %vm4983_vm6, %v4971_v55  ;;  %v4893_v27 = vmax.f32 %v4813_v47, 0.0  ;;  %v4405_v45 = vadd.f32 %v11718_v10, %v11706_v15  ;;  %v13289_v19 = vsub.f32 %v11016_v1, %v11021_v8  ;;  %v13290_v8 = vsub.f32 %v11054_v49, %v11059_v48 }
 0x57b   :  { %v11915_v47 = vadd.f32 %v13288_v57, %v3461_v58  ;;  %v4409_v57 = vadd.f32 %v11772_v51, %v11760_v14 }
 0x57c   :  { %v4973_v25 = vmin.f32 %v4893_v27, 32.0  ;;  %4624 = vrot.lane.b32.xlu1 %v4403_v5, %s5775_s16  ;;  %v11900_v63 = vpop.permute.xlu1 %4176  ;;  %v4647_v56 = vpop.permute.xlu0 %4646 }
 0x57d   :  { %v4339_v39 = vsub.f32 %v11897_v0, %v11900_v63  ;;  %v4815_v55 = vsel %vm4742_vm2, %v13287_v53, %v4647_v56  ;;  %v4263_v56 = vsub.f32 %v11190_v3, %v11057_v22 }
 0x57e   :  { %5054 = vst.msk [vmem:[%s12268_s5 + $0x230] sm:$0xff] %vm4983_vm6, %v4973_v25  ;;  %v4895_v35 = vmax.f32 %v4815_v55, 0.0  ;;  %v4407_v25 = vadd.f32 %v11746_v12, %v11734_v20 }
 0x580   :  { %v4975_v5 = vmin.f32 %v4895_v35, 32.0  ;;  %4628 = vrot.lane.b32.xlu1 %v4405_v45, %s5775_s16  ;;  %v11918_v27 = vpop.permute.xlu1 %4180  ;;  %v4651_v29 = vpop.permute.xlu0 %4650 }
 0x581   :  { %v4341_v54 = vsub.f32 %v11915_v47, %v11918_v27  ;;  %v4817_v33 = vsel %vm4742_vm2, %v13289_v19, %v4651_v29 }
 0x582   :  { %5056 = vst.msk [vmem:[%s12268_s5 + $0x240] sm:$0xff] %vm4983_vm6, %v4975_v5  ;;  %v4897_v58 = vmax.f32 %v4817_v33, 0.0  ;;  %v13291_v5 = vld [vmem:[#allocation82_spill] sm:$0xff] }
 0x583   :  { %v4265_v29 = vsub.f32 %v13291_v5, %v11081_v13 }
 0x584   :  { %v4977_v53 = vmin.f32 %v4897_v58, 32.0  ;;  %4632 = vrot.lane.b32.xlu1 %v4407_v25, %s5775_s16  ;;  %v4505_v55 = vpop.permute.xlu1 %4504  ;;  %v4655_v45 = vpop.permute.xlu0 %4654  ;;  %v13292_v58 = vsub.f32 %v11078_v7, %v11083_v28 }
 0x585   :  { %v4744_v1 = vsel %vm4742_vm2, %v4263_v56, %v4505_v55  ;;  %v4819_v35 = vsel %vm4742_vm2, %v13290_v8, %v4655_v45  ;;  %v13293_v45 = vld [vmem:[#allocation20_spill] sm:$0xff] }
 0x586   :  { %5058 = vst.msk [vmem:[%s12268_s5 + $0x250] sm:$0xff] %vm4983_vm6, %v4977_v53  ;;  %v4824_v22 = vmax.f32 %v4744_v1, 0.0  ;;  %v4899_v3 = vmax.f32 %v4819_v35, 0.0  ;;  %v4411_v53 = vadd.f32 %v11801_v18, %v11789_v43  ;;  %v4267_v7 = vsub.f32 %v13293_v45, %v11099_v17 }
 0x588   :  { %v4904_v19 = vmin.f32 %v4824_v22, 32.0  ;;  %v4979_v33 = vmin.f32 %v4899_v3, 32.0  ;;  %4636 = vrot.lane.b32.xlu1 %v4409_v57, %s5775_s16  ;;  %v4509_v49 = vpop.permute.xlu1 %4508  ;;  %v4659_v48 = vpop.permute.xlu0 %4658  ;;  %v4413_v57 = vadd.f32 %v11830_v21, %v11818_v34  ;;  %v13294_v22 = vld [vmem:[#allocation83_spill] sm:$0xff] }
 0x589   :  { %v4746_v25 = vsel %vm4742_vm2, %v4265_v29, %v4509_v49  ;;  %v4821_v56 = vsel %vm4742_vm2, %v13292_v58, %v4659_v48  ;;  %v4269_v3 = vsub.f32 %v13294_v22, %v11114_v23  ;;  %v13295_v48 = vld [vmem:[#allocation91_spill] sm:$0xff] }
 0x58a   :  { %4985 = vst.msk [vmem:[%s12268_s5 + $0x8] sm:$0xff] %vm4983_vm6, %v4904_v19  ;;  %5060 = vst.msk [vmem:[%s12268_s5 + $0x260] sm:$0xff] %vm4983_vm6, %v4979_v33  ;;  %v4826_v13 = vmax.f32 %v4746_v25, 0.0  ;;  %v4901_v55 = vmax.f32 %v4821_v56, 0.0  ;;  %v4415_v33 = vadd.f32 %v11857_v31, %v11847_v44  ;;  %v4271_v25 = vsub.f32 %v13295_v48, %v11133_v50 }
 0x58c   :  { %v4906_v28 = vmin.f32 %v4826_v13, 32.0  ;;  %v4981_v1 = vmin.f32 %v4901_v55, 32.0  ;;  %4640 = vrot.lane.b32.xlu1 %v4411_v53, %s5775_s16  ;;  %v4513_v8 = vpop.permute.xlu1 %4512  ;;  %v4417_v53 = vadd.f32 %v11880_v16, %v11874_v24  ;;  %v13296_v55 = vld [vmem:[#allocation84_spill] sm:$0xff] }
 0x58d   :  { %v4748_v35 = vsel %vm4742_vm2, %v4267_v7, %v4513_v8  ;;  %v4273_v45 = vsub.f32 %v13296_v55, %v11152_v52 }
 0x58e   :  { %4987 = vst.msk [vmem:[%s12268_s5 + $0x18] sm:$0xff] %vm4983_vm6, %v4906_v28  ;;  %5062 = vst.msk [vmem:[%s12268_s5 + $0x270] sm:$0xff] %vm4983_vm6, %v4981_v1  ;;  %v4828_v17 = vmax.f32 %v4748_v35, 0.0  ;;  %v4419_v1 = vadd.f32 %v11900_v63, %v11897_v0  ;;  %v13297_v35 = vld [vmem:[#allocation22_spill] sm:$0xff] }
 0x590   :  { %v4908_v5 = vmin.f32 %v4828_v17, 32.0  ;;  %4644 = vrot.lane.b32.xlu1 %v4413_v57, %s5775_s16  ;;  %v4517_v29 = vpop.permute.xlu1 %4516  ;;  %v4275_v57 = vsub.f32 %v13297_v35, %v11175_v9 }
 0x591   :  { %v4750_v19 = vsel %vm4742_vm2, %v4269_v3, %v4517_v29  ;;  %v4421_v3 = vadd.f32 %v11918_v27, %v11915_v47  ;;  %v13298_v29 = vld [vmem:[#allocation21_spill] sm:$0xff] }
 0x592   :  { %4989 = vst.msk [vmem:[%s12268_s5 + $0x28] sm:$0xff] %vm4983_vm6, %v4908_v5  ;;  %v4830_v49 = vmax.f32 %v4750_v19, 0.0  ;;  %v4277_v19 = vsub.f32 %v13298_v29, %v11197_v36  ;;  %v13303_v29 = vld [vmem:[#allocation103_spill] sm:$0xff] }
 0x594   :  { %v4910_v58 = vmin.f32 %v4830_v49, 32.0  ;;  %4648 = vrot.lane.b32.xlu1 %v4415_v33, %s5775_s16  ;;  %v4521_v23 = vpop.permute.xlu1 %4520 }
 0x595   :  { %v4752_v56 = vsel %vm4742_vm2, %v4271_v25, %v4521_v23  ;;  %v13299_v25 = vld [vmem:[#allocation87_spill] sm:$0xff] }
 0x596   :  { %4991 = vst.msk [vmem:[%s12268_s5 + $0x38] sm:$0xff] %vm4983_vm6, %v4910_v58  ;;  %v4832_v13 = vmax.f32 %v4752_v56, 0.0  ;;  %v4279_v58 = vsub.f32 %v13299_v25, %v11221_v41  ;;  %v13305_v25 = vld [vmem:[#allocation86_spill] sm:$0xff] }
 0x598   :  { %v4912_v7 = vmin.f32 %v4832_v13, 32.0  ;;  %4652 = vrot.lane.b32.xlu1 %v4417_v53, %s5775_s16  ;;  %v4525_v50 = vpop.permute.xlu1 %4524  ;;  %v13300_v13 = vld [vmem:[#allocation94_spill] sm:$0xff] }
 0x599   :  { %v4754_v28 = vsel %vm4742_vm2, %v4273_v45, %v4525_v50  ;;  %v4281_v55 = vsub.f32 %v13300_v13, %v11245_v4 }
 0x59a   :  { %4993 = vst.msk [vmem:[%s12268_s5 + $0x48] sm:$0xff] %vm4983_vm6, %v4912_v7  ;;  %v4834_v8 = vmax.f32 %v4754_v28, 0.0  ;;  %v13301_v28 = vld [vmem:[#allocation23_spill] sm:$0xff] }
 0x59c   :  { %v4914_v17 = vmin.f32 %v4834_v8, 32.0  ;;  %4656 = vrot.lane.b32.xlu1 %v4419_v1, %s5775_s16  ;;  %v4529_v52 = vpop.permute.xlu1 %4528  ;;  %v4283_v1 = vsub.f32 %v13301_v28, %v11269_v38 }
 0x59d   :  { %v4756_v22 = vsel %vm4742_vm2, %v4275_v57, %v4529_v52 }
 0x59e   :  { %4995 = vst.msk [vmem:[%s12268_s5 + $0x58] sm:$0xff] %vm4983_vm6, %v4914_v17  ;;  %v4836_v5 = vmax.f32 %v4756_v22, 0.0  ;;  %v13302_v17 = vld [vmem:[#allocation96_spill] sm:$0xff] }
 0x59f   :  { %v4285_v52 = vsub.f32 %v13302_v17, %v11291_v59 }
 0x5a0   :  { %v4916_v33 = vmin.f32 %v4836_v5, 32.0  ;;  %4660 = vrot.lane.b32.xlu1 %v4421_v3, %s5775_s16  ;;  %v4533_v9 = vpop.permute.xlu1 %4532 }
 0x5a1   :  { %v4758_v49 = vsel %vm4742_vm2, %v4277_v19, %v4533_v9  ;;  %v4287_v19 = vsub.f32 %v13303_v29, %v11312_v6 }
 0x5a2   :  { %4997 = vst.msk [vmem:[%s12268_s5 + $0x68] sm:$0xff] %vm4983_vm6, %v4916_v33  ;;  %v4838_v48 = vmax.f32 %v4758_v49, 0.0 }
 0x5a4   :  { %v4918_v23 = vmin.f32 %v4838_v48, 32.0  ;;  %v4537_v56 = vpop.permute.xlu1 %4536  ;;  %v13304_v48 = vld [vmem:[#allocation24_spill] sm:$0xff] }
 0x5a5   :  { %v4760_v53 = vsel %vm4742_vm2, %v4279_v58, %v4537_v56  ;;  %v4289_v58 = vsub.f32 %v13305_v25, %v13304_v48 }
 0x5a6   :  { %4999 = vst.msk [vmem:[%s12268_s5 + $0x78] sm:$0xff] %vm4983_vm6, %v4918_v23  ;;  %v4840_v36 = vmax.f32 %v4760_v53, 0.0 }
 0x5a8   :  { %v4920_v45 = vmin.f32 %v4840_v36, 32.0  ;;  %v4541_v7 = vpop.permute.xlu1 %4540  ;;  %v13306_v36 = vld [vmem:[#allocation88_spill] sm:$0xff] }
 0x5a9   :  { %v4762_v50 = vsel %vm4742_vm2, %v4281_v55, %v4541_v7  ;;  %v4291_v13 = vsub.f32 %v13306_v36, %v11354_v62 }
 0x5aa   :  { %5001 = vst.msk [vmem:[%s12268_s5 + $0x88] sm:$0xff] %vm4983_vm6, %v4920_v45  ;;  %v4842_v41 = vmax.f32 %v4762_v50, 0.0 }
 0x5ac   :  { %v4922_v8 = vmin.f32 %v4842_v41, 32.0  ;;  %v4545_v35 = vpop.permute.xlu1 %4544  ;;  %v4293_v41 = vsub.f32 %v11515_v37, %v11375_v26  ;;  %v13309_v37 = vld [vmem:[#allocation95_spill] sm:$0xff] }
 0x5ad   :  { %v4764_v57 = vsel %vm4742_vm2, %v4283_v1, %v4545_v35  ;;  %v13307_v35 = vld [vmem:[#allocation85_spill] sm:$0xff] }
 0x5ae   :  { %5003 = vst.msk [vmem:[%s12268_s5 + $0x98] sm:$0xff] %vm4983_vm6, %v4922_v8  ;;  %v4844_v4 = vmax.f32 %v4764_v57, 0.0  ;;  %v13308_v57 = vld [vmem:[#allocation38_spill] sm:$0xff] }
 0x5b0   :  { %v4924_v22 = vmin.f32 %v4844_v4, 32.0  ;;  %v4549_v3 = vpop.permute.xlu1 %4548  ;;  %v4295_v4 = vsub.f32 %v13308_v57, %v13307_v35  ;;  %v13317_v35 = vld [vmem:[#allocation31_spill] sm:$0xff]  ;;  %v13318_v57 = vld [vmem:[#allocation2_spill] sm:$0xff] }
 0x5b1   :  { %v4766_v5 = vsel %vm4742_vm2, %v4285_v52, %v4549_v3  ;;  %v13310_v3 = vld [vmem:[#allocation32_spill] sm:$0xff] }
 0x5b2   :  { %5005 = vst.msk [vmem:[%s12268_s5 + $0xa8] sm:$0xff] %vm4983_vm6, %v4924_v22  ;;  %v4846_v38 = vmax.f32 %v4766_v5, 0.0  ;;  %v4297_v5 = vsub.f32 %v13310_v3, %v13309_v37  ;;  %v13319_v37 = vld [vmem:[#allocation89_spill] sm:$0xff] }
 0x5b3   :  { %v13320_v3 = vld [vmem:[#allocation25_spill] sm:$0xff] }
 0x5b4   :  { %v4926_v33 = vmin.f32 %v4846_v38, 32.0  ;;  %v4553_v9 = vpop.permute.xlu1 %4552 }
 0x5b5   :  { %v4768_v49 = vsel %vm4742_vm2, %v4287_v19, %v4553_v9  ;;  %v13311_v9 = vld [vmem:[#allocation98_spill] sm:$0xff] }
 0x5b6   :  { %5007 = vst.msk [vmem:[%s12268_s5 + $0xb8] sm:$0xff] %vm4983_vm6, %v4926_v33  ;;  %v4848_v59 = vmax.f32 %v4768_v49, 0.0  ;;  %v13312_v49 = vld [vmem:[#allocation40_spill] sm:$0xff] }
 0x5b8   :  { %v4928_v23 = vmin.f32 %v4848_v59, 32.0  ;;  %v4557_v56 = vpop.permute.xlu1 %4556  ;;  %v4299_v59 = vsub.f32 %v13312_v49, %v13311_v9  ;;  %v13321_v9 = vld [vmem:[#allocation90_spill] sm:$0xff]  ;;  %v13322_v49 = vld [vmem:[#allocation3_spill] sm:$0xff] }
 0x5b9   :  { %v4770_v53 = vsel %vm4742_vm2, %v4289_v58, %v4557_v56  ;;  %v13313_v56 = vld [vmem:[#allocation30_spill] sm:$0xff] }
 0x5ba   :  { %5009 = vst.msk [vmem:[%s12268_s5 + $0xc8] sm:$0xff] %vm4983_vm6, %v4928_v23  ;;  %v4850_v6 = vmax.f32 %v4770_v53, 0.0  ;;  %v13314_v53 = vld [vmem:[#allocation41_spill] sm:$0xff] }
 0x5bc   :  { %v4930_v55 = vmin.f32 %v4850_v6, 32.0  ;;  %v4561_v45 = vpop.permute.xlu1 %4560  ;;  %v4301_v6 = vsub.f32 %v13314_v53, %v13313_v56  ;;  %v13323_v56 = vld [vmem:[#allocation36_spill] sm:$0xff]  ;;  %v13324_v53 = vld [vmem:[#allocation26_spill] sm:$0xff] }
 0x5bd   :  { %v4772_v7 = vsel %vm4742_vm2, %v4291_v13, %v4561_v45 }
 0x5be   :  { %5011 = vst.msk [vmem:[%s12268_s5 + $0xd8] sm:$0xff] %vm4983_vm6, %v4930_v55  ;;  %v4852_v50 = vmax.f32 %v4772_v7, 0.0  ;;  %v13315_v7 = vld [vmem:[#allocation37_spill] sm:$0xff] }
 0x5c0   :  { %v4932_v28 = vmin.f32 %v4852_v50, 32.0  ;;  %v4565_v1 = vpop.permute.xlu1 %4564  ;;  %v13316_v50 = vld [vmem:[#allocation93_spill] sm:$0xff] }
 0x5c1   :  { %v4774_v8 = vsel %vm4742_vm2, %v4293_v41, %v4565_v1  ;;  %v4303_v41 = vsub.f32 %v13316_v50, %v13315_v7  ;;  %v13325_v7 = vld [vmem:[#allocation92_spill] sm:$0xff]  ;;  %v13326_v50 = vld [vmem:[#allocation46_spill] sm:$0xff] }
 0x5c2   :  { %5013 = vst.msk [vmem:[%s12268_s5 + $0xe8] sm:$0xff] %vm4983_vm6, %v4932_v28  ;;  %v4854_v62 = vmax.f32 %v4774_v8, 0.0 }
 0x5c4   :  { %v4934_v17 = vmin.f32 %v4854_v62, 32.0  ;;  %v4569_v52 = vpop.permute.xlu1 %4568 }
 0x5c5   :  { %v4776_v22 = vsel %vm4742_vm2, %v4295_v4, %v4569_v52  ;;  %v4305_v4 = vsub.f32 %v13318_v57, %v13317_v35  ;;  %v13327_v35 = vld [vmem:[#allocation27_spill] sm:$0xff] }
 0x5c6   :  { %5015 = vst.msk [vmem:[%s12268_s5 + $0xf8] sm:$0xff] %vm4983_vm6, %v4934_v17  ;;  %v4856_v26 = vmax.f32 %v4776_v22, 0.0  ;;  %v4315_v57 = vsub.f32 %v13327_v35, %v11606_v61  ;;  %v13333_v35 = vsub.f32 %v11818_v34, %v11830_v21 }
 0x5c8   :  { %v4936_v38 = vmin.f32 %v4856_v26, 32.0  ;;  %v4573_v29 = vpop.permute.xlu1 %4572 }
 0x5c9   :  { %v4778_v19 = vsel %vm4742_vm2, %v4297_v5, %v4573_v29  ;;  %v4307_v5 = vsub.f32 %v13320_v3, %v13319_v37 }
 0x5ca   :  { %5017 = vst.msk [vmem:[%s12268_s5 + $0x108] sm:$0xff] %vm4983_vm6, %v4936_v38  ;;  %v4858_v33 = vmax.f32 %v4778_v19, 0.0 }
 0x5cc   :  { %v4938_v48 = vmin.f32 %v4858_v33, 32.0  ;;  %v4577_v25 = vpop.permute.xlu1 %4576 }
 0x5cd   :  { %v4780_v58 = vsel %vm4742_vm2, %v4299_v59, %v4577_v25  ;;  %v4309_v59 = vsub.f32 %v13322_v49, %v13321_v9  ;;  %v4321_v49 = vsub.f32 %v11850_v60, %v11669_v2 }
 0x5ce   :  { %5019 = vst.msk [vmem:[%s12268_s5 + $0x118] sm:$0xff] %vm4983_vm6, %v4938_v48  ;;  %v4860_v23 = vmax.f32 %v4780_v58, 0.0 }
 0x5d0   :  { %v4940_v36 = vmin.f32 %v4860_v23, 32.0  ;;  %v4581_v13 = vpop.permute.xlu1 %4580 }
 0x5d1   :  { %v4782_v55 = vsel %vm4742_vm2, %v4301_v6, %v4581_v13  ;;  %v4311_v6 = vsub.f32 %v13324_v53, %v13323_v56 }
 0x5d2   :  { %5021 = vst.msk [vmem:[%s12268_s5 + $0x128] sm:$0xff] %vm4983_vm6, %v4940_v36  ;;  %v4862_v45 = vmax.f32 %v4782_v55, 0.0 }
 0x5d4   :  { %v4942_v28 = vmin.f32 %v4862_v45, 32.0  ;;  %v4585_v1 = vpop.permute.xlu1 %4584 }
 0x5d5   :  { %v4784_v8 = vsel %vm4742_vm2, %v4303_v41, %v4585_v1  ;;  %v4313_v41 = vsub.f32 %v13326_v50, %v13325_v7  ;;  %v13331_v50 = vsub.f32 %v11760_v14, %v11772_v51 }
 0x5d6   :  { %5023 = vst.msk [vmem:[%s12268_s5 + $0x138] sm:$0xff] %vm4983_vm6, %v4942_v28  ;;  %v4864_v62 = vmax.f32 %v4784_v8, 0.0 }
 0x5d8   :  { %v4944_v17 = vmin.f32 %v4864_v62, 32.0  ;;  %v4589_v52 = vpop.permute.xlu1 %4588 }
 0x5d9   :  { %v4786_v22 = vsel %vm4742_vm2, %v4305_v4, %v4589_v52 }
 0x5da   :  { %5025 = vst.msk [vmem:[%s12268_s5 + $0x148] sm:$0xff] %vm4983_vm6, %v4944_v17  ;;  %v4866_v26 = vmax.f32 %v4786_v22, 0.0 }
 0x5dc   :  { %v4946_v38 = vmin.f32 %v4866_v26, 32.0  ;;  %v4593_v29 = vpop.permute.xlu1 %4592  ;;  %v13328_v26 = vld [vmem:[#allocation47_spill] sm:$0xff] }
 0x5dd   :  { %v4788_v19 = vsel %vm4742_vm2, %v4307_v5, %v4593_v29  ;;  %v4317_v37 = vsub.f32 %v13328_v26, %v11627_v32  ;;  %v4319_v29 = vsub.f32 %v11823_v30, %v11648_v46  ;;  %v4323_v30 = vsub.f32 %v11877_v11, %v11692_v40 }
 0x5de   :  { %5027 = vst.msk [vmem:[%s12268_s5 + $0x158] sm:$0xff] %vm4983_vm6, %v4946_v38  ;;  %v4868_v33 = vmax.f32 %v4788_v19, 0.0 }
 0x5e0   :  { %v4948_v48 = vmin.f32 %v4868_v33, 32.0  ;;  %v4597_v25 = vpop.permute.xlu1 %4596 }
 0x5e1   :  { %v4790_v58 = vsel %vm4742_vm2, %v4309_v59, %v4597_v25 }
 0x5e2   :  { %5029 = vst.msk [vmem:[%s12268_s5 + $0x168] sm:$0xff] %vm4983_vm6, %v4948_v48  ;;  %v4870_v23 = vmax.f32 %v4790_v58, 0.0 }
 0x5e4   :  { %v4950_v36 = vmin.f32 %v4870_v23, 32.0  ;;  %v4601_v13 = vpop.permute.xlu1 %4600 }
 0x5e5   :  { %v4792_v55 = vsel %vm4742_vm2, %v4311_v6, %v4601_v13  ;;  %v13329_v6 = vsub.f32 %v11706_v15, %v11718_v10 }
 0x5e6   :  { %5031 = vst.msk [vmem:[%s12268_s5 + $0x178] sm:$0xff] %vm4983_vm6, %v4950_v36  ;;  %v4872_v45 = vmax.f32 %v4792_v55, 0.0  ;;  %v13330_v55 = vsub.f32 %v11734_v20, %v11746_v12 }
 0x5e8   :  { %v4952_v28 = vmin.f32 %v4872_v45, 32.0  ;;  %v4605_v1 = vpop.permute.xlu1 %4604 }
 0x5e9   :  { %v4794_v8 = vsel %vm4742_vm2, %v4313_v41, %v4605_v1  ;;  %v13332_v1 = vsub.f32 %v11789_v43, %v11801_v18 }
 0x5ea   :  { %5033 = vst.msk [vmem:[%s12268_s5 + $0x188] sm:$0xff] %vm4983_vm6, %v4952_v28  ;;  %v4874_v62 = vmax.f32 %v4794_v8, 0.0 }
 0x5ec   :  { %v4954_v4 = vmin.f32 %v4874_v62, 32.0  ;;  %v4609_v17 = vpop.permute.xlu1 %4608 }
 0x5ed   :  { %v4796_v52 = vsel %vm4742_vm2, %v4315_v57, %v4609_v17  ;;  %v13334_v17 = vsub.f32 %v11847_v44, %v11857_v31 }
 0x5ee   :  { %5035 = vst.msk [vmem:[%s12268_s5 + $0x198] sm:$0xff] %vm4983_vm6, %v4954_v4  ;;  %v4876_v22 = vmax.f32 %v4796_v52, 0.0 }
 0x5f0   :  { %v4956_v3 = vmin.f32 %v4876_v22, 32.0  ;;  %v4613_v5 = vpop.permute.xlu1 %4612 }
 0x5f1   :  { %v4798_v38 = vsel %vm4742_vm2, %v4317_v37, %v4613_v5 }
 0x5f2   :  { %5037 = vst.msk [vmem:[%s12268_s5 + $0x1a8] sm:$0xff] %vm4983_vm6, %v4956_v3  ;;  %v4878_v61 = vmax.f32 %v4798_v38, 0.0 }
 0x5f4   :  { %v4958_v19 = vmin.f32 %v4878_v61, 32.0  ;;  %v4617_v33 = vpop.permute.xlu1 %4616 }
 0x5f5   :  { %v4800_v9 = vsel %vm4742_vm2, %v4319_v29, %v4617_v33 }
 0x5f6   :  { %5039 = vst.msk [vmem:[%s12268_s5 + $0x1b8] sm:$0xff] %vm4983_vm6, %v4958_v19  ;;  %v4880_v32 = vmax.f32 %v4800_v9, 0.0 }
 0x5f8   :  { %v4960_v59 = vmin.f32 %v4880_v32, 32.0  ;;  %v4621_v48 = vpop.permute.xlu1 %4620 }
 0x5f9   :  { %v4802_v25 = vsel %vm4742_vm2, %v4321_v49, %v4621_v48 }
 0x5fa   :  { %5041 = vst.msk [vmem:[%s12268_s5 + $0x1c8] sm:$0xff] %vm4983_vm6, %v4960_v59  ;;  %v4882_v46 = vmax.f32 %v4802_v25, 0.0 }
 0x5fc   :  { %v4962_v58 = vmin.f32 %v4882_v46, 32.0  ;;  %v4625_v23 = vpop.permute.xlu1 %4624 }
 0x5fd   :  { %v4804_v56 = vsel %vm4742_vm2, %v4323_v30, %v4625_v23 }
 0x5fe   :  { %5043 = vst.msk [vmem:[%s12268_s5 + $0x1d8] sm:$0xff] %vm4983_vm6, %v4962_v58  ;;  %v4884_v2 = vmax.f32 %v4804_v56, 0.0 }
 0x600   :  { %v4964_v60 = vmin.f32 %v4884_v2, 32.0  ;;  %v4629_v53 = vpop.permute.xlu1 %4628 }
 0x601   :  { %v4806_v36 = vsel %vm4742_vm2, %v13329_v6, %v4629_v53 }
 0x602   :  { %5045 = vst.msk [vmem:[%s12268_s5 + $0x1e8] sm:$0xff] %vm4983_vm6, %v4964_v60  ;;  %v4886_v40 = vmax.f32 %v4806_v36, 0.0 }
 0x604   :  { %v4966_v11 = vmin.f32 %v4886_v40, 32.0  ;;  %v4633_v13 = vpop.permute.xlu1 %4632 }
 0x605   :  { %v4808_v45 = vsel %vm4742_vm2, %v13330_v55, %v4633_v13 }
 0x606   :  { %5047 = vst.msk [vmem:[%s12268_s5 + $0x1f8] sm:$0xff] %vm4983_vm6, %v4966_v11  ;;  %v4888_v15 = vmax.f32 %v4808_v45, 0.0 }
 0x608   :  { %v4968_v10 = vmin.f32 %v4888_v15, 32.0  ;;  %v4637_v7 = vpop.permute.xlu1 %4636 }
 0x609   :  { %v4810_v41 = vsel %vm4742_vm2, %v13331_v50, %v4637_v7 }
 0x60a   :  { %5049 = vst.msk [vmem:[%s12268_s5 + $0x208] sm:$0xff] %vm4983_vm6, %v4968_v10  ;;  %v4890_v20 = vmax.f32 %v4810_v41, 0.0 }
 0x60c   :  { %v4970_v12 = vmin.f32 %v4890_v20, 32.0  ;;  %v4641_v28 = vpop.permute.xlu1 %4640 }
 0x60d   :  { %v4812_v8 = vsel %vm4742_vm2, %v13332_v1, %v4641_v28 }
 0x60e   :  { %5051 = vst.msk [vmem:[%s12268_s5 + $0x218] sm:$0xff] %vm4983_vm6, %v4970_v12  ;;  %v4892_v14 = vmax.f32 %v4812_v8, 0.0 }
 0x610   :  { %v4972_v51 = vmin.f32 %v4892_v14, 32.0  ;;  %v4645_v62 = vpop.permute.xlu1 %4644 }
 0x611   :  { %v4814_v57 = vsel %vm4742_vm2, %v13333_v35, %v4645_v62 }
 0x612   :  { %5053 = vst.msk [vmem:[%s12268_s5 + $0x228] sm:$0xff] %vm4983_vm6, %v4972_v51  ;;  %v4894_v43 = vmax.f32 %v4814_v57, 0.0 }
 0x614   :  { %v4974_v18 = vmin.f32 %v4894_v43, 32.0  ;;  %v4649_v4 = vpop.permute.xlu1 %4648 }
 0x615   :  { %v4816_v52 = vsel %vm4742_vm2, %v13334_v17, %v4649_v4 }
 0x616   :  { %5055 = vst.msk [vmem:[%s12268_s5 + $0x238] sm:$0xff] %vm4983_vm6, %v4974_v18  ;;  %v4896_v34 = vmax.f32 %v4816_v52, 0.0 }
 0x618   :  { %v4976_v21 = vmin.f32 %v4896_v34, 32.0  ;;  %v4653_v22 = vpop.permute.xlu1 %4652 }
 0x619   :  { %v4818_v26 = vsel %vm4742_vm2, %v4337_v42, %v4653_v22 }
 0x61a   :  { %5057 = vst.msk [vmem:[%s12268_s5 + $0x248] sm:$0xff] %vm4983_vm6, %v4976_v21  ;;  %v4898_v44 = vmax.f32 %v4818_v26, 0.0 }
 0x61c   :  { %v4978_v31 = vmin.f32 %v4898_v44, 32.0  ;;  %v4657_v37 = vpop.permute.xlu1 %4656 }
 0x61d   :  { %v4820_v3 = vsel %vm4742_vm2, %v4339_v39, %v4657_v37 }
 0x61e   :  { %5059 = vst.msk [vmem:[%s12268_s5 + $0x258] sm:$0xff] %vm4983_vm6, %v4978_v31  ;;  %v4900_v24 = vmax.f32 %v4820_v3, 0.0 }
 0x620   :  { %v4980_v16 = vmin.f32 %v4900_v24, 32.0  ;;  %v4661_v42 = vpop.permute.xlu1 %4660 }
 0x621   :  { %v4822_v5 = vsel %vm4742_vm2, %v4341_v54, %v4661_v42 }
 0x622   :  { %5061 = vst.msk [vmem:[%s12268_s5 + $0x268] sm:$0xff] %vm4983_vm6, %v4980_v16  ;;  %v4902_v0 = vmax.f32 %v4822_v5, 0.0 }
 0x624   :  { %v4982_v63 = vmin.f32 %v4902_v0, 32.0 }
 0x626   :  { %5063 = vst.msk [vmem:[%s12268_s5 + $0x278] sm:$0xff] %vm4983_vm6, %v4982_v63 }

// kernel: squeeze.9
= control target key start
LH: loop header
LB: loop body
LE: loop exit
PB: predicated region body
PF: predicated region fallthrough
CT: control target
= control target key end

     0   :  { %vm4_vm0 = vcmask 523264   ;;  %vm20_vm1 = vcmask 1048064   ;;  %s79_s0 = inlined_call_operand.vmem [shape: s32[640], index: 0, kind: input, shape index: {}]   ;;  %s80_s1 = inlined_call_operand.vmem [shape: s32[2,320], index: 1, kind: output, shape index: {}]  }
   0x1   :  { %v42_v0 = vld [vmem:[%s79_s0 + $0x2] sm:$0x7]   ;;  %v7_v4 = vld [vmem:[%s79_s0] sm:$0x3]  }
   0x2   :  { %v43_v1 = vld [vmem:[%s79_s0 + $0x3] sm:$0x3]   ;;  %v41_v3 = vld [vmem:[%s79_s0 + $0x2] sm:$0x1]   ;;  %s47_s0 = smov 64  }
   0x3   :  { %v14_v2 = vsel %vm4_vm0, %v43_v1, %v42_v0  ;;  %6 = vst.msk [vmem:[#allocation0 + $0x10] sm:$0x1] %vm4_vm0, %v41_v3   ;;  %8 = vst [vmem:[#allocation0] ss:$8 sm:$0x3] %v7_v4  }
   0x4   :  { %15 = vrot.lane.b32.xlu0 %v14_v2, %s47_s0 }
  0x76   :  { %v16_v5 = vpop.permute.xlu0 %15  }
  0x77   :  { %19 = vst.msk [vmem:[#allocation0 + $0x1] ss:$8 sm:$0x7] %vm4_vm0, %v16_v5  }
  0x78   :  { %22 = vst.msk [vmem:[#allocation0 + $0x1] ss:$8 sm:$0x3] %vm20_vm1, %v16_v5  }
  0x7e   :  { %v35_v6 = vld [vmem:[#allocation0 + $0x10] sm:$0x3] }
  0x7f   :  { %v26_v7 = vld [vmem:[#allocation0] sm:$0x3]  ;;  %v30_v8 = vld [vmem:[#allocation0 + $0x8] sm:$0x3]  ;;  %45 = vst [vmem:[%s80_s1 + $0x4] sm:$0x3] %v35_v6 }
  0x80   :  { %28 = vst [vmem:[%s80_s1] sm:$0x3] %v26_v7  ;;  %44 = vst [vmem:[%s80_s1 + $0x2] sm:$0x3] %v30_v8 }

</bundles_post_ra>
